<compile_context>
chip_gen: v7x
topology: tpu7x:2x2x1
jax: 0.10.0
libtpu: 0.0.40
codegen_flags: <defaults>
</compile_context>

<pallas_src>
import functools

import jax
import jax.numpy as jnp
from jax.experimental import pallas as pl
from jax.experimental.pallas import tpu as pltpu


def _round_up(x, m):
    return (x + m - 1) // m * m


# ----------------------------------------------------------------------------
# Fused Pallas kernel (one grid step == one batch element)
# ----------------------------------------------------------------------------
def _fused_kernel(patches_ref,
                  w0_ref, b0_ref,
                  w1_ref, b1_ref,
                  wsc_ref, bsc_ref,
                  w2_ref, b2_ref,
                  fc1w_ref, fc1b_ref, fc2w_ref, fc2b_ref,
                  out_ref, ee_ref,
                  a1_ref, a2_ref,
                  *, H, W, Wp, base, halo, npack):
    """dx-unrolled activation layout:

    a{1,2}_ref are (P, 3*C) slabs.  Column block dx holds the activation shifted
    by (dx-1) rows:   A3[q, dx*C:(dx+1)*C] == h[q - (base + 1 - dx)]
    so a 3x3 SAME conv is   sum_dy  A3[base+(dy-1)*Wp : +HW2, :] @ W3[dy]
    i.e. three sublane-aligned fat matmuls with K = 3*C.  Pad columns of h are
    zeroed by `mask`; halo rows of the slabs are re-zeroed each step.
    """
    HW2 = H * Wp
    P = a1_ref.shape[0]

    # ---- pad-column mask generated in-kernel (no DMA'd mask input) ----------
    col = jax.lax.broadcasted_iota(jnp.int32, (HW2, 1), 0).astype(jnp.float32)
    row = jnp.floor((col + 0.5) * (1.0 / Wp))          # exact row index
    mask = ((col - row * Wp) < W).astype(jnp.float32)  # 1.0 real cols, 0.0 pad

    # ---- zero only the halo rows; interior rows are fully rewritten ---------
    for ref in (a1_ref, a2_ref):
        c = ref.shape[1]
        ref[pl.ds(0, halo), :] = jnp.zeros((halo, c), jnp.float32)
        ref[pl.ds(P - halo, halo), :] = jnp.zeros((halo, c), jnp.float32)

    def scatter3(a_ref, h):
        """Write h (HW2, C) into the dx-unrolled slab (3 shifted stores)."""
        c = h.shape[1]
        for dx in range(3):
            a_ref[pl.ds(base + 1 - dx, HW2), dx * c:(dx + 1) * c] = h

    def conv3x3(a_ref, w_ref):
        """3 aligned fat matmuls (one per dy), K = 3*C."""
        acc = None
        for dy in range(3):
            lhs = a_ref[pl.ds(base + (dy - 1) * Wp, HW2), :]
            part = jnp.dot(lhs, w_ref[dy], preferred_element_type=jnp.float32)
            acc = part if acc is None else acc + part
        return acc

    # ---- stem: relu(bn1(conv1(x))) via host-side im2col (single K=27 matmul)
    h0 = jnp.dot(patches_ref[0], w0_ref[...], preferred_element_type=jnp.float32)
    h0 = jnp.maximum(h0 + b0_ref[...], 0.0) * mask
    scatter3(a1_ref, h0)

    # ---- 1x1 shortcut + bn (computed from the live h0 value) ----------------
    sc = jnp.dot(h0, wsc_ref[...], preferred_element_type=jnp.float32) + bsc_ref[...]

    # ---- BasicBlock conv1 + bn + relu ----------------------------------------
    h1 = jnp.maximum(conv3x3(a1_ref, w1_ref) + b1_ref[...], 0.0) * mask
    scatter3(a2_ref, h1)

    # ---- BasicBlock conv2 + bn + residual + relu ------------------------------
    y = jnp.maximum(conv3x3(a2_ref, w2_ref) + b2_ref[...] + sc, 0.0) * mask

    # ---- lane-dense output: pack npack row-chunks along lanes (last dim 128) --
    if npack > 1:
        seg = HW2 // npack
        packed = jnp.concatenate(
            [y[i * seg:(i + 1) * seg, :] for i in range(npack)], axis=-1)
        out_ref[0] = packed.astype(out_ref.dtype)
    else:
        out_ref[0] = y.astype(out_ref.dtype)

    # ---- early-exit head fused into the epilogue ------------------------------
    # masked pad columns of y are exactly zero, so row-sum / (H*W) == avg-pool.
    pooled = jnp.sum(y, axis=0, keepdims=True) * (1.0 / (H * W))
    hfc = jnp.maximum(jnp.dot(pooled, fc1w_ref[...],
                              preferred_element_type=jnp.float32) + fc1b_ref[...], 0.0)
    ee = jnp.dot(hfc, fc2w_ref[...],
                 preferred_element_type=jnp.float32) + fc2b_ref[...]
    ee_ref[0] = ee.astype(ee_ref.dtype)


# ----------------------------------------------------------------------------
# Parameter folding + wrapper (single pallas_call)
# ----------------------------------------------------------------------------
def fold_bn(gamma, beta, mean, var, eps=1e-5):
    scale = gamma / jnp.sqrt(var + eps)
    return scale, beta - mean * scale


def head_network_part1(x_nchw, p):
    """Forward pass. x_nchw: (N, 3, H, W). Returns (out NCHW, ee1_out)."""
    x = jnp.transpose(x_nchw, (0, 2, 3, 1)).astype(jnp.float32)      # -> NHWC
    N, H, W, Cin = x.shape

    Wp = _round_up(W + 2, 8)            # padded row pitch (sublane aligned)
    HW2 = H * Wp
    base = _round_up(Wp + 1, 8)         # slab row of output flat index 0
    halo = _round_up(base + 1, 8)       # halo band zeroed each step
    P_alloc = base + Wp + HW2           # multiple of 8; covers all halo reads

    # ---- fold BN (eval mode) into weights / biases ----
    C1 = p["conv1_w"].shape[-1]
    C2 = p["blk_conv1_w"].shape[-1]
    s0, b0 = fold_bn(*p["bn1"])
    K0 = _round_up(9 * Cin, 8)
    w0 = jnp.pad((p["conv1_w"] * s0).reshape(9 * Cin, C1),
                 ((0, K0 - 9 * Cin), (0, 0))).astype(jnp.float32)
    s1, bb1 = fold_bn(*p["blk_bn1"])
    w1 = (p["blk_conv1_w"] * s1).reshape(3, 3 * C1, C2).astype(jnp.float32)
    s2, bb2 = fold_bn(*p["blk_bn2"])
    w2 = (p["blk_conv2_w"] * s2).reshape(3, 3 * C2, C2).astype(jnp.float32)
    ssc, bsc = fold_bn(*p["blk_sc_bn"])
    wsc = (p["blk_sc_w"] * ssc).astype(jnp.float32)

    hidden = p["fc1_w"].shape[1]
    nc = p["fc2_w"].shape[1]

    # ---- host-side im2col for the tiny 3-channel stem (K = 9*Cin) ----
    xpad = jnp.pad(x, ((0, 0), (1, 1), (1, Wp + 1 - W), (0, 0)))
    taps = [xpad[:, dy:dy + H, dx:dx + Wp, :] for dy in range(3) for dx in range(3)]
    patches = jnp.concatenate(taps, axis=-1).reshape(N, HW2, 9 * Cin)
    patches = jnp.pad(patches, ((0, 0), (0, 0), (0, K0 - 9 * Cin)))

    # lane-dense output packing factor (2 for C2=64 -> 128-wide stores)
    npack = 128 // C2 if (C2 < 128 and 128 % C2 == 0
                          and HW2 % (128 // C2) == 0) else 1
    out_rows, out_cols = HW2 // npack, C2 * npack

    rowv = lambda v: v.reshape(1, -1).astype(jnp.float32)
    kernel = functools.partial(_fused_kernel, H=H, W=W, Wp=Wp, base=base,
                               halo=halo, npack=npack)

    out_slab, ee = pl.pallas_call(
        kernel,
        out_shape=(jax.ShapeDtypeStruct((N, out_rows, out_cols), jnp.float32),
                   jax.ShapeDtypeStruct((N, 1, nc), jnp.float32)),
        grid=(N,),
        in_specs=[
            pl.BlockSpec((1, HW2, K0), lambda n: (n, 0, 0)),         # stem patches
            pl.BlockSpec((K0, C1), lambda n: (0, 0)),                # w0 (BN folded)
            pl.BlockSpec((1, C1), lambda n: (0, 0)),                 # b0
            pl.BlockSpec((3, 3 * C1, C2), lambda n: (0, 0, 0)),      # blk conv1 w (dx-unrolled K)
            pl.BlockSpec((1, C2), lambda n: (0, 0)),                 # blk conv1 b
            pl.BlockSpec((C1, C2), lambda n: (0, 0)),                # 1x1 shortcut w
            pl.BlockSpec((1, C2), lambda n: (0, 0)),                 # shortcut b
            pl.BlockSpec((3, 3 * C2, C2), lambda n: (0, 0, 0)),      # blk conv2 w (dx-unrolled K)
            pl.BlockSpec((1, C2), lambda n: (0, 0)),                 # blk conv2 b
            pl.BlockSpec((C2, hidden), lambda n: (0, 0)),            # fc1 w
            pl.BlockSpec((1, hidden), lambda n: (0, 0)),             # fc1 b
            pl.BlockSpec((hidden, nc), lambda n: (0, 0)),            # fc2 w
            pl.BlockSpec((1, nc), lambda n: (0, 0)),                 # fc2 b
        ],
        out_specs=(
            pl.BlockSpec((1, out_rows, out_cols), lambda n: (n, 0, 0)),
            pl.BlockSpec((1, 1, nc), lambda n: (n, 0, 0)),
        ),
        scratch_shapes=[
            pltpu.VMEM((P_alloc, 3 * C1), jnp.float32),              # stem-output slab
            pltpu.VMEM((P_alloc, 3 * C2), jnp.float32),              # conv1-output slab
        ],
        compiler_params=pltpu.CompilerParams(dimension_semantics=("parallel",)),
    )(patches, w0, rowv(b0), w1, rowv(bb1), wsc, rowv(bsc), w2, rowv(bb2),
      p["fc1_w"].astype(jnp.float32), rowv(p["fc1_b"]),
      p["fc2_w"].astype(jnp.float32), rowv(p["fc2_b"]))

    # undo lane packing, drop pad columns, back to NCHW
    if npack > 1:
        y_full = jnp.concatenate([out_slab[:, :, i * C2:(i + 1) * C2]
                                  for i in range(npack)], axis=1)    # (N, HW2, C2)
    else:
        y_full = out_slab
    out = y_full.reshape(N, H, Wp, C2)[:, :, :W, :]
    return jnp.transpose(out, (0, 3, 1, 2)), ee.reshape(N, nc)


# ----------------------------------------------------------------------------
# Deterministic parameters
# ----------------------------------------------------------------------------
def init_params(key, in_planes=16, planes=64, num_classes=10):
    ks = jax.random.split(key, 16)

    def bn(k, c):
        k1, k2, k3, k4 = jax.random.split(k, 4)
        return (jax.random.uniform(k1, (c,), minval=0.5, maxval=1.5),   # gamma
                0.1 * jax.random.normal(k2, (c,)),                      # beta
                0.1 * jax.random.normal(k3, (c,)),                      # running_mean
                jax.random.uniform(k4, (c,), minval=0.5, maxval=1.5))   # running_var

    return {
        "conv1_w": 0.1 * jax.random.normal(ks[0], (3, 3, 3, in_planes)),
        "bn1": bn(ks[1], in_planes),
        "blk_conv1_w": 0.1 * jax.random.normal(ks[2], (3, 3, in_planes, planes)),
        "blk_bn1": bn(ks[3], planes),
        "blk_conv2_w": 0.1 * jax.random.normal(ks[4], (3, 3, planes, planes)),
        "blk_bn2": bn(ks[5], planes),
        "blk_sc_w": 0.1 * jax.random.normal(ks[6], (in_planes, planes)),
        "blk_sc_bn": bn(ks[7], planes),
        "fc1_w": 0.1 * jax.random.normal(ks[8], (planes, 64)),
        "fc1_b": 0.1 * jax.random.normal(ks[9], (64,)),
        "fc2_w": 0.1 * jax.random.normal(ks[10], (64, num_classes)),
        "fc2_b": 0.1 * jax.random.normal(ks[11], (num_classes,)),
    }


# ----------------------------------------------------------------------------
# Pure-JAX reference (correctness check only)
# ----------------------------------------------------------------------------
def _ref_conv(x, w):   # NHWC, HWIO, SAME, stride 1
    return jax.lax.conv_general_dilated(
        x, w, (1, 1), "SAME", dimension_numbers=("NHWC", "HWIO", "NHWC"))


def ref_forward(x_nchw, p):
    x = jnp.transpose(x_nchw, (0, 2, 3, 1)).astype(jnp.float32)
    s, b = fold_bn(*p["bn1"])
    out = jnp.maximum(_ref_conv(x, p["conv1_w"]) * s + b, 0.0)
    s1, b1 = fold_bn(*p["blk_bn1"])
    h = jnp.maximum(_ref_conv(out, p["blk_conv1_w"]) * s1 + b1, 0.0)
    ssc, bsc = fold_bn(*p["blk_sc_bn"])
    sc = jnp.einsum("nhwc,cd->nhwd", out, p["blk_sc_w"]) * ssc + bsc
    s2, b2 = fold_bn(*p["blk_bn2"])
    out = jnp.maximum(_ref_conv(h, p["blk_conv2_w"]) * s2 + b2 + sc, 0.0)
    pooled = jnp.mean(out, axis=(1, 2))
    hdn = jnp.maximum(pooled @ p["fc1_w"] + p["fc1_b"], 0.0)
    ee1 = hdn @ p["fc2_w"] + p["fc2_b"]
    return jnp.transpose(out, (0, 3, 1, 2)), ee1


# ----------------------------------------------------------------------------
if __name__ == "__main__":
    key = jax.random.PRNGKey(0)
    kx, kp = jax.random.split(key)

    N, H, W = 2, 16, 16
    in_planes, planes, num_classes = 16, 64, 10

    x = jax.random.normal(kx, (N, 3, H, W), dtype=jnp.float32)   # NCHW like PyTorch
    params = init_params(kp, in_planes=in_planes, planes=planes,
                         num_classes=num_classes)

    out, ee1 = jax.jit(head_network_part1)(x, params)
    out = jax.block_until_ready(out)
    ee1 = jax.block_until_ready(ee1)

    assert out.shape == (N, planes, H, W), out.shape
    assert ee1.shape == (N, num_classes), ee1.shape

    ref_out, ref_ee1 = ref_forward(x, params)
    assert jnp.allclose(out, ref_out, atol=1e-3, rtol=1e-3), \
        float(jnp.max(jnp.abs(out - ref_out)))
    assert jnp.allclose(ee1, ref_ee1, atol=1e-3, rtol=1e-3), \
        float(jnp.max(jnp.abs(ee1 - ref_ee1)))

    print("KERNEL_OK")
</pallas_src>

<mosaic_0001>
module attributes {stable_mosaic.version = 11 : i64} {
  func.func @_fused_kernel(%arg0: i32, %arg1: memref<1x384x32xf32, #tpu.memory_space<vmem>>, %arg2: memref<32x16xf32, #tpu.memory_space<vmem>>, %arg3: memref<1x16xf32, #tpu.memory_space<vmem>>, %arg4: memref<3x48x64xf32, #tpu.memory_space<vmem>>, %arg5: memref<1x64xf32, #tpu.memory_space<vmem>>, %arg6: memref<16x64xf32, #tpu.memory_space<vmem>>, %arg7: memref<1x64xf32, #tpu.memory_space<vmem>>, %arg8: memref<3x192x64xf32, #tpu.memory_space<vmem>>, %arg9: memref<1x64xf32, #tpu.memory_space<vmem>>, %arg10: memref<64x64xf32, #tpu.memory_space<vmem>>, %arg11: memref<1x64xf32, #tpu.memory_space<vmem>>, %arg12: memref<64x10xf32, #tpu.memory_space<vmem>>, %arg13: memref<1x10xf32, #tpu.memory_space<vmem>>, %arg14: memref<1x192x128xf32, #tpu.memory_space<vmem>>, %arg15: memref<1x1x10xf32, #tpu.memory_space<vmem>>, %arg16: memref<440x48xf32, #tpu.memory_space<vmem>>, %arg17: memref<440x192xf32, #tpu.memory_space<vmem>>) attributes {dimension_semantics = [#tpu.dimension_semantics<parallel>], iteration_bounds = array<i64: 2>, scalar_prefetch = 0 : i64, scratch_operands = 2 : i64, tpu.core_type = #tpu.core_type<tc>, window_params = [{transform_indices = @transform_0, window_bounds = array<i64: 1, 384, 32>}, {pipeline_mode = #tpu.pipeline_mode<synchronous>, transform_indices = @transform_1, window_bounds = array<i64: 32, 16>}, {pipeline_mode = #tpu.pipeline_mode<synchronous>, transform_indices = @transform_2, window_bounds = array<i64: 1, 16>}, {pipeline_mode = #tpu.pipeline_mode<synchronous>, transform_indices = @transform_3, window_bounds = array<i64: 3, 48, 64>}, {pipeline_mode = #tpu.pipeline_mode<synchronous>, transform_indices = @transform_4, window_bounds = array<i64: 1, 64>}, {pipeline_mode = #tpu.pipeline_mode<synchronous>, transform_indices = @transform_5, window_bounds = array<i64: 16, 64>}, {pipeline_mode = #tpu.pipeline_mode<synchronous>, transform_indices = @transform_6, window_bounds = array<i64: 1, 64>}, {pipeline_mode = #tpu.pipeline_mode<synchronous>, transform_indices = @transform_7, window_bounds = array<i64: 3, 192, 64>}, {pipeline_mode = #tpu.pipeline_mode<synchronous>, transform_indices = @transform_8, window_bounds = array<i64: 1, 64>}, {pipeline_mode = #tpu.pipeline_mode<synchronous>, transform_indices = @transform_9, window_bounds = array<i64: 64, 64>}, {pipeline_mode = #tpu.pipeline_mode<synchronous>, transform_indices = @transform_10, window_bounds = array<i64: 1, 64>}, {pipeline_mode = #tpu.pipeline_mode<synchronous>, transform_indices = @transform_11, window_bounds = array<i64: 64, 10>}, {pipeline_mode = #tpu.pipeline_mode<synchronous>, transform_indices = @transform_12, window_bounds = array<i64: 1, 10>}, {transform_indices = @transform_13, window_bounds = array<i64: 1, 192, 128>}, {transform_indices = @transform_14, window_bounds = array<i64: 1, 1, 10>}]} {
    %0 = tpu.iota {dimensions = array<i32: 0>} : vector<384x1xi32>
    %1 = arith.sitofp %0 : vector<384x1xi32> to vector<384x1xf32>
    %cst = arith.constant 5.000000e-01 : f32
    %2 = vector.broadcast %cst : f32 to vector<384x1xf32>
    %3 = arith.addf %1, %2 : vector<384x1xf32>
    %cst_0 = arith.constant 0.0416666679 : f32
    %4 = vector.broadcast %cst_0 : f32 to vector<384x1xf32>
    %5 = arith.mulf %3, %4 : vector<384x1xf32>
    %6 = math.floor %5 : vector<384x1xf32>
    %cst_1 = arith.constant 2.400000e+01 : f32
    %7 = vector.broadcast %cst_1 : f32 to vector<384x1xf32>
    %8 = arith.mulf %6, %7 : vector<384x1xf32>
    %9 = arith.subf %1, %8 : vector<384x1xf32>
    %cst_2 = arith.constant 1.600000e+01 : f32
    %10 = vector.broadcast %cst_2 : f32 to vector<384x1xf32>
    %11 = arith.cmpf olt, %9, %10 : vector<384x1xf32>
    %12 = arith.extui %11 : vector<384x1xi1> to vector<384x1xi32>
    %13 = arith.sitofp %12 : vector<384x1xi32> to vector<384x1xf32>
    %cst_3 = arith.constant 0.000000e+00 : f32
    %14 = vector.broadcast %cst_3 : f32 to vector<40x48xf32>
    %c0 = arith.constant 0 : index
    %c0_4 = arith.constant 0 : index
    %15 = vector.load %arg16[%c0, %c0_4] : memref<440x48xf32, #tpu.memory_space<vmem>>, vector<40x48xf32>
    tpu.vector_store %arg16[%c0, %c0_4], %14 {strides = array<i32>} : memref<440x48xf32, #tpu.memory_space<vmem>>, vector<40x48xf32>,
    %cst_5 = arith.constant 0.000000e+00 : f32
    %16 = vector.broadcast %cst_5 : f32 to vector<40x48xf32>
    %c400 = arith.constant 400 : index
    %c0_6 = arith.constant 0 : index
    %17 = vector.load %arg16[%c400, %c0_6] : memref<440x48xf32, #tpu.memory_space<vmem>>, vector<40x48xf32>
    tpu.vector_store %arg16[%c400, %c0_6], %16 {strides = array<i32>} : memref<440x48xf32, #tpu.memory_space<vmem>>, vector<40x48xf32>,
    %cst_7 = arith.constant 0.000000e+00 : f32
    %18 = vector.broadcast %cst_7 : f32 to vector<40x192xf32>
    %c0_8 = arith.constant 0 : index
    %c0_9 = arith.constant 0 : index
    %19 = vector.load %arg17[%c0_8, %c0_9] : memref<440x192xf32, #tpu.memory_space<vmem>>, vector<40x192xf32>
    tpu.vector_store %arg17[%c0_8, %c0_9], %18 {strides = array<i32>} : memref<440x192xf32, #tpu.memory_space<vmem>>, vector<40x192xf32>,
    %cst_10 = arith.constant 0.000000e+00 : f32
    %20 = vector.broadcast %cst_10 : f32 to vector<40x192xf32>
    %c400_11 = arith.constant 400 : index
    %c0_12 = arith.constant 0 : index
    %21 = vector.load %arg17[%c400_11, %c0_12] : memref<440x192xf32, #tpu.memory_space<vmem>>, vector<40x192xf32>
    tpu.vector_store %arg17[%c400_11, %c0_12], %20 {strides = array<i32>} : memref<440x192xf32, #tpu.memory_space<vmem>>, vector<40x192xf32>,
    %c0_13 = arith.constant 0 : index
    %c0_14 = arith.constant 0 : index
    %c0_15 = arith.constant 0 : index
    %22 = vector.load %arg1[%c0_13, %c0_14, %c0_15] : memref<1x384x32xf32, #tpu.memory_space<vmem>>, vector<1x384x32xf32>
    %23 = vector.shape_cast %22 : vector<1x384x32xf32> to vector<384x32xf32>
    %c0_16 = arith.constant 0 : index
    %c0_17 = arith.constant 0 : index
    %24 = vector.load %arg2[%c0_16, %c0_17] : memref<32x16xf32, #tpu.memory_space<vmem>>, vector<32x16xf32>
    %cst_18 = arith.constant dense<0.000000e+00> : vector<384x16xf32>
    %25 = tpu.matmul %23, %24, %cst_18 {dimension_numbers = #tpu.dot_dimension_numbers<[1], [0], [0], [1], [0, 0, 1, 1], [], []>} : vector<384x32xf32>, vector<32x16xf32>, vector<384x16xf32> -> vector<384x16xf32>
    %c0_19 = arith.constant 0 : index
    %c0_20 = arith.constant 0 : index
    %26 = vector.load %arg3[%c0_19, %c0_20] : memref<1x16xf32, #tpu.memory_space<vmem>>, vector<1x16xf32>
    %27 = vector.broadcast %26 : vector<1x16xf32> to vector<384x16xf32>
    %28 = arith.addf %25, %27 : vector<384x16xf32>
    %cst_21 = arith.constant 0.000000e+00 : f32
    %29 = vector.broadcast %cst_21 : f32 to vector<384x16xf32>
    %30 = arith.maximumf %28, %29 : vector<384x16xf32>
    %31 = vector.broadcast %13 : vector<384x1xf32> to vector<384x16xf32>
    %32 = arith.mulf %30, %31 : vector<384x16xf32>
    %c33 = arith.constant 33 : index
    %c0_22 = arith.constant 0 : index
    %33 = vector.load %arg16[%c33, %c0_22] : memref<440x48xf32, #tpu.memory_space<vmem>>, vector<384x16xf32>
    tpu.vector_store %arg16[%c33, %c0_22], %32 {strides = array<i32>} : memref<440x48xf32, #tpu.memory_space<vmem>>, vector<384x16xf32>,
    %c32 = arith.constant 32 : index
    %c16 = arith.constant 16 : index
    %34 = vector.load %arg16[%c32, %c16] : memref<440x48xf32, #tpu.memory_space<vmem>>, vector<384x16xf32>
    tpu.vector_store %arg16[%c32, %c16], %32 {strides = array<i32>} : memref<440x48xf32, #tpu.memory_space<vmem>>, vector<384x16xf32>,
    %c31 = arith.constant 31 : index
    %c32_23 = arith.constant 32 : index
    %35 = vector.load %arg16[%c31, %c32_23] : memref<440x48xf32, #tpu.memory_space<vmem>>, vector<384x16xf32>
    tpu.vector_store %arg16[%c31, %c32_23], %32 {strides = array<i32>} : memref<440x48xf32, #tpu.memory_space<vmem>>, vector<384x16xf32>,
    %c0_24 = arith.constant 0 : index
    %c0_25 = arith.constant 0 : index
    %36 = vector.load %arg6[%c0_24, %c0_25] : memref<16x64xf32, #tpu.memory_space<vmem>>, vector<16x64xf32>
    %cst_26 = arith.constant dense<0.000000e+00> : vector<384x64xf32>
    %37 = tpu.matmul %32, %36, %cst_26 {dimension_numbers = #tpu.dot_dimension_numbers<[1], [0], [0], [1], [0, 0, 1, 1], [], []>} : vector<384x16xf32>, vector<16x64xf32>, vector<384x64xf32> -> vector<384x64xf32>
    %c0_27 = arith.constant 0 : index
    %c0_28 = arith.constant 0 : index
    %38 = vector.load %arg7[%c0_27, %c0_28] : memref<1x64xf32, #tpu.memory_space<vmem>>, vector<1x64xf32>
    %39 = vector.broadcast %38 : vector<1x64xf32> to vector<384x64xf32>
    %40 = arith.addf %37, %39 : vector<384x64xf32>
    %c8 = arith.constant 8 : index
    %c0_29 = arith.constant 0 : index
    %41 = vector.load %arg16[%c8, %c0_29] : memref<440x48xf32, #tpu.memory_space<vmem>>, vector<384x48xf32>
    %c0_30 = arith.constant 0 : index
    %c0_31 = arith.constant 0 : index
    %c0_32 = arith.constant 0 : index
    %42 = vector.load %arg4[%c0_30, %c0_31, %c0_32] : memref<3x48x64xf32, #tpu.memory_space<vmem>>, vector<1x48x64xf32>
    %43 = vector.shape_cast %42 : vector<1x48x64xf32> to vector<48x64xf32>
    %cst_33 = arith.constant dense<0.000000e+00> : vector<384x64xf32>
    %44 = tpu.matmul %41, %43, %cst_33 {dimension_numbers = #tpu.dot_dimension_numbers<[1], [0], [0], [1], [0, 0, 1, 1], [], []>} : vector<384x48xf32>, vector<48x64xf32>, vector<384x64xf32> -> vector<384x64xf32>
    %c32_34 = arith.constant 32 : index
    %c0_35 = arith.constant 0 : index
    %45 = vector.load %arg16[%c32_34, %c0_35] : memref<440x48xf32, #tpu.memory_space<vmem>>, vector<384x48xf32>
    %c1 = arith.constant 1 : index
    %c0_36 = arith.constant 0 : index
    %c0_37 = arith.constant 0 : index
    %46 = vector.load %arg4[%c1, %c0_36, %c0_37] : memref<3x48x64xf32, #tpu.memory_space<vmem>>, vector<1x48x64xf32>
    %47 = vector.shape_cast %46 : vector<1x48x64xf32> to vector<48x64xf32>
    %cst_38 = arith.constant dense<0.000000e+00> : vector<384x64xf32>
    %48 = tpu.matmul %45, %47, %cst_38 {dimension_numbers = #tpu.dot_dimension_numbers<[1], [0], [0], [1], [0, 0, 1, 1], [], []>} : vector<384x48xf32>, vector<48x64xf32>, vector<384x64xf32> -> vector<384x64xf32>
    %49 = arith.addf %44, %48 : vector<384x64xf32>
    %c56 = arith.constant 56 : index
    %c0_39 = arith.constant 0 : index
    %50 = vector.load %arg16[%c56, %c0_39] : memref<440x48xf32, #tpu.memory_space<vmem>>, vector<384x48xf32>
    %c2 = arith.constant 2 : index
    %c0_40 = arith.constant 0 : index
    %c0_41 = arith.constant 0 : index
    %51 = vector.load %arg4[%c2, %c0_40, %c0_41] : memref<3x48x64xf32, #tpu.memory_space<vmem>>, vector<1x48x64xf32>
    %52 = vector.shape_cast %51 : vector<1x48x64xf32> to vector<48x64xf32>
    %cst_42 = arith.constant dense<0.000000e+00> : vector<384x64xf32>
    %53 = tpu.matmul %50, %52, %cst_42 {dimension_numbers = #tpu.dot_dimension_numbers<[1], [0], [0], [1], [0, 0, 1, 1], [], []>} : vector<384x48xf32>, vector<48x64xf32>, vector<384x64xf32> -> vector<384x64xf32>
    %54 = arith.addf %49, %53 : vector<384x64xf32>
    %c0_43 = arith.constant 0 : index
    %c0_44 = arith.constant 0 : index
    %55 = vector.load %arg5[%c0_43, %c0_44] : memref<1x64xf32, #tpu.memory_space<vmem>>, vector<1x64xf32>
    %56 = vector.broadcast %55 : vector<1x64xf32> to vector<384x64xf32>
    %57 = arith.addf %54, %56 : vector<384x64xf32>
    %cst_45 = arith.constant 0.000000e+00 : f32
    %58 = vector.broadcast %cst_45 : f32 to vector<384x64xf32>
    %59 = arith.maximumf %57, %58 : vector<384x64xf32>
    %60 = vector.broadcast %13 : vector<384x1xf32> to vector<384x64xf32>
    %61 = arith.mulf %59, %60 : vector<384x64xf32>
    %c33_46 = arith.constant 33 : index
    %c0_47 = arith.constant 0 : index
    %62 = vector.load %arg17[%c33_46, %c0_47] : memref<440x192xf32, #tpu.memory_space<vmem>>, vector<384x64xf32>
    tpu.vector_store %arg17[%c33_46, %c0_47], %61 {strides = array<i32>} : memref<440x192xf32, #tpu.memory_space<vmem>>, vector<384x64xf32>,
    %c32_48 = arith.constant 32 : index
    %c64 = arith.constant 64 : index
    %63 = vector.load %arg17[%c32_48, %c64] : memref<440x192xf32, #tpu.memory_space<vmem>>, vector<384x64xf32>
    tpu.vector_store %arg17[%c32_48, %c64], %61 {strides = array<i32>} : memref<440x192xf32, #tpu.memory_space<vmem>>, vector<384x64xf32>,
    %c31_49 = arith.constant 31 : index
    %c128 = arith.constant 128 : index
    %64 = vector.load %arg17[%c31_49, %c128] : memref<440x192xf32, #tpu.memory_space<vmem>>, vector<384x64xf32>
    tpu.vector_store %arg17[%c31_49, %c128], %61 {strides = array<i32>} : memref<440x192xf32, #tpu.memory_space<vmem>>, vector<384x64xf32>,
    %c8_50 = arith.constant 8 : index
    %c0_51 = arith.constant 0 : index
    %65 = vector.load %arg17[%c8_50, %c0_51] : memref<440x192xf32, #tpu.memory_space<vmem>>, vector<384x192xf32>
    %c0_52 = arith.constant 0 : index
    %c0_53 = arith.constant 0 : index
    %c0_54 = arith.constant 0 : index
    %66 = vector.load %arg8[%c0_52, %c0_53, %c0_54] : memref<3x192x64xf32, #tpu.memory_space<vmem>>, vector<1x192x64xf32>
    %67 = vector.shape_cast %66 : vector<1x192x64xf32> to vector<192x64xf32>
    %cst_55 = arith.constant dense<0.000000e+00> : vector<384x64xf32>
    %68 = tpu.matmul %65, %67, %cst_55 {dimension_numbers = #tpu.dot_dimension_numbers<[1], [0], [0], [1], [0, 0, 1, 1], [], []>} : vector<384x192xf32>, vector<192x64xf32>, vector<384x64xf32> -> vector<384x64xf32>
    %c32_56 = arith.constant 32 : index
    %c0_57 = arith.constant 0 : index
    %69 = vector.load %arg17[%c32_56, %c0_57] : memref<440x192xf32, #tpu.memory_space<vmem>>, vector<384x192xf32>
    %c1_58 = arith.constant 1 : index
    %c0_59 = arith.constant 0 : index
    %c0_60 = arith.constant 0 : index
    %70 = vector.load %arg8[%c1_58, %c0_59, %c0_60] : memref<3x192x64xf32, #tpu.memory_space<vmem>>, vector<1x192x64xf32>
    %71 = vector.shape_cast %70 : vector<1x192x64xf32> to vector<192x64xf32>
    %cst_61 = arith.constant dense<0.000000e+00> : vector<384x64xf32>
    %72 = tpu.matmul %69, %71, %cst_61 {dimension_numbers = #tpu.dot_dimension_numbers<[1], [0], [0], [1], [0, 0, 1, 1], [], []>} : vector<384x192xf32>, vector<192x64xf32>, vector<384x64xf32> -> vector<384x64xf32>
    %73 = arith.addf %68, %72 : vector<384x64xf32>
    %c56_62 = arith.constant 56 : index
    %c0_63 = arith.constant 0 : index
    %74 = vector.load %arg17[%c56_62, %c0_63] : memref<440x192xf32, #tpu.memory_space<vmem>>, vector<384x192xf32>
    %c2_64 = arith.constant 2 : index
    %c0_65 = arith.constant 0 : index
    %c0_66 = arith.constant 0 : index
    %75 = vector.load %arg8[%c2_64, %c0_65, %c0_66] : memref<3x192x64xf32, #tpu.memory_space<vmem>>, vector<1x192x64xf32>
    %76 = vector.shape_cast %75 : vector<1x192x64xf32> to vector<192x64xf32>
    %cst_67 = arith.constant dense<0.000000e+00> : vector<384x64xf32>
    %77 = tpu.matmul %74, %76, %cst_67 {dimension_numbers = #tpu.dot_dimension_numbers<[1], [0], [0], [1], [0, 0, 1, 1], [], []>} : vector<384x192xf32>, vector<192x64xf32>, vector<384x64xf32> -> vector<384x64xf32>
    %78 = arith.addf %73, %77 : vector<384x64xf32>
    %c0_68 = arith.constant 0 : index
    %c0_69 = arith.constant 0 : index
    %79 = vector.load %arg9[%c0_68, %c0_69] : memref<1x64xf32, #tpu.memory_space<vmem>>, vector<1x64xf32>
    %80 = vector.broadcast %79 : vector<1x64xf32> to vector<384x64xf32>
    %81 = arith.addf %78, %80 : vector<384x64xf32>
    %82 = arith.addf %81, %40 : vector<384x64xf32>
    %cst_70 = arith.constant 0.000000e+00 : f32
    %83 = vector.broadcast %cst_70 : f32 to vector<384x64xf32>
    %84 = arith.maximumf %82, %83 : vector<384x64xf32>
    %85 = vector.broadcast %13 : vector<384x1xf32> to vector<384x64xf32>
    %86 = arith.mulf %84, %85 : vector<384x64xf32>
    %87 = vector.extract_strided_slice %86 {offsets = [0, 0], sizes = [192, 64], strides = [1, 1]} : vector<384x64xf32> to vector<192x64xf32>
    %88 = vector.extract_strided_slice %86 {offsets = [192, 0], sizes = [192, 64], strides = [1, 1]} : vector<384x64xf32> to vector<192x64xf32>
    %89 = tpu.concatenate %87, %88 in 1 : vector<192x64xf32>, vector<192x64xf32> -> vector<192x128xf32>
    %c0_71 = arith.constant 0 : index
    %c0_72 = arith.constant 0 : index
    %c0_73 = arith.constant 0 : index
    %90 = vector.load %arg14[%c0_71, %c0_72, %c0_73] : memref<1x192x128xf32, #tpu.memory_space<vmem>>, vector<1x192x128xf32>
    %91 = vector.shape_cast %90 : vector<1x192x128xf32> to vector<192x128xf32>
    %92 = vector.shape_cast %89 : vector<192x128xf32> to vector<1x192x128xf32>
    tpu.vector_store %arg14[%c0_71, %c0_72, %c0_73], %92 {strides = array<i32>} : memref<1x192x128xf32, #tpu.memory_space<vmem>>, vector<1x192x128xf32>,
    %cst_74 = arith.constant dense<0.000000e+00> : vector<64xf32>
    %93 = vector.multi_reduction <add>, %86, %cst_74 [0] : vector<384x64xf32> to vector<64xf32>
    %94 = vector.shape_cast %93 : vector<64xf32> to vector<1x64xf32>
    %cst_75 = arith.constant 3.906250e-03 : f32
    %95 = vector.broadcast %cst_75 : f32 to vector<1x64xf32>
    %96 = arith.mulf %94, %95 : vector<1x64xf32>
    %c0_76 = arith.constant 0 : index
    %c0_77 = arith.constant 0 : index
    %97 = vector.load %arg10[%c0_76, %c0_77] : memref<64x64xf32, #tpu.memory_space<vmem>>, vector<64x64xf32>
    %cst_78 = arith.constant dense<0.000000e+00> : vector<1x64xf32>
    %98 = tpu.matmul %96, %97, %cst_78 {dimension_numbers = #tpu.dot_dimension_numbers<[1], [0], [0], [1], [0, 0, 1, 1], [], []>} : vector<1x64xf32>, vector<64x64xf32>, vector<1x64xf32> -> vector<1x64xf32>
    %c0_79 = arith.constant 0 : index
    %c0_80 = arith.constant 0 : index
    %99 = vector.load %arg11[%c0_79, %c0_80] : memref<1x64xf32, #tpu.memory_space<vmem>>, vector<1x64xf32>
    %100 = arith.addf %98, %99 : vector<1x64xf32>
    %cst_81 = arith.constant 0.000000e+00 : f32
    %101 = vector.broadcast %cst_81 : f32 to vector<1x64xf32>
    %102 = arith.maximumf %100, %101 : vector<1x64xf32>
    %c0_82 = arith.constant 0 : index
    %c0_83 = arith.constant 0 : index
    %103 = vector.load %arg12[%c0_82, %c0_83] : memref<64x10xf32, #tpu.memory_space<vmem>>, vector<64x10xf32>
    %cst_84 = arith.constant dense<0.000000e+00> : vector<1x10xf32>
    %104 = tpu.matmul %102, %103, %cst_84 {dimension_numbers = #tpu.dot_dimension_numbers<[1], [0], [0], [1], [0, 0, 1, 1], [], []>} : vector<1x64xf32>, vector<64x10xf32>, vector<1x10xf32> -> vector<1x10xf32>
    %c0_85 = arith.constant 0 : index
    %c0_86 = arith.constant 0 : index
    %105 = vector.load %arg13[%c0_85, %c0_86] : memref<1x10xf32, #tpu.memory_space<vmem>>, vector<1x10xf32>
    %106 = arith.addf %104, %105 : vector<1x10xf32>
    %c0_87 = arith.constant 0 : index
    %c0_88 = arith.constant 0 : index
    %c0_89 = arith.constant 0 : index
    %107 = vector.load %arg15[%c0_87, %c0_88, %c0_89] : memref<1x1x10xf32, #tpu.memory_space<vmem>>, vector<1x1x10xf32>
    %108 = vector.shape_cast %107 : vector<1x1x10xf32> to vector<1x10xf32>
    %109 = vector.shape_cast %106 : vector<1x10xf32> to vector<1x1x10xf32>
    tpu.vector_store %arg15[%c0_87, %c0_88, %c0_89], %109 {strides = array<i32>} : memref<1x1x10xf32, #tpu.memory_space<vmem>>, vector<1x1x10xf32>,
    return
  }
  func.func @transform_0(%arg0: i32) -> (i32, i32, i32) {
    %c0_i32 = arith.constant 0 : i32
    %c0_i32_0 = arith.constant 0 : i32
    %c0_i32_1 = arith.constant 0 : i32
    return %arg0, %c0_i32, %c0_i32_0 : i32, i32, i32
  }
  func.func @transform_1(%arg0: i32) -> (i32, i32) {
    %c0_i32 = arith.constant 0 : i32
    %c0_i32_0 = arith.constant 0 : i32
    %c0_i32_1 = arith.constant 0 : i32
    return %c0_i32, %c0_i32_0 : i32, i32
  }
  func.func @transform_2(%arg0: i32) -> (i32, i32) {
    %c0_i32 = arith.constant 0 : i32
    %c0_i32_0 = arith.constant 0 : i32
    %c0_i32_1 = arith.constant 0 : i32
    return %c0_i32, %c0_i32_0 : i32, i32
  }
  func.func @transform_3(%arg0: i32) -> (i32, i32, i32) {
    %c0_i32 = arith.constant 0 : i32
    %c0_i32_0 = arith.constant 0 : i32
    %c0_i32_1 = arith.constant 0 : i32
    %c0_i32_2 = arith.constant 0 : i32
    return %c0_i32, %c0_i32_0, %c0_i32_1 : i32, i32, i32
  }
  func.func @transform_4(%arg0: i32) -> (i32, i32) {
    %c0_i32 = arith.constant 0 : i32
    %c0_i32_0 = arith.constant 0 : i32
    %c0_i32_1 = arith.constant 0 : i32
    return %c0_i32, %c0_i32_0 : i32, i32
  }
  func.func @transform_5(%arg0: i32) -> (i32, i32) {
    %c0_i32 = arith.constant 0 : i32
    %c0_i32_0 = arith.constant 0 : i32
    %c0_i32_1 = arith.constant 0 : i32
    return %c0_i32, %c0_i32_0 : i32, i32
  }
  func.func @transform_6(%arg0: i32) -> (i32, i32) {
    %c0_i32 = arith.constant 0 : i32
    %c0_i32_0 = arith.constant 0 : i32
    %c0_i32_1 = arith.constant 0 : i32
    return %c0_i32, %c0_i32_0 : i32, i32
  }
  func.func @transform_7(%arg0: i32) -> (i32, i32, i32) {
    %c0_i32 = arith.constant 0 : i32
    %c0_i32_0 = arith.constant 0 : i32
    %c0_i32_1 = arith.constant 0 : i32
    %c0_i32_2 = arith.constant 0 : i32
    return %c0_i32, %c0_i32_0, %c0_i32_1 : i32, i32, i32
  }
  func.func @transform_8(%arg0: i32) -> (i32, i32) {
    %c0_i32 = arith.constant 0 : i32
    %c0_i32_0 = arith.constant 0 : i32
    %c0_i32_1 = arith.constant 0 : i32
    return %c0_i32, %c0_i32_0 : i32, i32
  }
  func.func @transform_9(%arg0: i32) -> (i32, i32) {
    %c0_i32 = arith.constant 0 : i32
    %c0_i32_0 = arith.constant 0 : i32
    %c0_i32_1 = arith.constant 0 : i32
    return %c0_i32, %c0_i32_0 : i32, i32
  }
  func.func @transform_10(%arg0: i32) -> (i32, i32) {
    %c0_i32 = arith.constant 0 : i32
    %c0_i32_0 = arith.constant 0 : i32
    %c0_i32_1 = arith.constant 0 : i32
    return %c0_i32, %c0_i32_0 : i32, i32
  }
  func.func @transform_11(%arg0: i32) -> (i32, i32) {
    %c0_i32 = arith.constant 0 : i32
    %c0_i32_0 = arith.constant 0 : i32
    %c0_i32_1 = arith.constant 0 : i32
    return %c0_i32, %c0_i32_0 : i32, i32
  }
  func.func @transform_12(%arg0: i32) -> (i32, i32) {
    %c0_i32 = arith.constant 0 : i32
    %c0_i32_0 = arith.constant 0 : i32
    %c0_i32_1 = arith.constant 0 : i32
    return %c0_i32, %c0_i32_0 : i32, i32
  }
  func.func @transform_13(%arg0: i32) -> (i32, i32, i32) {
    %c0_i32 = arith.constant 0 : i32
    %c0_i32_0 = arith.constant 0 : i32
    %c0_i32_1 = arith.constant 0 : i32
    return %arg0, %c0_i32, %c0_i32_0 : i32, i32, i32
  }
  func.func @transform_14(%arg0: i32) -> (i32, i32, i32) {
    %c0_i32 = arith.constant 0 : i32
    %c0_i32_0 = arith.constant 0 : i32
    %c0_i32_1 = arith.constant 0 : i32
    return %arg0, %c0_i32, %c0_i32_0 : i32, i32, i32
  }
}

</mosaic_0001>

<bundles_post_ra>
// kernel: head_network_part1.1
= control target key start
LH: loop header
LB: loop body
LE: loop exit
PB: predicated region body
PF: predicated region fallthrough
CT: control target
= control target key end

     0   :  { %s12890_s0 = inlined_call_operand.vmem [shape: f32[2,384,32], index: 0, kind: input, shape index: {}]   ;;  %s12891_s1 = inlined_call_operand.vmem [shape: f32[32,16], index: 1, kind: input, shape index: {}]   ;;  %s12892_s2 = inlined_call_operand.vmem [shape: f32[1,16], index: 2, kind: input, shape index: {}]   ;;  %s12893_s3 = inlined_call_operand.vmem [shape: f32[3,48,64], index: 3, kind: input, shape index: {}]   ;;  %s12894_s4 = inlined_call_operand.vmem [shape: f32[1,64], index: 4, kind: input, shape index: {}]   ;;  %s12895_s5 = inlined_call_operand.vmem [shape: f32[16,64], index: 5, kind: input, shape index: {}]   ;;  %s12896_s6 = inlined_call_operand.vmem [shape: f32[1,64], index: 6, kind: input, shape index: {}]   ;;  %s12897_s7 = inlined_call_operand.vmem [shape: f32[3,192,64], index: 7, kind: input, shape index: {}]   ;;  %s12898_s8 = inlined_call_operand.vmem [shape: f32[1,64], index: 8, kind: input, shape index: {}]   ;;  %s12899_s9 = inlined_call_operand.vmem [shape: f32[64,64], index: 9, kind: input, shape index: {}]   ;;  %s12900_s10 = inlined_call_operand.vmem [shape: f32[1,64], index: 10, kind: input, shape index: {}]   ;;  %s12901_s11 = inlined_call_operand.vmem [shape: f32[64,10], index: 11, kind: input, shape index: {}]   ;;  %s12902_s12 = inlined_call_operand.vmem [shape: f32[1,10], index: 12, kind: input, shape index: {}]   ;;  %s12903_s13 = inlined_call_operand.vmem [shape: f32[2,192,128], index: 13, kind: output, shape index: {0}]   ;;  %s12904_s14 = inlined_call_operand.hbm [shape: f32[2,1,10], index: 14, kind: output, shape index: {1}]  }
   0x1   :  { %13058 = sst [smem:[#allocation151_spill]] %s12890_s0 }
   0x2   :  { %13059 = sst [smem:[#allocation152_spill]] %s12891_s1 }
   0x3   :  { %13060 = sst [smem:[#allocation153_spill]] %s12892_s2 }
   0x4   :  { %13061 = sst [smem:[#allocation154_spill]] %s12893_s3 }
   0x5   :  { %20 = vsyncpa [#allocation5], 0 }
   0x6   :  { %22 = vsyncpa [#allocation5 + $0x1], 0  ;;  %s8632_s29 = smov 0   ;;  %s8634_s30 = smov 0  }
   0x7   :  { %s8636_s15 = smov 0   ;;  %s8638_s16 = smov 0  }
   0x8 LB: > { %s8653_s17 = sadd.s32 4294967295, %s8548_s16   ;;  %s6897_s18 = sadd.s32 4294967294, %s8548_s16   ;;  %s8548_s16 = sphi %s8638_s16, %s13516_s16   ;;  %s8544_s15 = sphi %s8636_s15, %s13515_s15   ;;  %s8540_s30 = sphi %s8634_s30, %s13514_s30   ;;  %s8536_s29 = sphi %s8632_s29, %s13513_s29  }
   0x9   : > { %s8657_s19 = sadd.s32 1, %s8548_s16   ;;  %s339_s20 = sadd.s32 1, %s8544_s15 }
   0xa   : > { %s336_s21 = ssub.s32 %s8548_s16, %s8657_s19  ;;  %p349_p0 = scmp.ne.s32.totalorder %s8544_s15, %s8540_s30 }
   0xb   : > { %p337_p1 = scmp.eq.s32.totalorder %s336_s21, 0  ;;  %p350_p2 = scmp.eq.s32.totalorder %s8653_s17, 1 }
   0xc   : > { %p355_p3 = scmp.ne.s32.totalorder %s8540_s30, %s8536_s29  ;;  %p356_p4 = scmp.eq.s32.totalorder %s6897_s18, 1 }
   0xd   : > { %s8668_s22 = scalar_select %p337_p1, %s8544_s15, %s339_s20  }
   0xe   : > { %p8670_p5 = por %p350_p2, %p349_p0  ;;  %p8674_p6 = por %p356_p4, %p355_p3 }
   0xf   : > { %13062 = sst [smem:[#allocation7_spill]] %s8668_s22  ;;  %p6900_p7 = scmp.ge.s32.totalorder %s8548_s16, 1 }
  0x10   : > { %p418_p8 = scmp.lt.s32.totalorder %s8548_s16, 3 }
  0x12   : > { %p419_p9 = pnand %p6900_p7, %p418_p8 }
  0x14   : > { %422 = sbr.rel (%p419_p9) target bundleno = 2195 (0x893), region = 72 }
  0x1b   : > { %s13065_s1 = sld [smem:[#allocation152_spill]]  ;;  %p468_p10 = scmp.lt.s32.totalorder %s8653_s17, 1  ;;  %v8550_v5 = vmov 0.0   ;;  %vm1050_vm0 = vcmask 261120   ;;  %v2079_v53 = vld [vmem:[%s12895_s5] sm:$0xff]  ;;  %v2080_v54 = vld [vmem:[%s12895_s5 + $0x8] sm:$0xff]  ;;  %v478_v58 = vlaneseq }
  0x1c   : > { %970 = vst [vmem:[#allocation3] sm:$0xff] %v8550_v5  ;;  %979 = vst [vmem:[#allocation3 + $0x40] sm:$0xff] %v8550_v5  ;;  %s13066_s0 = sld [smem:[#allocation151_spill]]  ;;  %v8140_v56 = vpack.c.bf16 %v2080_v54, %v2079_v53  ;;  %vm959_vm1 = vcmask 392192   ;;  %s13082_s3 = sld [smem:[#allocation154_spill]] }
  0x1d   : > { %981 = vst [vmem:[#allocation3 + $0x320] sm:$0xff] %v8550_v5  ;;  %983 = vst [vmem:[#allocation3 + $0x330] sm:$0xff] %v8550_v5  ;;  %s8699_s25 = scalar_select %p468_p10, %s8653_s17, 1  ;;  %v8827_v59 = vshrl.u32 %v478_v58, 7 }
  0x1e   : > { %985 = vst [vmem:[#allocation3 + $0x340] sm:$0xff] %v8550_v5  ;;  %8141 = vmatprep.subr.bf16.mxu1 %v8140_v56  ;;  %964 = vst.msk [vmem:[#allocation2 + $0x20] sm:$0xff] %vm959_vm1, %v8550_v5  ;;  %s13083_s2 = sld [smem:[#allocation153_spill]]  ;;  %s8551_s18 = smov 16  }
  0x1f   : > { %s8432_s26 = smul.u32 384, %s8699_s25  ;;  %8143 = vmatpush3.bf16.msra.mxu1 %v8140_v56  ;;  %961 = vst.msk [vmem:[#allocation2 + $0x8] sm:$0xff] %vm959_vm1, %v8550_v5  ;;  %962 = vst.msk [vmem:[#allocation2 + $0x10] sm:$0xff] %vm959_vm1, %v8550_v5  ;;  %v480_v60 = vadd.s32 8, %v8827_v59  ;;  %v482_v61 = vadd.s32 24, %v8827_v59  ;;  %v527_v63 = vcvt.s32.f32 %v8827_v59  ;;  %v8868_v58 = vadd.s32 96, %v8827_v59 }
  0x20   : > { %963 = vst.msk [vmem:[#allocation2 + $0x18] sm:$0xff] %vm959_vm1, %v8550_v5  ;;  %965 = vst.msk [vmem:[#allocation2 + $0x190] sm:$0xff] %vm959_vm1, %v8550_v5  ;;  %s8552_s20 = smov 32  }
  0x21   : > { %v1039_v0 = vld [vmem:[%s13065_s1] sm:$0xff]  ;;  %v1040_v1 = vld [vmem:[%s13065_s1 + $0x8] sm:$0xff]  ;;  %v1041_v2 = vld [vmem:[%s13065_s1 + $0x10] sm:$0xff]  ;;  %966 = vst.msk [vmem:[#allocation2 + $0x198] sm:$0xff] %vm959_vm1, %v8550_v5  ;;  %v528_v62 = vcvt.s32.f32 %v480_v60 }
  0x22   : > { %v8132_v3 = vpack.c.bf16 %v1040_v1, %v1039_v0  ;;  %v1042_v4 = vld [vmem:[%s13065_s1 + $0x18] sm:$0xff]  ;;  %s8705_s28 = scalar_lea.vmem %s13066_s0, %s8432_s26  ;;  %967 = vst.msk [vmem:[#allocation2 + $0x1a0] sm:$0xff] %vm959_vm1, %v8550_v5  ;;  %968 = vst.msk [vmem:[#allocation2 + $0x1a8] sm:$0xff] %vm959_vm1, %v8550_v5  ;;  %v481_v0 = vadd.s32 16, %v8827_v59  ;;  %v530_v1 = vcvt.s32.f32 %v482_v61  ;;  %s466_s0 = sand.u32 1, %s8540_s30  }
  0x23   : > { %v8136_v6 = vpack.c.bf16 %v1042_v4, %v1041_v2  ;;  %v991_v7 = vld [vmem:[%s8705_s28] sm:$0xff]  ;;  %v992_v8 = vld [vmem:[%s8705_s28 + $0x8] sm:$0xff]  ;;  %v993_v9 = vld [vmem:[%s8705_s28 + $0x10] sm:$0xff]  ;;  %969 = vst.msk [vmem:[#allocation2 + $0x1b0] sm:$0xff] %vm959_vm1, %v8550_v5  ;;  %v483_v2 = vadd.s32 32, %v8827_v59  ;;  %v576_v4 = vadd.f32 0.5, %v528_v62 }
  0x24   : > { %8133 = vmatprep.subr.bf16.mxu0 %v8132_v3  ;;  %7694 = vmatprep.mubr.msk.f32.mxu0 %vm1050_vm0, %v991_v7  ;;  %v994_v10 = vld [vmem:[%s8705_s28 + $0x18] sm:$0xff]  ;;  %v995_v11 = vld [vmem:[%s8705_s28 + $0x20] sm:$0xff]  ;;  %v996_v12 = vld [vmem:[%s8705_s28 + $0x28] sm:$0xff]  ;;  %v529_v7 = vcvt.s32.f32 %v481_v0  ;;  %s7401_s1 = sshll.u32 %s8653_s17, 4  ;;  %s8556_s17 = smov [#allocation4]  }
  0x25   : > { %8135 = vmatpush3.bf16.msra.mxu0 %v8132_v3  ;;  %v997_v13 = vld [vmem:[%s8705_s28 + $0x30] sm:$0xff]  ;;  %v998_v14 = vld [vmem:[%s8705_s28 + $0x38] sm:$0xff]  ;;  %v999_v15 = vld [vmem:[%s8705_s28 + $0x40] sm:$0xff]  ;;  %v484_v3 = vadd.s32 40, %v8827_v59  ;;  %s12848_s27 = scalar_lea.hbm %s12904_s14, %s7401_s1  ;;  %s8490_s26 = sshll.u32 %s8556_s17, 4  ;;  %s8491_s26 = int_to_ptr.vmem [resolvable:$false] %s8490_s26 }
  0x26   : > { %8137 = vmatprep.subr.bf16.mxu0 %v8136_v6  ;;  %v1000_v16 = vld [vmem:[%s8705_s28 + $0x48] sm:$0xff]  ;;  %v1001_v17 = vld [vmem:[%s8705_s28 + $0x50] sm:$0xff]  ;;  %v1002_v18 = vld [vmem:[%s8705_s28 + $0x58] sm:$0xff] }
  0x27   : > { %v1003_v19 = vld [vmem:[%s8705_s28 + $0x60] sm:$0xff]  ;;  %v1004_v20 = vld [vmem:[%s8705_s28 + $0x68] sm:$0xff]  ;;  %v1005_v21 = vld [vmem:[%s8705_s28 + $0x70] sm:$0xff] }
  0x28   : > { %v1006_v22 = vld [vmem:[%s8705_s28 + $0x78] sm:$0xff]  ;;  %v1007_v23 = vld [vmem:[%s8705_s28 + $0x80] sm:$0xff]  ;;  %v1008_v24 = vld [vmem:[%s8705_s28 + $0x88] sm:$0xff] }
  0x29   : > { %8139 = vmatpush3.bf16.msra.mxu0 %v8136_v6  ;;  %v1009_v25 = vld [vmem:[%s8705_s28 + $0x90] sm:$0xff]  ;;  %v1010_v26 = vld [vmem:[%s8705_s28 + $0x98] sm:$0xff]  ;;  %v1011_v27 = vld [vmem:[%s8705_s28 + $0xa0] sm:$0xff]  ;;  %v575_v6 = vadd.f32 0.5, %v527_v63 }
  0x2a   : > { %v1012_v28 = vld [vmem:[%s8705_s28 + $0xa8] sm:$0xff]  ;;  %v1013_v29 = vld [vmem:[%s8705_s28 + $0xb0] sm:$0xff]  ;;  %v1014_v30 = vld [vmem:[%s8705_s28 + $0xb8] sm:$0xff] }
  0x2b   : > { %v1015_v31 = vld [vmem:[%s8705_s28 + $0xc0] sm:$0xff]  ;;  %v1016_v32 = vld [vmem:[%s8705_s28 + $0xc8] sm:$0xff]  ;;  %v1017_v33 = vld [vmem:[%s8705_s28 + $0xd0] sm:$0xff] }
  0x2c   : > { %7695 = vmatmul.mubr.msk.f32.vlgmr.msra.gmra.mrb[0].mxu0 %vm1050_vm0, %v992_v8  ;;  %v1018_v34 = vld [vmem:[%s8705_s28 + $0xd8] sm:$0xff]  ;;  %v1019_v35 = vld [vmem:[%s8705_s28 + $0xe0] sm:$0xff]  ;;  %v1020_v36 = vld [vmem:[%s8705_s28 + $0xe8] sm:$0xff]  ;;  %v578_v8 = vadd.f32 0.5, %v530_v1 }
  0x2d   : > { %7697 = vmatprep.mubr.msk.f32.mxu0 %vm1050_vm0, %v993_v9  ;;  %v1021_v37 = vld [vmem:[%s8705_s28 + $0xf0] sm:$0xff]  ;;  %v1022_v38 = vld [vmem:[%s8705_s28 + $0xf8] sm:$0xff]  ;;  %v1023_v39 = vld [vmem:[%s8705_s28 + $0x100] sm:$0xff]  ;;  %v531_v9 = vcvt.s32.f32 %v483_v2 }
  0x2e   : > { %v1024_v40 = vld [vmem:[%s8705_s28 + $0x108] sm:$0xff]  ;;  %v1025_v41 = vld [vmem:[%s8705_s28 + $0x110] sm:$0xff]  ;;  %v1026_v42 = vld [vmem:[%s8705_s28 + $0x118] sm:$0xff] }
  0x2f   : > { %v1027_v43 = vld [vmem:[%s8705_s28 + $0x120] sm:$0xff]  ;;  %v1028_v44 = vld [vmem:[%s8705_s28 + $0x128] sm:$0xff]  ;;  %v1029_v45 = vld [vmem:[%s8705_s28 + $0x130] sm:$0xff] }
  0x30   : > { %7698 = vmatmul.mubr.msk.f32.gmra.mrb[2].mxu0 %vm1050_vm0, %v994_v10  ;;  %v1030_v46 = vld [vmem:[%s8705_s28 + $0x138] sm:$0xff]  ;;  %v1031_v47 = vld [vmem:[%s8705_s28 + $0x140] sm:$0xff]  ;;  %v1032_v48 = vld [vmem:[%s8705_s28 + $0x148] sm:$0xff]  ;;  %v532_v10 = vcvt.s32.f32 %v484_v3 }
  0x31   : > { %7700 = vmatprep.mubr.msk.f32.mxu0 %vm1050_vm0, %v995_v11  ;;  %v1033_v49 = vld [vmem:[%s8705_s28 + $0x150] sm:$0xff]  ;;  %v1034_v50 = vld [vmem:[%s8705_s28 + $0x158] sm:$0xff]  ;;  %v1035_v51 = vld [vmem:[%s8705_s28 + $0x160] sm:$0xff]  ;;  %v624_v11 = vmul.f32 0.041666668, %v576_v4 }
  0x32   : > { %v1036_v52 = vld [vmem:[%s8705_s28 + $0x168] sm:$0xff]  ;;  %v1037_v55 = vld [vmem:[%s8705_s28 + $0x170] sm:$0xff]  ;;  %v1038_v57 = vld [vmem:[%s8705_s28 + $0x178] sm:$0xff]  ;;  %s6802_s28 = scalar_lea.sflag [#allocation5], %s466_s0 }
  0x34   : > { %7701 = vmatmul.mubr.msk.f32.gmra.mrb[4].mxu0 %vm1050_vm0, %v996_v12  ;;  %v623_v12 = vmul.f32 0.041666668, %v575_v6 }
  0x35   : > { %7703 = vmatprep.mubr.msk.f32.mxu0 %vm1050_vm0, %v997_v13  ;;  %v577_v13 = vadd.f32 0.5, %v529_v7 }
  0x38   : > { %7704 = vmatmul.mubr.msk.f32.gmra.mrb[6].mxu0 %vm1050_vm0, %v998_v14  ;;  %v626_v14 = vmul.f32 0.041666668, %v578_v8 }
  0x39   : > { %7706 = vmatprep.mubr.msk.f32.mxu0 %vm1050_vm0, %v999_v15  ;;  %v579_v15 = vadd.f32 0.5, %v531_v9 }
  0x3c   : > { %7707 = vmatmul.mubr.msk.f32.gmra.mrb[8].mxu0 %vm1050_vm0, %v1000_v16  ;;  %v8836_v16 = vadd.s32 48, %v8827_v59 }
  0x3d   : > { %7709 = vmatprep.mubr.msk.f32.mxu0 %vm1050_vm0, %v1001_v17  ;;  %v8839_v17 = vadd.s32 56, %v8827_v59 }
  0x40   : > { %7710 = vmatmul.mubr.msk.f32.gmra.mrb[10].mxu0 %vm1050_vm0, %v1002_v18  ;;  %v580_v18 = vadd.f32 0.5, %v532_v10 }
  0x41   : > { %7712 = vmatprep.mubr.msk.f32.mxu0 %vm1050_vm0, %v1003_v19  ;;  %v672_v19 = vfloor.f32 %v624_v11 }
  0x44   : > { %7713 = vmatmul.mubr.msk.f32.gmra.mrb[12].mxu0 %vm1050_vm0, %v1004_v20  ;;  %v671_v20 = vfloor.f32 %v623_v12  ;;  %v8891_v12 = vadd.s32 120, %v8827_v59 }
  0x45   : > { %7715 = vmatprep.mubr.msk.f32.mxu0 %vm1050_vm0, %v1005_v21  ;;  %v625_v21 = vmul.f32 0.041666668, %v577_v13 }
  0x48   : > { %7716 = vmatmul.mubr.msk.f32.gmra.mrb[14].mxu0 %vm1050_vm0, %v1006_v22  ;;  %v674_v22 = vfloor.f32 %v626_v14 }
  0x49   : > { %7718 = vmatprep.mubr.msk.f32.mxu0 %vm1050_vm0, %v1007_v23  ;;  %v627_v23 = vmul.f32 0.041666668, %v579_v15  ;;  %v8897_v15 = vadd.s32 136, %v8827_v59 }
  0x4c   : > { %7719 = vmatmul.mubr.msk.f32.gmra.mrb[16].mxu0 %vm1050_vm0, %v1008_v24  ;;  %v533_v24 = vcvt.s32.f32 %v8836_v16  ;;  %v8900_v16 = vadd.s32 128, %v8827_v59 }
  0x4d   : > { %7721 = vmatprep.mubr.msk.f32.mxu0 %vm1050_vm0, %v1009_v25  ;;  %v534_v25 = vcvt.s32.f32 %v8839_v17 }
  0x50   : > { %7722 = vmatmul.mubr.msk.f32.gmra.mrb[18].mxu0 %vm1050_vm0, %v1010_v26  ;;  %v8844_v26 = vadd.s32 64, %v8827_v59 }
  0x51   : > { %7724 = vmatprep.mubr.msk.f32.mxu0 %vm1050_vm0, %v1011_v27  ;;  %v628_v27 = vmul.f32 0.041666668, %v580_v18 }
  0x54   : > { %7725 = vmatmul.mubr.msk.f32.gmra.mrb[20].mxu0 %vm1050_vm0, %v1012_v28  ;;  %v8847_v28 = vadd.s32 72, %v8827_v59 }
  0x55   : > { %7727 = vmatprep.mubr.msk.f32.mxu0 %vm1050_vm0, %v1013_v29  ;;  %v720_v29 = vmul.f32 24.0, %v672_v19 }
  0x58   : > { %7728 = vmatmul.mubr.msk.f32.gmra.mrb[22].mxu0 %vm1050_vm0, %v1014_v30  ;;  %v719_v30 = vmul.f32 24.0, %v671_v20 }
  0x59   : > { %7730 = vmatprep.mubr.msk.f32.mxu0 %vm1050_vm0, %v1015_v31  ;;  %v673_v31 = vfloor.f32 %v625_v21  ;;  %v8906_v21 = vadd.s32 144, %v8827_v59 }
  0x5c   : > { %7731 = vmatmul.mubr.msk.f32.gmra.mrb[24].mxu0 %vm1050_vm0, %v1016_v32  ;;  %v722_v32 = vmul.f32 24.0, %v674_v22 }
  0x5d   : > { %7733 = vmatprep.mubr.msk.f32.mxu0 %vm1050_vm0, %v1017_v33  ;;  %v675_v33 = vfloor.f32 %v627_v23 }
  0x60   : > { %7734 = vmatmul.mubr.msk.f32.gmra.mrb[26].mxu0 %vm1050_vm0, %v1018_v34  ;;  %v581_v34 = vadd.f32 0.5, %v533_v24 }
  0x61   : > { %7736 = vmatprep.mubr.msk.f32.mxu0 %vm1050_vm0, %v1019_v35  ;;  %v582_v35 = vadd.f32 0.5, %v534_v25 }
  0x64   : > { %7737 = vmatmul.mubr.msk.f32.gmra.mrb[28].mxu0 %vm1050_vm0, %v1020_v36  ;;  %v535_v36 = vcvt.s32.f32 %v8844_v26 }
  0x65   : > { %7739 = vmatprep.mubr.msk.f32.mxu0 %vm1050_vm0, %v1021_v37  ;;  %v676_v37 = vfloor.f32 %v628_v27 }
  0x68   : > { %7740 = vmatmul.mubr.msk.f32.gmra.mrb[30].mxu0 %vm1050_vm0, %v1022_v38  ;;  %v536_v38 = vcvt.s32.f32 %v8847_v28 }
  0x69   : > { %7742 = vmatprep.mubr.msk.f32.mxu0 %vm1050_vm0, %v1023_v39  ;;  %v768_v39 = vsub.f32 %v528_v62, %v720_v29 }
  0x6b   : > { %vm816_vm2 = vcmp.lt.f32.partialorder %v768_v39, 16.0  ;;  %v8927_v39 = vadd.s32 160, %v8827_v59 }
  0x6c   : > { %7743 = vmatmul.mubr.msk.f32.gmra.mrb[32].mxu0 %vm1050_vm0, %v1024_v40  ;;  %v767_v40 = vsub.f32 %v527_v63, %v719_v30  ;;  %v8871_v60 = vsel %vm816_vm2, 1.0, %v8550_v5  ;;  %vm1596_vm2 = vcmask 130048  }
  0x6d   : > { %7745 = vmatprep.mubr.msk.f32.mxu0 %vm1050_vm0, %v1025_v41  ;;  %v721_v41 = vmul.f32 24.0, %v673_v31  ;;  %13067 = vst [vmem:[#allocation8_spill] sm:$0xff] %v8871_v60 }
  0x6e   : > { %vm815_vm3 = vcmp.lt.f32.partialorder %v767_v40, 16.0 }
  0x6f   : > { %v8874_v63 = vsel %vm815_vm3, 1.0, %v8550_v5 }
  0x70   : > { %7746 = vmatmul.mubr.msk.f32.gmra.mrb[34].mxu0 %vm1050_vm0, %v1026_v42  ;;  %v770_v42 = vsub.f32 %v530_v1, %v722_v32  ;;  %13068 = vst [vmem:[#allocation9_spill] sm:$0xff] %v8874_v63  ;;  %v8878_v1 = vadd.s32 112, %v8827_v59  ;;  %v8919_v32 = vadd.s32 152, %v8827_v59 }
  0x71   : > { %7748 = vmatprep.mubr.msk.f32.mxu0 %vm1050_vm0, %v1027_v43  ;;  %v723_v43 = vmul.f32 24.0, %v675_v33 }
  0x72   : > { %vm818_vm4 = vcmp.lt.f32.partialorder %v770_v42, 16.0  ;;  %v541_v14 = vcvt.s32.f32 %v8878_v1 }
  0x73   : > { %v8881_v2 = vsel %vm818_vm4, 1.0, %v8550_v5 }
  0x74   : > { %7749 = vmatmul.mubr.msk.f32.gmra.mrb[36].mxu0 %vm1050_vm0, %v1028_v44  ;;  %v629_v44 = vmul.f32 0.041666668, %v581_v34  ;;  %13069 = vst [vmem:[#allocation10_spill] sm:$0xff] %v8881_v2  ;;  %v589_v17 = vadd.f32 0.5, %v541_v14  ;;  %v543_v34 = vcvt.s32.f32 %v8900_v16 }
  0x75   : > { %7751 = vmatprep.mubr.msk.f32.mxu0 %vm1050_vm0, %v1029_v45  ;;  %v8854_v45 = vadd.s32 80, %v8827_v59 }
  0x76   : > { %v677_v53 = vfloor.f32 %v629_v44  ;;  %v591_v26 = vadd.f32 0.5, %v543_v34 }
  0x77   : > { %v537_v54 = vcvt.s32.f32 %v8854_v45 }
  0x78   : > { %7752 = vmatmul.mubr.msk.f32.gmra.mrb[38].mxu0 %vm1050_vm0, %v1030_v46  ;;  %v630_v46 = vmul.f32 0.041666668, %v582_v35  ;;  %v725_v3 = vmul.f32 24.0, %v677_v53 }
  0x79   : > { %7754 = vmatprep.mubr.msk.f32.mxu0 %vm1050_vm0, %v1031_v47  ;;  %v583_v47 = vadd.f32 0.5, %v535_v36  ;;  %v585_v4 = vadd.f32 0.5, %v537_v54 }
  0x7a   : > { %v773_v19 = vsub.f32 %v533_v24, %v725_v3  ;;  %v542_v24 = vcvt.s32.f32 %v8891_v12 }
  0x7b   : > { %v631_v56 = vmul.f32 0.041666668, %v583_v47  ;;  %v633_v20 = vmul.f32 0.041666668, %v585_v4  ;;  %v8937_v47 = vadd.s32 168, %v8827_v59 }
  0x7c   : > { %7755 = vmatmul.mubr.msk.f32.gmra.mrb[40].mxu0 %vm1050_vm0, %v1032_v48  ;;  %v724_v48 = vmul.f32 24.0, %v676_v37  ;;  %vm821_vm8 = vcmp.lt.f32.partialorder %v773_v19, 16.0  ;;  %v545_v37 = vcvt.s32.f32 %v8906_v21  ;;  %v590_v44 = vadd.f32 0.5, %v542_v24 }
  0x7d   : > { %7757 = vmatprep.mubr.msk.f32.mxu0 %vm1050_vm0, %v1033_v49  ;;  %v584_v49 = vadd.f32 0.5, %v536_v38  ;;  %v681_v35 = vfloor.f32 %v633_v20  ;;  %v8945_v28 = vsel %vm821_vm8, 1.0, %v8550_v5  ;;  %v548_v3 = vcvt.s32.f32 %v8937_v47 }
  0x7e   : > { %v772_v61 = vsub.f32 %v532_v10, %v724_v48  ;;  %13073 = vst [vmem:[#allocation14_spill] sm:$0xff] %v8945_v28 }
  0x7f   : > { %v632_v62 = vmul.f32 0.041666668, %v584_v49  ;;  %v637_v49 = vmul.f32 0.041666668, %v589_v17  ;;  %v596_v17 = vadd.f32 0.5, %v548_v3 }
  0x80   : > { %7758 = vmatmul.mubr.msk.f32.gmra.mrb[42].mxu0 %vm1050_vm0, %v1034_v50  ;;  %v769_v50 = vsub.f32 %v529_v7, %v721_v41  ;;  %v679_v7 = vfloor.f32 %v631_v56  ;;  %vm820_vm7 = vcmp.lt.f32.partialorder %v772_v61, 16.0  ;;  %v638_v61 = vmul.f32 0.041666668, %v590_v44 }
  0x81   : > { %7760 = vmatprep.mubr.msk.f32.mxu0 %vm1050_vm0, %v1035_v51  ;;  %v8861_v51 = vadd.s32 88, %v8827_v59  ;;  %v680_v11 = vfloor.f32 %v632_v62  ;;  %v8915_v30 = vsel %vm820_vm7, 1.0, %v8550_v5 }
  0x82   : > { %vm817_vm5 = vcmp.lt.f32.partialorder %v769_v50, 16.0  ;;  %v727_v23 = vmul.f32 24.0, %v679_v7  ;;  %13072 = vst [vmem:[#allocation13_spill] sm:$0xff] %v8915_v30  ;;  %v686_v45 = vfloor.f32 %v638_v61 }
  0x83   : > { %v538_v0 = vcvt.s32.f32 %v8861_v51  ;;  %v8888_v10 = vsel %vm817_vm5, 1.0, %v8550_v5  ;;  %v728_v31 = vmul.f32 24.0, %v680_v11  ;;  %v639_v11 = vmul.f32 0.041666668, %v591_v26 }
  0x84   : > { %7761 = vmatmul.mubr.msk.f32.gmra.mrb[44].mxu0 %vm1050_vm0, %v1036_v52  ;;  %v771_v52 = vsub.f32 %v531_v9, %v723_v43  ;;  %v539_v9 = vcvt.s32.f32 %v8868_v58  ;;  %13070 = vst [vmem:[#allocation11_spill] sm:$0xff] %v8888_v10  ;;  %v775_v40 = vsub.f32 %v535_v36, %v727_v23  ;;  %v729_v36 = vmul.f32 24.0, %v681_v35 }
  0x85   : > { %7763 = vmatprep.mubr.msk.f32.mxu0 %vm1050_vm0, %v1037_v55  ;;  %v678_v55 = vfloor.f32 %v630_v46  ;;  %v586_v13 = vadd.f32 0.5, %v538_v0  ;;  %v776_v43 = vsub.f32 %v536_v38, %v728_v31  ;;  %v546_v46 = vcvt.s32.f32 %v8919_v32  ;;  %v7050_v32 = vld [vmem:[%s13082_s3 + $0x38] sm:$0xff] }
  0x86   : > { %vm819_vm6 = vcmp.lt.f32.partialorder %v771_v52, 16.0  ;;  %v587_v29 = vadd.f32 0.5, %v539_v9  ;;  %v593_v38 = vadd.f32 0.5, %v545_v37  ;;  %v547_v52 = vcvt.s32.f32 %v8927_v39 }
  0x87   : > { %v726_v6 = vmul.f32 24.0, %v678_v55  ;;  %v8903_v18 = vsel %vm819_vm6, 1.0, %v8550_v5  ;;  %v634_v33 = vmul.f32 0.041666668, %v586_v13  ;;  %vm823_vm10 = vcmp.lt.f32.partialorder %v775_v40, 16.0 }
  0x88   : > { %7764 = vmatmul.mubr.msk.f32.gmra.mrb[46].mxu0 %vm1050_vm0, %v1038_v57  ;;  %v8865_v57 = vadd.s32 104, %v8827_v59  ;;  %13071 = vst [vmem:[#allocation12_spill] sm:$0xff] %v8903_v18  ;;  %v635_v42 = vmul.f32 0.041666668, %v587_v29  ;;  %vm824_vm11 = vcmp.lt.f32.partialorder %v776_v43, 16.0  ;;  %v594_v62 = vadd.f32 0.5, %v546_v46 }
  0x89   : > { %v774_v22 = vsub.f32 %v534_v25, %v726_v6  ;;  %v544_v25 = vcvt.s32.f32 %v8897_v15  ;;  %v682_v48 = vfloor.f32 %v634_v33  ;;  %v685_v6 = vfloor.f32 %v637_v49 }
  0x8a   : > { %v540_v8 = vcvt.s32.f32 %v8865_v57  ;;  %v683_v56 = vfloor.f32 %v635_v42  ;;  %v777_v13 = vsub.f32 %v537_v54, %v729_v36  ;;  %v641_v19 = vmul.f32 0.041666668, %v593_v38 }
  0x8b   : > { %vm822_vm9 = vcmp.lt.f32.partialorder %v774_v22, 16.0  ;;  %v592_v50 = vadd.f32 0.5, %v544_v25  ;;  %v730_v4 = vmul.f32 24.0, %v682_v48  ;;  %v595_v20 = vadd.f32 0.5, %v547_v52 }
  0x8c   : > { %v588_v27 = vadd.f32 0.5, %v540_v8  ;;  %v8952_v53 = vsel %vm822_vm9, 1.0, %v8550_v5  ;;  %v8962_v22 = vadd.s32 176, %v8827_v59  ;;  %v8965_v23 = vsel %vm823_vm10, 1.0, %v8550_v5 }
  0x8d   : > { %13074 = vst [vmem:[#allocation15_spill] sm:$0xff] %v8952_v53  ;;  %v640_v7 = vmul.f32 0.041666668, %v592_v50  ;;  %13075 = vst [vmem:[#allocation16_spill] sm:$0xff] %v8965_v23  ;;  %v731_v29 = vmul.f32 24.0, %v683_v56  ;;  %v8968_v31 = vadd.s32 184, %v8827_v59  ;;  %v778_v35 = vsub.f32 %v538_v0, %v730_v4 }
  0x8e   : > { %v636_v41 = vmul.f32 0.041666668, %v588_v27  ;;  %v8972_v33 = vsel %vm824_vm11, 1.0, %v8550_v5  ;;  %v642_v54 = vmul.f32 0.041666668, %v594_v62  ;;  %v733_v40 = vmul.f32 24.0, %v685_v6 }
  0x8f   : > { %13076 = vst [vmem:[#allocation17_spill] sm:$0xff] %v8972_v33  ;;  %v687_v42 = vfloor.f32 %v639_v11  ;;  %vm825_vm12 = vcmp.lt.f32.partialorder %v777_v13, 16.0  ;;  %v689_v44 = vfloor.f32 %v641_v19  ;;  %v643_v48 = vmul.f32 0.041666668, %v595_v20 }
  0x90   : > { %v684_v55 = vfloor.f32 %v636_v41  ;;  %v688_v41 = vfloor.f32 %v640_v7  ;;  %v549_v49 = vcvt.s32.f32 %v8962_v22  ;;  %v779_v50 = vsub.f32 %v539_v9, %v731_v29 }
  0x91   : > { %v550_v26 = vcvt.s32.f32 %v8968_v31  ;;  %v8985_v36 = vadd.s32 192, %v8827_v59  ;;  %v734_v51 = vmul.f32 24.0, %v686_v45  ;;  %v690_v0 = vfloor.f32 %v642_v54  ;;  %v7053_v31 = vld [vmem:[%s13082_s3 + $0x50] sm:$0xff] }
  0x92   : > { %v732_v27 = vmul.f32 24.0, %v684_v55  ;;  %v644_v38 = vmul.f32 0.041666668, %v596_v17  ;;  %v8988_v55 = vadd.s32 200, %v8827_v59  ;;  %vm826_vm13 = vcmp.lt.f32.partialorder %v778_v35, 16.0  ;;  %v7049_v35 = vld [vmem:[%s13082_s3 + $0x30] sm:$0xff] }
  0x93   : > { %v781_v56 = vsub.f32 %v541_v14, %v733_v40  ;;  %v736_v57 = vmul.f32 24.0, %v688_v41  ;;  %v8994_v58 = vsel %vm825_vm12, 1.0, %v8550_v5  ;;  %v737_v9 = vmul.f32 24.0, %v689_v44 }
  0x94   : > { %v780_v43 = vsub.f32 %v540_v8, %v732_v27  ;;  %v735_v8 = vmul.f32 24.0, %v687_v42  ;;  %13077 = vst [vmem:[#allocation18_spill] sm:$0xff] %v8994_v58  ;;  %v691_v61 = vfloor.f32 %v643_v48  ;;  %v597_v62 = vadd.f32 0.5, %v549_v49 }
  0x95   : > { %vm827_vm15 = vcmp.lt.f32.partialorder %v779_v50, 16.0  ;;  %v598_v4 = vadd.f32 0.5, %v550_v26  ;;  %v551_v6 = vcvt.s32.f32 %v8985_v36  ;;  %v782_v1 = vsub.f32 %v542_v24, %v734_v51 }
  0x96   : > { %vm828_vm14 = vcmp.lt.f32.partialorder %v780_v43, 16.0  ;;  %v738_v14 = vmul.f32 24.0, %v690_v0  ;;  %v692_v7 = vfloor.f32 %v644_v38  ;;  %v552_v11 = vcvt.s32.f32 %v8988_v55 }
  0x97   : > { %v9006_v13 = vsel %vm826_vm13, 1.0, %v8550_v5  ;;  %vm829_vm0 = vcmp.lt.f32.partialorder %v781_v56, 16.0  ;;  %v784_v19 = vsub.f32 %v544_v25, %v736_v57  ;;  %v783_v20 = vsub.f32 %v543_v34, %v735_v8 }
  0x98   : > { %13078 = vst [vmem:[#allocation19_spill] sm:$0xff] %v9006_v13  ;;  %v785_v27 = vsub.f32 %v545_v37, %v737_v9  ;;  %v739_v12 = vmul.f32 24.0, %v691_v61  ;;  %v645_v24 = vmul.f32 0.041666668, %v597_v62  ;;  %v9015_v29 = vadd.s32 208, %v8827_v59 }
  0x99   : > { %v9019_v45 = vsel %vm828_vm14, 1.0, %v8550_v5  ;;  %v9023_v54 = vsel %vm827_vm15, 1.0, %v8550_v5  ;;  %v646_v15 = vmul.f32 0.041666668, %v598_v4  ;;  %v599_v16 = vadd.f32 0.5, %v551_v6 }
  0x9a   : > { %13079 = vst [vmem:[#allocation20_spill] sm:$0xff] %v9019_v45  ;;  %13080 = vst [vmem:[#allocation21_spill] sm:$0xff] %v9023_v54  ;;  %vm830_vm3 = vcmp.lt.f32.partialorder %v782_v1, 16.0  ;;  %v786_v21 = vsub.f32 %v546_v46, %v738_v14  ;;  %v740_v25 = vmul.f32 24.0, %v692_v7  ;;  %v600_v34 = vadd.f32 0.5, %v552_v11 }
  0x9b   : > { %v9033_v37 = vsel %vm829_vm0, 1.0, %v8550_v5  ;;  %vm832_vm4 = vcmp.lt.f32.partialorder %v784_v19, 16.0  ;;  %vm831_vm5 = vcmp.lt.f32.partialorder %v783_v20, 16.0  ;;  %v9036_v17 = vadd.s32 216, %v8827_v59  ;;  %v9047_v46 = vld [vmem:[%s13083_s2] ss:$0 sm:$0xff] }
  0x9c   : > { %13081 = vst [vmem:[#allocation22_spill] sm:$0xff] %v9033_v37  ;;  %vm833_vm6 = vcmp.lt.f32.partialorder %v785_v27, 16.0  ;;  %v787_v40 = vsub.f32 %v547_v52, %v739_v12  ;;  %v693_v41 = vfloor.f32 %v645_v24  ;;  %v553_v42 = vcvt.s32.f32 %v9015_v29  ;;  %v7051_v12 = vld [vmem:[%s13082_s3 + $0x40] sm:$0xff]  ;;  %v7052_v24 = vld [vmem:[%s13082_s3 + $0x48] sm:$0xff] }
  0x9d   : > { %v9053_v44 = vsel %vm830_vm3, 1.0, %v8550_v5  ;;  %v694_v48 = vfloor.f32 %v646_v15  ;;  %v647_v43 = vmul.f32 0.041666668, %v599_v16  ;;  %v9055_v50 = vpack.c.bf16 %v7050_v32, %v7049_v35 }
  0x9e   : > { %13084 = vst [vmem:[#allocation23_spill] sm:$0xff] %v9053_v44  ;;  %v9058_v0 = vsel %vm831_vm5, 1.0, %v8550_v5  ;;  %vm834_vm7 = vcmp.lt.f32.partialorder %v786_v21, 16.0  ;;  %v788_v38 = vsub.f32 %v548_v3, %v740_v25  ;;  %v648_v39 = vmul.f32 0.041666668, %v600_v34 }
  0x9f   : > { %13085 = vst [vmem:[#allocation24_spill] sm:$0xff] %v9058_v0  ;;  %v9065_v57 = vsel %vm832_vm4, 1.0, %v8550_v5  ;;  %v9069_v8 = vsel %vm833_vm6, 1.0, %v8550_v5  ;;  %v554_v9 = vcvt.s32.f32 %v9036_v17  ;;  %8145 = vmatprep.subr.bf16.mxu1 %v9055_v50  ;;  %vm835_vm8 = vcmp.lt.f32.partialorder %v787_v40, 16.0 }
  0xa0   : > { %13086 = vst [vmem:[#allocation25_spill] sm:$0xff] %v9065_v57  ;;  %13087 = vst [vmem:[#allocation26_spill] sm:$0xff] %v9069_v8  ;;  %v741_v47 = vmul.f32 24.0, %v693_v41  ;;  %v601_v3 = vadd.f32 0.5, %v553_v42  ;;  %v9077_v4 = vsel %vm834_vm7, 1.0, %v8550_v5  ;;  %v742_v1 = vmul.f32 24.0, %v694_v48 }
  0xa1   : > { %13088 = vst [vmem:[#allocation27_spill] sm:$0xff] %v9077_v4  ;;  %v695_v14 = vfloor.f32 %v647_v43  ;;  %vm836_vm9 = vcmp.lt.f32.partialorder %v788_v38, 16.0  ;;  %v696_v20 = vfloor.f32 %v648_v39  ;;  %v9080_v27 = vadd.s32 224, %v8827_v59 }
  0xa2   : > { %v9092_v25 = vsel %vm835_vm8, 1.0, %v8550_v5  ;;  %v602_v34 = vadd.f32 0.5, %v554_v9  ;;  %v789_v41 = vsub.f32 %v549_v49, %v741_v47  ;;  %v649_v48 = vmul.f32 0.041666668, %v601_v3 }
  0xa3   : > { %13089 = vst [vmem:[#allocation28_spill] sm:$0xff] %v9092_v25  ;;  %v790_v40 = vsub.f32 %v550_v26, %v742_v1  ;;  %v8148_v39 = vpack.c.bf16 %v7052_v24, %v7051_v12  ;;  %v744_v49 = vmul.f32 24.0, %v696_v20  ;;  %v7054_v26 = vld [vmem:[%s13082_s3 + $0x58] sm:$0xff]  ;;  %v9124_v1 = vsel %vm836_vm9, 1.0, %v8550_v5 }
  0xa4   : > { %13090 = vst [vmem:[#allocation29_spill] sm:$0xff] %v9124_v1  ;;  %vm837_vm10 = vcmp.lt.f32.partialorder %v789_v41, 16.0  ;;  %v697_v20 = vfloor.f32 %v649_v48  ;;  %v8152_v24 = vpack.c.bf16 %v7054_v26, %v7053_v31  ;;  %v9198_v29 = vadd.s32 256, %v8827_v59 }
  0xa5   : > { %vm838_vm11 = vcmp.lt.f32.partialorder %v790_v40, 16.0  ;;  %v9165_v31 = vsel %vm837_vm10, 1.0, %v8550_v5 }
  0xa6   : > { %13092 = vst [vmem:[#allocation31_spill] sm:$0xff] %v9165_v31 }
  0xff   : > { %v7696_v51 = vpop.f32.mrb[0].mxu0 }
 0x100   : > { %v1267_v52 = vadd.f32 %v7696_v51, %v9047_v46  ;;  %v1261_v56 = vpop.f32.mrb[1].mxu0  ;;  %v743_v51 = vmul.f32 24.0, %v695_v14  ;;  %v650_v14 = vmul.f32 0.041666668, %v602_v34 }
 0x101   : > { %v1262_v61 = vadd.f32 %v9047_v46, %v1261_v56  ;;  %v9107_v56 = vadd.s32 232, %v8827_v59 }
 0x102   : > { %v1501_v62 = vmax.f32 %v1267_v52, 0.0  ;;  %v791_v38 = vsub.f32 %v551_v6, %v743_v51  ;;  %v698_v48 = vfloor.f32 %v650_v14  ;;  %v745_v51 = vmul.f32 24.0, %v697_v20 }
 0x103   : > { %v1500_v7 = vmax.f32 %v1262_v61, 0.0  ;;  %v7699_v19 = vpop.f32.mrb[2].mxu0  ;;  %v555_v61 = vcvt.s32.f32 %v9080_v27  ;;  %v12909_v34 = vcvt.s32.f32 %v9107_v56 }
 0x104   : > { %v1549_v15 = vmul.f32 %v8871_v60, %v1501_v62  ;;  %v1277_v16 = vadd.f32 %v7699_v19, %v9047_v46  ;;  %v1271_v21 = vpop.f32.mrb[3].mxu0  ;;  %vm839_vm12 = vcmp.lt.f32.partialorder %v791_v38, 16.0  ;;  %v746_v14 = vmul.f32 24.0, %v698_v48 }
 0x105   : > { %v1548_v35 = vmul.f32 %v8874_v63, %v1500_v7  ;;  %v1272_v32 = vadd.f32 %v9047_v46, %v1271_v21  ;;  %v792_v21 = vsub.f32 %v552_v11, %v744_v49  ;;  %v9161_v49 = vsel %vm838_vm11, 1.0, %v8550_v5 }
 0x106   : > { %v1503_v43 = vmax.f32 %v1277_v16, 0.0  ;;  %1695 = vrot.lane.b32.xlu0 %v1549_v15, %s8551_s18  ;;  %1598 = vst.msk [vmem:[#allocation2 + $0x29] sm:$0xff] %vm1596_vm2, %v1549_v15  ;;  %13091 = vst [vmem:[#allocation30_spill] sm:$0xff] %v9161_v49 }
 0x107   : > { %v1502_v52 = vmax.f32 %v1272_v32, 0.0  ;;  %1886 = vrot.lane.b32.xlu1 %v1548_v35, %s8552_s20  ;;  %7770 = vmatprep.mubr.msk.f32.mxu1 %vm1596_vm2, %v1548_v35  ;;  %v7702_v22 = vpop.f32.mrb[4].mxu0  ;;  %1597 = vst.msk [vmem:[#allocation2 + $0x21] sm:$0xff] %vm1596_vm2, %v1548_v35  ;;  %vm840_vm13 = vcmp.lt.f32.partialorder %v792_v21, 16.0 }
 0x108   : > { %v9118_v47 = vmul.f32 %v8881_v2, %v1503_v43  ;;  %v1287_v3 = vadd.f32 %v7702_v22, %v9047_v46  ;;  %7771 = vmatmul.mubr.msk.f32.vlgmr.msra.gmra.mrb[0].mxu1 %vm1596_vm2, %v1549_v15  ;;  %v1281_v62 = vpop.f32.mrb[5].mxu0  ;;  %v9149_v43 = vadd.s32 248, %v8827_v59  ;;  %v9207_v38 = vsel %vm840_vm13, 1.0, %v8550_v5 }
 0x109   : > { %v1550_v7 = vmul.f32 %v8888_v10, %v1502_v52  ;;  %v1282_v19 = vadd.f32 %v9047_v46, %v1281_v62  ;;  %8147 = vmatpush3.bf16.msra.mxu1 %v9055_v50  ;;  %v9154_v52 = vadd.s32 240, %v8827_v59  ;;  %13094 = vst [vmem:[#allocation33_spill] sm:$0xff] %v9207_v38 }
 0x10a   : > { %1600 = vst.msk [vmem:[#allocation2 + $0x39] sm:$0xff] %vm1596_vm2, %v9118_v47  ;;  %v1505_v12 = vmax.f32 %v1287_v3, 0.0  ;;  %1888 = vrot.lane.b32.xlu0 %v1549_v15, %s8552_s20  ;;  %8149 = vmatprep.subr.bf16.mxu1 %v8148_v39  ;;  %v603_v15 = vadd.f32 0.5, %v555_v61 }
 0x10b   : > { %1599 = vst.msk [vmem:[#allocation2 + $0x31] sm:$0xff] %vm1596_vm2, %v1550_v7  ;;  %v1504_v16 = vmax.f32 %v1282_v19, 0.0  ;;  %1697 = vrot.lane.b32.xlu1 %v1550_v7, %s8551_s18  ;;  %7773 = vmatprep.mubr.msk.f32.mxu1 %vm1596_vm2, %v1550_v7  ;;  %v7705_v50 = vpop.f32.mrb[6].mxu0 }
 0x10c   : > { %v9143_v36 = vmul.f32 %v8915_v30, %v1505_v12  ;;  %7774 = vmatmul.mubr.msk.f32.gmra.mrb[2].mxu1 %vm1596_vm2, %v9118_v47  ;;  %v1297_v6 = vadd.f32 %v7705_v50, %v9047_v46  ;;  %v1291_v32 = vpop.f32.mrb[7].mxu0  ;;  %v651_v40 = vmul.f32 0.041666668, %v603_v15  ;;  %v793_v12 = vsub.f32 %v553_v42, %v745_v51 }
 0x10d   : > { %v1552_v55 = vmul.f32 %v8903_v18, %v1504_v16  ;;  %v1292_v11 = vadd.f32 %v9047_v46, %v1291_v32  ;;  %8151 = vmatpush3.bf16.msra.mxu1 %v8148_v39  ;;  %v12905_v16 = vcvt.s32.f32 %v9154_v52  ;;  %v9192_v15 = vsel %vm839_vm12, 1.0, %v8550_v5 }
 0x10e   : > { %1602 = vst.msk [vmem:[#allocation2 + $0x49] sm:$0xff] %vm1596_vm2, %v9143_v36  ;;  %1693 = vrot.lane.b32.xlu0 %v1548_v35, %s8551_s18  ;;  %v1507_v22 = vmax.f32 %v1297_v6, 0.0  ;;  %8153 = vmatprep.subr.bf16.mxu1 %v8152_v24  ;;  %v604_v35 = vadd.f32 0.5, %v12909_v34  ;;  %13093 = vst [vmem:[#allocation32_spill] sm:$0xff] %v9192_v15  ;;  %v9195_v6 = vadd.s32 264, %v8827_v59  ;;  %v699_v48 = vfloor.f32 %v651_v40 }
 0x10f   : > { %1601 = vst.msk [vmem:[#allocation2 + $0x41] sm:$0xff] %vm1596_vm2, %v1552_v55  ;;  %1890 = vrot.lane.b32.xlu1 %v1550_v7, %s8552_s20  ;;  %7776 = vmatprep.mubr.msk.f32.mxu1 %vm1596_vm2, %v1552_v55  ;;  %v1506_v39 = vmax.f32 %v1292_v11, 0.0  ;;  %v7708_v26 = vpop.f32.mrb[8].mxu0  ;;  %v12908_v7 = vcvt.s32.f32 %v9149_v43  ;;  %vm841_vm14 = vcmp.lt.f32.partialorder %v793_v12, 16.0  ;;  %v605_v40 = vadd.f32 0.5, %v12905_v16 }
 0x110   : > { %v9173_v3 = vmul.f32 %v8952_v53, %v1507_v22  ;;  %7777 = vmatmul.mubr.msk.f32.gmra.mrb[4].mxu1 %vm1596_vm2, %v9143_v36  ;;  %v1307_v41 = vadd.f32 %v7708_v26, %v9047_v46  ;;  %v1301_v62 = vpop.f32.mrb[9].mxu0  ;;  %v652_v32 = vmul.f32 0.041666668, %v604_v35 }
 0x111   : > { %v9180_v19 = vmul.f32 %v8945_v28, %v1506_v39  ;;  %v1302_v20 = vadd.f32 %v9047_v46, %v1301_v62  ;;  %8155 = vmatpush3.bf16.msra.mxu1 %v8152_v24  ;;  %v794_v39 = vsub.f32 %v554_v9, %v746_v14  ;;  %v606_v26 = vadd.f32 0.5, %v12908_v7 }
 0x112   : > { %1604 = vst.msk [vmem:[#allocation2 + $0x59] sm:$0xff] %vm1596_vm2, %v9173_v3  ;;  %1699 = vrot.lane.b32.xlu0 %v9118_v47, %s8551_s18  ;;  %v1509_v50 = vmax.f32 %v1307_v41, 0.0  ;;  %v12907_v9 = vcvt.s32.f32 %v9195_v6  ;;  %v12906_v41 = vcvt.s32.f32 %v9198_v29  ;;  %v9232_v62 = vadd.s32 280, %v8827_v59 }
 0x113   : > { %1603 = vst.msk [vmem:[#allocation2 + $0x51] sm:$0xff] %vm1596_vm2, %v9180_v19  ;;  %1701 = vrot.lane.b32.xlu1 %v1552_v55, %s8551_s18  ;;  %7779 = vmatprep.mubr.msk.f32.mxu1 %vm1596_vm2, %v9180_v19  ;;  %v1508_v42 = vmax.f32 %v1302_v20, 0.0  ;;  %v7711_v24 = vpop.f32.mrb[10].mxu0  ;;  %v700_v20 = vfloor.f32 %v652_v32  ;;  %vm842_vm15 = vcmp.lt.f32.partialorder %v794_v39, 16.0  ;;  %v13098_v39 = vcvt.s32.f32 %v9107_v56 }
 0x114   : > { %v9210_v11 = vmul.f32 %v8972_v33, %v1509_v50  ;;  %7780 = vmatmul.mubr.msk.f32.gmra.mrb[6].mxu1 %vm1596_vm2, %v9173_v3  ;;  %v1317_v51 = vadd.f32 %v7711_v24, %v9047_v46  ;;  %v1311_v22 = vpop.f32.mrb[11].mxu0  ;;  %v747_v50 = vmul.f32 24.0, %v699_v48  ;;  %v9254_v48 = vsel %vm841_vm14, 1.0, %v8550_v5  ;;  %v7156_v33 = vld [vmem:[%s13082_s3 + $0x88] sm:$0xff] }
 0x115   : > { %v9220_v21 = vmul.f32 %v8965_v23, %v1508_v42  ;;  %v1312_v35 = vadd.f32 %v9047_v46, %v1311_v22  ;;  %v9240_v42 = vadd.s32 272, %v8827_v59  ;;  %v654_v22 = vmul.f32 0.041666668, %v606_v26  ;;  %13095 = vst [vmem:[#allocation34_spill] sm:$0xff] %v9254_v48 }
 0x116   : > { %1892 = vrot.lane.b32.xlu0 %v9118_v47, %s8552_s20  ;;  %1606 = vst.msk [vmem:[#allocation2 + $0x69] sm:$0xff] %vm1596_vm2, %v9210_v11  ;;  %v1511_v17 = vmax.f32 %v1317_v51, 0.0  ;;  %v608_v26 = vadd.f32 0.5, %v12907_v9  ;;  %v795_v34 = vsub.f32 %v555_v61, %v747_v50 }
 0x117   : > { %1894 = vrot.lane.b32.xlu1 %v1552_v55, %s8552_s20  ;;  %1605 = vst.msk [vmem:[#allocation2 + $0x61] sm:$0xff] %vm1596_vm2, %v9220_v21  ;;  %7782 = vmatprep.mubr.msk.f32.mxu1 %vm1596_vm2, %v9220_v21  ;;  %v1510_v47 = vmax.f32 %v1312_v35, 0.0  ;;  %v7714_v14 = vpop.f32.mrb[12].mxu0  ;;  %v653_v35 = vmul.f32 0.041666668, %v605_v40  ;;  %v748_v40 = vmul.f32 24.0, %v700_v20 }
 0x118   : > { %v9243_v24 = vmul.f32 %v9006_v13, %v1511_v17  ;;  %7783 = vmatmul.mubr.msk.f32.gmra.mrb[8].mxu1 %vm1596_vm2, %v9210_v11  ;;  %v1327_v55 = vadd.f32 %v7714_v14, %v9047_v46  ;;  %v1321_v51 = vpop.f32.mrb[13].mxu0  ;;  %v9287_v14 = vld [vmem:[#allocation3] sm:$0xff]  ;;  %v656_v61 = vmul.f32 0.041666668, %v608_v26  ;;  %vm843_vm0 = vcmp.lt.f32.partialorder %v795_v34, 16.0 }
 0x119   : > { %v9249_v16 = vmul.f32 %v8994_v58, %v1510_v47  ;;  %v1322_v32 = vadd.f32 %v9047_v46, %v1321_v51  ;;  %v607_v47 = vadd.f32 0.5, %v12906_v41  ;;  %v9273_v51 = vadd.s32 296, %v8827_v59 }
 0x11a   : > { %1703 = vrot.lane.b32.xlu0 %v9143_v36, %s8551_s18  ;;  %1608 = vst.msk [vmem:[#allocation2 + $0x79] sm:$0xff] %vm1596_vm2, %v9243_v24  ;;  %v1513_v17 = vmax.f32 %v1327_v55, 0.0 }
 0x11b   : > { %1705 = vrot.lane.b32.xlu1 %v9180_v19, %s8551_s18  ;;  %1607 = vst.msk [vmem:[#allocation2 + $0x71] sm:$0xff] %vm1596_vm2, %v9249_v16  ;;  %7785 = vmatprep.mubr.msk.f32.mxu1 %vm1596_vm2, %v9249_v16  ;;  %v1512_v5 = vmax.f32 %v1322_v32, 0.0  ;;  %v7717_v12 = vpop.f32.mrb[14].mxu0  ;;  %v702_v32 = vfloor.f32 %v654_v22  ;;  %v655_v50 = vmul.f32 0.041666668, %v607_v47  ;;  %v13097_v22 = vcvt.s32.f32 %v9232_v62 }
 0x11c   : > { %v9276_v41 = vmul.f32 %v9019_v45, %v1513_v17  ;;  %7786 = vmatmul.mubr.msk.f32.gmra.mrb[10].mxu1 %vm1596_vm2, %v9243_v24  ;;  %v1337_v9 = vadd.f32 %v7717_v12, %v9047_v46  ;;  %v1331_v7 = vpop.f32.mrb[15].mxu0  ;;  %v9291_v17 = vsel %vm842_vm15, 1.0, %v9287_v14  ;;  %v701_v45 = vfloor.f32 %v653_v35 }
 0x11d   : > { %v9284_v20 = vmul.f32 %v9023_v54, %v1512_v5  ;;  %v1332_v55 = vadd.f32 %v9047_v46, %v1331_v7  ;;  %13096 = vst [vmem:[#allocation35_spill] sm:$0xff] %v9291_v17  ;;  %v610_v5 = vadd.f32 0.5, %v13097_v22  ;;  %v796_v35 = vsub.f32 %v13098_v39, %v748_v40 }
 0x11e   : > { %1896 = vrot.lane.b32.xlu0 %v9143_v36, %s8552_s20  ;;  %1610 = vst.msk [vmem:[#allocation2 + $0x89] sm:$0xff] %vm1596_vm2, %v9276_v41  ;;  %v1515_v27 = vmax.f32 %v1337_v9, 0.0  ;;  %v13099_v9 = vcvt.s32.f32 %v9240_v42  ;;  %v749_v40 = vmul.f32 24.0, %v701_v45  ;;  %v9321_v39 = vadd.s32 288, %v8827_v59 }
 0x11f   : > { %1898 = vrot.lane.b32.xlu1 %v9180_v19, %s8552_s20  ;;  %1609 = vst.msk [vmem:[#allocation2 + $0x81] sm:$0xff] %vm1596_vm2, %v9284_v20  ;;  %7788 = vmatprep.mubr.msk.f32.mxu1 %vm1596_vm2, %v9284_v20  ;;  %v1514_v7 = vmax.f32 %v1332_v55, 0.0  ;;  %v7720_v36 = vpop.f32.mrb[16].mxu0  ;;  %v750_v55 = vmul.f32 24.0, %v702_v32  ;;  %v658_v47 = vmul.f32 0.041666668, %v610_v5 }
 0x120   : > { %v609_v26 = vadd.f32 0.5, %v13099_v9  ;;  %v9311_v12 = vmul.f32 %v9053_v44, %v1515_v27  ;;  %7789 = vmatmul.mubr.msk.f32.gmra.mrb[12].mxu1 %vm1596_vm2, %v9276_v41  ;;  %v1347_v19 = vadd.f32 %v7720_v36, %v9047_v46  ;;  %v1341_v22 = vpop.f32.mrb[17].mxu0  ;;  %v704_v36 = vfloor.f32 %v656_v61 }
 0x121   : > { %v9317_v54 = vmul.f32 %v9033_v37, %v1514_v7  ;;  %v1342_v56 = vadd.f32 %v9047_v46, %v1341_v22  ;;  %v703_v9 = vfloor.f32 %v655_v50  ;;  %vm844_vm3 = vcmp.lt.f32.partialorder %v796_v35, 16.0 }
 0x122   : > { %1707 = vrot.lane.b32.xlu0 %v9173_v3, %s8551_s18  ;;  %1612 = vst.msk [vmem:[#allocation2 + $0x99] sm:$0xff] %vm1596_vm2, %v9311_v12  ;;  %v1517_v27 = vmax.f32 %v1347_v19, 0.0  ;;  %v657_v7 = vmul.f32 0.041666668, %v609_v26  ;;  %v13100_v22 = vcvt.s32.f32 %v9273_v51  ;;  %v9343_v19 = vsel %vm843_vm0, 1.0, %v9287_v14 }
 0x123   : > { %1709 = vrot.lane.b32.xlu1 %v9220_v21, %s8551_s18  ;;  %1611 = vst.msk [vmem:[#allocation2 + $0x91] sm:$0xff] %vm1596_vm2, %v9317_v54  ;;  %7791 = vmatprep.mubr.msk.f32.mxu1 %vm1596_vm2, %v9317_v54  ;;  %v1516_v45 = vmax.f32 %v1342_v56, 0.0  ;;  %v7723_v32 = vpop.f32.mrb[18].mxu0  ;;  %13101 = vst [vmem:[#allocation36_spill] sm:$0xff] %v9343_v19  ;;  %v13102_v56 = vcvt.s32.f32 %v9149_v43  ;;  %v12922_v58 = vcvt.s32.f32 %v9321_v39  ;;  %v751_v43 = vmul.f32 24.0, %v703_v9 }
 0x124   : > { %v612_v37 = vadd.f32 0.5, %v13100_v22  ;;  %v9336_v61 = vmul.f32 %v9065_v57, %v1517_v27  ;;  %7792 = vmatmul.mubr.msk.f32.gmra.mrb[14].mxu1 %vm1596_vm2, %v9311_v12  ;;  %v1357_v50 = vadd.f32 %v7723_v32, %v9047_v46  ;;  %v1351_v5 = vpop.f32.mrb[19].mxu0  ;;  %v13103_v27 = vcvt.s32.f32 %v9154_v52 }
 0x125   : > { %v798_v44 = vsub.f32 %v13102_v56, %v750_v55  ;;  %v9348_v26 = vmul.f32 %v9058_v0, %v1516_v45  ;;  %v1352_v22 = vadd.f32 %v9047_v46, %v1351_v5  ;;  %v752_v32 = vmul.f32 24.0, %v704_v36 }
 0x126   : > { %v797_v57 = vsub.f32 %v13103_v27, %v749_v40  ;;  %1900 = vrot.lane.b32.xlu0 %v9173_v3, %s8552_s20  ;;  %1614 = vst.msk [vmem:[#allocation2 + $0xa9] sm:$0xff] %vm1596_vm2, %v9336_v61  ;;  %v1519_v34 = vmax.f32 %v1357_v50, 0.0  ;;  %v706_v55 = vfloor.f32 %v658_v47  ;;  %v705_v45 = vfloor.f32 %v657_v7 }
 0x127   : > { %1902 = vrot.lane.b32.xlu1 %v9220_v21, %s8552_s20  ;;  %1613 = vst.msk [vmem:[#allocation2 + $0xa1] sm:$0xff] %vm1596_vm2, %v9348_v26  ;;  %7794 = vmatprep.mubr.msk.f32.mxu1 %vm1596_vm2, %v9348_v26  ;;  %v1518_v52 = vmax.f32 %v1352_v22, 0.0  ;;  %v7726_v40 = vpop.f32.mrb[20].mxu0  ;;  %v660_v3 = vmul.f32 0.041666668, %v612_v37  ;;  %v9365_v5 = vadd.s32 312, %v8827_v59  ;;  %v13105_v35 = vcvt.s32.f32 %v9195_v6 }
 0x128   : > { %v9368_v36 = vmul.f32 %v9077_v4, %v1519_v34  ;;  %7795 = vmatmul.mubr.msk.f32.gmra.mrb[16].mxu1 %vm1596_vm2, %v9336_v61  ;;  %v1367_v21 = vadd.f32 %v7726_v40, %v9047_v46  ;;  %v1361_v47 = vpop.f32.mrb[21].mxu0  ;;  %v9375_v9 = vsel %vm844_vm3, 1.0, %v9287_v14  ;;  %vm846_vm4 = vcmp.lt.f32.partialorder %v798_v44, 16.0 }
 0x129   : > { %13104 = vst [vmem:[#allocation37_spill] sm:$0xff] %v9375_v9  ;;  %v9378_v7 = vmul.f32 %v9069_v8, %v1518_v52  ;;  %v1362_v37 = vadd.f32 %v9047_v46, %v1361_v47  ;;  %vm845_vm5 = vcmp.lt.f32.partialorder %v797_v57, 16.0  ;;  %v611_v50 = vadd.f32 0.5, %v12922_v58 }
 0x12a   : > { %1711 = vrot.lane.b32.xlu0 %v9210_v11, %s8551_s18  ;;  %1616 = vst.msk [vmem:[#allocation2 + $0xb9] sm:$0xff] %vm1596_vm2, %v9368_v36  ;;  %v1521_v56 = vmax.f32 %v1367_v21, 0.0  ;;  %v800_v22 = vsub.f32 %v13105_v35, %v752_v32  ;;  %v13106_v27 = vcvt.s32.f32 %v9198_v29  ;;  %v754_v52 = vmul.f32 24.0, %v706_v55 }
 0x12b   : > { %1713 = vrot.lane.b32.xlu1 %v9249_v16, %s8551_s18  ;;  %1615 = vst.msk [vmem:[#allocation2 + $0xb1] sm:$0xff] %vm1596_vm2, %v9378_v7  ;;  %7797 = vmatprep.mubr.msk.f32.mxu1 %vm1596_vm2, %v9378_v7  ;;  %v1520_v40 = vmax.f32 %v1362_v37, 0.0  ;;  %v7729_v47 = vpop.f32.mrb[22].mxu0  ;;  %v753_v58 = vmul.f32 24.0, %v705_v45  ;;  %v708_v21 = vfloor.f32 %v660_v3  ;;  %v12923_v6 = vcvt.s32.f32 %v9365_v5 }
 0x12c   : > { %v799_v34 = vsub.f32 %v13106_v27, %v751_v43  ;;  %v9399_v32 = vmul.f32 %v9124_v1, %v1521_v56  ;;  %7798 = vmatmul.mubr.msk.f32.gmra.mrb[18].mxu1 %vm1596_vm2, %v9368_v36  ;;  %v1377_v29 = vadd.f32 %v7729_v47, %v9047_v46  ;;  %v1371_v43 = vpop.f32.mrb[23].mxu0  ;;  %v9406_v55 = vsel %vm846_vm4, 1.0, %v9287_v14 }
 0x12d   : > { %13107 = vst [vmem:[#allocation38_spill] sm:$0xff] %v9406_v55  ;;  %v9409_v37 = vadd.s32 304, %v8827_v59  ;;  %v9412_v45 = vmul.f32 %v9092_v25, %v1520_v40  ;;  %v1372_v3 = vadd.f32 %v9047_v46, %v1371_v43  ;;  %v9417_v56 = vsel %vm845_vm5, 1.0, %v9287_v14 }
 0x12e   : > { %13108 = vst [vmem:[#allocation39_spill] sm:$0xff] %v9417_v56  ;;  %v659_v35 = vmul.f32 0.041666668, %v611_v50  ;;  %1904 = vrot.lane.b32.xlu0 %v9210_v11, %s8552_s20  ;;  %1618 = vst.msk [vmem:[#allocation2 + $0xc9] sm:$0xff] %vm1596_vm2, %v9399_v32  ;;  %v1523_v44 = vmax.f32 %v1377_v29, 0.0  ;;  %vm848_vm6 = vcmp.lt.f32.partialorder %v800_v22, 16.0  ;;  %v13109_v27 = vcvt.s32.f32 %v9232_v62 }
 0x12f   : > { %vm847_vm7 = vcmp.lt.f32.partialorder %v799_v34, 16.0  ;;  %1906 = vrot.lane.b32.xlu1 %v9249_v16, %s8552_s20  ;;  %1617 = vst.msk [vmem:[#allocation2 + $0xc1] sm:$0xff] %vm1596_vm2, %v9412_v45  ;;  %v1522_v57 = vmax.f32 %v1372_v3, 0.0  ;;  %7800 = vmatprep.mubr.msk.f32.mxu1 %vm1596_vm2, %v9412_v45  ;;  %v7732_v11 = vpop.f32.mrb[24].mxu0  ;;  %v13110_v50 = vcvt.s32.f32 %v9240_v42  ;;  %v756_v29 = vmul.f32 24.0, %v708_v21 }
 0x130   : > { %v802_v40 = vsub.f32 %v13109_v27, %v754_v52  ;;  %v614_v43 = vadd.f32 0.5, %v12923_v6  ;;  %v9436_v62 = vmul.f32 %v9161_v49, %v1523_v44  ;;  %7801 = vmatmul.mubr.msk.f32.gmra.mrb[20].mxu1 %vm1596_vm2, %v9399_v32  ;;  %v1387_v16 = vadd.f32 %v7732_v11, %v9047_v46  ;;  %v1381_v52 = vpop.f32.mrb[25].mxu0 }
 0x131   : > { %v801_v47 = vsub.f32 %v13110_v50, %v753_v58  ;;  %v9443_v27 = vadd.s32 328, %v8827_v59  ;;  %v9446_v58 = vmul.f32 %v9165_v31, %v1522_v57  ;;  %v1382_v42 = vadd.f32 %v9047_v46, %v1381_v52 }
 0x132   : > { %v707_v21 = vfloor.f32 %v659_v35  ;;  %v9450_v44 = vadd.s32 320, %v8827_v59  ;;  %1715 = vrot.lane.b32.xlu0 %v9243_v24, %s8551_s18  ;;  %1620 = vst.msk [vmem:[#allocation2 + $0xd9] sm:$0xff] %vm1596_vm2, %v9436_v62  ;;  %v1525_v11 = vmax.f32 %v1387_v16, 0.0  ;;  %v9458_v50 = vsel %vm848_vm6, 1.0, %v9287_v14 }
 0x133   : > { %13111 = vst [vmem:[#allocation40_spill] sm:$0xff] %v9458_v50  ;;  %v9462_v57 = vsel %vm847_vm7, 1.0, %v9287_v14  ;;  %vm850_vm8 = vcmp.lt.f32.partialorder %v802_v40, 16.0  ;;  %1717 = vrot.lane.b32.xlu1 %v9284_v20, %s8551_s18  ;;  %1619 = vst.msk [vmem:[#allocation2 + $0xd1] sm:$0xff] %vm1596_vm2, %v9446_v58  ;;  %v1524_v35 = vmax.f32 %v1382_v42, 0.0  ;;  %v7735_v52 = vpop.f32.mrb[26].mxu0  ;;  %7803 = vmatprep.mubr.msk.f32.mxu1 %vm1596_vm2, %v9446_v58  ;;  %v13113_v22 = vcvt.s32.f32 %v9273_v51 }
 0x134   : > { %13112 = vst [vmem:[#allocation41_spill] sm:$0xff] %v9462_v57  ;;  %vm849_vm9 = vcmp.lt.f32.partialorder %v801_v47, 16.0  ;;  %v662_v6 = vmul.f32 0.041666668, %v614_v43  ;;  %v9473_v34 = vmul.f32 %v9207_v38, %v1525_v11  ;;  %v1397_v3 = vadd.f32 %v7735_v52, %v9047_v46  ;;  %v1391_v31 = vpop.f32.mrb[27].mxu0  ;;  %7804 = vmatmul.mubr.msk.f32.gmra.mrb[22].mxu1 %vm1596_vm2, %v9436_v62 }
 0x135   : > { %v804_v16 = vsub.f32 %v13113_v22, %v756_v29  ;;  %v13114_v42 = vcvt.s32.f32 %v9409_v37  ;;  %v12936_v25 = vcvt.s32.f32 %v9443_v27  ;;  %v9482_v1 = vmul.f32 %v9192_v15, %v1524_v35 }
 0x136   : > { %v1392_v51 = vadd.f32 %v9047_v46, %v1391_v31  ;;  %v755_v29 = vmul.f32 24.0, %v707_v21  ;;  %1908 = vrot.lane.b32.xlu0 %v9243_v24, %s8552_s20  ;;  %1622 = vst.msk [vmem:[#allocation2 + $0xe9] sm:$0xff] %vm1596_vm2, %v9473_v34  ;;  %v1527_v11 = vmax.f32 %v1397_v3, 0.0  ;;  %v9492_v52 = vsel %vm850_vm8, 1.0, %v9287_v14 }
 0x137   : > { %v613_v49 = vadd.f32 0.5, %v13114_v42  ;;  %13115 = vst [vmem:[#allocation42_spill] sm:$0xff] %v9492_v52  ;;  %v9496_v35 = vsel %vm849_vm9, 1.0, %v9287_v14  ;;  %v9499_v31 = vadd.s32 344, %v8827_v59  ;;  %1910 = vrot.lane.b32.xlu1 %v9284_v20, %s8552_s20  ;;  %1621 = vst.msk [vmem:[#allocation2 + $0xe1] sm:$0xff] %vm1596_vm2, %v9482_v1  ;;  %v7738_v21 = vpop.f32.mrb[28].mxu0  ;;  %7806 = vmatprep.mubr.msk.f32.mxu1 %vm1596_vm2, %v9482_v1  ;;  %v710_v40 = vfloor.f32 %v662_v6 }
 0x138   : > { %13116 = vst [vmem:[#allocation43_spill] sm:$0xff] %v9496_v35  ;;  %v1526_v24 = vmax.f32 %v1392_v51, 0.0  ;;  %vm852_vm10 = vcmp.lt.f32.partialorder %v804_v16, 16.0  ;;  %v9508_v47 = vadd.s32 336, %v8827_v59  ;;  %v9511_v3 = vmul.f32 %v9291_v17, %v1527_v11  ;;  %v1401_v42 = vpop.f32.mrb[29].mxu0  ;;  %7807 = vmatmul.mubr.msk.f32.gmra.mrb[24].mxu1 %vm1596_vm2, %v9473_v34 }
 0x139   : > { %v1407_v22 = vadd.f32 %v7738_v21, %v9047_v46  ;;  %v661_v20 = vmul.f32 0.041666668, %v613_v49  ;;  %v616_v51 = vadd.f32 0.5, %v12936_v25  ;;  %v1402_v6 = vadd.f32 %v9047_v46, %v1401_v42 }
 0x13a   : > { %v9519_v43 = vmul.f32 %v9254_v48, %v1526_v24  ;;  %v13117_v15 = vcvt.s32.f32 %v9321_v39  ;;  %v13118_v11 = vcvt.s32.f32 %v9450_v44  ;;  %1719 = vrot.lane.b32.xlu0 %v9276_v41, %s8551_s18  ;;  %1624 = vst.msk [vmem:[#allocation2 + $0xf9] sm:$0xff] %vm1596_vm2, %v9511_v3  ;;  %v9534_v24 = vsel %vm852_vm10, 1.0, %v9287_v14 }
 0x13b   : > { %v1529_v49 = vmax.f32 %v1407_v22, 0.0  ;;  %13119 = vst [vmem:[#allocation44_spill] sm:$0xff] %v9534_v24  ;;  %v9538_v39 = vadd.s32 360, %v8827_v59  ;;  %1721 = vrot.lane.b32.xlu1 %v9317_v54, %s8551_s18  ;;  %v758_v22 = vmul.f32 24.0, %v710_v40  ;;  %v664_v17 = vmul.f32 0.041666668, %v616_v51 }
 0x13c   : > { %v9524_v38 = vsub.f32 %v13117_v15, %v755_v29  ;;  %v615_v21 = vadd.f32 0.5, %v13118_v11  ;;  %1623 = vst.msk [vmem:[#allocation2 + $0xf1] sm:$0xff] %vm1596_vm2, %v9519_v43  ;;  %v1528_v15 = vmax.f32 %v1402_v6, 0.0  ;;  %v7741_v29 = vpop.f32.mrb[30].mxu0  ;;  %7809 = vmatprep.mubr.msk.f32.mxu1 %vm1596_vm2, %v9519_v43  ;;  %v9548_v11 = vadd.s32 352, %v8827_v59 }
 0x13d   : > { %v9551_v25 = vmul.f32 %v9375_v9, %v1529_v49  ;;  %v1417_v42 = vadd.f32 %v7741_v29, %v9047_v46  ;;  %v1411_v48 = vpop.f32.mrb[31].mxu0  ;;  %7810 = vmatmul.mubr.msk.f32.gmra.mrb[26].mxu1 %vm1596_vm2, %v9511_v3  ;;  %v709_v6 = vfloor.f32 %v661_v20  ;;  %v13120_v29 = vcvt.s32.f32 %v9499_v31 }
 0x13e   : > { %v9557_v8 = vmul.f32 %v9343_v19, %v1528_v15  ;;  %v1412_v40 = vadd.f32 %v9047_v46, %v1411_v48  ;;  %vm851_vm11 = vcmp.lt.f32.partialorder %v9524_v38, 16.0  ;;  %v663_v16 = vmul.f32 0.041666668, %v615_v21  ;;  %1912 = vrot.lane.b32.xlu0 %v9276_v41, %s8552_s20 }
 0x13f   : > { %1626 = vst.msk [vmem:[#allocation2 + $0x109] sm:$0xff] %vm1596_vm2, %v9551_v25  ;;  %v1531_v49 = vmax.f32 %v1417_v42, 0.0  ;;  %v618_v9 = vadd.f32 0.5, %v13120_v29  ;;  %v9569_v51 = vadd.s32 376, %v8827_v59  ;;  %1914 = vrot.lane.b32.xlu1 %v9317_v54, %s8552_s20  ;;  %v7744_v41 = vpop.f32.mrb[32].mxu0  ;;  %v13121_v21 = vcvt.s32.f32 %v9508_v47 }
 0x140   : > { %1625 = vst.msk [vmem:[#allocation2 + $0x101] sm:$0xff] %vm1596_vm2, %v9557_v8  ;;  %v1530_v48 = vmax.f32 %v1412_v40, 0.0  ;;  %7812 = vmatprep.mubr.msk.f32.mxu1 %vm1596_vm2, %v9557_v8  ;;  %v9581_v29 = vadd.s32 368, %v8827_v59  ;;  %v1427_v54 = vadd.f32 %v7744_v41, %v9047_v46  ;;  %v1421_v19 = vpop.f32.mrb[33].mxu0  ;;  %v13122_v40 = vcvt.s32.f32 %v9365_v5 }
 0x141   : > { %v617_v42 = vadd.f32 0.5, %v13121_v21  ;;  %v9584_v20 = vmul.f32 %v9406_v55, %v1531_v49  ;;  %7813 = vmatmul.mubr.msk.f32.gmra.mrb[28].mxu1 %vm1596_vm2, %v9551_v25  ;;  %v712_v0 = vfloor.f32 %v664_v17  ;;  %v1422_v59 = vadd.f32 %v9047_v46, %v1421_v19 }
 0x142   : > { %v9591_v4 = vsub.f32 %v13122_v40, %v758_v22  ;;  %v9594_v21 = vmul.f32 %v9417_v56, %v1530_v48  ;;  %v757_v15 = vmul.f32 24.0, %v709_v6  ;;  %v711_v13 = vfloor.f32 %v663_v16  ;;  %1723 = vrot.lane.b32.xlu0 %v9311_v12, %s8551_s18 }
 0x143   : > { %1628 = vst.msk [vmem:[#allocation2 + $0x119] sm:$0xff] %vm1596_vm2, %v9584_v20  ;;  %v1533_v49 = vmax.f32 %v1427_v54, 0.0  ;;  %v666_v41 = vmul.f32 0.041666668, %v618_v9  ;;  %v13123_v5 = vcvt.s32.f32 %v9538_v39  ;;  %1725 = vrot.lane.b32.xlu1 %v9348_v26, %s8551_s18  ;;  %v1532_v19 = vmax.f32 %v1422_v59, 0.0  ;;  %v7747_v16 = vpop.f32.mrb[34].mxu0 }
 0x144   : > { %1627 = vst.msk [vmem:[#allocation2 + $0x111] sm:$0xff] %vm1596_vm2, %v9594_v21  ;;  %7815 = vmatprep.mubr.msk.f32.mxu1 %vm1596_vm2, %v9594_v21  ;;  %v665_v6 = vmul.f32 0.041666668, %v617_v42  ;;  %v13124_v48 = vcvt.s32.f32 %v9548_v11  ;;  %v1431_v17 = vpop.f32.mrb[35].mxu0  ;;  %v9622_v59 = vsel %vm851_vm11, 1.0, %v9287_v14  ;;  %v760_v42 = vmul.f32 24.0, %v712_v0 }
 0x145   : > { %v620_v22 = vadd.f32 0.5, %v13123_v5  ;;  %v9614_v40 = vmul.f32 %v9458_v50, %v1533_v49  ;;  %v1437_v5 = vadd.f32 %v7747_v16, %v9047_v46  ;;  %7816 = vmatmul.mubr.msk.f32.gmra.mrb[30].mxu1 %vm1596_vm2, %v9584_v20  ;;  %13125 = vst [vmem:[#allocation45_spill] sm:$0xff] %v9622_v59  ;;  %v9625_v56 = vmul.f32 %v9462_v57, %v1532_v19  ;;  %v7155_v57 = vld [vmem:[%s13082_s3 + $0x80] sm:$0xff] }
 0x146   : > { %v619_v9 = vadd.f32 0.5, %v13124_v48  ;;  %v1432_v48 = vadd.f32 %v9047_v46, %v1431_v17  ;;  %v13126_v49 = vcvt.s32.f32 %v9409_v37  ;;  %v759_v50 = vmul.f32 24.0, %v711_v13  ;;  %1916 = vrot.lane.b32.xlu0 %v9311_v12, %s8552_s20 }
 0x147   : > { %1630 = vst.msk [vmem:[#allocation2 + $0x129] sm:$0xff] %vm1596_vm2, %v9614_v40  ;;  %v1535_v16 = vmax.f32 %v1437_v5, 0.0  ;;  %v714_v38 = vfloor.f32 %v666_v41  ;;  %v668_v55 = vmul.f32 0.041666668, %v620_v22  ;;  %v13127_v0 = vcvt.s32.f32 %v9569_v51  ;;  %1918 = vrot.lane.b32.xlu1 %v9348_v26, %s8552_s20  ;;  %1629 = vst.msk [vmem:[#allocation2 + $0x121] sm:$0xff] %vm1596_vm2, %v9625_v56  ;;  %v7750_v13 = vpop.f32.mrb[36].mxu0  ;;  %7818 = vmatprep.mubr.msk.f32.mxu1 %vm1596_vm2, %v9625_v56 }
 0x148   : > { %v805_v54 = vsub.f32 %v13126_v49, %v757_v15  ;;  %v1534_v37 = vmax.f32 %v1432_v48, 0.0  ;;  %v713_v12 = vfloor.f32 %v665_v6  ;;  %v667_v15 = vmul.f32 0.041666668, %v619_v9  ;;  %v1441_v5 = vpop.f32.mrb[37].mxu0 }
 0x149   : > { %v622_v23 = vadd.f32 0.5, %v13127_v0  ;;  %v13128_v17 = vcvt.s32.f32 %v9581_v29  ;;  %v9645_v22 = vmul.f32 %v9492_v52, %v1535_v16  ;;  %v1447_v19 = vadd.f32 %v7750_v13, %v9047_v46  ;;  %7819 = vmatmul.mubr.msk.f32.gmra.mrb[32].mxu1 %vm1596_vm2, %v9614_v40 }
 0x14a   : > { %vm854_vm12 = vcmp.lt.f32.partialorder %v9591_v4, 16.0  ;;  %v13129_v26 = vcvt.s32.f32 %v9443_v27  ;;  %v9654_v6 = vmul.f32 %v9496_v35, %v1534_v37  ;;  %v1442_v9 = vadd.f32 %v9047_v46, %v1441_v5  ;;  %1727 = vrot.lane.b32.xlu0 %v9336_v61, %s8551_s18 }
 0x14b   : > { %v621_v41 = vadd.f32 0.5, %v13128_v17  ;;  %vm853_vm13 = vcmp.lt.f32.partialorder %v805_v54, 16.0  ;;  %v13130_v49 = vcvt.s32.f32 %v9450_v44  ;;  %1632 = vst.msk [vmem:[#allocation2 + $0x139] sm:$0xff] %vm1596_vm2, %v9645_v22  ;;  %v1537_v0 = vmax.f32 %v1447_v19, 0.0  ;;  %1729 = vrot.lane.b32.xlu1 %v9378_v7, %s8551_s18  ;;  %v7753_v37 = vpop.f32.mrb[38].mxu0 }
 0x14c   : > { %v808_v48 = vsub.f32 %v13129_v26, %v760_v42  ;;  %v762_v13 = vmul.f32 24.0, %v714_v38  ;;  %v716_v17 = vfloor.f32 %v668_v55  ;;  %v670_v27 = vmul.f32 0.041666668, %v622_v23  ;;  %1631 = vst.msk [vmem:[#allocation2 + $0x131] sm:$0xff] %vm1596_vm2, %v9654_v6  ;;  %7821 = vmatprep.mubr.msk.f32.mxu1 %vm1596_vm2, %v9654_v6  ;;  %v1451_v19 = vpop.f32.mrb[39].mxu0 }
 0x14d   : > { %v807_v16 = vsub.f32 %v13130_v49, %v759_v50  ;;  %v1536_v42 = vmax.f32 %v1442_v9, 0.0  ;;  %v761_v44 = vmul.f32 24.0, %v713_v12  ;;  %v715_v50 = vfloor.f32 %v667_v15  ;;  %7822 = vmatmul.mubr.msk.f32.gmra.mrb[34].mxu1 %vm1596_vm2, %v9645_v22 }
 0x14e   : > { %v669_v5 = vmul.f32 0.041666668, %v621_v41  ;;  %v9670_v26 = vmul.f32 %v9534_v24, %v1537_v0  ;;  %v9675_v23 = vsel %vm854_vm12, 1.0, %v9287_v14  ;;  %v1457_v55 = vadd.f32 %v7753_v37, %v9047_v46  ;;  %1920 = vrot.lane.b32.xlu0 %v9336_v61, %s8552_s20 }
 0x14f   : > { %13131 = vst [vmem:[#allocation46_spill] sm:$0xff] %v9675_v23  ;;  %v9680_v38 = vsel %vm853_vm13, 1.0, %v9287_v14  ;;  %v9685_v12 = vmul.f32 %v9622_v59, %v1536_v42  ;;  %v1452_v15 = vadd.f32 %v9047_v46, %v1451_v19  ;;  %vm856_vm14 = vcmp.lt.f32.partialorder %v808_v48, 16.0  ;;  %1922 = vrot.lane.b32.xlu1 %v9378_v7, %s8552_s20  ;;  %v7756_v42 = vpop.f32.mrb[40].mxu0 }
 0x150   : > { %13132 = vst [vmem:[#allocation47_spill] sm:$0xff] %v9680_v38  ;;  %vm855_vm15 = vcmp.lt.f32.partialorder %v807_v16, 16.0  ;;  %1634 = vst.msk [vmem:[#allocation2 + $0x149] sm:$0xff] %vm1596_vm2, %v9670_v26  ;;  %v1539_v4 = vmax.f32 %v1457_v55, 0.0  ;;  %v13133_v54 = vcvt.s32.f32 %v9499_v31  ;;  %v764_v9 = vmul.f32 24.0, %v716_v17  ;;  %v1461_v17 = vpop.f32.mrb[41].mxu0 }
 0x151   : > { %v718_v49 = vfloor.f32 %v670_v27  ;;  %1633 = vst.msk [vmem:[#allocation2 + $0x141] sm:$0xff] %vm1596_vm2, %v9685_v12  ;;  %v1538_v0 = vmax.f32 %v1452_v15, 0.0  ;;  %7824 = vmatprep.mubr.msk.f32.mxu1 %vm1596_vm2, %v9685_v12  ;;  %v13134_v61 = vcvt.s32.f32 %v9508_v47  ;;  %v763_v55 = vmul.f32 24.0, %v715_v50 }
 0x152   : > { %v810_v41 = vsub.f32 %v13133_v54, %v762_v13  ;;  %v717_v19 = vfloor.f32 %v669_v5  ;;  %v9703_v31 = vmul.f32 %v9675_v23, %v1539_v4  ;;  %v1467_v13 = vadd.f32 %v7756_v42, %v9047_v46  ;;  %7825 = vmatmul.mubr.msk.f32.gmra.mrb[36].mxu1 %vm1596_vm2, %v9670_v26  ;;  %1731 = vrot.lane.b32.xlu0 %v9368_v36, %s8551_s18 }
 0x153   : > { %v809_v37 = vsub.f32 %v13134_v61, %v761_v44  ;;  %v9709_v7 = vmul.f32 %v9680_v38, %v1538_v0  ;;  %v9713_v27 = vsel %vm856_vm14, 1.0, %v9287_v14  ;;  %v9717_v47 = vsel %vm855_vm15, 1.0, %v9287_v14  ;;  %1733 = vrot.lane.b32.xlu1 %v9412_v45, %s8551_s18 }
 0x154   : > { %13135 = vst [vmem:[#allocation48_spill] sm:$0xff] %v9713_v27  ;;  %13136 = vst [vmem:[#allocation49_spill] sm:$0xff] %v9717_v47  ;;  %v1462_v44 = vadd.f32 %v9047_v46, %v1461_v17  ;;  %v1541_v50 = vmax.f32 %v1467_v13, 0.0  ;;  %vm858_vm0 = vcmp.lt.f32.partialorder %v810_v41, 16.0  ;;  %v13137_v5 = vcvt.s32.f32 %v9538_v39  ;;  %v7759_v46 = vpop.f32.mrb[42].mxu0 }
 0x155   : > { %1636 = vst.msk [vmem:[#allocation2 + $0x159] sm:$0xff] %vm1596_vm2, %v9703_v31  ;;  %v766_v48 = vmul.f32 24.0, %v718_v49  ;;  %1635 = vst.msk [vmem:[#allocation2 + $0x151] sm:$0xff] %vm1596_vm2, %v9709_v7  ;;  %7827 = vmatprep.mubr.msk.f32.mxu1 %vm1596_vm2, %v9709_v7  ;;  %vm857_vm3 = vcmp.lt.f32.partialorder %v809_v37, 16.0  ;;  %v13138_v4 = vcvt.s32.f32 %v9548_v11  ;;  %v765_v0 = vmul.f32 24.0, %v717_v19  ;;  %v1471_v42 = vpop.f32.mrb[43].mxu0 }
 0x156   : > { %v812_v15 = vsub.f32 %v13137_v5, %v764_v9  ;;  %v1540_v16 = vmax.f32 %v1462_v44, 0.0  ;;  %v9735_v39 = vmul.f32 %v9713_v27, %v1541_v50  ;;  %v8480_v9 = vld [vmem:[%s13083_s2] ss:$0 sm:$0xff]  ;;  %7828 = vmatmul.mubr.msk.f32.gmra.mrb[38].mxu1 %vm1596_vm2, %v9703_v31  ;;  %v9747_v11 = vsel %vm858_vm0, 1.0, %v9287_v14  ;;  %1924 = vrot.lane.b32.xlu0 %v9368_v36, %s8552_s20 }
 0x157   : > { %v811_v54 = vsub.f32 %v13138_v4, %v763_v55  ;;  %v1477_v49 = vadd.f32 %v8480_v9, %v7759_v46  ;;  %13139 = vst [vmem:[#allocation50_spill] sm:$0xff] %v9747_v11  ;;  %v1472_v37 = vadd.f32 %v8480_v9, %v1471_v42  ;;  %v9754_v19 = vsel %vm857_vm3, 1.0, %v9287_v14  ;;  %1926 = vrot.lane.b32.xlu1 %v9412_v45, %s8552_s20  ;;  %v7762_v44 = vpop.f32.mrb[44].mxu0 }
 0x158   : > { %v9743_v61 = vmul.f32 %v9717_v47, %v1540_v16  ;;  %1638 = vst.msk [vmem:[#allocation2 + $0x169] sm:$0xff] %vm1596_vm2, %v9735_v39  ;;  %13140 = vst [vmem:[#allocation51_spill] sm:$0xff] %v9754_v19  ;;  %vm860_vm4 = vcmp.lt.f32.partialorder %v812_v15, 16.0  ;;  %v13141_v13 = vcvt.s32.f32 %v9569_v51  ;;  %v13142_v36 = vcvt.s32.f32 %v9581_v29  ;;  %v1481_v15 = vpop.f32.mrb[45].mxu0 }
 0x159   : > { %v1543_v55 = vmax.f32 %v1477_v49, 0.0  ;;  %v1542_v41 = vmax.f32 %v1472_v37, 0.0  ;;  %vm859_vm5 = vcmp.lt.f32.partialorder %v811_v54, 16.0  ;;  %v1487_v51 = vadd.f32 %v8480_v9, %v7762_v44 }
 0x15a   : > { %v814_v17 = vsub.f32 %v13141_v13, %v766_v48  ;;  %1637 = vst.msk [vmem:[#allocation2 + $0x161] sm:$0xff] %vm1596_vm2, %v9743_v61  ;;  %7830 = vmatprep.mubr.msk.f32.mxu1 %vm1596_vm2, %v9743_v61  ;;  %v813_v50 = vsub.f32 %v13142_v36, %v765_v0  ;;  %v9775_v48 = vsel %vm860_vm4, 1.0, %v9287_v14  ;;  %v1482_v16 = vadd.f32 %v8480_v9, %v1481_v15 }
 0x15b   : > { %v9767_v5 = vmul.f32 %v9747_v11, %v1543_v55  ;;  %7831 = vmatmul.mubr.msk.f32.gmra.mrb[40].mxu1 %vm1596_vm2, %v9735_v39  ;;  %v9772_v45 = vmul.f32 %v9754_v19, %v1542_v41  ;;  %13143 = vst [vmem:[#allocation52_spill] sm:$0xff] %v9775_v48  ;;  %1735 = vrot.lane.b32.xlu0 %v9399_v32, %s8551_s18  ;;  %v1545_v29 = vmax.f32 %v1487_v51, 0.0  ;;  %v9782_v46 = vsel %vm859_vm5, 1.0, %v9287_v14  ;;  %v7765_v54 = vpop.f32.mrb[46].mxu0  ;;  %v2540_v51 = vld [vmem:[%s13082_s3 + $0x18] sm:$0xff] }
 0x15c   : > { %13144 = vst [vmem:[#allocation53_spill] sm:$0xff] %v9782_v46  ;;  %vm862_vm6 = vcmp.lt.f32.partialorder %v814_v17, 16.0  ;;  %1737 = vrot.lane.b32.xlu1 %v9446_v58, %s8551_s18  ;;  %v1544_v4 = vmax.f32 %v1482_v16, 0.0  ;;  %vm861_vm7 = vcmp.lt.f32.partialorder %v813_v50, 16.0  ;;  %v1497_v49 = vadd.f32 %v8480_v9, %v7765_v54  ;;  %v1491_v42 = vpop.f32.mrb[47].mxu0  ;;  %v2539_v50 = vld [vmem:[%s13082_s3 + $0x10] sm:$0xff] }
 0x15d   : > { %1640 = vst.msk [vmem:[#allocation2 + $0x179] sm:$0xff] %vm1596_vm2, %v9767_v5  ;;  %1639 = vst.msk [vmem:[#allocation2 + $0x171] sm:$0xff] %vm1596_vm2, %v9772_v45  ;;  %7833 = vmatprep.mubr.msk.f32.mxu1 %vm1596_vm2, %v9772_v45  ;;  %v9791_v0 = vmul.f32 %v9775_v48, %v1545_v29  ;;  %v9799_v55 = vsel %vm862_vm6, 1.0, %v9287_v14  ;;  %v1492_v13 = vadd.f32 %v8480_v9, %v1491_v42  ;;  %v9806_v41 = vsel %vm861_vm7, 1.0, %v9287_v14  ;;  %v2537_v14 = vld [vmem:[%s13082_s3] sm:$0xff] }
 0x15e   : > { %v9796_v37 = vmul.f32 %v9782_v46, %v1544_v4  ;;  %13145 = vst [vmem:[#allocation54_spill] sm:$0xff] %v9799_v55  ;;  %v1547_v17 = vmax.f32 %v1497_v49, 0.0  ;;  %13146 = vst [vmem:[#allocation55_spill] sm:$0xff] %v9806_v41  ;;  %vm2030_vm8 = vcmask 392448   ;;  %v8176_v53 = vpack.c.bf16 %v7156_v33, %v7155_v57  ;;  %v3363_v33 = vld [vmem:[#allocation2 + $0x1b0] sm:$0xff]  ;;  %v8481_v57 = vld [vmem:[#allocation3] sm:$0xff] }
 0x15f   : > { %7834 = vmatmul.mubr.msk.f32.gmra.mrb[42].mxu1 %vm1596_vm2, %v9767_v5  ;;  %1928 = vrot.lane.b32.xlu0 %v9399_v32, %s8552_s20  ;;  %1642 = vst.msk [vmem:[#allocation2 + $0x189] sm:$0xff] %vm1596_vm2, %v9791_v0  ;;  %v1546_v44 = vmax.f32 %v1492_v13, 0.0  ;;  %vm971_vm9 = vcmask 523264   ;;  %vm4601_vm10 = vcmask 523271   ;;  %vm4067_vm11 = vcmask 1040384  }
 0x160   : > { %1930 = vrot.lane.b32.xlu1 %v9446_v58, %s8552_s20  ;;  %1641 = vst.msk [vmem:[#allocation2 + $0x181] sm:$0xff] %vm1596_vm2, %v9796_v37  ;;  %7836 = vmatprep.mubr.msk.f32.mxu1 %vm1596_vm2, %v9796_v37  ;;  %v9815_v9 = vmul.f32 %v9799_v55, %v1547_v17  ;;  %v2538_v58 = vld [vmem:[%s13082_s3 + $0x8] sm:$0xff]  ;;  %vm4212_vm12 = vcmask 523265   ;;  %vm4261_vm13 = vcmask 516096   ;;  %vm4650_vm14 = vcmask 522240  }
 0x161   : > { %v9820_v32 = vmul.f32 %v9806_v41, %v1546_v44  ;;  %v8156_v36 = vpack.c.bf16 %v2538_v58, %v2537_v14  ;;  %978 = vst.msk [vmem:[#allocation3 + $0x38] sm:$0xff] %vm971_vm9, %v8481_v57  ;;  %980 = vst.msk [vmem:[#allocation3 + $0x48] sm:$0xff] %vm971_vm9, %v8481_v57  ;;  %vm4407_vm15 = vcmask 1048064   ;;  %vm8555_vm0 = vmmov 0  }
 0x162   : > { %1644 = vst.msk [vmem:[#allocation2 + $0x199] sm:$0xff] %vm1596_vm2, %v9815_v9  ;;  %vm6794_vm3 = vcmask 73728  }
 0x163   : > { %7837 = vmatmul.mubr.msk.f32.gmra.mrb[44].mxu1 %vm1596_vm2, %v9791_v0  ;;  %1739 = vrot.lane.b32.xlu0 %v9436_v62, %s8551_s18  ;;  %1643 = vst.msk [vmem:[#allocation2 + $0x191] sm:$0xff] %vm1596_vm2, %v9820_v32 }
 0x164   : > { %1741 = vrot.lane.b32.xlu1 %v9482_v1, %s8551_s18  ;;  %7839 = vmatprep.mubr.msk.f32.mxu1 %vm1596_vm2, %v9820_v32  ;;  %974 = vst.msk [vmem:[#allocation3 + $0x18] sm:$0xff] %vm971_vm9, %v8481_v57  ;;  %976 = vst.msk [vmem:[#allocation3 + $0x28] sm:$0xff] %vm971_vm9, %v8481_v57 }
 0x165   : > { %8157 = vmatprep.subr.bf16.mxu1 %v8156_v36  ;;  %982 = vst.msk [vmem:[#allocation3 + $0x328] sm:$0xff] %vm971_vm9, %v8481_v57  ;;  %984 = vst.msk [vmem:[#allocation3 + $0x338] sm:$0xff] %vm971_vm9, %v8481_v57 }
 0x166   : > { %986 = vst.msk [vmem:[#allocation3 + $0x348] sm:$0xff] %vm971_vm9, %v8481_v57  ;;  %988 = vst.msk [vmem:[#allocation3 + $0x358] sm:$0xff] %vm971_vm9, %v8481_v57 }
 0x167   : > { %7840 = vmatmul.mubr.msk.f32.gmra.mrb[46].mxu1 %vm1596_vm2, %v9815_v9  ;;  %1932 = vrot.lane.b32.xlu0 %v9436_v62, %s8552_s20  ;;  %vm1837_vm2 = vcmask 261248   ;;  %990 = vst.msk [vmem:[#allocation3 + $0x368] sm:$0xff] %vm971_vm9, %v8481_v57 }
 0x168   : > { %1934 = vrot.lane.b32.xlu1 %v9482_v1, %s8552_s20 }
 0x16b   : > { %1743 = vrot.lane.b32.xlu0 %v9473_v34, %s8551_s18 }
 0x16c   : > { %1745 = vrot.lane.b32.xlu1 %v9519_v43, %s8551_s18 }
 0x16f   : > { %1936 = vrot.lane.b32.xlu0 %v9473_v34, %s8552_s20 }
 0x170   : > { %1938 = vrot.lane.b32.xlu1 %v9519_v43, %s8552_s20 }
 0x173   : > { %1747 = vrot.lane.b32.xlu0 %v9511_v3, %s8551_s18 }
 0x174   : > { %1749 = vrot.lane.b32.xlu1 %v9557_v8, %s8551_s18 }
 0x177   : > { %1940 = vrot.lane.b32.xlu0 %v9511_v3, %s8552_s20 }
 0x178   : > { %1942 = vrot.lane.b32.xlu1 %v9557_v8, %s8552_s20  ;;  %v1696_v1 = vpop.permute.xlu0 %1695 }
 0x179   : > { %1839 = vst.msk [vmem:[#allocation2 + $0x28] sm:$0xff] %vm1837_vm2, %v1696_v1  ;;  %v1887_v62 = vpop.permute.xlu1 %1886 }
 0x17b   : > { %1751 = vrot.lane.b32.xlu0 %v9551_v25, %s8551_s18 }
 0x17c   : > { %1753 = vrot.lane.b32.xlu1 %v9594_v21, %s8551_s18  ;;  %v1889_v34 = vpop.permute.xlu0 %1888 }
 0x17d   : > { %v1698_v43 = vpop.permute.xlu1 %1697 }
 0x17e   : > { %1840 = vst.msk [vmem:[#allocation2 + $0x30] sm:$0xff] %vm1837_vm2, %v1698_v43 }
 0x17f   : > { %1944 = vrot.lane.b32.xlu0 %v9551_v25, %s8552_s20 }
 0x180   : > { %1946 = vrot.lane.b32.xlu1 %v9594_v21, %s8552_s20  ;;  %v1694_v8 = vpop.permute.xlu0 %1693 }
 0x181   : > { %1838 = vst.msk [vmem:[#allocation2 + $0x20] sm:$0xff] %vm1837_vm2, %v1694_v8  ;;  %v1891_v3 = vpop.permute.xlu1 %1890 }
 0x182   : > { %2031 = vst.msk [vmem:[#allocation2 + $0x1f] sm:$0xff] %vm2030_vm8, %v1887_v62  ;;  %2032 = vst.msk [vmem:[#allocation2 + $0x27] sm:$0xff] %vm2030_vm8, %v1889_v34 }
 0x183   : > { %2033 = vst.msk [vmem:[#allocation2 + $0x2f] sm:$0xff] %vm2030_vm8, %v1891_v3  ;;  %1755 = vrot.lane.b32.xlu0 %v9584_v20, %s8551_s18 }
 0x184   : > { %1757 = vrot.lane.b32.xlu1 %v9625_v56, %s8551_s18  ;;  %v1700_v25 = vpop.permute.xlu0 %1699 }
 0x185   : > { %1841 = vst.msk [vmem:[#allocation2 + $0x38] sm:$0xff] %vm1837_vm2, %v1700_v25  ;;  %v1702_v21 = vpop.permute.xlu1 %1701 }
 0x186   : > { %1842 = vst.msk [vmem:[#allocation2 + $0x40] sm:$0xff] %vm1837_vm2, %v1702_v21 }
 0x187   : > { %1948 = vrot.lane.b32.xlu0 %v9584_v20, %s8552_s20  ;;  %v8160_v20 = vpack.c.bf16 %v2540_v51, %v2539_v50 }
 0x188   : > { %1950 = vrot.lane.b32.xlu1 %v9625_v56, %s8552_s20  ;;  %v1893_v15 = vpop.permute.xlu0 %1892 }
 0x189   : > { %2034 = vst.msk [vmem:[#allocation2 + $0x37] sm:$0xff] %vm2030_vm8, %v1893_v15  ;;  %v1895_v16 = vpop.permute.xlu1 %1894  ;;  %v9891_v29 = vld [vmem:[#allocation2 + $0x20] sm:$0xff]  ;;  %v2491_v28 = vld [vmem:[#allocation2 + $0x18] sm:$0xff] }
 0x18a   : > { %v9893_v4 = vld [vmem:[#allocation2 + $0x28] sm:$0xff]  ;;  %2035 = vst.msk [vmem:[#allocation2 + $0x3f] sm:$0xff] %vm2030_vm8, %v1895_v16  ;;  %7854 = vmatprep.mubr.msk.f32.mxu1 %vm959_vm1, %v9891_v29 }
 0x18b   : > { %1759 = vrot.lane.b32.xlu0 %v9614_v40, %s8551_s18  ;;  %7855 = vmatmul.mubr.msk.f32.vlgmr.msra.gmra.mrb[48].mxu1 %vm959_vm1, %v9893_v4 }
 0x18c   : > { %1761 = vrot.lane.b32.xlu1 %v9654_v6, %s8551_s18  ;;  %v1704_v56 = vpop.permute.xlu0 %1703  ;;  %8159 = vmatpush3.bf16.msra.mxu1 %v8156_v36 }
 0x18d   : > { %1843 = vst.msk [vmem:[#allocation2 + $0x48] sm:$0xff] %vm1837_vm2, %v1704_v56  ;;  %v1706_v54 = vpop.permute.xlu1 %1705  ;;  %8161 = vmatprep.subr.bf16.mxu1 %v8160_v20 }
 0x18e   : > { %1844 = vst.msk [vmem:[#allocation2 + $0x50] sm:$0xff] %vm1837_vm2, %v1706_v54 }
 0x18f   : > { %1952 = vrot.lane.b32.xlu0 %v9614_v40, %s8552_s20 }
 0x190   : > { %1954 = vrot.lane.b32.xlu1 %v9654_v6, %s8552_s20  ;;  %v1897_v49 = vpop.permute.xlu0 %1896  ;;  %v9910_v42 = vld [vmem:[#allocation2 + $0x30] sm:$0xff]  ;;  %8163 = vmatpush3.bf16.msra.mxu1 %v8160_v20 }
 0x191   : > { %2036 = vst.msk [vmem:[#allocation2 + $0x47] sm:$0xff] %vm2030_vm8, %v1897_v49  ;;  %v1899_v13 = vpop.permute.xlu1 %1898  ;;  %7857 = vmatprep.mubr.msk.f32.mxu1 %vm959_vm1, %v9910_v42  ;;  %v9915_v17 = vld [vmem:[#allocation2 + $0x38] sm:$0xff] }
 0x192   : > { %2037 = vst.msk [vmem:[#allocation2 + $0x4f] sm:$0xff] %vm2030_vm8, %v1899_v13  ;;  %7858 = vmatmul.mubr.msk.f32.gmra.mrb[50].mxu1 %vm959_vm1, %v9915_v17 }
 0x193   : > { %1763 = vrot.lane.b32.xlu0 %v9645_v22, %s8551_s18 }
 0x194   : > { %1765 = vrot.lane.b32.xlu1 %v9685_v12, %s8551_s18  ;;  %v1708_v40 = vpop.permute.xlu0 %1707 }
 0x195   : > { %1845 = vst.msk [vmem:[#allocation2 + $0x58] sm:$0xff] %vm1837_vm2, %v1708_v40  ;;  %v1710_v6 = vpop.permute.xlu1 %1709 }
 0x196   : > { %1846 = vst.msk [vmem:[#allocation2 + $0x60] sm:$0xff] %vm1837_vm2, %v1710_v6 }
 0x197   : > { %1956 = vrot.lane.b32.xlu0 %v9645_v22, %s8552_s20 }
 0x198   : > { %1958 = vrot.lane.b32.xlu1 %v9685_v12, %s8552_s20  ;;  %v1901_v44 = vpop.permute.xlu0 %1900  ;;  %v9930_v14 = vld [vmem:[#allocation2 + $0x40] sm:$0xff] }
 0x199   : > { %2038 = vst.msk [vmem:[#allocation2 + $0x57] sm:$0xff] %vm2030_vm8, %v1901_v44  ;;  %v1903_v58 = vpop.permute.xlu1 %1902  ;;  %7860 = vmatprep.mubr.msk.f32.mxu1 %vm959_vm1, %v9930_v14  ;;  %v9935_v36 = vld [vmem:[#allocation2 + $0x48] sm:$0xff] }
 0x19a   : > { %2039 = vst.msk [vmem:[#allocation2 + $0x5f] sm:$0xff] %vm2030_vm8, %v1903_v58  ;;  %7861 = vmatmul.mubr.msk.f32.gmra.mrb[52].mxu1 %vm959_vm1, %v9935_v36 }
 0x19b   : > { %1767 = vrot.lane.b32.xlu0 %v9670_v26, %s8551_s18 }
 0x19c   : > { %1769 = vrot.lane.b32.xlu1 %v9709_v7, %s8551_s18  ;;  %v1712_v22 = vpop.permute.xlu0 %1711 }
 0x19d   : > { %1847 = vst.msk [vmem:[#allocation2 + $0x68] sm:$0xff] %vm1837_vm2, %v1712_v22  ;;  %v1714_v12 = vpop.permute.xlu1 %1713  ;;  %v7151_v22 = vld [vmem:[%s13082_s3 + $0x60] sm:$0xff] }
 0x19e   : > { %1848 = vst.msk [vmem:[#allocation2 + $0x70] sm:$0xff] %vm1837_vm2, %v1714_v12  ;;  %v7152_v12 = vld [vmem:[%s13082_s3 + $0x68] sm:$0xff] }
 0x19f   : > { %1960 = vrot.lane.b32.xlu0 %v9670_v26, %s8552_s20  ;;  %v2541_v26 = vld [vmem:[%s13082_s3 + $0x20] sm:$0xff] }
 0x1a0   : > { %1962 = vrot.lane.b32.xlu1 %v9709_v7, %s8552_s20  ;;  %v1905_v1 = vpop.permute.xlu0 %1904  ;;  %v9950_v62 = vld [vmem:[#allocation2 + $0x50] sm:$0xff]  ;;  %v2542_v7 = vld [vmem:[%s13082_s3 + $0x28] sm:$0xff] }
 0x1a1   : > { %2040 = vst.msk [vmem:[#allocation2 + $0x67] sm:$0xff] %vm2030_vm8, %v1905_v1  ;;  %v1907_v34 = vpop.permute.xlu1 %1906  ;;  %7863 = vmatprep.mubr.msk.f32.mxu1 %vm959_vm1, %v9950_v62  ;;  %v9955_v43 = vld [vmem:[#allocation2 + $0x58] sm:$0xff]  ;;  %v8164_v8 = vpack.c.bf16 %v2542_v7, %v2541_v26 }
 0x1a2   : > { %2041 = vst.msk [vmem:[#allocation2 + $0x6f] sm:$0xff] %vm2030_vm8, %v1907_v34  ;;  %7864 = vmatmul.mubr.msk.f32.gmra.mrb[54].mxu1 %vm959_vm1, %v9955_v43 }
 0x1a3   : > { %1771 = vrot.lane.b32.xlu0 %v9703_v31, %s8551_s18  ;;  %8165 = vmatprep.subr.bf16.mxu1 %v8164_v8 }
 0x1a4   : > { %1773 = vrot.lane.b32.xlu1 %v9743_v61, %s8551_s18  ;;  %v1716_v3 = vpop.permute.xlu0 %1715  ;;  %8167 = vmatpush3.bf16.msra.mxu1 %v8164_v8 }
 0x1a5   : > { %1849 = vst.msk [vmem:[#allocation2 + $0x78] sm:$0xff] %vm1837_vm2, %v1716_v3  ;;  %v1718_v25 = vpop.permute.xlu1 %1717 }
 0x1a6   : > { %1850 = vst.msk [vmem:[#allocation2 + $0x80] sm:$0xff] %vm1837_vm2, %v1718_v25 }
 0x1a7   : > { %1964 = vrot.lane.b32.xlu0 %v9703_v31, %s8552_s20 }
 0x1a8   : > { %1966 = vrot.lane.b32.xlu1 %v9743_v61, %s8552_s20  ;;  %v1909_v21 = vpop.permute.xlu0 %1908  ;;  %v9976_v50 = vld [vmem:[#allocation2 + $0x60] sm:$0xff] }
 0x1a9   : > { %2042 = vst.msk [vmem:[#allocation2 + $0x77] sm:$0xff] %vm2030_vm8, %v1909_v21  ;;  %v1911_v51 = vpop.permute.xlu1 %1910  ;;  %7866 = vmatprep.mubr.msk.f32.mxu1 %vm959_vm1, %v9976_v50  ;;  %v9981_v15 = vld [vmem:[#allocation2 + $0x68] sm:$0xff] }
 0x1aa   : > { %2043 = vst.msk [vmem:[#allocation2 + $0x7f] sm:$0xff] %vm2030_vm8, %v1911_v51  ;;  %7867 = vmatmul.mubr.msk.f32.gmra.mrb[56].mxu1 %vm959_vm1, %v9981_v15 }
 0x1ab   : > { %1775 = vrot.lane.b32.xlu0 %v9735_v39, %s8551_s18 }
 0x1ac   : > { %1777 = vrot.lane.b32.xlu1 %v9772_v45, %s8551_s18  ;;  %v1720_v31 = vpop.permute.xlu0 %1719 }
 0x1ad   : > { %1851 = vst.msk [vmem:[#allocation2 + $0x88] sm:$0xff] %vm1837_vm2, %v1720_v31  ;;  %v1722_v61 = vpop.permute.xlu1 %1721 }
 0x1ae   : > { %1852 = vst.msk [vmem:[#allocation2 + $0x90] sm:$0xff] %vm1837_vm2, %v1722_v61 }
 0x1af   : > { %1968 = vrot.lane.b32.xlu0 %v9735_v39, %s8552_s20 }
 0x1b0   : > { %1970 = vrot.lane.b32.xlu1 %v9772_v45, %s8552_s20  ;;  %v1913_v16 = vpop.permute.xlu0 %1912  ;;  %v9996_v20 = vld [vmem:[#allocation2 + $0x70] sm:$0xff] }
 0x1b1   : > { %2044 = vst.msk [vmem:[#allocation2 + $0x87] sm:$0xff] %vm2030_vm8, %v1913_v16  ;;  %v1915_v56 = vpop.permute.xlu1 %1914  ;;  %7869 = vmatprep.mubr.msk.f32.mxu1 %vm959_vm1, %v9996_v20  ;;  %v10001_v54 = vld [vmem:[#allocation2 + $0x78] sm:$0xff] }
 0x1b2   : > { %2045 = vst.msk [vmem:[#allocation2 + $0x8f] sm:$0xff] %vm2030_vm8, %v1915_v56  ;;  %7870 = vmatmul.mubr.msk.f32.gmra.mrb[58].mxu1 %vm959_vm1, %v10001_v54 }
 0x1b3   : > { %1779 = vrot.lane.b32.xlu0 %v9767_v5, %s8551_s18 }
 0x1b4   : > { %1781 = vrot.lane.b32.xlu1 %v9796_v37, %s8551_s18  ;;  %v1724_v39 = vpop.permute.xlu0 %1723 }
 0x1b5   : > { %1853 = vst.msk [vmem:[#allocation2 + $0x98] sm:$0xff] %vm1837_vm2, %v1724_v39  ;;  %v1726_v45 = vpop.permute.xlu1 %1725 }
 0x1b6   : > { %1854 = vst.msk [vmem:[#allocation2 + $0xa0] sm:$0xff] %vm1837_vm2, %v1726_v45 }
 0x1b7   : > { %1972 = vrot.lane.b32.xlu0 %v9767_v5, %s8552_s20 }
 0x1b8   : > { %1974 = vrot.lane.b32.xlu1 %v9796_v37, %s8552_s20  ;;  %v1917_v49 = vpop.permute.xlu0 %1916  ;;  %v10016_v13 = vld [vmem:[#allocation2 + $0x80] sm:$0xff] }
 0x1b9   : > { %2046 = vst.msk [vmem:[#allocation2 + $0x97] sm:$0xff] %vm2030_vm8, %v1917_v49  ;;  %v1919_v40 = vpop.permute.xlu1 %1918  ;;  %7872 = vmatprep.mubr.msk.f32.mxu1 %vm959_vm1, %v10016_v13  ;;  %v10021_v6 = vld [vmem:[#allocation2 + $0x88] sm:$0xff] }
 0x1ba   : > { %2047 = vst.msk [vmem:[#allocation2 + $0x9f] sm:$0xff] %vm2030_vm8, %v1919_v40  ;;  %7873 = vmatmul.mubr.msk.f32.gmra.mrb[60].mxu1 %vm959_vm1, %v10021_v6 }
 0x1bb   : > { %1783 = vrot.lane.b32.xlu0 %v9791_v0, %s8551_s18 }
 0x1bc   : > { %1785 = vrot.lane.b32.xlu1 %v9820_v32, %s8551_s18  ;;  %v1728_v5 = vpop.permute.xlu0 %1727 }
 0x1bd   : > { %1855 = vst.msk [vmem:[#allocation2 + $0xa8] sm:$0xff] %vm1837_vm2, %v1728_v5  ;;  %v1730_v37 = vpop.permute.xlu1 %1729 }
 0x1be   : > { %1856 = vst.msk [vmem:[#allocation2 + $0xb0] sm:$0xff] %vm1837_vm2, %v1730_v37 }
 0x1bf   : > { %1976 = vrot.lane.b32.xlu0 %v9791_v0, %s8552_s20 }
 0x1c0   : > { %1978 = vrot.lane.b32.xlu1 %v9820_v32, %s8552_s20  ;;  %v1921_v44 = vpop.permute.xlu0 %1920  ;;  %v10036_v58 = vld [vmem:[#allocation2 + $0x90] sm:$0xff]  ;;  %v10049_v32 = vpack.c.bf16 %v7152_v12, %v7151_v22 }
 0x1c1   : > { %2048 = vst.msk [vmem:[#allocation2 + $0xa7] sm:$0xff] %vm2030_vm8, %v1921_v44  ;;  %v1923_v1 = vpop.permute.xlu1 %1922  ;;  %7875 = vmatprep.mubr.msk.f32.mxu1 %vm959_vm1, %v10036_v58  ;;  %v10047_v0 = vld [vmem:[#allocation2 + $0x98] sm:$0xff] }
 0x1c2   : > { %2049 = vst.msk [vmem:[#allocation2 + $0xaf] sm:$0xff] %vm2030_vm8, %v1923_v1  ;;  %7876 = vmatmul.mubr.msk.f32.gmra.mrb[62].mxu1 %vm959_vm1, %v10047_v0  ;;  %8169 = vmatprep.subr.bf16.mxu1 %v10049_v32 }
 0x1c3   : > { %1787 = vrot.lane.b32.xlu0 %v9815_v9, %s8551_s18  ;;  %s8492_s18 = scalar_lea.vmem %s8491_s26, 32 }
 0x1c4   : > { %1980 = vrot.lane.b32.xlu1 %v9815_v9, %s8552_s20  ;;  %v1732_v34 = vpop.permute.xlu0 %1731  ;;  %s8554_s20 = smov 64  }
 0x1c5   : > { %1857 = vst.msk [vmem:[#allocation2 + $0xb8] sm:$0xff] %vm1837_vm2, %v1732_v34  ;;  %v1734_v26 = vpop.permute.xlu1 %1733 }
 0x1c6   : > { %1858 = vst.msk [vmem:[#allocation2 + $0xc0] sm:$0xff] %vm1837_vm2, %v1734_v26 }
 0x1c8   : > { %v1925_v7 = vpop.permute.xlu0 %1924  ;;  %v10061_v8 = vld [vmem:[#allocation2 + $0xa0] sm:$0xff] }
 0x1c9   : > { %2050 = vst.msk [vmem:[#allocation2 + $0xb7] sm:$0xff] %vm2030_vm8, %v1925_v7  ;;  %v1927_v3 = vpop.permute.xlu1 %1926  ;;  %7878 = vmatprep.mubr.msk.f32.mxu1 %vm959_vm1, %v10061_v8  ;;  %v10066_v25 = vld [vmem:[#allocation2 + $0xa8] sm:$0xff] }
 0x1ca   : > { %2051 = vst.msk [vmem:[#allocation2 + $0xbf] sm:$0xff] %vm2030_vm8, %v1927_v3  ;;  %7879 = vmatmul.mubr.msk.f32.gmra.mrb[64].mxu1 %vm959_vm1, %v10066_v25 }
 0x1cd   : > { %v1736_v9 = vpop.permute.xlu0 %1735 }
 0x1ce   : > { %1859 = vst.msk [vmem:[#allocation2 + $0xc8] sm:$0xff] %vm1837_vm2, %v1736_v9  ;;  %v1738_v21 = vpop.permute.xlu1 %1737 }
 0x1cf   : > { %1860 = vst.msk [vmem:[#allocation2 + $0xd0] sm:$0xff] %vm1837_vm2, %v1738_v21 }
 0x1d0   : > { %v10073_v31 = vld [vmem:[#allocation2 + $0xb0] sm:$0xff] }
 0x1d1   : > { %v1929_v51 = vpop.permute.xlu0 %1928  ;;  %7881 = vmatprep.mubr.msk.f32.mxu1 %vm959_vm1, %v10073_v31  ;;  %v10078_v16 = vld [vmem:[#allocation2 + $0xb8] sm:$0xff] }
 0x1d2   : > { %2052 = vst.msk [vmem:[#allocation2 + $0xc7] sm:$0xff] %vm2030_vm8, %v1929_v51  ;;  %v1931_v61 = vpop.permute.xlu1 %1930  ;;  %7882 = vmatmul.mubr.msk.f32.gmra.mrb[66].mxu1 %vm959_vm1, %v10078_v16 }
 0x1d3   : > { %2053 = vst.msk [vmem:[#allocation2 + $0xcf] sm:$0xff] %vm2030_vm8, %v1931_v61 }
 0x1d5   : > { %v1740_v56 = vpop.permute.xlu0 %1739 }
 0x1d6   : > { %1861 = vst.msk [vmem:[#allocation2 + $0xd8] sm:$0xff] %vm1837_vm2, %v1740_v56  ;;  %v1742_v39 = vpop.permute.xlu1 %1741 }
 0x1d7   : > { %1862 = vst.msk [vmem:[#allocation2 + $0xe0] sm:$0xff] %vm1837_vm2, %v1742_v39 }
 0x1d9   : > { %v1933_v45 = vpop.permute.xlu0 %1932  ;;  %v10085_v49 = vld [vmem:[#allocation2 + $0xc0] sm:$0xff] }
 0x1da   : > { %2054 = vst.msk [vmem:[#allocation2 + $0xd7] sm:$0xff] %vm2030_vm8, %v1933_v45  ;;  %v1935_v40 = vpop.permute.xlu1 %1934  ;;  %7884 = vmatprep.mubr.msk.f32.mxu1 %vm959_vm1, %v10085_v49  ;;  %v10090_v5 = vld [vmem:[#allocation2 + $0xc8] sm:$0xff] }
 0x1db   : > { %2055 = vst.msk [vmem:[#allocation2 + $0xdf] sm:$0xff] %vm2030_vm8, %v1935_v40  ;;  %7885 = vmatmul.mubr.msk.f32.gmra.mrb[68].mxu1 %vm959_vm1, %v10090_v5  ;;  %v10095_v37 = vpop.f32.mrb[0].mxu1 }
 0x1dc   : > { %13147 = vst [vmem:[#allocation56_spill] sm:$0xff] %v10095_v37  ;;  %v10097_v22 = vpop.f32.mrb[1].mxu1 }
 0x1dd   : > { %v1744_v44 = vpop.permute.xlu0 %1743  ;;  %13148 = vst [vmem:[#allocation57_spill] sm:$0xff] %v10097_v22 }
 0x1de   : > { %1863 = vst.msk [vmem:[#allocation2 + $0xe8] sm:$0xff] %vm1837_vm2, %v1744_v44  ;;  %v1746_v12 = vpop.permute.xlu1 %1745 }
 0x1df   : > { %1864 = vst.msk [vmem:[#allocation2 + $0xf0] sm:$0xff] %vm1837_vm2, %v1746_v12  ;;  %v10101_v1 = vpop.f32.mrb[2].mxu1 }
 0x1e0   : > { %13149 = vst [vmem:[#allocation58_spill] sm:$0xff] %v10101_v1  ;;  %v10103_v26 = vpop.f32.mrb[3].mxu1 }
 0x1e1   : > { %v1937_v34 = vpop.permute.xlu0 %1936  ;;  %13150 = vst [vmem:[#allocation59_spill] sm:$0xff] %v10103_v26  ;;  %v10105_v7 = vld [vmem:[#allocation2 + $0xd0] sm:$0xff] }
 0x1e2   : > { %2056 = vst.msk [vmem:[#allocation2 + $0xe7] sm:$0xff] %vm2030_vm8, %v1937_v34  ;;  %v1939_v3 = vpop.permute.xlu1 %1938  ;;  %7887 = vmatprep.mubr.msk.f32.mxu1 %vm959_vm1, %v10105_v7  ;;  %v10110_v9 = vld [vmem:[#allocation2 + $0xd8] sm:$0xff] }
 0x1e3   : > { %2057 = vst.msk [vmem:[#allocation2 + $0xef] sm:$0xff] %vm2030_vm8, %v1939_v3  ;;  %7888 = vmatmul.mubr.msk.f32.gmra.mrb[70].mxu1 %vm959_vm1, %v10110_v9  ;;  %v10115_v21 = vpop.f32.mrb[4].mxu1 }
 0x1e4   : > { %13151 = vst [vmem:[#allocation60_spill] sm:$0xff] %v10115_v21  ;;  %v10117_v61 = vpop.f32.mrb[5].mxu1 }
 0x1e5   : > { %v1748_v51 = vpop.permute.xlu0 %1747  ;;  %13152 = vst [vmem:[#allocation61_spill] sm:$0xff] %v10117_v61 }
 0x1e6   : > { %1865 = vst.msk [vmem:[#allocation2 + $0xf8] sm:$0xff] %vm1837_vm2, %v1748_v51  ;;  %v1750_v56 = vpop.permute.xlu1 %1749 }
 0x1e7   : > { %1866 = vst.msk [vmem:[#allocation2 + $0x100] sm:$0xff] %vm1837_vm2, %v1750_v56  ;;  %v10121_v39 = vpop.f32.mrb[6].mxu1 }
 0x1e8   : > { %13153 = vst [vmem:[#allocation62_spill] sm:$0xff] %v10121_v39  ;;  %v10125_v44 = vpop.f32.mrb[7].mxu1 }
 0x1e9   : > { %v1941_v45 = vpop.permute.xlu0 %1940  ;;  %v10123_v40 = vld [vmem:[#allocation2 + $0xe0] sm:$0xff]  ;;  %13154 = vst [vmem:[#allocation63_spill] sm:$0xff] %v10125_v44 }
 0x1ea   : > { %2058 = vst.msk [vmem:[#allocation2 + $0xf7] sm:$0xff] %vm2030_vm8, %v1941_v45  ;;  %v1943_v12 = vpop.permute.xlu1 %1942  ;;  %7890 = vmatprep.mubr.msk.f32.mxu1 %vm959_vm1, %v10123_v40  ;;  %v10130_v34 = vld [vmem:[#allocation2 + $0xe8] sm:$0xff] }
 0x1eb   : > { %2059 = vst.msk [vmem:[#allocation2 + $0xff] sm:$0xff] %vm2030_vm8, %v1943_v12  ;;  %7891 = vmatmul.mubr.msk.f32.gmra.mrb[72].mxu1 %vm959_vm1, %v10130_v34  ;;  %v10135_v3 = vpop.f32.mrb[8].mxu1 }
 0x1ec   : > { %13155 = vst [vmem:[#allocation64_spill] sm:$0xff] %v10135_v3  ;;  %v10137_v56 = vpop.f32.mrb[9].mxu1 }
 0x1ed   : > { %v1752_v51 = vpop.permute.xlu0 %1751  ;;  %13156 = vst [vmem:[#allocation65_spill] sm:$0xff] %v10137_v56 }
 0x1ee   : > { %1867 = vst.msk [vmem:[#allocation2 + $0x108] sm:$0xff] %vm1837_vm2, %v1752_v51  ;;  %v1754_v39 = vpop.permute.xlu1 %1753 }
 0x1ef   : > { %1868 = vst.msk [vmem:[#allocation2 + $0x110] sm:$0xff] %vm1837_vm2, %v1754_v39  ;;  %v10141_v45 = vpop.f32.mrb[10].mxu1 }
 0x1f0   : > { %13157 = vst [vmem:[#allocation66_spill] sm:$0xff] %v10141_v45  ;;  %v10145_v61 = vpop.f32.mrb[11].mxu1 }
 0x1f1   : > { %v1945_v44 = vpop.permute.xlu0 %1944  ;;  %v10143_v21 = vld [vmem:[#allocation2 + $0xf0] sm:$0xff]  ;;  %13158 = vst [vmem:[#allocation67_spill] sm:$0xff] %v10145_v61 }
 0x1f2   : > { %2060 = vst.msk [vmem:[#allocation2 + $0x107] sm:$0xff] %vm2030_vm8, %v1945_v44  ;;  %v1947_v12 = vpop.permute.xlu1 %1946  ;;  %7893 = vmatprep.mubr.msk.f32.mxu1 %vm959_vm1, %v10143_v21  ;;  %v10150_v1 = vld [vmem:[#allocation2 + $0xf8] sm:$0xff] }
 0x1f3   : > { %2061 = vst.msk [vmem:[#allocation2 + $0x10f] sm:$0xff] %vm2030_vm8, %v1947_v12  ;;  %7894 = vmatmul.mubr.msk.f32.gmra.mrb[74].mxu1 %vm959_vm1, %v10150_v1  ;;  %v10155_v39 = vpop.f32.mrb[12].mxu1 }
 0x1f4   : > { %13159 = vst [vmem:[#allocation68_spill] sm:$0xff] %v10155_v39  ;;  %v10157_v56 = vpop.f32.mrb[13].mxu1 }
 0x1f5   : > { %v1756_v51 = vpop.permute.xlu0 %1755  ;;  %13160 = vst [vmem:[#allocation69_spill] sm:$0xff] %v10157_v56 }
 0x1f6   : > { %1869 = vst.msk [vmem:[#allocation2 + $0x118] sm:$0xff] %vm1837_vm2, %v1756_v51  ;;  %v1758_v26 = vpop.permute.xlu1 %1757 }
 0x1f7   : > { %1870 = vst.msk [vmem:[#allocation2 + $0x120] sm:$0xff] %vm1837_vm2, %v1758_v26  ;;  %v10161_v44 = vpop.f32.mrb[14].mxu1 }
 0x1f8   : > { %13161 = vst [vmem:[#allocation70_spill] sm:$0xff] %v10161_v44  ;;  %v10165_v45 = vpop.f32.mrb[15].mxu1 }
 0x1f9   : > { %v1949_v37 = vpop.permute.xlu0 %1948  ;;  %v10163_v22 = vld [vmem:[#allocation2 + $0x100] sm:$0xff]  ;;  %13162 = vst [vmem:[#allocation71_spill] sm:$0xff] %v10165_v45 }
 0x1fa   : > { %2062 = vst.msk [vmem:[#allocation2 + $0x117] sm:$0xff] %vm2030_vm8, %v1949_v37  ;;  %v1951_v12 = vpop.permute.xlu1 %1950  ;;  %7896 = vmatprep.mubr.msk.f32.mxu1 %vm959_vm1, %v10163_v22  ;;  %v10170_v39 = vld [vmem:[#allocation2 + $0x108] sm:$0xff] }
 0x1fb   : > { %2063 = vst.msk [vmem:[#allocation2 + $0x11f] sm:$0xff] %vm2030_vm8, %v1951_v12  ;;  %7897 = vmatmul.mubr.msk.f32.gmra.mrb[76].mxu1 %vm959_vm1, %v10170_v39  ;;  %v10175_v26 = vpop.f32.mrb[16].mxu1 }
 0x1fc   : > { %13163 = vst [vmem:[#allocation72_spill] sm:$0xff] %v10175_v26  ;;  %v10177_v44 = vpop.f32.mrb[17].mxu1 }
 0x1fd   : > { %v1760_v51 = vpop.permute.xlu0 %1759  ;;  %13164 = vst [vmem:[#allocation73_spill] sm:$0xff] %v10177_v44 }
 0x1fe   : > { %1871 = vst.msk [vmem:[#allocation2 + $0x128] sm:$0xff] %vm1837_vm2, %v1760_v51  ;;  %v1762_v45 = vpop.permute.xlu1 %1761 }
 0x1ff   : > { %1872 = vst.msk [vmem:[#allocation2 + $0x130] sm:$0xff] %vm1837_vm2, %v1762_v45  ;;  %v10181_v37 = vpop.f32.mrb[18].mxu1 }
 0x200   : > { %13165 = vst [vmem:[#allocation74_spill] sm:$0xff] %v10181_v37  ;;  %v10185_v3 = vpop.f32.mrb[19].mxu1 }
 0x201   : > { %v1953_v56 = vpop.permute.xlu0 %1952  ;;  %v10183_v61 = vld [vmem:[#allocation2 + $0x110] sm:$0xff]  ;;  %13166 = vst [vmem:[#allocation75_spill] sm:$0xff] %v10185_v3 }
 0x202   : > { %2064 = vst.msk [vmem:[#allocation2 + $0x127] sm:$0xff] %vm2030_vm8, %v1953_v56  ;;  %v1955_v12 = vpop.permute.xlu1 %1954  ;;  %7899 = vmatprep.mubr.msk.f32.mxu1 %vm959_vm1, %v10183_v61  ;;  %v10190_v26 = vld [vmem:[#allocation2 + $0x118] sm:$0xff] }
 0x203   : > { %2065 = vst.msk [vmem:[#allocation2 + $0x12f] sm:$0xff] %vm2030_vm8, %v1955_v12  ;;  %7900 = vmatmul.mubr.msk.f32.gmra.mrb[78].mxu1 %vm959_vm1, %v10190_v26  ;;  %v10195_v45 = vpop.f32.mrb[20].mxu1 }
 0x204   : > { %13167 = vst [vmem:[#allocation76_spill] sm:$0xff] %v10195_v45  ;;  %v10197_v37 = vpop.f32.mrb[21].mxu1 }
 0x205   : > { %v1764_v51 = vpop.permute.xlu0 %1763  ;;  %13168 = vst [vmem:[#allocation77_spill] sm:$0xff] %v10197_v37 }
 0x206   : > { %1873 = vst.msk [vmem:[#allocation2 + $0x138] sm:$0xff] %vm1837_vm2, %v1764_v51  ;;  %v1766_v3 = vpop.permute.xlu1 %1765 }
 0x207   : > { %1874 = vst.msk [vmem:[#allocation2 + $0x140] sm:$0xff] %vm1837_vm2, %v1766_v3  ;;  %v10201_v56 = vpop.f32.mrb[22].mxu1 }
 0x208   : > { %13169 = vst [vmem:[#allocation78_spill] sm:$0xff] %v10201_v56  ;;  %v10205_v55 = vpop.f32.mrb[23].mxu1 }
 0x209   : > { %v1957_v44 = vpop.permute.xlu0 %1956  ;;  %v10203_v41 = vld [vmem:[#allocation2 + $0x120] sm:$0xff]  ;;  %13170 = vst [vmem:[#allocation79_spill] sm:$0xff] %v10205_v55 }
 0x20a   : > { %2066 = vst.msk [vmem:[#allocation2 + $0x137] sm:$0xff] %vm2030_vm8, %v1957_v44  ;;  %v1959_v12 = vpop.permute.xlu1 %1958  ;;  %7902 = vmatprep.mubr.msk.f32.mxu1 %vm959_vm1, %v10203_v41  ;;  %v10210_v45 = vld [vmem:[#allocation2 + $0x128] sm:$0xff] }
 0x20b   : > { %2067 = vst.msk [vmem:[#allocation2 + $0x13f] sm:$0xff] %vm2030_vm8, %v1959_v12  ;;  %7903 = vmatmul.mubr.msk.f32.gmra.mrb[80].mxu1 %vm959_vm1, %v10210_v45  ;;  %v10215_v3 = vpop.f32.mrb[24].mxu1 }
 0x20c   : > { %13171 = vst [vmem:[#allocation80_spill] sm:$0xff] %v10215_v3  ;;  %v10217_v56 = vpop.f32.mrb[25].mxu1 }
 0x20d   : > { %v1768_v51 = vpop.permute.xlu0 %1767  ;;  %13172 = vst [vmem:[#allocation81_spill] sm:$0xff] %v10217_v56 }
 0x20e   : > { %1875 = vst.msk [vmem:[#allocation2 + $0x148] sm:$0xff] %vm1837_vm2, %v1768_v51  ;;  %v1770_v55 = vpop.permute.xlu1 %1769 }
 0x20f   : > { %1876 = vst.msk [vmem:[#allocation2 + $0x150] sm:$0xff] %vm1837_vm2, %v1770_v55 }
 0x210   : > { %v10221_v44 = vpop.f32.mrb[26].mxu1 }
 0x211   : > { %13173 = vst [vmem:[#allocation82_spill] sm:$0xff] %v10221_v44  ;;  %v1961_v37 = vpop.permute.xlu0 %1960  ;;  %v10223_v46 = vld [vmem:[#allocation2 + $0x130] sm:$0xff]  ;;  %v10225_v48 = vpop.f32.mrb[27].mxu1 }
 0x212   : > { %13174 = vst [vmem:[#allocation83_spill] sm:$0xff] %v10225_v48  ;;  %2068 = vst.msk [vmem:[#allocation2 + $0x147] sm:$0xff] %vm2030_vm8, %v1961_v37  ;;  %v1963_v12 = vpop.permute.xlu1 %1962  ;;  %7905 = vmatprep.mubr.msk.f32.mxu1 %vm959_vm1, %v10223_v46  ;;  %v10230_v3 = vld [vmem:[#allocation2 + $0x138] sm:$0xff] }
 0x213   : > { %2069 = vst.msk [vmem:[#allocation2 + $0x14f] sm:$0xff] %vm2030_vm8, %v1963_v12  ;;  %7906 = vmatmul.mubr.msk.f32.gmra.mrb[82].mxu1 %vm959_vm1, %v10230_v3 }
 0x214   : > { %v10235_v55 = vpop.f32.mrb[28].mxu1 }
 0x215   : > { %13175 = vst [vmem:[#allocation84_spill] sm:$0xff] %v10235_v55  ;;  %v1772_v51 = vpop.permute.xlu0 %1771  ;;  %v10237_v44 = vpop.f32.mrb[29].mxu1 }
 0x216   : > { %13176 = vst [vmem:[#allocation85_spill] sm:$0xff] %v10237_v44  ;;  %1877 = vst.msk [vmem:[#allocation2 + $0x158] sm:$0xff] %vm1837_vm2, %v1772_v51  ;;  %v1774_v48 = vpop.permute.xlu1 %1773 }
 0x217   : > { %1878 = vst.msk [vmem:[#allocation2 + $0x160] sm:$0xff] %vm1837_vm2, %v1774_v48 }
 0x218   : > { %v10241_v37 = vpop.f32.mrb[30].mxu1 }
 0x219   : > { %13177 = vst [vmem:[#allocation86_spill] sm:$0xff] %v10241_v37  ;;  %v1965_v56 = vpop.permute.xlu0 %1964  ;;  %v10243_v19 = vld [vmem:[#allocation2 + $0x140] sm:$0xff]  ;;  %v10245_v11 = vpop.f32.mrb[31].mxu1 }
 0x21a   : > { %13178 = vst [vmem:[#allocation87_spill] sm:$0xff] %v10245_v11  ;;  %2070 = vst.msk [vmem:[#allocation2 + $0x157] sm:$0xff] %vm2030_vm8, %v1965_v56  ;;  %v1967_v12 = vpop.permute.xlu1 %1966  ;;  %7908 = vmatprep.mubr.msk.f32.mxu1 %vm959_vm1, %v10243_v19  ;;  %v10250_v55 = vld [vmem:[#allocation2 + $0x148] sm:$0xff] }
 0x21b   : > { %2071 = vst.msk [vmem:[#allocation2 + $0x15f] sm:$0xff] %vm2030_vm8, %v1967_v12  ;;  %7909 = vmatmul.mubr.msk.f32.gmra.mrb[84].mxu1 %vm959_vm1, %v10250_v55 }
 0x21c   : > { %v10255_v48 = vpop.f32.mrb[32].mxu1 }
 0x21d   : > { %13179 = vst [vmem:[#allocation88_spill] sm:$0xff] %v10255_v48  ;;  %v1776_v51 = vpop.permute.xlu0 %1775  ;;  %v10257_v37 = vpop.f32.mrb[33].mxu1 }
 0x21e   : > { %13180 = vst [vmem:[#allocation89_spill] sm:$0xff] %v10257_v37  ;;  %1879 = vst.msk [vmem:[#allocation2 + $0x168] sm:$0xff] %vm1837_vm2, %v1776_v51  ;;  %v1778_v11 = vpop.permute.xlu1 %1777 }
 0x21f   : > { %1880 = vst.msk [vmem:[#allocation2 + $0x170] sm:$0xff] %vm1837_vm2, %v1778_v11 }
 0x220   : > { %v10261_v56 = vpop.f32.mrb[34].mxu1 }
 0x221   : > { %13181 = vst [vmem:[#allocation90_spill] sm:$0xff] %v10261_v56  ;;  %v1969_v44 = vpop.permute.xlu0 %1968  ;;  %v10263_v47 = vld [vmem:[#allocation2 + $0x150] sm:$0xff]  ;;  %v10265_v27 = vpop.f32.mrb[35].mxu1 }
 0x222   : > { %13182 = vst [vmem:[#allocation91_spill] sm:$0xff] %v10265_v27  ;;  %2072 = vst.msk [vmem:[#allocation2 + $0x167] sm:$0xff] %vm2030_vm8, %v1969_v44  ;;  %v1971_v12 = vpop.permute.xlu1 %1970  ;;  %7911 = vmatprep.mubr.msk.f32.mxu1 %vm959_vm1, %v10263_v47  ;;  %v10270_v48 = vld [vmem:[#allocation2 + $0x158] sm:$0xff] }
 0x223   : > { %2073 = vst.msk [vmem:[#allocation2 + $0x16f] sm:$0xff] %vm2030_vm8, %v1971_v12  ;;  %7912 = vmatmul.mubr.msk.f32.gmra.mrb[86].mxu1 %vm959_vm1, %v10270_v48 }
 0x225   : > { %v10275_v11 = vpop.f32.mrb[36].mxu1  ;;  %v1780_v51 = vpop.permute.xlu0 %1779 }
 0x226   : > { %13183 = vst [vmem:[#allocation92_spill] sm:$0xff] %v10275_v11  ;;  %v10277_v56 = vpop.f32.mrb[37].mxu1  ;;  %1881 = vst.msk [vmem:[#allocation2 + $0x178] sm:$0xff] %vm1837_vm2, %v1780_v51  ;;  %v1782_v27 = vpop.permute.xlu1 %1781 }
 0x227   : > { %13184 = vst [vmem:[#allocation93_spill] sm:$0xff] %v10277_v56  ;;  %1882 = vst.msk [vmem:[#allocation2 + $0x180] sm:$0xff] %vm1837_vm2, %v1782_v27 }
 0x229   : > { %v10281_v44 = vpop.f32.mrb[38].mxu1  ;;  %v1973_v37 = vpop.permute.xlu0 %1972  ;;  %v10283_v38 = vld [vmem:[#allocation2 + $0x160] sm:$0xff] }
 0x22a   : > { %13185 = vst [vmem:[#allocation94_spill] sm:$0xff] %v10281_v44  ;;  %v10285_v23 = vpop.f32.mrb[39].mxu1  ;;  %2074 = vst.msk [vmem:[#allocation2 + $0x177] sm:$0xff] %vm2030_vm8, %v1973_v37  ;;  %v1975_v12 = vpop.permute.xlu1 %1974  ;;  %7914 = vmatprep.mubr.msk.f32.mxu1 %vm959_vm1, %v10283_v38  ;;  %v10290_v11 = vld [vmem:[#allocation2 + $0x168] sm:$0xff] }
 0x22b   : > { %13186 = vst [vmem:[#allocation95_spill] sm:$0xff] %v10285_v23  ;;  %2075 = vst.msk [vmem:[#allocation2 + $0x17f] sm:$0xff] %vm2030_vm8, %v1975_v12  ;;  %7915 = vmatmul.mubr.msk.f32.gmra.mrb[88].mxu1 %vm959_vm1, %v10290_v11 }
 0x22d   : > { %v1784_v51 = vpop.permute.xlu0 %1783 }
 0x22e   : > { %v10295_v27 = vpop.f32.mrb[40].mxu1  ;;  %1883 = vst.msk [vmem:[#allocation2 + $0x188] sm:$0xff] %vm1837_vm2, %v1784_v51  ;;  %v1786_v23 = vpop.permute.xlu1 %1785 }
 0x22f   : > { %13187 = vst [vmem:[#allocation96_spill] sm:$0xff] %v10295_v27  ;;  %v10297_v44 = vpop.f32.mrb[41].mxu1  ;;  %1884 = vst.msk [vmem:[#allocation2 + $0x190] sm:$0xff] %vm1837_vm2, %v1786_v23 }
 0x230   : > { %13188 = vst [vmem:[#allocation97_spill] sm:$0xff] %v10297_v44 }
 0x231   : > { %v1977_v56 = vpop.permute.xlu0 %1976  ;;  %v10303_v59 = vld [vmem:[#allocation2 + $0x170] sm:$0xff] }
 0x232   : > { %v10301_v37 = vpop.f32.mrb[42].mxu1  ;;  %2076 = vst.msk [vmem:[#allocation2 + $0x187] sm:$0xff] %vm2030_vm8, %v1977_v56  ;;  %v1979_v12 = vpop.permute.xlu1 %1978  ;;  %7917 = vmatprep.mubr.msk.f32.mxu1 %vm959_vm1, %v10303_v59  ;;  %v10310_v27 = vld [vmem:[#allocation2 + $0x178] sm:$0xff] }
 0x233   : > { %13189 = vst [vmem:[#allocation98_spill] sm:$0xff] %v10301_v37  ;;  %v10305_v24 = vpop.f32.mrb[43].mxu1  ;;  %2077 = vst.msk [vmem:[#allocation2 + $0x18f] sm:$0xff] %vm2030_vm8, %v1979_v12  ;;  %7918 = vmatmul.mubr.msk.f32.gmra.mrb[90].mxu1 %vm959_vm1, %v10310_v27 }
 0x234   : > { %13190 = vst [vmem:[#allocation99_spill] sm:$0xff] %v10305_v24 }
 0x235   : > { %v1788_v51 = vpop.permute.xlu0 %1787 }
 0x236   : > { %v10315_v23 = vpop.f32.mrb[44].mxu1  ;;  %1885 = vst.msk [vmem:[#allocation2 + $0x198] sm:$0xff] %vm1837_vm2, %v1788_v51  ;;  %v1981_v24 = vpop.permute.xlu1 %1980 }
 0x237   : > { %13191 = vst [vmem:[#allocation100_spill] sm:$0xff] %v10315_v23  ;;  %v10317_v37 = vpop.f32.mrb[45].mxu1  ;;  %2078 = vst.msk [vmem:[#allocation2 + $0x197] sm:$0xff] %vm2030_vm8, %v1981_v24  ;;  %v7153_v24 = vld [vmem:[%s13082_s3 + $0x70] sm:$0xff] }
 0x238   : > { %13192 = vst [vmem:[#allocation101_spill] sm:$0xff] %v10317_v37  ;;  %v2489_v37 = vld [vmem:[#allocation2 + $0x8] sm:$0xff] }
 0x239   : > { %v10323_v44 = vld [vmem:[#allocation2 + $0x180] sm:$0xff] }
 0x23a   : > { %v10321_v56 = vpop.f32.mrb[46].mxu1  ;;  %7920 = vmatprep.mubr.msk.f32.mxu1 %vm959_vm1, %v10323_v44  ;;  %v10329_v12 = vld [vmem:[#allocation2 + $0x188] sm:$0xff] }
 0x23b   : > { %13193 = vst [vmem:[#allocation102_spill] sm:$0xff] %v10321_v56  ;;  %v10325_v35 = vpop.f32.mrb[47].mxu1  ;;  %7921 = vmatmul.mubr.msk.f32.gmra.mrb[92].mxu1 %vm959_vm1, %v10329_v12  ;;  %v7154_v56 = vld [vmem:[%s13082_s3 + $0x78] sm:$0xff] }
 0x23c   : > { %13194 = vst [vmem:[#allocation103_spill] sm:$0xff] %v10325_v35  ;;  %v2490_v35 = vld [vmem:[#allocation2 + $0x10] sm:$0xff]  ;;  %v8172_v52 = vpack.c.bf16 %v7154_v56, %v7153_v24  ;;  %v7229_v56 = vld [vmem:[%s12897_s7 + $0x178] sm:$0xff] }
 0x23d   : > { %v7336_v24 = vld [vmem:[%s12897_s7 + $0x1d0] sm:$0xff] }
 0x23e   : > { %v10333_v23 = vld [vmem:[#allocation2 + $0x190] sm:$0xff]  ;;  %v10335_v51 = vld [vmem:[#allocation2 + $0x198] sm:$0xff] }
 0x23f   : > { %7923 = vmatprep.mubr.msk.f32.mxu1 %vm959_vm1, %v10333_v23 }
 0x240   : > { %7924 = vmatmul.mubr.msk.f32.gmra.mrb[94].mxu1 %vm959_vm1, %v10335_v51 }
 0x241   : > { %7938 = vmatprep.mubr.msk.f32.mxu1 %vm959_vm1, %v2489_v37 }
 0x244   : > { %7939 = vmatmul.mubr.msk.f32.vlgmr.msra.gmra.mrb[48].mxu1 %vm959_vm1, %v2490_v35  ;;  %v7207_v35 = vld [vmem:[%s12897_s7 + $0xc8] sm:$0xff] }
 0x245   : > { %8171 = vmatpush3.bf16.msra.mxu1 %v10049_v32  ;;  %7941 = vmatprep.mubr.msk.f32.mxu1 %vm959_vm1, %v2491_v28  ;;  %v3362_v28 = vld [vmem:[#allocation2 + $0x1a8] sm:$0xff] }
 0x246   : > { %8173 = vmatprep.subr.bf16.mxu1 %v8172_v52 }
 0x248   : > { %7942 = vmatmul.mubr.msk.f32.gmra.mrb[50].mxu1 %vm959_vm1, %v9891_v29  ;;  %v7211_v29 = vld [vmem:[%s12897_s7 + $0xe8] sm:$0xff] }
 0x249   : > { %7944 = vmatprep.mubr.msk.f32.mxu1 %vm959_vm1, %v9893_v4  ;;  %8175 = vmatpush3.bf16.msra.mxu1 %v8172_v52  ;;  %v7206_v52 = vld [vmem:[%s12897_s7 + $0xc0] sm:$0xff] }
 0x24a   : > { %8177 = vmatprep.subr.bf16.mxu1 %v8176_v53 }
 0x24c   : > { %7945 = vmatmul.mubr.msk.f32.gmra.mrb[52].mxu1 %vm959_vm1, %v9910_v42  ;;  %v7212_v42 = vld [vmem:[%s12897_s7 + $0xf0] sm:$0xff] }
 0x24d   : > { %7947 = vmatprep.mubr.msk.f32.mxu1 %vm959_vm1, %v9915_v17  ;;  %8179 = vmatpush3.bf16.msra.mxu1 %v8176_v53  ;;  %v3361_v53 = vld [vmem:[#allocation2 + $0x1a0] sm:$0xff] }
 0x250   : > { %7948 = vmatmul.mubr.msk.f32.gmra.mrb[54].mxu1 %vm959_vm1, %v9930_v14 }
 0x251   : > { %7950 = vmatprep.mubr.msk.f32.mxu1 %vm959_vm1, %v9935_v36 }
 0x254   : > { %7951 = vmatmul.mubr.msk.f32.gmra.mrb[56].mxu1 %vm959_vm1, %v9950_v62 }
 0x255   : > { %7953 = vmatprep.mubr.msk.f32.mxu1 %vm959_vm1, %v9955_v43 }
 0x258   : > { %7954 = vmatmul.mubr.msk.f32.gmra.mrb[58].mxu1 %vm959_vm1, %v9976_v50 }
 0x259   : > { %7956 = vmatprep.mubr.msk.f32.mxu1 %vm959_vm1, %v9981_v15 }
 0x25c   : > { %7957 = vmatmul.mubr.msk.f32.gmra.mrb[60].mxu1 %vm959_vm1, %v9996_v20 }
 0x25d   : > { %7959 = vmatprep.mubr.msk.f32.mxu1 %vm959_vm1, %v10001_v54 }
 0x260   : > { %7960 = vmatmul.mubr.msk.f32.gmra.mrb[62].mxu1 %vm959_vm1, %v10016_v13 }
 0x261   : > { %7962 = vmatprep.mubr.msk.f32.mxu1 %vm959_vm1, %v10021_v6 }
 0x264   : > { %7963 = vmatmul.mubr.msk.f32.gmra.mrb[64].mxu1 %vm959_vm1, %v10036_v58 }
 0x265   : > { %7965 = vmatprep.mubr.msk.f32.mxu1 %vm959_vm1, %v10047_v0 }
 0x268   : > { %7966 = vmatmul.mubr.msk.f32.gmra.mrb[66].mxu1 %vm959_vm1, %v10061_v8 }
 0x269   : > { %7968 = vmatprep.mubr.msk.f32.mxu1 %vm959_vm1, %v10066_v25 }
 0x26c   : > { %7969 = vmatmul.mubr.msk.f32.gmra.mrb[68].mxu1 %vm959_vm1, %v10073_v31 }
 0x26d   : > { %7971 = vmatprep.mubr.msk.f32.mxu1 %vm959_vm1, %v10078_v16 }
 0x270   : > { %7972 = vmatmul.mubr.msk.f32.gmra.mrb[70].mxu1 %vm959_vm1, %v10085_v49 }
 0x271   : > { %7974 = vmatprep.mubr.msk.f32.mxu1 %vm959_vm1, %v10090_v5 }
 0x274   : > { %7975 = vmatmul.mubr.msk.f32.gmra.mrb[72].mxu1 %vm959_vm1, %v10105_v7 }
 0x275   : > { %7977 = vmatprep.mubr.msk.f32.mxu1 %vm959_vm1, %v10110_v9 }
 0x278   : > { %7978 = vmatmul.mubr.msk.f32.gmra.mrb[74].mxu1 %vm959_vm1, %v10123_v40 }
 0x279   : > { %7980 = vmatprep.mubr.msk.f32.mxu1 %vm959_vm1, %v10130_v34 }
 0x27c   : > { %7981 = vmatmul.mubr.msk.f32.gmra.mrb[76].mxu1 %vm959_vm1, %v10143_v21 }
 0x27d   : > { %7983 = vmatprep.mubr.msk.f32.mxu1 %vm959_vm1, %v10150_v1 }
 0x280   : > { %7984 = vmatmul.mubr.msk.f32.gmra.mrb[78].mxu1 %vm959_vm1, %v10163_v22 }
 0x281   : > { %7986 = vmatprep.mubr.msk.f32.mxu1 %vm959_vm1, %v10170_v39 }
 0x284   : > { %7987 = vmatmul.mubr.msk.f32.gmra.mrb[80].mxu1 %vm959_vm1, %v10183_v61 }
 0x285   : > { %7989 = vmatprep.mubr.msk.f32.mxu1 %vm959_vm1, %v10190_v26 }
 0x288   : > { %7990 = vmatmul.mubr.msk.f32.gmra.mrb[82].mxu1 %vm959_vm1, %v10203_v41 }
 0x289   : > { %7992 = vmatprep.mubr.msk.f32.mxu1 %vm959_vm1, %v10210_v45 }
 0x28c   : > { %7993 = vmatmul.mubr.msk.f32.gmra.mrb[84].mxu1 %vm959_vm1, %v10223_v46 }
 0x28d   : > { %7995 = vmatprep.mubr.msk.f32.mxu1 %vm959_vm1, %v10230_v3 }
 0x290   : > { %7996 = vmatmul.mubr.msk.f32.gmra.mrb[86].mxu1 %vm959_vm1, %v10243_v19 }
 0x291   : > { %7998 = vmatprep.mubr.msk.f32.mxu1 %vm959_vm1, %v10250_v55 }
 0x294   : > { %7999 = vmatmul.mubr.msk.f32.gmra.mrb[88].mxu1 %vm959_vm1, %v10263_v47 }
 0x295   : > { %8001 = vmatprep.mubr.msk.f32.mxu1 %vm959_vm1, %v10270_v48 }
 0x298   : > { %8002 = vmatmul.mubr.msk.f32.gmra.mrb[90].mxu1 %vm959_vm1, %v10283_v38 }
 0x299   : > { %8004 = vmatprep.mubr.msk.f32.mxu1 %vm959_vm1, %v10290_v11 }
 0x29c   : > { %8005 = vmatmul.mubr.msk.f32.gmra.mrb[92].mxu1 %vm959_vm1, %v10303_v59 }
 0x29d   : > { %8007 = vmatprep.mubr.msk.f32.mxu1 %vm959_vm1, %v10310_v27 }
 0x2a0   : > { %8008 = vmatmul.mubr.msk.f32.gmra.mrb[94].mxu1 %vm959_vm1, %v10323_v44 }
 0x2a1   : > { %8022 = vmatprep.mubr.msk.f32.mxu1 %vm959_vm1, %v9915_v17  ;;  %v7213_v17 = vld [vmem:[%s12897_s7 + $0xf8] sm:$0xff] }
 0x2a4   : > { %8023 = vmatmul.mubr.msk.f32.vlgmr.msra.gmra.mrb[48].mxu1 %vm959_vm1, %v9930_v14  ;;  %v8190_v14 = vpack.c.bf16 %v7213_v17, %v7212_v42 }
 0x2a5   : > { %8025 = vmatprep.mubr.msk.f32.mxu1 %vm959_vm1, %v9935_v36  ;;  %v7214_v36 = vld [vmem:[%s12897_s7 + $0x100] sm:$0xff] }
 0x2a8   : > { %8026 = vmatmul.mubr.msk.f32.gmra.mrb[50].mxu1 %vm959_vm1, %v9950_v62  ;;  %v7215_v62 = vld [vmem:[%s12897_s7 + $0x108] sm:$0xff] }
 0x2a9   : > { %8028 = vmatprep.mubr.msk.f32.mxu1 %vm959_vm1, %v9955_v43  ;;  %v8193_v43 = vpack.c.bf16 %v7215_v62, %v7214_v36 }
 0x2ac   : > { %8029 = vmatmul.mubr.msk.f32.gmra.mrb[52].mxu1 %vm959_vm1, %v9976_v50  ;;  %v7216_v50 = vld [vmem:[%s12897_s7 + $0x110] sm:$0xff] }
 0x2ad   : > { %8031 = vmatprep.mubr.msk.f32.mxu1 %vm959_vm1, %v9981_v15  ;;  %v7217_v15 = vld [vmem:[%s12897_s7 + $0x118] sm:$0xff] }
 0x2b0   : > { %8032 = vmatmul.mubr.msk.f32.gmra.mrb[54].mxu1 %vm959_vm1, %v9996_v20  ;;  %v8196_v20 = vpack.c.bf16 %v7217_v15, %v7216_v50  ;;  %v7340_v15 = vld [vmem:[%s12897_s7 + $0x1f0] sm:$0xff] }
 0x2b1   : > { %8034 = vmatprep.mubr.msk.f32.mxu1 %vm959_vm1, %v10001_v54  ;;  %v7218_v54 = vld [vmem:[%s12897_s7 + $0x120] sm:$0xff] }
 0x2b4   : > { %8035 = vmatmul.mubr.msk.f32.gmra.mrb[56].mxu1 %vm959_vm1, %v10016_v13  ;;  %v7219_v13 = vld [vmem:[%s12897_s7 + $0x128] sm:$0xff] }
 0x2b5   : > { %8037 = vmatprep.mubr.msk.f32.mxu1 %vm959_vm1, %v10021_v6  ;;  %v8199_v6 = vpack.c.bf16 %v7219_v13, %v7218_v54 }
 0x2b8   : > { %8038 = vmatmul.mubr.msk.f32.gmra.mrb[58].mxu1 %vm959_vm1, %v10036_v58  ;;  %v7220_v58 = vld [vmem:[%s12897_s7 + $0x130] sm:$0xff] }
 0x2b9   : > { %8040 = vmatprep.mubr.msk.f32.mxu1 %vm959_vm1, %v10047_v0  ;;  %v7221_v0 = vld [vmem:[%s12897_s7 + $0x138] sm:$0xff] }
 0x2ba   : > { %v8202_v32 = vpack.c.bf16 %v7221_v0, %v7220_v58 }
 0x2bc   : > { %8041 = vmatmul.mubr.msk.f32.gmra.mrb[60].mxu1 %vm959_vm1, %v10061_v8  ;;  %v7222_v8 = vld [vmem:[%s12897_s7 + $0x140] sm:$0xff] }
 0x2bd   : > { %8043 = vmatprep.mubr.msk.f32.mxu1 %vm959_vm1, %v10066_v25  ;;  %v7223_v25 = vld [vmem:[%s12897_s7 + $0x148] sm:$0xff] }
 0x2c0   : > { %8044 = vmatmul.mubr.msk.f32.gmra.mrb[62].mxu1 %vm959_vm1, %v10073_v31  ;;  %v7224_v31 = vld [vmem:[%s12897_s7 + $0x150] sm:$0xff] }
 0x2c1   : > { %8046 = vmatprep.mubr.msk.f32.mxu1 %vm959_vm1, %v10078_v16  ;;  %v8205_v16 = vpack.c.bf16 %v7223_v25, %v7222_v8 }
 0x2c4   : > { %8047 = vmatmul.mubr.msk.f32.gmra.mrb[64].mxu1 %vm959_vm1, %v10085_v49  ;;  %v7225_v49 = vld [vmem:[%s12897_s7 + $0x158] sm:$0xff] }
 0x2c5   : > { %8049 = vmatprep.mubr.msk.f32.mxu1 %vm959_vm1, %v10090_v5  ;;  %v7326_v5 = vld [vmem:[%s12897_s7 + $0x180] sm:$0xff] }
 0x2c8   : > { %8050 = vmatmul.mubr.msk.f32.gmra.mrb[66].mxu1 %vm959_vm1, %v10105_v7  ;;  %v7328_v7 = vld [vmem:[%s12897_s7 + $0x190] sm:$0xff] }
 0x2c9   : > { %8052 = vmatprep.mubr.msk.f32.mxu1 %vm959_vm1, %v10110_v9  ;;  %v7329_v9 = vld [vmem:[%s12897_s7 + $0x198] sm:$0xff] }
 0x2cc   : > { %8053 = vmatmul.mubr.msk.f32.gmra.mrb[68].mxu1 %vm959_vm1, %v10123_v40  ;;  %v7226_v40 = vld [vmem:[%s12897_s7 + $0x160] sm:$0xff] }
 0x2cd   : > { %8055 = vmatprep.mubr.msk.f32.mxu1 %vm959_vm1, %v10130_v34  ;;  %v7227_v34 = vld [vmem:[%s12897_s7 + $0x168] sm:$0xff] }
 0x2d0   : > { %8056 = vmatmul.mubr.msk.f32.gmra.mrb[70].mxu1 %vm959_vm1, %v10143_v21  ;;  %v8208_v21 = vpack.c.bf16 %v7225_v49, %v7224_v31 }
 0x2d1   : > { %8058 = vmatprep.mubr.msk.f32.mxu1 %vm959_vm1, %v10150_v1 }
 0x2d4   : > { %8059 = vmatmul.mubr.msk.f32.gmra.mrb[72].mxu1 %vm959_vm1, %v10163_v22  ;;  %v7327_v22 = vld [vmem:[%s12897_s7 + $0x188] sm:$0xff] }
 0x2d5   : > { %8061 = vmatprep.mubr.msk.f32.mxu1 %vm959_vm1, %v10170_v39  ;;  %v10625_v1 = vpack.c.bf16 %v7327_v22, %v7326_v5  ;;  %v7330_v39 = vld [vmem:[%s12897_s7 + $0x1a0] sm:$0xff] }
 0x2d8   : > { %8062 = vmatmul.mubr.msk.f32.gmra.mrb[74].mxu1 %vm959_vm1, %v10183_v61  ;;  %v10635_v61 = vpack.c.bf16 %v7329_v9, %v7328_v7 }
 0x2d9   : > { %8064 = vmatprep.mubr.msk.f32.mxu1 %vm959_vm1, %v10190_v26  ;;  %v7331_v26 = vld [vmem:[%s12897_s7 + $0x1a8] sm:$0xff] }
 0x2dc   : > { %8065 = vmatmul.mubr.msk.f32.gmra.mrb[76].mxu1 %vm959_vm1, %v10203_v41  ;;  %v7210_v41 = vld [vmem:[%s12897_s7 + $0xe0] sm:$0xff] }
 0x2dd   : > { %8067 = vmatprep.mubr.msk.f32.mxu1 %vm959_vm1, %v10210_v45  ;;  %v8187_v4 = vpack.c.bf16 %v7211_v29, %v7210_v41  ;;  %v8211_v45 = vpack.c.bf16 %v7227_v34, %v7226_v40  ;;  %v7339_v41 = vld [vmem:[%s12897_s7 + $0x1e8] sm:$0xff] }
 0x2de   : > { %v7343_v40 = vld [vmem:[%s12897_s7 + $0x208] sm:$0xff] }
 0x2e0   : > { %8068 = vmatmul.mubr.msk.f32.gmra.mrb[78].mxu1 %vm959_vm1, %v10223_v46 }
 0x2e1   : > { %8070 = vmatprep.mubr.msk.f32.mxu1 %vm959_vm1, %v10230_v3  ;;  %v10652_v3 = vpack.c.bf16 %v7331_v26, %v7330_v39 }
 0x2e4   : > { %8071 = vmatmul.mubr.msk.f32.gmra.mrb[80].mxu1 %vm959_vm1, %v10243_v19  ;;  %v7209_v19 = vld [vmem:[%s12897_s7 + $0xd8] sm:$0xff] }
 0x2e5   : > { %8073 = vmatprep.mubr.msk.f32.mxu1 %vm959_vm1, %v10250_v55  ;;  %v7332_v55 = vld [vmem:[%s12897_s7 + $0x1b0] sm:$0xff] }
 0x2e8   : > { %8074 = vmatmul.mubr.msk.f32.gmra.mrb[82].mxu1 %vm959_vm1, %v10263_v47  ;;  %v7208_v47 = vld [vmem:[%s12897_s7 + $0xd0] sm:$0xff] }
 0x2e9   : > { %8076 = vmatprep.mubr.msk.f32.mxu1 %vm959_vm1, %v10270_v48  ;;  %v8184_v46 = vpack.c.bf16 %v7209_v19, %v7208_v47  ;;  %v7333_v48 = vld [vmem:[%s12897_s7 + $0x1b8] sm:$0xff]  ;;  %v7338_v47 = vld [vmem:[%s12897_s7 + $0x1e0] sm:$0xff] }
 0x2ea   : > { %v10712_v17 = vpack.c.bf16 %v7339_v41, %v7338_v47 }
 0x2ec   : > { %8077 = vmatmul.mubr.msk.f32.gmra.mrb[84].mxu1 %vm959_vm1, %v10283_v38  ;;  %v8181_v38 = vpack.c.bf16 %v7207_v35, %v7206_v52 }
 0x2ed   : > { %8079 = vmatprep.mubr.msk.f32.mxu1 %vm959_vm1, %v10290_v11  ;;  %v10662_v11 = vpack.c.bf16 %v7333_v48, %v7332_v55 }
 0x2f0   : > { %8080 = vmatmul.mubr.msk.f32.gmra.mrb[86].mxu1 %vm959_vm1, %v10303_v59  ;;  %v12997_v59 = vmov 0.0|0.0  }
 0x2f1   : > { %8082 = vmatprep.mubr.msk.f32.mxu1 %vm959_vm1, %v10310_v27  ;;  %8180 = vmatprep.subr.bf16.mxu0 %v12997_v59  ;;  %v7335_v27 = vld [vmem:[%s12897_s7 + $0x1c8] sm:$0xff] }
 0x2f2   : > { %8312 = vmatprep.subr.bf16.mxu1 %v12997_v59  ;;  %8182 = vmatpush1.bf16.msra.mxu0 %v8181_v38 }
 0x2f3   : > { %8183 = vmatprep.subr.bf16.mxu0 %v12997_v59  ;;  %8324 = vmatpush1.bf16.msra.mxu1 %v10625_v1 }
 0x2f4   : > { %8083 = vmatmul.mubr.msk.f32.gmra.mrb[88].mxu1 %vm959_vm1, %v10323_v44  ;;  %8313 = vmatprep.subr.bf16.mxu1 %v12997_v59  ;;  %v7334_v44 = vld [vmem:[%s12897_s7 + $0x1c0] sm:$0xff] }
 0x2f5   : > { %8085 = vmatprep.mubr.msk.f32.mxu1 %vm959_vm1, %v10329_v12  ;;  %v10674_v37 = vpack.c.bf16 %v7335_v27, %v7334_v44 }
 0x2f6   : > { %8185 = vmatpush1.bf16.msra.mxu0 %v8184_v46 }
 0x2f7   : > { %8186 = vmatprep.subr.bf16.mxu0 %v12997_v59  ;;  %8325 = vmatpush1.bf16.msra.mxu1 %v10635_v61 }
 0x2f8   : > { %8086 = vmatmul.mubr.msk.f32.gmra.mrb[90].mxu1 %vm959_vm1, %v10333_v23  ;;  %8314 = vmatprep.subr.bf16.mxu1 %v12997_v59  ;;  %v7228_v23 = vld [vmem:[%s12897_s7 + $0x170] sm:$0xff] }
 0x2f9   : > { %8088 = vmatprep.mubr.msk.f32.mxu1 %vm959_vm1, %v10335_v51  ;;  %v8214_v12 = vpack.c.bf16 %v7229_v56, %v7228_v23  ;;  %v10687_v51 = vld [vmem:[%s12894_s4] ss:$0 sm:$0xff] }
 0x2fa   : > { %8188 = vmatpush1.bf16.msra.mxu0 %v8187_v4 }
 0x2fb   : > { %8189 = vmatprep.subr.bf16.mxu0 %v12997_v59  ;;  %8326 = vmatpush1.bf16.msra.mxu1 %v10652_v3 }
 0x2fc   : > { %8089 = vmatmul.mubr.msk.f32.gmra.mrb[92].mxu1 %vm959_vm1, %v3361_v53  ;;  %8315 = vmatprep.subr.bf16.mxu1 %v12997_v59 }
 0x2fd   : > { %8091 = vmatprep.mubr.msk.f32.mxu1 %vm959_vm1, %v3362_v28  ;;  %v7337_v28 = vld [vmem:[%s12897_s7 + $0x1d8] sm:$0xff] }
 0x2fe   : > { %8191 = vmatpush1.bf16.msra.mxu0 %v8190_v14 }
 0x2ff   : > { %8192 = vmatprep.subr.bf16.mxu0 %v12997_v59  ;;  %8327 = vmatpush1.bf16.msra.mxu1 %v10662_v11 }
 0x300   : > { %8092 = vmatmul.mubr.msk.f32.gmra.mrb[94].mxu1 %vm959_vm1, %v3363_v33  ;;  %8316 = vmatprep.subr.bf16.mxu1 %v12997_v59  ;;  %v10696_v33 = vpack.c.bf16 %v7337_v28, %v7336_v24  ;;  %vm4456_vm1 = vcmask 1046528  }
 0x302   : > { %8194 = vmatpush1.bf16.msra.mxu0 %v8193_v43 }
 0x303   : > { %8195 = vmatprep.subr.bf16.mxu0 %v12997_v59  ;;  %8328 = vmatpush1.bf16.msra.mxu1 %v10674_v37 }
 0x304   : > { %8317 = vmatprep.subr.bf16.mxu1 %v12997_v59 }
 0x306   : > { %8197 = vmatpush1.bf16.msra.mxu0 %v8196_v20  ;;  %v7341_v20 = vld [vmem:[%s12897_s7 + $0x1f8] sm:$0xff] }
 0x307   : > { %8198 = vmatprep.subr.bf16.mxu0 %v12997_v59  ;;  %8329 = vmatpush1.bf16.msra.mxu1 %v10696_v33  ;;  %v10729_v0 = vpack.c.bf16 %v7341_v20, %v7340_v15 }
 0x308   : > { %8318 = vmatprep.subr.bf16.mxu1 %v12997_v59 }
 0x30a   : > { %8200 = vmatpush1.bf16.msra.mxu0 %v8199_v6 }
 0x30b   : > { %8201 = vmatprep.subr.bf16.mxu0 %v12997_v59  ;;  %8330 = vmatpush1.bf16.msra.mxu1 %v10712_v17 }
 0x30c   : > { %8319 = vmatprep.subr.bf16.mxu1 %v12997_v59 }
 0x30e   : > { %8203 = vmatpush1.bf16.msra.mxu0 %v8202_v32 }
 0x30f   : > { %8204 = vmatprep.subr.bf16.mxu0 %v12997_v59  ;;  %8331 = vmatpush1.bf16.msra.mxu1 %v10729_v0 }
 0x310   : > { %8320 = vmatprep.subr.bf16.mxu1 %v12997_v59 }
 0x312   : > { %8206 = vmatpush1.bf16.msra.mxu0 %v8205_v16 }
 0x313   : > { %8207 = vmatprep.subr.bf16.mxu0 %v12997_v59 }
 0x316   : > { %8209 = vmatpush1.bf16.msra.mxu0 %v8208_v21  ;;  %v7342_v21 = vld [vmem:[%s12897_s7 + $0x200] sm:$0xff] }
 0x317   : > { %8210 = vmatprep.subr.bf16.mxu0 %v12997_v59  ;;  %v10758_v55 = vpack.c.bf16 %v7343_v40, %v7342_v21  ;;  %v7347_v21 = vld [vmem:[%s12897_s7 + $0x228] sm:$0xff]  ;;  %v13197_v40 = vld [vmem:[#allocation17_spill] sm:$0xff] }
 0x319   : > { %8332 = vmatpush1.bf16.msra.mxu1 %v10758_v55 }
 0x31a   : > { %8212 = vmatpush1.bf16.msra.mxu0 %v8211_v45  ;;  %8321 = vmatprep.subr.bf16.mxu1 %v12997_v59 }
 0x31b   : > { %8213 = vmatprep.subr.bf16.mxu0 %v12997_v59 }
 0x31e   : > { %8215 = vmatpush1.bf16.msra.mxu0 %v8214_v12 }
 0x31f   : > { %8216 = vmatprep.subr.bf16.mxu0 %v12997_v59 }
 0x377   : > { %v8024_v53 = vpop.f32.mrb[48].mxu1 }
 0x378   : > { %v3876_v57 = vadd.f32 %v8024_v53, %v10687_v51  ;;  %v3581_v52 = vpop.f32.mrb[49].mxu1 }
 0x379   : > { %v3875_v35 = vadd.f32 %v10687_v51, %v3581_v52 }
 0x37a   : > { %v3924_v38 = vmax.f32 %v3876_v57, 0.0 }
 0x37b   : > { %v3923_v19 = vmax.f32 %v3875_v35, 0.0  ;;  %v8027_v46 = vpop.f32.mrb[50].mxu1  ;;  %v7344_v35 = vld [vmem:[%s12897_s7 + $0x210] sm:$0xff] }
 0x37c   : > { %v10709_v29 = vmul.f32 %v8871_v60, %v3924_v38  ;;  %v3878_v4 = vadd.f32 %v8027_v46, %v10687_v51  ;;  %v3591_v42 = vpop.f32.mrb[51].mxu1  ;;  %v7345_v38 = vld [vmem:[%s12897_s7 + $0x218] sm:$0xff]  ;;  %v4765_v60 = vld [vmem:[%s12897_s7 + $0x88] sm:$0xff] }
 0x37d   : > { %v3971_v14 = vmul.f32 %v8874_v63, %v3923_v19  ;;  %v3877_v36 = vadd.f32 %v10687_v51, %v3591_v42  ;;  %v13195_v42 = vld [vmem:[#allocation15_spill] sm:$0xff] }
 0x37e   : > { %v4069_v62 = vrot.slane %v10709_v29, 7  ;;  %v4458_v43 = vrot.slane %v10709_v29, 1  ;;  %v3926_v50 = vmax.f32 %v3878_v4, 0.0  ;;  %4265 = vrot.lane.b32.xlu1 %v10709_v29, %s8554_s20 }
 0x37f   : > { %v4068_v54 = vrot.slane %v3971_v14, 7  ;;  %v4457_v13 = vrot.slane %v3971_v14, 1  ;;  %v3925_v6 = vmax.f32 %v3877_v36, 0.0  ;;  %4263 = vrot.lane.b32.xlu0 %v3971_v14, %s8554_s20  ;;  %v8030_v58 = vpop.f32.mrb[52].mxu1 }
 0x380   : > { %v10732_v32 = vmul.f32 %v8881_v2, %v3926_v50  ;;  %v3880_v8 = vadd.f32 %v8030_v58, %v10687_v51  ;;  %v3601_v25 = vpop.f32.mrb[53].mxu1  ;;  %v10795_v50 = vpack.c.bf16 %v7345_v38, %v7344_v35 }
 0x381   : > { %v4459_v31 = vsel %vm4456_vm1, %v4457_v13, %v4458_v43  ;;  %4602 = vst.msk [vmem:[#allocation3 + $0x38] sm:$0x80] %vm4601_vm10, %v4457_v13  ;;  %v3973_v16 = vmul.f32 %v8888_v10, %v3925_v6  ;;  %v3879_v49 = vadd.f32 %v10687_v51, %v3601_v25  ;;  %v4070_v5 = vsel %vm4067_vm11, %v4068_v54, %v4069_v62 }
 0x382   : > { %4213 = vst.msk [vmem:[#allocation3 + $0x40] sm:$0xfe] %vm4212_vm12, %v4068_v54  ;;  %v4073_v22 = vrot.slane %v10732_v32, 7  ;;  %v4462_v7 = vrot.slane %v10732_v32, 1  ;;  %v3928_v9 = vmax.f32 %v3880_v8, 0.0  ;;  %4269 = vrot.lane.b32.xlu1 %v10732_v32, %s8554_s20  ;;  %v13196_v54 = vld [vmem:[#allocation14_spill] sm:$0xff]  ;;  %8333 = vmatpush1.bf16.msra.mxu1 %v10795_v50 }
 0x383   : > { %4603 = vst.msk [vmem:[#allocation3 + $0x48] sm:$0xff] %vm971_vm9, %v4459_v31  ;;  %4214 = vst.msk [vmem:[#allocation3 + $0x50] sm:$0xff] %vm971_vm9, %v4070_v5  ;;  %v4071_v34 = vrot.slane %v3973_v16, 7  ;;  %v4460_v39 = vrot.slane %v3973_v16, 1  ;;  %v3927_v26 = vmax.f32 %v3879_v49, 0.0  ;;  %4267 = vrot.lane.b32.xlu0 %v3973_v16, %s8554_s20  ;;  %v8033_v45 = vpop.f32.mrb[54].mxu1  ;;  %8322 = vmatprep.subr.bf16.mxu1 %v12997_v59 }
 0x384   : > { %v10761_v48 = vmul.f32 %v8915_v30, %v3928_v9  ;;  %v3882_v44 = vadd.f32 %v8033_v45, %v10687_v51  ;;  %v3611_v27 = vpop.f32.mrb[55].mxu1  ;;  %v7346_v31 = vld [vmem:[%s12897_s7 + $0x220] sm:$0xff]  ;;  %v4763_v30 = vld [vmem:[%s12897_s7 + $0x78] sm:$0xff] }
 0x385   : > { %v4461_v23 = vsel %vm4456_vm1, %v4458_v43, %v4460_v39  ;;  %v4463_v56 = vsel %vm4456_vm1, %v4460_v39, %v4462_v7  ;;  %v3975_v12 = vmul.f32 %v8903_v18, %v3927_v26  ;;  %v3881_v24 = vadd.f32 %v10687_v51, %v3611_v27 }
 0x386   : > { %4604 = vst.msk [vmem:[#allocation3 + $0x58] sm:$0xff] %vm971_vm9, %v4461_v23  ;;  %4605 = vst.msk [vmem:[#allocation3 + $0x68] sm:$0xff] %vm971_vm9, %v4463_v56  ;;  %v4077_v28 = vrot.slane %v10761_v48, 7  ;;  %v4466_v53 = vrot.slane %v10761_v48, 1  ;;  %v3930_v57 = vmax.f32 %v3882_v44, 0.0  ;;  %4273 = vrot.lane.b32.xlu1 %v10761_v48, %s8554_s20  ;;  %v4074_v52 = vsel %vm4067_vm11, %v4071_v34, %v4073_v22  ;;  %v13198_v44 = vld [vmem:[#allocation16_spill] sm:$0xff] }
 0x387   : > { %v4075_v47 = vrot.slane %v3975_v12, 7  ;;  %v4464_v19 = vrot.slane %v3975_v12, 1  ;;  %v3929_v46 = vmax.f32 %v3881_v24, 0.0  ;;  %4271 = vrot.lane.b32.xlu0 %v3975_v12, %s8554_s20  ;;  %v8036_v41 = vpop.f32.mrb[56].mxu1  ;;  %4216 = vst.msk [vmem:[#allocation3 + $0x70] sm:$0xff] %vm971_vm9, %v4074_v52  ;;  %v4072_v4 = vsel %vm4067_vm11, %v4069_v62, %v4071_v34  ;;  %v7349_v52 = vld [vmem:[%s12897_s7 + $0x238] sm:$0xff] }
 0x388   : > { %v10791_v14 = vmul.f32 %v13195_v42, %v3930_v57  ;;  %v3884_v36 = vadd.f32 %v8036_v41, %v10687_v51  ;;  %v3621_v43 = vpop.f32.mrb[57].mxu1  ;;  %4215 = vst.msk [vmem:[#allocation3 + $0x60] sm:$0xff] %vm971_vm9, %v4072_v4  ;;  %v10829_v45 = vpack.c.bf16 %v7347_v21, %v7346_v31  ;;  %v7348_v57 = vld [vmem:[%s12897_s7 + $0x230] sm:$0xff]  ;;  %v13199_v41 = vld [vmem:[#allocation19_spill] sm:$0xff] }
 0x389   : > { %v4465_v15 = vsel %vm4456_vm1, %v4462_v7, %v4464_v19  ;;  %v4467_v20 = vsel %vm4456_vm1, %v4464_v19, %v4466_v53  ;;  %v3977_v29 = vmul.f32 %v13196_v54, %v3929_v46  ;;  %v3883_v62 = vadd.f32 %v10687_v51, %v3621_v43 }
 0x38a   : > { %v4659_v13 = vld [vmem:[#allocation3 + $0x48] sm:$0xff]  ;;  %4606 = vst.msk [vmem:[#allocation3 + $0x78] sm:$0xff] %vm971_vm9, %v4465_v15  ;;  %4607 = vst.msk [vmem:[#allocation3 + $0x88] sm:$0xff] %vm971_vm9, %v4467_v20  ;;  %v4081_v6 = vrot.slane %v10791_v14, 7  ;;  %v4470_v58 = vrot.slane %v10791_v14, 1  ;;  %v3932_v8 = vmax.f32 %v3884_v36, 0.0  ;;  %4277 = vrot.lane.b32.xlu1 %v10791_v14, %s8554_s20  ;;  %v4078_v25 = vsel %vm4067_vm11, %v4075_v47, %v4077_v28  ;;  %8334 = vmatpush1.bf16.msra.mxu1 %v10829_v45 }
 0x38b   : > { %7230 = vmatprep.mubr.msk.f32.mxu0 %vm971_vm9, %v4659_v13  ;;  %v4079_v16 = vrot.slane %v3977_v29, 7  ;;  %v4468_v49 = vrot.slane %v3977_v29, 1  ;;  %v3931_v5 = vmax.f32 %v3883_v62, 0.0  ;;  %4275 = vrot.lane.b32.xlu0 %v3977_v29, %s8554_s20  ;;  %v8039_v7 = vpop.f32.mrb[58].mxu1  ;;  %4218 = vst.msk [vmem:[#allocation3 + $0x90] sm:$0xff] %vm971_vm9, %v4078_v25  ;;  %v4076_v9 = vsel %vm4067_vm11, %v4073_v22, %v4075_v47  ;;  %v13200_v29 = vld [vmem:[#allocation18_spill] sm:$0xff] }
 0x38c   : > { %v10824_v34 = vmul.f32 %v13197_v40, %v3932_v8  ;;  %v3886_v39 = vadd.f32 %v8039_v7, %v10687_v51  ;;  %v3631_v26 = vpop.f32.mrb[59].mxu1  ;;  %4217 = vst.msk [vmem:[#allocation3 + $0x80] sm:$0xff] %vm971_vm9, %v4076_v9  ;;  %8323 = vmatprep.subr.bf16.mxu1 %v12997_v59  ;;  %v10862_v15 = vpack.c.bf16 %v7349_v52, %v7348_v57  ;;  %v13201_v9 = vld [vmem:[#allocation20_spill] sm:$0xff] }
 0x38d   : > { %v4469_v32 = vsel %vm4456_vm1, %v4466_v53, %v4468_v49  ;;  %v4471_v22 = vsel %vm4456_vm1, %v4468_v49, %v4470_v58  ;;  %v3979_v27 = vmul.f32 %v13198_v44, %v3931_v5  ;;  %v3885_v23 = vadd.f32 %v10687_v51, %v3631_v26 }
 0x38e   : > { %4608 = vst.msk [vmem:[#allocation3 + $0x98] sm:$0xff] %vm971_vm9, %v4469_v32  ;;  %4609 = vst.msk [vmem:[#allocation3 + $0xa8] sm:$0xff] %vm971_vm9, %v4471_v22  ;;  %v4085_v56 = vrot.slane %v10824_v34, 7  ;;  %v4474_v12 = vrot.slane %v10824_v34, 1  ;;  %v3934_v24 = vmax.f32 %v3886_v39, 0.0  ;;  %4281 = vrot.lane.b32.xlu1 %v10824_v34, %s8554_s20  ;;  %v4082_v53 = vsel %vm4067_vm11, %v4079_v16, %v4081_v6  ;;  %8335 = vmatpush1.bf16.msra.mxu1 %v10862_v15  ;;  %v13202_v22 = vld [vmem:[#allocation21_spill] sm:$0xff] }
 0x38f   : > { %v4083_v35 = vrot.slane %v3979_v27, 7  ;;  %v4472_v38 = vrot.slane %v3979_v27, 1  ;;  %v3933_v47 = vmax.f32 %v3885_v23, 0.0  ;;  %4279 = vrot.lane.b32.xlu0 %v3979_v27, %s8554_s20  ;;  %v8042_v19 = vpop.f32.mrb[60].mxu1  ;;  %4220 = vst.msk [vmem:[#allocation3 + $0xb0] sm:$0xff] %vm971_vm9, %v4082_v53  ;;  %v4080_v46 = vsel %vm4067_vm11, %v4077_v28, %v4079_v16 }
 0x390   : > { %v10857_v4 = vmul.f32 %v13199_v41, %v3934_v24  ;;  %v3888_v36 = vadd.f32 %v8042_v19, %v10687_v51  ;;  %v3641_v43 = vpop.f32.mrb[61].mxu1  ;;  %4219 = vst.msk [vmem:[#allocation3 + $0xa0] sm:$0xff] %vm971_vm9, %v4080_v46  ;;  %v13232_v41 = vld [vmem:[#allocation51_spill] sm:$0xff] }
 0x391   : > { %v4473_v20 = vsel %vm4456_vm1, %v4470_v58, %v4472_v38  ;;  %v4475_v48 = vsel %vm4456_vm1, %v4472_v38, %v4474_v12  ;;  %v3981_v28 = vmul.f32 %v13200_v29, %v3933_v47  ;;  %v3887_v62 = vadd.f32 %v10687_v51, %v3641_v43  ;;  %v13203_v47 = vld [vmem:[#allocation23_spill] sm:$0xff] }
 0x392   : > { %4610 = vst.msk [vmem:[#allocation3 + $0xb8] sm:$0xff] %vm971_vm9, %v4473_v20  ;;  %4611 = vst.msk [vmem:[#allocation3 + $0xc8] sm:$0xff] %vm971_vm9, %v4475_v48  ;;  %v4089_v13 = vrot.slane %v10857_v4, 7  ;;  %v4478_v8 = vrot.slane %v10857_v4, 1  ;;  %v3936_v25 = vmax.f32 %v3888_v36, 0.0  ;;  %4285 = vrot.lane.b32.xlu1 %v10857_v4, %s8554_s20  ;;  %v4086_v58 = vsel %vm4067_vm11, %v4083_v35, %v4085_v56  ;;  %v13204_v20 = vld [vmem:[#allocation22_spill] sm:$0xff] }
 0x393   : > { %v4087_v31 = vrot.slane %v3981_v28, 7  ;;  %v4476_v16 = vrot.slane %v3981_v28, 1  ;;  %v3935_v49 = vmax.f32 %v3887_v62, 0.0  ;;  %4283 = vrot.lane.b32.xlu0 %v3981_v28, %s8554_s20  ;;  %v8045_v5 = vpop.f32.mrb[62].mxu1  ;;  %4222 = vst.msk [vmem:[#allocation3 + $0xd0] sm:$0xff] %vm971_vm9, %v4086_v58  ;;  %v4084_v7 = vsel %vm4067_vm11, %v4081_v6, %v4083_v35 }
 0x394   : > { %v10882_v21 = vmul.f32 %v13201_v9, %v3936_v25  ;;  %v3890_v34 = vadd.f32 %v8045_v5, %v10687_v51  ;;  %v3651_v39 = vpop.f32.mrb[63].mxu1  ;;  %4221 = vst.msk [vmem:[#allocation3 + $0xc0] sm:$0xff] %vm971_vm9, %v4084_v7  ;;  %v13205_v7 = vld [vmem:[#allocation25_spill] sm:$0xff] }
 0x395   : > { %v4477_v26 = vsel %vm4456_vm1, %v4474_v12, %v4476_v16  ;;  %v4479_v32 = vsel %vm4456_vm1, %v4476_v16, %v4478_v8  ;;  %v3983_v27 = vmul.f32 %v13202_v22, %v3935_v49  ;;  %v3889_v14 = vadd.f32 %v10687_v51, %v3651_v39 }
 0x396   : > { %4612 = vst.msk [vmem:[#allocation3 + $0xd8] sm:$0xff] %vm971_vm9, %v4477_v26  ;;  %4613 = vst.msk [vmem:[#allocation3 + $0xe8] sm:$0xff] %vm971_vm9, %v4479_v32  ;;  %v4093_v6 = vrot.slane %v10882_v21, 7  ;;  %v4482_v23 = vrot.slane %v10882_v21, 1  ;;  %v3938_v24 = vmax.f32 %v3890_v34, 0.0  ;;  %4289 = vrot.lane.b32.xlu1 %v10882_v21, %s8554_s20  ;;  %v4090_v12 = vsel %vm4067_vm11, %v4087_v31, %v4089_v13 }
 0x397   : > { %v4091_v53 = vrot.slane %v3983_v27, 7  ;;  %v4480_v57 = vrot.slane %v3983_v27, 1  ;;  %v3937_v52 = vmax.f32 %v3889_v14, 0.0  ;;  %4287 = vrot.lane.b32.xlu0 %v3983_v27, %s8554_s20  ;;  %v8048_v35 = vpop.f32.mrb[64].mxu1  ;;  %4224 = vst.msk [vmem:[#allocation3 + $0xf0] sm:$0xff] %vm971_vm9, %v4090_v12  ;;  %v4088_v38 = vsel %vm4067_vm11, %v4085_v56, %v4087_v31  ;;  %v13206_v27 = vld [vmem:[#allocation24_spill] sm:$0xff] }
 0x398   : > { %v10901_v19 = vmul.f32 %v13203_v47, %v3938_v24  ;;  %v3892_v46 = vadd.f32 %v8048_v35, %v10687_v51  ;;  %v3661_v4 = vpop.f32.mrb[65].mxu1  ;;  %4223 = vst.msk [vmem:[#allocation3 + $0xe0] sm:$0xff] %vm971_vm9, %v4088_v38 }
 0x399   : > { %v4481_v36 = vsel %vm4456_vm1, %v4478_v8, %v4480_v57  ;;  %v4483_v43 = vsel %vm4456_vm1, %v4480_v57, %v4482_v23  ;;  %v3985_v48 = vmul.f32 %v13204_v20, %v3937_v52  ;;  %v3891_v28 = vadd.f32 %v10687_v51, %v3661_v4 }
 0x39a   : > { %4614 = vst.msk [vmem:[#allocation3 + $0xf8] sm:$0xff] %vm971_vm9, %v4481_v36  ;;  %4615 = vst.msk [vmem:[#allocation3 + $0x108] sm:$0xff] %vm971_vm9, %v4483_v43  ;;  %v4097_v56 = vrot.slane %v10901_v19, 7  ;;  %v4486_v62 = vrot.slane %v10901_v19, 1  ;;  %v3940_v25 = vmax.f32 %v3892_v46, 0.0  ;;  %4293 = vrot.lane.b32.xlu1 %v10901_v19, %s8554_s20  ;;  %v4094_v8 = vsel %vm4067_vm11, %v4091_v53, %v4093_v6  ;;  %v13207_v46 = vld [vmem:[#allocation27_spill] sm:$0xff] }
 0x39b   : > { %v4095_v58 = vrot.slane %v3985_v48, 7  ;;  %v4484_v31 = vrot.slane %v3985_v48, 1  ;;  %v3939_v16 = vmax.f32 %v3891_v28, 0.0  ;;  %4291 = vrot.lane.b32.xlu0 %v3985_v48, %s8554_s20  ;;  %v8051_v49 = vpop.f32.mrb[66].mxu1  ;;  %4226 = vst.msk [vmem:[#allocation3 + $0x110] sm:$0xff] %vm971_vm9, %v4094_v8  ;;  %v4092_v5 = vsel %vm4067_vm11, %v4089_v13, %v4091_v53 }
 0x39c   : > { %v10920_v21 = vmul.f32 %v13205_v7, %v3940_v25  ;;  %v3894_v34 = vadd.f32 %v8051_v49, %v10687_v51  ;;  %v3671_v39 = vpop.f32.mrb[67].mxu1  ;;  %4225 = vst.msk [vmem:[#allocation3 + $0x100] sm:$0xff] %vm971_vm9, %v4092_v5  ;;  %v13208_v25 = vld [vmem:[#allocation26_spill] sm:$0xff] }
 0x39d   : > { %v4485_v26 = vsel %vm4456_vm1, %v4482_v23, %v4484_v31  ;;  %v4487_v32 = vsel %vm4456_vm1, %v4484_v31, %v4486_v62  ;;  %v3987_v14 = vmul.f32 %v13206_v27, %v3939_v16  ;;  %v3893_v24 = vadd.f32 %v10687_v51, %v3671_v39 }
 0x39e   : > { %4616 = vst.msk [vmem:[#allocation3 + $0x118] sm:$0xff] %vm971_vm9, %v4485_v26  ;;  %4617 = vst.msk [vmem:[#allocation3 + $0x128] sm:$0xff] %vm971_vm9, %v4487_v32  ;;  %v4101_v13 = vrot.slane %v10920_v21, 7  ;;  %v4490_v12 = vrot.slane %v10920_v21, 1  ;;  %v3942_v53 = vmax.f32 %v3894_v34, 0.0  ;;  %4297 = vrot.lane.b32.xlu1 %v10920_v21, %s8554_s20  ;;  %v4098_v23 = vsel %vm4067_vm11, %v4095_v58, %v4097_v56  ;;  %v13209_v32 = vld [vmem:[#allocation29_spill] sm:$0xff] }
 0x39f   : > { %v4099_v57 = vrot.slane %v3987_v14, 7  ;;  %v4488_v52 = vrot.slane %v3987_v14, 1  ;;  %v3941_v35 = vmax.f32 %v3893_v24, 0.0  ;;  %4295 = vrot.lane.b32.xlu0 %v3987_v14, %s8554_s20  ;;  %v8054_v38 = vpop.f32.mrb[68].mxu1  ;;  %4228 = vst.msk [vmem:[#allocation3 + $0x130] sm:$0xff] %vm971_vm9, %v4098_v23  ;;  %v4096_v19 = vsel %vm4067_vm11, %v4093_v6, %v4095_v58 }
 0x3a0   : > { %v10939_v4 = vmul.f32 %v13207_v46, %v3942_v53  ;;  %v3896_v36 = vadd.f32 %v8054_v38, %v10687_v51  ;;  %v3681_v43 = vpop.f32.mrb[69].mxu1  ;;  %4227 = vst.msk [vmem:[#allocation3 + $0x120] sm:$0xff] %vm971_vm9, %v4096_v19 }
 0x3a1   : > { %v4489_v48 = vsel %vm4456_vm1, %v4486_v62, %v4488_v52  ;;  %v4491_v28 = vsel %vm4456_vm1, %v4488_v52, %v4490_v12  ;;  %v3989_v8 = vmul.f32 %v13208_v25, %v3941_v35  ;;  %v3895_v31 = vadd.f32 %v10687_v51, %v3681_v43  ;;  %v5585_v16 = vld [vmem:[#allocation3 + $0x108] sm:$0xff]  ;;  %v13210_v35 = vld [vmem:[#allocation28_spill] sm:$0xff] }
 0x3a2   : > { %4618 = vst.msk [vmem:[#allocation3 + $0x138] sm:$0xff] %vm971_vm9, %v4489_v48  ;;  %4619 = vst.msk [vmem:[#allocation3 + $0x148] sm:$0xff] %vm971_vm9, %v4491_v28  ;;  %v4105_v6 = vrot.slane %v10939_v4, 7  ;;  %v4494_v58 = vrot.slane %v10939_v4, 1  ;;  %v3944_v49 = vmax.f32 %v3896_v36, 0.0  ;;  %7359 = vmatprep.mubr.msk.f32.mxu1 %vm971_vm9, %v5585_v16  ;;  %4301 = vrot.lane.b32.xlu1 %v10939_v4, %s8554_s20  ;;  %v4102_v62 = vsel %vm4067_vm11, %v4099_v57, %v4101_v13 }
 0x3a3   : > { %v4103_v5 = vrot.slane %v3989_v8, 7  ;;  %v4492_v21 = vrot.slane %v3989_v8, 1  ;;  %v3943_v34 = vmax.f32 %v3895_v31, 0.0  ;;  %4299 = vrot.lane.b32.xlu0 %v3989_v8, %s8554_s20  ;;  %v8057_v39 = vpop.f32.mrb[70].mxu1  ;;  %4230 = vst.msk [vmem:[#allocation3 + $0x150] sm:$0xff] %vm971_vm9, %v4102_v62  ;;  %v4100_v26 = vsel %vm4067_vm11, %v4097_v56, %v4099_v57  ;;  %v13211_v31 = vld [vmem:[#allocation30_spill] sm:$0xff] }
 0x3a4   : > { %v10959_v14 = vmul.f32 %v13209_v32, %v3944_v49  ;;  %v3898_v24 = vadd.f32 %v8057_v39, %v10687_v51  ;;  %v3691_v53 = vpop.f32.mrb[71].mxu1  ;;  %4229 = vst.msk [vmem:[#allocation3 + $0x140] sm:$0xff] %vm971_vm9, %v4100_v26  ;;  %v13212_v39 = vld [vmem:[#allocation31_spill] sm:$0xff] }
 0x3a5   : > { %v4493_v23 = vsel %vm4456_vm1, %v4490_v12, %v4492_v21  ;;  %v4495_v52 = vsel %vm4456_vm1, %v4492_v21, %v4494_v58  ;;  %v3991_v38 = vmul.f32 %v13210_v35, %v3943_v34  ;;  %v3897_v19 = vadd.f32 %v10687_v51, %v3691_v53 }
 0x3a6   : > { %4620 = vst.msk [vmem:[#allocation3 + $0x158] sm:$0xff] %vm971_vm9, %v4493_v23  ;;  %4621 = vst.msk [vmem:[#allocation3 + $0x168] sm:$0xff] %vm971_vm9, %v4495_v52  ;;  %v4109_v56 = vrot.slane %v10959_v14, 7  ;;  %v4498_v57 = vrot.slane %v10959_v14, 1  ;;  %v3946_v4 = vmax.f32 %v3898_v24, 0.0  ;;  %4305 = vrot.lane.b32.xlu1 %v10959_v14, %s8554_s20  ;;  %v4106_v12 = vsel %vm4067_vm11, %v4103_v5, %v4105_v6 }
 0x3a7   : > { %v4107_v36 = vrot.slane %v3991_v38, 7  ;;  %v4496_v43 = vrot.slane %v3991_v38, 1  ;;  %v3945_v48 = vmax.f32 %v3897_v19, 0.0  ;;  %4303 = vrot.lane.b32.xlu0 %v3991_v38, %s8554_s20  ;;  %v8060_v28 = vpop.f32.mrb[72].mxu1  ;;  %4232 = vst.msk [vmem:[#allocation3 + $0x170] sm:$0xff] %vm971_vm9, %v4106_v12  ;;  %v4104_v8 = vsel %vm4067_vm11, %v4101_v13, %v4103_v5 }
 0x3a8   : > { %v10978_v16 = vmul.f32 %v13211_v31, %v3946_v4  ;;  %v3900_v49 = vadd.f32 %v8060_v28, %v10687_v51  ;;  %v3701_v62 = vpop.f32.mrb[73].mxu1  ;;  %4231 = vst.msk [vmem:[#allocation3 + $0x160] sm:$0xff] %vm971_vm9, %v4104_v8  ;;  %v13213_v4 = vld [vmem:[#allocation33_spill] sm:$0xff] }
 0x3a9   : > { %v4497_v21 = vsel %vm4456_vm1, %v4494_v58, %v4496_v43  ;;  %v4499_v34 = vsel %vm4456_vm1, %v4496_v43, %v4498_v57  ;;  %v3993_v26 = vmul.f32 %v13212_v39, %v3945_v48  ;;  %v3899_v14 = vadd.f32 %v10687_v51, %v3701_v62 }
 0x3aa   : > { %4622 = vst.msk [vmem:[#allocation3 + $0x178] sm:$0xff] %vm971_vm9, %v4497_v21  ;;  %4623 = vst.msk [vmem:[#allocation3 + $0x188] sm:$0xff] %vm971_vm9, %v4499_v34  ;;  %v4113_v13 = vrot.slane %v10978_v16, 7  ;;  %v4502_v5 = vrot.slane %v10978_v16, 1  ;;  %v3948_v24 = vmax.f32 %v3900_v49, 0.0  ;;  %4309 = vrot.lane.b32.xlu1 %v10978_v16, %s8554_s20  ;;  %v4110_v58 = vsel %vm4067_vm11, %v4107_v36, %v4109_v56  ;;  %v13214_v16 = vld [vmem:[#allocation32_spill] sm:$0xff] }
 0x3ab   : > { %v4111_v53 = vrot.slane %v3993_v26, 7  ;;  %v4500_v23 = vrot.slane %v3993_v26, 1  ;;  %v3947_v52 = vmax.f32 %v3899_v14, 0.0  ;;  %4307 = vrot.lane.b32.xlu0 %v3993_v26, %s8554_s20  ;;  %v8063_v38 = vpop.f32.mrb[74].mxu1  ;;  %4234 = vst.msk [vmem:[#allocation3 + $0x190] sm:$0xff] %vm971_vm9, %v4110_v58  ;;  %v4108_v19 = vsel %vm4067_vm11, %v4105_v6, %v4107_v36 }
 0x3ac   : > { %v10997_v12 = vmul.f32 %v13213_v4, %v3948_v24  ;;  %v3902_v43 = vadd.f32 %v8063_v38, %v10687_v51  ;;  %v3711_v48 = vpop.f32.mrb[75].mxu1  ;;  %4233 = vst.msk [vmem:[#allocation3 + $0x180] sm:$0xff] %vm971_vm9, %v4108_v19 }
 0x3ad   : > { %v4501_v28 = vsel %vm4456_vm1, %v4498_v57, %v4500_v23  ;;  %v4503_v8 = vsel %vm4456_vm1, %v4500_v23, %v4502_v5  ;;  %v3995_v49 = vmul.f32 %v13214_v16, %v3947_v52  ;;  %v3901_v62 = vadd.f32 %v10687_v51, %v3711_v48  ;;  %v13215_v23 = vld [vmem:[#allocation35_spill] sm:$0xff]  ;;  %v13216_v48 = vld [vmem:[#allocation34_spill] sm:$0xff] }
 0x3ae   : > { %4624 = vst.msk [vmem:[#allocation3 + $0x198] sm:$0xff] %vm971_vm9, %v4501_v28  ;;  %4625 = vst.msk [vmem:[#allocation3 + $0x1a8] sm:$0xff] %vm971_vm9, %v4503_v8  ;;  %v4117_v6 = vrot.slane %v10997_v12, 7  ;;  %v4506_v36 = vrot.slane %v10997_v12, 1  ;;  %v3950_v21 = vmax.f32 %v3902_v43, 0.0  ;;  %4313 = vrot.lane.b32.xlu1 %v10997_v12, %s8554_s20  ;;  %v4114_v57 = vsel %vm4067_vm11, %v4111_v53, %v4113_v13 }
 0x3af   : > { %v4115_v34 = vrot.slane %v3995_v49, 7  ;;  %v4504_v26 = vrot.slane %v3995_v49, 1  ;;  %v3949_v14 = vmax.f32 %v3901_v62, 0.0  ;;  %4311 = vrot.lane.b32.xlu0 %v3995_v49, %s8554_s20  ;;  %v8066_v24 = vpop.f32.mrb[76].mxu1  ;;  %4236 = vst.msk [vmem:[#allocation3 + $0x1b0] sm:$0xff] %vm971_vm9, %v4114_v57  ;;  %v4112_v58 = vsel %vm4067_vm11, %v4109_v56, %v4111_v53 }
 0x3b0   : > { %v11016_v52 = vmul.f32 %v13215_v23, %v3950_v21  ;;  %v3904_v38 = vadd.f32 %v8066_v24, %v10687_v51  ;;  %v3721_v19 = vpop.f32.mrb[77].mxu1  ;;  %4235 = vst.msk [vmem:[#allocation3 + $0x1a0] sm:$0xff] %vm971_vm9, %v4112_v58  ;;  %v13217_v24 = vld [vmem:[#allocation37_spill] sm:$0xff] }
 0x3b1   : > { %v4505_v12 = vsel %vm4456_vm1, %v4502_v5, %v4504_v26  ;;  %v4507_v43 = vsel %vm4456_vm1, %v4504_v26, %v4506_v36  ;;  %v3997_v28 = vmul.f32 %v13216_v48, %v3949_v14  ;;  %v3903_v8 = vadd.f32 %v10687_v51, %v3721_v19 }
 0x3b2   : > { %4626 = vst.msk [vmem:[#allocation3 + $0x1b8] sm:$0xff] %vm971_vm9, %v4505_v12  ;;  %4627 = vst.msk [vmem:[#allocation3 + $0x1c8] sm:$0xff] %vm971_vm9, %v4507_v43  ;;  %v4121_v56 = vrot.slane %v11016_v52, 7  ;;  %v4510_v53 = vrot.slane %v11016_v52, 1  ;;  %v3952_v49 = vmax.f32 %v3904_v38, 0.0  ;;  %4317 = vrot.lane.b32.xlu1 %v11016_v52, %s8554_s20  ;;  %v4118_v5 = vsel %vm4067_vm11, %v4115_v34, %v4117_v6  ;;  %v13218_v43 = vld [vmem:[#allocation36_spill] sm:$0xff] }
 0x3b3   : > { %v4119_v62 = vrot.slane %v3997_v28, 7  ;;  %v4508_v21 = vrot.slane %v3997_v28, 1  ;;  %v3951_v57 = vmax.f32 %v3903_v8, 0.0  ;;  %4315 = vrot.lane.b32.xlu0 %v3997_v28, %s8554_s20  ;;  %v8069_v26 = vpop.f32.mrb[78].mxu1  ;;  %4238 = vst.msk [vmem:[#allocation3 + $0x1d0] sm:$0xff] %vm971_vm9, %v4118_v5  ;;  %v4116_v14 = vsel %vm4067_vm11, %v4113_v13, %v4115_v34 }
 0x3b4   : > { %v11035_v58 = vmul.f32 %v13217_v24, %v3952_v49  ;;  %v3906_v38 = vadd.f32 %v8069_v26, %v10687_v51  ;;  %v3731_v19 = vpop.f32.mrb[79].mxu1  ;;  %4237 = vst.msk [vmem:[#allocation3 + $0x1c0] sm:$0xff] %vm971_vm9, %v4116_v14 }
 0x3b5   : > { %v4509_v52 = vsel %vm4456_vm1, %v4506_v36, %v4508_v21  ;;  %v4511_v12 = vsel %vm4456_vm1, %v4508_v21, %v4510_v53  ;;  %v3999_v8 = vmul.f32 %v13218_v43, %v3951_v57  ;;  %v3905_v28 = vadd.f32 %v10687_v51, %v3731_v19  ;;  %v13219_v19 = vld [vmem:[#allocation38_spill] sm:$0xff] }
 0x3b6   : > { %4628 = vst.msk [vmem:[#allocation3 + $0x1d8] sm:$0xff] %vm971_vm9, %v4509_v52  ;;  %4629 = vst.msk [vmem:[#allocation3 + $0x1e8] sm:$0xff] %vm971_vm9, %v4511_v12  ;;  %v4125_v13 = vrot.slane %v11035_v58, 7  ;;  %v4514_v34 = vrot.slane %v11035_v58, 1  ;;  %v3954_v49 = vmax.f32 %v3906_v38, 0.0  ;;  %4321 = vrot.lane.b32.xlu1 %v11035_v58, %s8554_s20  ;;  %v4122_v36 = vsel %vm4067_vm11, %v4119_v62, %v4121_v56 }
 0x3b7   : > { %v4123_v5 = vrot.slane %v3999_v8, 7  ;;  %v4512_v21 = vrot.slane %v3999_v8, 1  ;;  %v3953_v26 = vmax.f32 %v3905_v28, 0.0  ;;  %4319 = vrot.lane.b32.xlu0 %v3999_v8, %s8554_s20  ;;  %v8072_v57 = vpop.f32.mrb[80].mxu1  ;;  %4240 = vst.msk [vmem:[#allocation3 + $0x1f0] sm:$0xff] %vm971_vm9, %v4122_v36  ;;  %v4120_v14 = vsel %vm4067_vm11, %v4117_v6, %v4119_v62  ;;  %v13220_v28 = vld [vmem:[#allocation39_spill] sm:$0xff] }
 0x3b8   : > { %v11054_v52 = vmul.f32 %v13219_v19, %v3954_v49  ;;  %v3908_v38 = vadd.f32 %v8072_v57, %v10687_v51  ;;  %v3741_v12 = vpop.f32.mrb[81].mxu1  ;;  %4239 = vst.msk [vmem:[#allocation3 + $0x1e0] sm:$0xff] %vm971_vm9, %v4120_v14  ;;  %v13221_v14 = vld [vmem:[#allocation40_spill] sm:$0xff] }
 0x3b9   : > { %v4513_v58 = vsel %vm4456_vm1, %v4510_v53, %v4512_v21  ;;  %v4515_v59 = vsel %vm4456_vm1, %v4512_v21, %v4514_v34  ;;  %v4001_v31 = vmul.f32 %v13220_v28, %v3953_v26  ;;  %v3907_v8 = vadd.f32 %v10687_v51, %v3741_v12  ;;  %v11474_v28 = vld [vmem:[#allocation3 + $0x188] sm:$0xff] }
 0x3ba   : > { %4630 = vst.msk [vmem:[#allocation3 + $0x1f8] sm:$0xff] %vm971_vm9, %v4513_v58  ;;  %4631 = vst.msk [vmem:[#allocation3 + $0x208] sm:$0xff] %vm971_vm9, %v4515_v59  ;;  %v4129_v6 = vrot.slane %v11054_v52, 7  ;;  %v4518_v62 = vrot.slane %v11054_v52, 1  ;;  %v3956_v49 = vmax.f32 %v3908_v38, 0.0  ;;  %4325 = vrot.lane.b32.xlu1 %v11054_v52, %s8554_s20  ;;  %v4126_v53 = vsel %vm4067_vm11, %v4123_v5, %v4125_v13 }
 0x3bb   : > { %v4127_v36 = vrot.slane %v4001_v31, 7  ;;  %v4516_v21 = vrot.slane %v4001_v31, 1  ;;  %v3955_v57 = vmax.f32 %v3907_v8, 0.0  ;;  %4323 = vrot.lane.b32.xlu0 %v4001_v31, %s8554_s20  ;;  %v8075_v26 = vpop.f32.mrb[82].mxu1  ;;  %4242 = vst.msk [vmem:[#allocation3 + $0x210] sm:$0xff] %vm971_vm9, %v4126_v53  ;;  %v4124_v59 = vsel %vm4067_vm11, %v4121_v56, %v4123_v5  ;;  %v13222_v8 = vld [vmem:[#allocation41_spill] sm:$0xff] }
 0x3bc   : > { %v11073_v12 = vmul.f32 %v13221_v14, %v3956_v49  ;;  %v3910_v38 = vadd.f32 %v8075_v26, %v10687_v51  ;;  %v3751_v58 = vpop.f32.mrb[83].mxu1  ;;  %4241 = vst.msk [vmem:[#allocation3 + $0x200] sm:$0xff] %vm971_vm9, %v4124_v59  ;;  %v13223_v59 = vld [vmem:[#allocation42_spill] sm:$0xff]  ;;  %13244 = vst [vmem:[#allocation110_spill] sm:$0xff] %v11474_v28 }
 0x3bd   : > { %v4517_v52 = vsel %vm4456_vm1, %v4514_v34, %v4516_v21  ;;  %v4519_v39 = vsel %vm4456_vm1, %v4516_v21, %v4518_v62  ;;  %v4003_v32 = vmul.f32 %v13222_v8, %v3955_v57  ;;  %v3909_v31 = vadd.f32 %v10687_v51, %v3751_v58  ;;  %v4771_v14 = vld [vmem:[%s12897_s7 + $0xb8] sm:$0xff] }
 0x3be   : > { %4632 = vst.msk [vmem:[#allocation3 + $0x218] sm:$0xff] %vm971_vm9, %v4517_v52  ;;  %4633 = vst.msk [vmem:[#allocation3 + $0x228] sm:$0xff] %vm971_vm9, %v4519_v39  ;;  %v4133_v56 = vrot.slane %v11073_v12, 7  ;;  %v4522_v5 = vrot.slane %v11073_v12, 1  ;;  %v3958_v49 = vmax.f32 %v3910_v38, 0.0  ;;  %4329 = vrot.lane.b32.xlu1 %v11073_v12, %s8554_s20  ;;  %v4130_v34 = vsel %vm4067_vm11, %v4127_v36, %v4129_v6 }
 0x3bf   : > { %v4131_v53 = vrot.slane %v4003_v32, 7  ;;  %v4520_v21 = vrot.slane %v4003_v32, 1  ;;  %v3957_v26 = vmax.f32 %v3909_v31, 0.0  ;;  %4327 = vrot.lane.b32.xlu0 %v4003_v32, %s8554_s20  ;;  %v8078_v57 = vpop.f32.mrb[84].mxu1  ;;  %4244 = vst.msk [vmem:[#allocation3 + $0x230] sm:$0xff] %vm971_vm9, %v4130_v34  ;;  %v4128_v39 = vsel %vm4067_vm11, %v4125_v13, %v4127_v36  ;;  %v13224_v31 = vld [vmem:[#allocation43_spill] sm:$0xff] }
 0x3c0   : > { %v11092_v58 = vmul.f32 %v13223_v59, %v3958_v49  ;;  %v3912_v38 = vadd.f32 %v8078_v57, %v10687_v51  ;;  %v3761_v52 = vpop.f32.mrb[85].mxu1  ;;  %4243 = vst.msk [vmem:[#allocation3 + $0x220] sm:$0xff] %vm971_vm9, %v4128_v39  ;;  %v13225_v39 = vld [vmem:[#allocation44_spill] sm:$0xff] }
 0x3c1   : > { %v4521_v12 = vsel %vm4456_vm1, %v4518_v62, %v4520_v21  ;;  %v4523_v35 = vsel %vm4456_vm1, %v4520_v21, %v4522_v5  ;;  %v4005_v46 = vmul.f32 %v13224_v31, %v3957_v26  ;;  %v3911_v32 = vadd.f32 %v10687_v51, %v3761_v52  ;;  %v4770_v31 = vld [vmem:[%s12897_s7 + $0xb0] sm:$0xff] }
 0x3c2   : > { %4634 = vst.msk [vmem:[#allocation3 + $0x238] sm:$0xff] %vm971_vm9, %v4521_v12  ;;  %4635 = vst.msk [vmem:[#allocation3 + $0x248] sm:$0xff] %vm971_vm9, %v4523_v35  ;;  %v4137_v13 = vrot.slane %v11092_v58, 7  ;;  %v4526_v36 = vrot.slane %v11092_v58, 1  ;;  %v3960_v49 = vmax.f32 %v3912_v38, 0.0  ;;  %4333 = vrot.lane.b32.xlu1 %v11092_v58, %s8554_s20  ;;  %v4134_v62 = vsel %vm4067_vm11, %v4131_v53, %v4133_v56 }
 0x3c3   : > { %v4135_v34 = vrot.slane %v4005_v46, 7  ;;  %v4524_v21 = vrot.slane %v4005_v46, 1  ;;  %v3959_v57 = vmax.f32 %v3911_v32, 0.0  ;;  %4331 = vrot.lane.b32.xlu0 %v4005_v46, %s8554_s20  ;;  %v8081_v26 = vpop.f32.mrb[86].mxu1  ;;  %4246 = vst.msk [vmem:[#allocation3 + $0x250] sm:$0xff] %vm971_vm9, %v4134_v62  ;;  %v4132_v35 = vsel %vm4067_vm11, %v4129_v6, %v4131_v53  ;;  %v13226_v32 = vld [vmem:[#allocation45_spill] sm:$0xff] }
 0x3c4   : > { %v11111_v52 = vmul.f32 %v13225_v39, %v3960_v49  ;;  %v3914_v38 = vadd.f32 %v8081_v26, %v10687_v51  ;;  %v3771_v12 = vpop.f32.mrb[87].mxu1  ;;  %4245 = vst.msk [vmem:[#allocation3 + $0x240] sm:$0xff] %vm971_vm9, %v4132_v35  ;;  %v13227_v35 = vld [vmem:[#allocation46_spill] sm:$0xff]  ;;  %v11427_v39 = vld [vmem:[#allocation3 + $0x158] sm:$0xff] }
 0x3c5   : > { %v4525_v58 = vsel %vm4456_vm1, %v4522_v5, %v4524_v21  ;;  %v4527_v25 = vsel %vm4456_vm1, %v4524_v21, %v4526_v36  ;;  %v4007_v7 = vmul.f32 %v13226_v32, %v3959_v57  ;;  %v3913_v46 = vadd.f32 %v10687_v51, %v3771_v12  ;;  %13238 = vst [vmem:[#allocation104_spill] sm:$0xff] %v11427_v39  ;;  %v11444_v32 = vld [vmem:[#allocation3 + $0x168] sm:$0xff] }
 0x3c6   : > { %4636 = vst.msk [vmem:[#allocation3 + $0x258] sm:$0xff] %vm971_vm9, %v4525_v58  ;;  %4637 = vst.msk [vmem:[#allocation3 + $0x268] sm:$0xff] %vm971_vm9, %v4527_v25  ;;  %v4141_v6 = vrot.slane %v11111_v52, 7  ;;  %v4530_v53 = vrot.slane %v11111_v52, 1  ;;  %v3962_v49 = vmax.f32 %v3914_v38, 0.0  ;;  %4337 = vrot.lane.b32.xlu1 %v11111_v52, %s8554_s20  ;;  %v4138_v5 = vsel %vm4067_vm11, %v4135_v34, %v4137_v13 }
 0x3c7   : > { %v4139_v62 = vrot.slane %v4007_v7, 7  ;;  %v4528_v21 = vrot.slane %v4007_v7, 1  ;;  %v3961_v26 = vmax.f32 %v3913_v46, 0.0  ;;  %4335 = vrot.lane.b32.xlu0 %v4007_v7, %s8554_s20  ;;  %v8084_v57 = vpop.f32.mrb[88].mxu1  ;;  %4248 = vst.msk [vmem:[#allocation3 + $0x270] sm:$0xff] %vm971_vm9, %v4138_v5  ;;  %v4136_v25 = vsel %vm4067_vm11, %v4133_v56, %v4135_v34  ;;  %v13228_v46 = vld [vmem:[#allocation47_spill] sm:$0xff] }
 0x3c8   : > { %v11130_v12 = vmul.f32 %v13227_v35, %v3962_v49  ;;  %v3916_v38 = vadd.f32 %v8084_v57, %v10687_v51  ;;  %v3781_v58 = vpop.f32.mrb[89].mxu1  ;;  %4247 = vst.msk [vmem:[#allocation3 + $0x260] sm:$0xff] %vm971_vm9, %v4136_v25  ;;  %v13229_v25 = vld [vmem:[#allocation48_spill] sm:$0xff]  ;;  %13240 = vst [vmem:[#allocation106_spill] sm:$0xff] %v11444_v32 }
 0x3c9   : > { %v4529_v52 = vsel %vm4456_vm1, %v4526_v36, %v4528_v21  ;;  %v4531_v27 = vsel %vm4456_vm1, %v4528_v21, %v4530_v53  ;;  %v4009_v47 = vmul.f32 %v13228_v46, %v3961_v26  ;;  %v3915_v7 = vadd.f32 %v10687_v51, %v3781_v58  ;;  %v11425_v46 = vld [vmem:[#allocation3 + $0xf8] sm:$0xff] }
 0x3ca   : > { %4638 = vst.msk [vmem:[#allocation3 + $0x278] sm:$0xff] %vm971_vm9, %v4529_v52  ;;  %4639 = vst.msk [vmem:[#allocation3 + $0x288] sm:$0xff] %vm971_vm9, %v4531_v27  ;;  %v4145_v56 = vrot.slane %v11130_v12, 7  ;;  %v4534_v34 = vrot.slane %v11130_v12, 1  ;;  %v3964_v49 = vmax.f32 %v3916_v38, 0.0  ;;  %4341 = vrot.lane.b32.xlu1 %v11130_v12, %s8554_s20  ;;  %v4142_v36 = vsel %vm4067_vm11, %v4139_v62, %v4141_v6 }
 0x3cb   : > { %v4143_v5 = vrot.slane %v4009_v47, 7  ;;  %v4532_v21 = vrot.slane %v4009_v47, 1  ;;  %v3963_v57 = vmax.f32 %v3915_v7, 0.0  ;;  %4339 = vrot.lane.b32.xlu0 %v4009_v47, %s8554_s20  ;;  %v8087_v26 = vpop.f32.mrb[90].mxu1  ;;  %4250 = vst.msk [vmem:[#allocation3 + $0x290] sm:$0xff] %vm971_vm9, %v4142_v36  ;;  %v4140_v27 = vsel %vm4067_vm11, %v4137_v13, %v4139_v62  ;;  %v13230_v7 = vld [vmem:[#allocation49_spill] sm:$0xff] }
 0x3cc   : > { %v11149_v58 = vmul.f32 %v13229_v25, %v3964_v49  ;;  %v3918_v38 = vadd.f32 %v8087_v26, %v10687_v51  ;;  %v3791_v52 = vpop.f32.mrb[91].mxu1  ;;  %4249 = vst.msk [vmem:[#allocation3 + $0x280] sm:$0xff] %vm971_vm9, %v4140_v27  ;;  %v13231_v27 = vld [vmem:[#allocation50_spill] sm:$0xff]  ;;  %v4769_v25 = vld [vmem:[%s12897_s7 + $0xa8] sm:$0xff] }
 0x3cd   : > { %v4533_v12 = vsel %vm4456_vm1, %v4530_v53, %v4532_v21  ;;  %v4535_v20 = vsel %vm4456_vm1, %v4532_v21, %v4534_v34  ;;  %v4011_v9 = vmul.f32 %v13230_v7, %v3963_v57  ;;  %v3917_v47 = vadd.f32 %v10687_v51, %v3791_v52 }
 0x3ce   : > { %4640 = vst.msk [vmem:[#allocation3 + $0x298] sm:$0xff] %vm971_vm9, %v4533_v12  ;;  %4641 = vst.msk [vmem:[#allocation3 + $0x2a8] sm:$0xff] %vm971_vm9, %v4535_v20  ;;  %v4149_v13 = vrot.slane %v11149_v58, 7  ;;  %v4538_v62 = vrot.slane %v11149_v58, 1  ;;  %v3966_v49 = vmax.f32 %v3918_v38, 0.0  ;;  %4345 = vrot.lane.b32.xlu1 %v11149_v58, %s8554_s20  ;;  %v4146_v53 = vsel %vm4067_vm11, %v4143_v5, %v4145_v56 }
 0x3cf   : > { %v4147_v36 = vrot.slane %v4011_v9, 7  ;;  %v4536_v21 = vrot.slane %v4011_v9, 1  ;;  %v3965_v26 = vmax.f32 %v3917_v47, 0.0  ;;  %4343 = vrot.lane.b32.xlu0 %v4011_v9, %s8554_s20  ;;  %v8090_v57 = vpop.f32.mrb[92].mxu1  ;;  %4252 = vst.msk [vmem:[#allocation3 + $0x2b0] sm:$0xff] %vm971_vm9, %v4146_v53  ;;  %v4144_v20 = vsel %vm4067_vm11, %v4141_v6, %v4143_v5 }
 0x3d0   : > { %v4014_v52 = vmul.f32 %v13231_v27, %v3966_v49  ;;  %v3920_v12 = vadd.f32 %v8090_v57, %v10687_v51  ;;  %v3801_v38 = vpop.f32.mrb[93].mxu1  ;;  %4251 = vst.msk [vmem:[#allocation3 + $0x2a0] sm:$0xff] %vm971_vm9, %v4144_v20 }
 0x3d1   : > { %v4537_v58 = vsel %vm4456_vm1, %v4534_v34, %v4536_v21  ;;  %v4539_v22 = vsel %vm4456_vm1, %v4536_v21, %v4538_v62  ;;  %v4013_v47 = vmul.f32 %v13232_v41, %v3965_v26  ;;  %v3919_v9 = vadd.f32 %v10687_v51, %v3801_v38  ;;  %v13233_v26 = vld [vmem:[#allocation52_spill] sm:$0xff]  ;;  %v4768_v41 = vld [vmem:[%s12897_s7 + $0xa0] sm:$0xff] }
 0x3d2   : > { %4642 = vst.msk [vmem:[#allocation3 + $0x2b8] sm:$0xff] %vm971_vm9, %v4537_v58  ;;  %4643 = vst.msk [vmem:[#allocation3 + $0x2c8] sm:$0xff] %vm971_vm9, %v4539_v22  ;;  %v4153_v6 = vrot.slane %v4014_v52, 7  ;;  %v4542_v5 = vrot.slane %v4014_v52, 1  ;;  %v3968_v49 = vmax.f32 %v3920_v12, 0.0  ;;  %4349 = vrot.lane.b32.xlu1 %v4014_v52, %s8554_s20  ;;  %v4150_v53 = vsel %vm4067_vm11, %v4147_v36, %v4149_v13 }
 0x3d3   : > { %v4151_v57 = vrot.slane %v4013_v47, 7  ;;  %v4540_v20 = vrot.slane %v4013_v47, 1  ;;  %v3967_v34 = vmax.f32 %v3919_v9, 0.0  ;;  %4347 = vrot.lane.b32.xlu0 %v4013_v47, %s8554_s20  ;;  %v8093_v21 = vpop.f32.mrb[94].mxu1  ;;  %4254 = vst.msk [vmem:[#allocation3 + $0x2d0] sm:$0xff] %vm971_vm9, %v4150_v53  ;;  %v4148_v51 = vsel %vm4067_vm11, %v4145_v56, %v4147_v36  ;;  %v13234_v47 = vld [vmem:[#allocation53_spill] sm:$0xff] }
 0x3d4   : > { %v4016_v38 = vmul.f32 %v13233_v26, %v3968_v49  ;;  %v8482_v22 = vld [vmem:[%s12894_s4] ss:$0 sm:$0xff]  ;;  %v3811_v52 = vpop.f32.mrb[95].mxu1  ;;  %4253 = vst.msk [vmem:[#allocation3 + $0x2c0] sm:$0xff] %vm971_vm9, %v4148_v51  ;;  %v4767_v26 = vld [vmem:[%s12897_s7 + $0x98] sm:$0xff] }
 0x3d5   : > { %v3922_v12 = vadd.f32 %v8482_v22, %v8093_v21  ;;  %v4541_v58 = vsel %vm4456_vm1, %v4538_v62, %v4540_v20  ;;  %v4543_v9 = vsel %vm4456_vm1, %v4540_v20, %v4542_v5  ;;  %v4015_v29 = vmul.f32 %v13234_v47, %v3967_v34  ;;  %v13235_v20 = vld [vmem:[#allocation54_spill] sm:$0xff] }
 0x3d6   : > { %v3921_v40 = vadd.f32 %v8482_v22, %v3811_v52  ;;  %4644 = vst.msk [vmem:[#allocation3 + $0x2d8] sm:$0xff] %vm971_vm9, %v4541_v58  ;;  %4645 = vst.msk [vmem:[#allocation3 + $0x2e8] sm:$0xff] %vm971_vm9, %v4543_v9  ;;  %v4157_v56 = vrot.slane %v4016_v38, 7  ;;  %v4546_v36 = vrot.slane %v4016_v38, 1  ;;  %4353 = vrot.lane.b32.xlu1 %v4016_v38, %s8554_s20  ;;  %v4154_v53 = vsel %vm4067_vm11, %v4151_v57, %v4153_v6 }
 0x3d7   : > { %v3970_v49 = vmax.f32 %v3922_v12, 0.0  ;;  %v4155_v21 = vrot.slane %v4015_v29, 7  ;;  %v4544_v51 = vrot.slane %v4015_v29, 1  ;;  %4351 = vrot.lane.b32.xlu0 %v4015_v29, %s8554_s20  ;;  %4256 = vst.msk [vmem:[#allocation3 + $0x2f0] sm:$0xff] %vm971_vm9, %v4154_v53  ;;  %v4152_v62 = vsel %vm4067_vm11, %v4149_v13, %v4151_v57  ;;  %v13236_v12 = vld [vmem:[#allocation55_spill] sm:$0xff] }
 0x3d8   : > { %v3969_v44 = vmax.f32 %v3921_v40, 0.0  ;;  %4255 = vst.msk [vmem:[#allocation3 + $0x2e0] sm:$0xff] %vm971_vm9, %v4152_v62 }
 0x3d9   : > { %v4018_v34 = vmul.f32 %v13235_v20, %v3970_v49  ;;  %v4545_v22 = vsel %vm4456_vm1, %v4542_v5, %v4544_v51  ;;  %v4547_v38 = vsel %vm4456_vm1, %v4544_v51, %v4546_v36  ;;  %v4158_v40 = vsel %vm4067_vm11, %v4155_v21, %v4157_v56  ;;  %v4749_v51 = vld [vmem:[%s12897_s7 + $0x8] sm:$0xff] }
 0x3da   : > { %v4017_v52 = vmul.f32 %v13236_v12, %v3969_v44  ;;  %4646 = vst.msk [vmem:[#allocation3 + $0x2f8] sm:$0xff] %vm971_vm9, %v4545_v22  ;;  %4647 = vst.msk [vmem:[#allocation3 + $0x308] sm:$0xff] %vm971_vm9, %v4547_v38  ;;  %v4156_v57 = vsel %vm4067_vm11, %v4153_v6, %v4155_v21  ;;  %v4750_v38 = vld [vmem:[%s12897_s7 + $0x10] sm:$0xff] }
 0x3db   : > { %v4161_v29 = vrot.slane %v4018_v34, 7  ;;  %v4550_v13 = vrot.slane %v4018_v34, 1  ;;  %4357 = vrot.lane.b32.xlu1 %v4018_v34, %s8554_s20  ;;  %4258 = vst.msk [vmem:[#allocation3 + $0x310] sm:$0xff] %vm971_vm9, %v4158_v40  ;;  %4257 = vst.msk [vmem:[#allocation3 + $0x300] sm:$0xff] %vm971_vm9, %v4156_v57  ;;  %v4766_v12 = vld [vmem:[%s12897_s7 + $0x90] sm:$0xff] }
 0x3dc   : > { %v4159_v58 = vrot.slane %v4017_v52, 7  ;;  %v4548_v5 = vrot.slane %v4017_v52, 1  ;;  %4355 = vrot.lane.b32.xlu0 %v4017_v52, %s8554_s20  ;;  %v4751_v52 = vld [vmem:[%s12897_s7 + $0x18] sm:$0xff]  ;;  %v8244_v47 = vpack.c.bf16 %v4767_v26, %v4766_v12  ;;  %v11410_v26 = vld [vmem:[#allocation3 + $0x148] sm:$0xff] }
 0x3dd   : > { %4262 = vst.msk [vmem:[#allocation3 + $0x340] sm:$0x1] %vm4261_vm13, %v4161_v29  ;;  %v8220_v57 = vpack.c.bf16 %v4751_v52, %v4750_v38 }
 0x3de   : > { %4651 = vst.msk [vmem:[#allocation3 + $0x338] sm:$0x7f] %vm4650_vm14, %v4550_v13  ;;  %v4549_v44 = vsel %vm4456_vm1, %v4546_v36, %v4548_v5  ;;  %v4551_v9 = vsel %vm4456_vm1, %v4548_v5, %v4550_v13  ;;  %v4162_v49 = vsel %vm4067_vm11, %v4159_v58, %v4161_v29  ;;  %v4160_v53 = vsel %vm4067_vm11, %v4157_v56, %v4159_v58  ;;  %v4748_v56 = vld [vmem:[%s12897_s7] sm:$0xff]  ;;  %v11240_v13 = vld [vmem:[#allocation3 + $0x58] sm:$0xff] }
 0x3df   : > { %4648 = vst.msk [vmem:[#allocation3 + $0x318] sm:$0xff] %vm971_vm9, %v4549_v44  ;;  %4649 = vst.msk [vmem:[#allocation3 + $0x328] sm:$0xff] %vm971_vm9, %v4551_v9  ;;  %v8217_v34 = vpack.c.bf16 %v4749_v51, %v4748_v56  ;;  %v13237_v5 = vmov 0.0|0.0   ;;  %v4752_v44 = vld [vmem:[%s12897_s7 + $0x20] sm:$0xff]  ;;  %v4753_v9 = vld [vmem:[%s12897_s7 + $0x28] sm:$0xff] }
 0x3e0   : > { %4260 = vst.msk [vmem:[#allocation3 + $0x330] sm:$0xff] %vm971_vm9, %v4162_v49  ;;  %4259 = vst.msk [vmem:[#allocation3 + $0x320] sm:$0xff] %vm971_vm9, %v4160_v53  ;;  %v4754_v56 = vld [vmem:[%s12897_s7 + $0x30] sm:$0xff]  ;;  %v4755_v51 = vld [vmem:[%s12897_s7 + $0x38] sm:$0xff] }
 0x3e1   : > { %v8226_v38 = vpack.c.bf16 %v4755_v51, %v4754_v56  ;;  %v4759_v56 = vld [vmem:[%s12897_s7 + $0x58] sm:$0xff] }
 0x3f0   : > { %v4266_v6 = vpop.permute.xlu1 %4265 }
 0x3f1   : > { %4409 = vst.msk [vmem:[#allocation3 + $0x50] sm:$0xff] %vm4407_vm15, %v4266_v6  ;;  %v4264_v21 = vpop.permute.xlu0 %4263  ;;  %v11256_v6 = vld [vmem:[#allocation3 + $0x68] sm:$0xff] }
 0x3f2   : > { %4408 = vst.msk [vmem:[#allocation3 + $0x40] sm:$0xff] %vm4407_vm15, %v4264_v21  ;;  %v8223_v21 = vpack.c.bf16 %v4753_v9, %v4752_v44  ;;  %v11288_v9 = vld [vmem:[#allocation3 + $0x88] sm:$0xff] }
 0x3f4   : > { %v4270_v36 = vpop.permute.xlu1 %4269 }
 0x3f5   : > { %4411 = vst.msk [vmem:[#allocation3 + $0x70] sm:$0xff] %vm4407_vm15, %v4270_v36  ;;  %v4268_v62 = vpop.permute.xlu0 %4267 }
 0x3f6   : > { %4410 = vst.msk [vmem:[#allocation3 + $0x60] sm:$0xff] %vm4407_vm15, %v4268_v62 }
 0x3f8   : > { %v4274_v22 = vpop.permute.xlu1 %4273  ;;  %v11252_v53 = vld [vmem:[#allocation3 + $0x50] sm:$0xff] }
 0x3f9   : > { %4413 = vst.msk [vmem:[#allocation3 + $0x90] sm:$0xff] %vm4407_vm15, %v4274_v22  ;;  %v4272_v40 = vpop.permute.xlu0 %4271  ;;  %v11236_v29 = vld [vmem:[#allocation3 + $0x40] sm:$0xff]  ;;  %v11272_v22 = vld [vmem:[#allocation3 + $0x78] sm:$0xff] }
 0x3fa   : > { %4412 = vst.msk [vmem:[#allocation3 + $0x80] sm:$0xff] %vm4407_vm15, %v4272_v40  ;;  %5012 = vmatmul.mubr.f32.vlgmr.msra.gmra.mrb[48].mxu0 %v11236_v29  ;;  %v4756_v40 = vld [vmem:[%s12897_s7 + $0x40] sm:$0xff] }
 0x3fb   : > { %8218 = vmatpush1.bf16.msra.mxu0 %v8217_v34  ;;  %7231 = vmatprep.mubr.msk.f32.mxu0 %vm971_vm9, %v11240_v13 }
 0x3fc   : > { %v4278_v58 = vpop.permute.xlu1 %4277  ;;  %8219 = vmatprep.subr.bf16.mxu0 %v13237_v5  ;;  %v11284_v44 = vld [vmem:[#allocation3 + $0x70] sm:$0xff] }
 0x3fd   : > { %4415 = vst.msk [vmem:[#allocation3 + $0xb0] sm:$0xff] %vm4407_vm15, %v4278_v58  ;;  %v4276_v49 = vpop.permute.xlu0 %4275  ;;  %v11268_v34 = vld [vmem:[#allocation3 + $0x60] sm:$0xff] }
 0x3fe   : > { %4414 = vst.msk [vmem:[#allocation3 + $0xa0] sm:$0xff] %vm4407_vm15, %v4276_v49  ;;  %5017 = vmatmul.mubr.f32.gmra.mrb[50].mxu0 %v11252_v53 }
 0x3ff   : > { %7232 = vmatprep.mubr.msk.f32.mxu0 %vm971_vm9, %v11256_v6  ;;  %8221 = vmatpush1.bf16.msra.mxu0 %v8220_v57  ;;  %v4757_v57 = vld [vmem:[%s12897_s7 + $0x48] sm:$0xff] }
 0x400   : > { %v4282_v36 = vpop.permute.xlu1 %4281  ;;  %8222 = vmatprep.subr.bf16.mxu0 %v13237_v5  ;;  %v8229_v49 = vpack.c.bf16 %v4757_v57, %v4756_v40 }
 0x401   : > { %4417 = vst.msk [vmem:[#allocation3 + $0xd0] sm:$0xff] %vm4407_vm15, %v4282_v36  ;;  %v4280_v62 = vpop.permute.xlu0 %4279  ;;  %v4758_v36 = vld [vmem:[%s12897_s7 + $0x50] sm:$0xff] }
 0x402   : > { %4416 = vst.msk [vmem:[#allocation3 + $0xc0] sm:$0xff] %vm4407_vm15, %v4280_v62  ;;  %5022 = vmatmul.mubr.f32.gmra.mrb[52].mxu0 %v11268_v34  ;;  %v11300_v62 = vld [vmem:[#allocation3 + $0x80] sm:$0xff] }
 0x403   : > { %7233 = vmatprep.mubr.msk.f32.mxu0 %vm971_vm9, %v11272_v22  ;;  %8224 = vmatpush1.bf16.msra.mxu0 %v8223_v21 }
 0x404   : > { %v4286_v52 = vpop.permute.xlu1 %4285  ;;  %8225 = vmatprep.subr.bf16.mxu0 %v13237_v5  ;;  %v11351_v2 = vld [vmem:[#allocation3 + $0xb0] sm:$0xff] }
 0x405   : > { %4419 = vst.msk [vmem:[#allocation3 + $0xf0] sm:$0xff] %vm4407_vm15, %v4286_v52  ;;  %v4284_v58 = vpop.permute.xlu0 %4283  ;;  %v8232_v52 = vpack.c.bf16 %v4759_v56, %v4758_v36 }
 0x406   : > { %4418 = vst.msk [vmem:[#allocation3 + $0xe0] sm:$0xff] %vm4407_vm15, %v4284_v58  ;;  %5027 = vmatmul.mubr.f32.gmra.mrb[54].mxu0 %v11284_v44  ;;  %v11310_v58 = vld [vmem:[#allocation3 + $0x90] sm:$0xff] }
 0x407   : > { %7234 = vmatprep.mubr.msk.f32.mxu0 %vm971_vm9, %v11288_v9  ;;  %8227 = vmatpush1.bf16.msra.mxu0 %v8226_v38  ;;  %v11304_v38 = vld [vmem:[#allocation3 + $0x98] sm:$0xff] }
 0x408   : > { %v4290_v21 = vpop.permute.xlu1 %4289  ;;  %8228 = vmatprep.subr.bf16.mxu0 %v13237_v5 }
 0x409   : > { %4421 = vst.msk [vmem:[#allocation3 + $0x110] sm:$0xff] %vm4407_vm15, %v4290_v21  ;;  %v4288_v51 = vpop.permute.xlu0 %4287  ;;  %v4760_v21 = vld [vmem:[%s12897_s7 + $0x60] sm:$0xff] }
 0x40a   : > { %4420 = vst.msk [vmem:[#allocation3 + $0x100] sm:$0xff] %vm4407_vm15, %v4288_v51  ;;  %5032 = vmatmul.mubr.f32.gmra.mrb[56].mxu0 %v11300_v62  ;;  %v4761_v51 = vld [vmem:[%s12897_s7 + $0x68] sm:$0xff] }
 0x40b   : > { %7235 = vmatprep.mubr.msk.f32.mxu0 %vm971_vm9, %v11304_v38  ;;  %8230 = vmatpush1.bf16.msra.mxu0 %v8229_v49  ;;  %v11320_v49 = vld [vmem:[#allocation3 + $0xa8] sm:$0xff]  ;;  %v8235_v56 = vpack.c.bf16 %v4761_v51, %v4760_v21  ;;  %v11341_v21 = vld [vmem:[#allocation3 + $0x118] sm:$0xff] }
 0x40c   : > { %v4294_v40 = vpop.permute.xlu1 %4293  ;;  %8231 = vmatprep.subr.bf16.mxu0 %v13237_v5 }
 0x40d   : > { %4423 = vst.msk [vmem:[#allocation3 + $0x130] sm:$0xff] %vm4407_vm15, %v4294_v40  ;;  %v4292_v57 = vpop.permute.xlu0 %4291  ;;  %v4762_v40 = vld [vmem:[%s12897_s7 + $0x70] sm:$0xff]  ;;  %v11417_v7 = vld [vmem:[#allocation3 + $0xe0] sm:$0xff] }
 0x40e   : > { %4422 = vst.msk [vmem:[#allocation3 + $0x120] sm:$0xff] %vm4407_vm15, %v4292_v57  ;;  %5037 = vmatmul.mubr.f32.gmra.mrb[58].mxu0 %v11310_v58  ;;  %v11329_v57 = vld [vmem:[#allocation3 + $0xa0] sm:$0xff] }
 0x40f   : > { %7236 = vmatprep.mubr.msk.f32.mxu0 %vm971_vm9, %v11320_v49  ;;  %8233 = vmatpush1.bf16.msra.mxu0 %v8232_v52  ;;  %v11339_v52 = vld [vmem:[#allocation3 + $0xb8] sm:$0xff] }
 0x410   : > { %v4298_v36 = vpop.permute.xlu1 %4297  ;;  %8234 = vmatprep.subr.bf16.mxu0 %v13237_v5  ;;  %v11353_v10 = vld [vmem:[#allocation3 + $0x110] sm:$0xff] }
 0x411   : > { %4425 = vst.msk [vmem:[#allocation3 + $0x150] sm:$0xff] %vm4407_vm15, %v4298_v36  ;;  %v4296_v42 = vpop.permute.xlu0 %4295  ;;  %v11331_v54 = vld [vmem:[#allocation3 + $0x100] sm:$0xff]  ;;  %v8238_v36 = vpack.c.bf16 %v4763_v30, %v4762_v40  ;;  %v11362_v30 = vld [vmem:[#allocation3 + $0xc8] sm:$0xff] }
 0x412   : > { %4424 = vst.msk [vmem:[#allocation3 + $0x140] sm:$0xff] %vm4407_vm15, %v4296_v42  ;;  %5042 = vmatmul.mubr.f32.gmra.mrb[60].mxu0 %v11329_v57  ;;  %5941 = vmatmul.mubr.f32.vlgmr.msra.gmra.mrb[96].mxu1 %v11331_v54  ;;  %v4764_v42 = vld [vmem:[%s12897_s7 + $0x80] sm:$0xff] }
 0x413   : > { %7237 = vmatprep.mubr.msk.f32.mxu0 %vm971_vm9, %v11339_v52  ;;  %7360 = vmatprep.mubr.msk.f32.mxu1 %vm971_vm9, %v11341_v21  ;;  %v8241_v63 = vpack.c.bf16 %v4765_v60, %v4764_v42  ;;  %v11385_v60 = vld [vmem:[#allocation3 + $0xd8] sm:$0xff] }
 0x414   : > { %v4302_v51 = vpop.permute.xlu1 %4301  ;;  %8236 = vmatpush1.bf16.msra.mxu0 %v8235_v56  ;;  %v11364_v56 = vld [vmem:[#allocation3 + $0x128] sm:$0xff]  ;;  %v11396_v27 = vld [vmem:[#allocation3 + $0x130] sm:$0xff] }
 0x415   : > { %4427 = vst.msk [vmem:[#allocation3 + $0x170] sm:$0xff] %vm4407_vm15, %v4302_v51  ;;  %v4300_v18 = vpop.permute.xlu0 %4299  ;;  %8237 = vmatprep.subr.bf16.mxu0 %v13237_v5  ;;  %v11370_v51 = vld [vmem:[#allocation3 + $0xc0] sm:$0xff] }
 0x416   : > { %4426 = vst.msk [vmem:[#allocation3 + $0x160] sm:$0xff] %vm4407_vm15, %v4300_v18  ;;  %5047 = vmatmul.mubr.f32.gmra.mrb[62].mxu0 %v11351_v2  ;;  %5946 = vmatmul.mubr.f32.gmra.mrb[98].mxu1 %v11353_v10  ;;  %v11373_v20 = vld [vmem:[#allocation3 + $0x120] sm:$0xff] }
 0x417   : > { %7238 = vmatprep.mubr.msk.f32.mxu0 %vm971_vm9, %v11362_v30  ;;  %7361 = vmatprep.mubr.msk.f32.mxu1 %vm971_vm9, %v11364_v56 }
 0x418   : > { %v4306_v40 = vpop.permute.xlu1 %4305  ;;  %8239 = vmatpush1.bf16.msra.mxu0 %v8238_v36  ;;  %v11387_v36 = vld [vmem:[#allocation3 + $0x138] sm:$0xff] }
 0x419   : > { %4429 = vst.msk [vmem:[#allocation3 + $0x190] sm:$0xff] %vm4407_vm15, %v4306_v40  ;;  %v4304_v18 = vpop.permute.xlu0 %4303  ;;  %8240 = vmatprep.subr.bf16.mxu0 %v13237_v5  ;;  %v11393_v40 = vld [vmem:[#allocation3 + $0xd0] sm:$0xff]  ;;  %v11419_v35 = vld [vmem:[#allocation3 + $0x140] sm:$0xff] }
 0x41a   : > { %4428 = vst.msk [vmem:[#allocation3 + $0x180] sm:$0xff] %vm4407_vm15, %v4304_v18  ;;  %5052 = vmatmul.mubr.f32.gmra.mrb[64].mxu0 %v11370_v51  ;;  %5951 = vmatmul.mubr.f32.gmra.mrb[100].mxu1 %v11373_v20 }
 0x41b   : > { %7239 = vmatprep.mubr.msk.f32.mxu0 %vm971_vm9, %v11385_v60  ;;  %7362 = vmatprep.mubr.msk.f32.mxu1 %vm971_vm9, %v11387_v36 }
 0x41c   : > { %v4310_v42 = vpop.permute.xlu1 %4309  ;;  %8242 = vmatpush1.bf16.msra.mxu0 %v8241_v63  ;;  %v11408_v63 = vld [vmem:[#allocation3 + $0xe8] sm:$0xff]  ;;  %v11469_v19 = vld [vmem:[#allocation3 + $0x170] sm:$0xff] }
 0x41d   : > { %4431 = vst.msk [vmem:[#allocation3 + $0x1b0] sm:$0xff] %vm4407_vm15, %v4310_v42  ;;  %v4308_v18 = vpop.permute.xlu0 %4307  ;;  %8243 = vmatprep.subr.bf16.mxu0 %v13237_v5  ;;  %v8247_v42 = vpack.c.bf16 %v4769_v25, %v4768_v41  ;;  %v11451_v59 = vld [vmem:[#allocation3 + $0x160] sm:$0xff]  ;;  %13243 = vst [vmem:[#allocation109_spill] sm:$0xff] %v11469_v19 }
 0x41e   : > { %4430 = vst.msk [vmem:[#allocation3 + $0x1a0] sm:$0xff] %vm4407_vm15, %v4308_v18  ;;  %5057 = vmatmul.mubr.f32.gmra.mrb[66].mxu0 %v11393_v40  ;;  %5956 = vmatmul.mubr.f32.gmra.mrb[102].mxu1 %v11396_v27  ;;  %13241 = vst [vmem:[#allocation107_spill] sm:$0xff] %v11451_v59 }
 0x41f   : > { %7240 = vmatprep.mubr.msk.f32.mxu0 %vm971_vm9, %v11408_v63  ;;  %7363 = vmatprep.mubr.msk.f32.mxu1 %vm971_vm9, %v11410_v26 }
 0x420   : > { %v4314_v12 = vpop.permute.xlu1 %4313  ;;  %8245 = vmatpush1.bf16.msra.mxu0 %v8244_v47  ;;  %v11434_v47 = vld [vmem:[#allocation3 + $0xf0] sm:$0xff] }
 0x421   : > { %4433 = vst.msk [vmem:[#allocation3 + $0x1d0] sm:$0xff] %vm4407_vm15, %v4314_v12  ;;  %v4312_v18 = vpop.permute.xlu0 %4311  ;;  %8246 = vmatprep.subr.bf16.mxu0 %v13237_v5  ;;  %v11436_v12 = vld [vmem:[#allocation3 + $0x150] sm:$0xff] }
 0x422   : > { %4432 = vst.msk [vmem:[#allocation3 + $0x1c0] sm:$0xff] %vm4407_vm15, %v4312_v18  ;;  %5062 = vmatmul.mubr.f32.gmra.mrb[68].mxu0 %v11417_v7  ;;  %5961 = vmatmul.mubr.f32.gmra.mrb[104].mxu1 %v11419_v35  ;;  %13239 = vst [vmem:[#allocation105_spill] sm:$0xff] %v11436_v12  ;;  %v11442_v18 = vld [vmem:[#allocation3 + $0x108] sm:$0xff]  ;;  %v11494_v24 = vld [vmem:[#allocation3 + $0x190] sm:$0xff] }
 0x423   : > { %7241 = vmatprep.mubr.msk.f32.mxu0 %vm971_vm9, %v11425_v46  ;;  %7364 = vmatprep.mubr.msk.f32.mxu1 %vm971_vm9, %v11427_v39  ;;  %13247 = vst [vmem:[#allocation113_spill] sm:$0xff] %v11494_v24 }
 0x424   : > { %v4318_v41 = vpop.permute.xlu1 %4317  ;;  %8248 = vmatpush1.bf16.msra.mxu0 %v8247_v42  ;;  %v11518_v4 = vld [vmem:[#allocation3 + $0x1b0] sm:$0xff] }
 0x425   : > { %4435 = vst.msk [vmem:[#allocation3 + $0x1f0] sm:$0xff] %vm4407_vm15, %v4318_v41  ;;  %v4316_v25 = vpop.permute.xlu0 %4315  ;;  %8249 = vmatprep.subr.bf16.mxu0 %v13237_v5  ;;  %v11506_v23 = vld [vmem:[#allocation3 + $0x1a0] sm:$0xff]  ;;  %13251 = vst [vmem:[#allocation117_spill] sm:$0xff] %v11518_v4 }
 0x426   : > { %4434 = vst.msk [vmem:[#allocation3 + $0x1e0] sm:$0xff] %vm4407_vm15, %v4316_v25  ;;  %5067 = vmatmul.mubr.f32.gmra.mrb[70].mxu0 %v11434_v47  ;;  %5966 = vmatmul.mubr.f32.gmra.mrb[106].mxu1 %v11436_v12  ;;  %v11456_v25 = vld [vmem:[#allocation3 + $0x178] sm:$0xff]  ;;  %13249 = vst [vmem:[#allocation115_spill] sm:$0xff] %v11506_v23 }
 0x427   : > { %7242 = vmatprep.mubr.msk.f32.mxu0 %vm971_vm9, %v11442_v18  ;;  %7365 = vmatprep.mubr.msk.f32.mxu1 %vm971_vm9, %v11444_v32  ;;  %13242 = vst [vmem:[#allocation108_spill] sm:$0xff] %v11456_v25 }
 0x428   : > { %v4322_v42 = vpop.permute.xlu1 %4321 }
 0x429   : > { %4437 = vst.msk [vmem:[#allocation3 + $0x210] sm:$0xff] %vm4407_vm15, %v4322_v42  ;;  %v4320_v41 = vpop.permute.xlu0 %4319  ;;  %v8250_v42 = vpack.c.bf16 %v4771_v14, %v4770_v31 }
 0x42a   : > { %4436 = vst.msk [vmem:[#allocation3 + $0x200] sm:$0xff] %vm4407_vm15, %v4320_v41  ;;  %5072 = vmatmul.mubr.f32.gmra.mrb[72].mxu0 %v11331_v54  ;;  %5971 = vmatmul.mubr.f32.gmra.mrb[108].mxu1 %v11451_v59 }
 0x42b   : > { %7243 = vmatprep.mubr.msk.f32.mxu0 %vm971_vm9, %v11341_v21  ;;  %7366 = vmatprep.mubr.msk.f32.mxu1 %vm971_vm9, %v11456_v25 }
 0x42c   : > { %v4326_v41 = vpop.permute.xlu1 %4325  ;;  %8251 = vmatpush1.bf16.msra.mxu0 %v8250_v42  ;;  %v11482_v42 = vld [vmem:[#allocation3 + $0x180] sm:$0xff] }
 0x42d   : > { %4439 = vst.msk [vmem:[#allocation3 + $0x230] sm:$0xff] %vm4407_vm15, %v4326_v41  ;;  %v4324_v8 = vpop.permute.xlu0 %4323  ;;  %8252 = vmatprep.subr.bf16.mxu0 %v13237_v5  ;;  %13245 = vst [vmem:[#allocation111_spill] sm:$0xff] %v11482_v42 }
 0x42e   : > { %4438 = vst.msk [vmem:[#allocation3 + $0x220] sm:$0xff] %vm4407_vm15, %v4324_v8  ;;  %5077 = vmatmul.mubr.f32.gmra.mrb[74].mxu0 %v11353_v10  ;;  %5976 = vmatmul.mubr.f32.gmra.mrb[110].mxu1 %v11469_v19  ;;  %v11487_v8 = vld [vmem:[#allocation3 + $0x198] sm:$0xff] }
 0x42f   : > { %7244 = vmatprep.mubr.msk.f32.mxu0 %vm971_vm9, %v11364_v56  ;;  %7367 = vmatprep.mubr.msk.f32.mxu1 %vm971_vm9, %v11474_v28  ;;  %13246 = vst [vmem:[#allocation112_spill] sm:$0xff] %v11487_v8 }
 0x430   : > { %v4330_v14 = vpop.permute.xlu1 %4329 }
 0x431   : > { %4441 = vst.msk [vmem:[#allocation3 + $0x250] sm:$0xff] %vm4407_vm15, %v4330_v14  ;;  %v4328_v31 = vpop.permute.xlu0 %4327 }
 0x432   : > { %4440 = vst.msk [vmem:[#allocation3 + $0x240] sm:$0xff] %vm4407_vm15, %v4328_v31  ;;  %5082 = vmatmul.mubr.f32.gmra.mrb[76].mxu0 %v11373_v20  ;;  %5981 = vmatmul.mubr.f32.gmra.mrb[112].mxu1 %v11482_v42  ;;  %v11499_v31 = vld [vmem:[#allocation3 + $0x1a8] sm:$0xff] }
 0x433   : > { %7245 = vmatprep.mubr.msk.f32.mxu0 %vm971_vm9, %v11387_v36  ;;  %7368 = vmatprep.mubr.msk.f32.mxu1 %vm971_vm9, %v11487_v8  ;;  %13248 = vst [vmem:[#allocation114_spill] sm:$0xff] %v11499_v31 }
 0x434   : > { %v4334_v41 = vpop.permute.xlu1 %4333 }
 0x435   : > { %4443 = vst.msk [vmem:[#allocation3 + $0x270] sm:$0xff] %vm4407_vm15, %v4334_v41  ;;  %v4332_v14 = vpop.permute.xlu0 %4331 }
 0x436   : > { %4442 = vst.msk [vmem:[#allocation3 + $0x260] sm:$0xff] %vm4407_vm15, %v4332_v14  ;;  %5087 = vmatmul.mubr.f32.gmra.mrb[78].mxu0 %v11396_v27  ;;  %5986 = vmatmul.mubr.f32.gmra.mrb[114].mxu1 %v11494_v24  ;;  %v11511_v14 = vld [vmem:[#allocation3 + $0x1b8] sm:$0xff] }
 0x437   : > { %7246 = vmatprep.mubr.msk.f32.mxu0 %vm971_vm9, %v11410_v26  ;;  %7369 = vmatprep.mubr.msk.f32.mxu1 %vm971_vm9, %v11499_v31  ;;  %13250 = vst [vmem:[#allocation116_spill] sm:$0xff] %v11511_v14 }
 0x438   : > { %v4338_v43 = vpop.permute.xlu1 %4337 }
 0x439   : > { %4445 = vst.msk [vmem:[#allocation3 + $0x290] sm:$0xff] %vm4407_vm15, %v4338_v43  ;;  %v4336_v41 = vpop.permute.xlu0 %4335 }
 0x43a   : > { %4444 = vst.msk [vmem:[#allocation3 + $0x280] sm:$0xff] %vm4407_vm15, %v4336_v41  ;;  %5092 = vmatmul.mubr.f32.gmra.mrb[80].mxu0 %v11419_v35  ;;  %5991 = vmatmul.mubr.f32.gmra.mrb[116].mxu1 %v11506_v23  ;;  %v11523_v41 = vld [vmem:[#allocation3 + $0x1c8] sm:$0xff] }
 0x43b   : > { %7247 = vmatprep.mubr.msk.f32.mxu0 %vm971_vm9, %v11427_v39  ;;  %7370 = vmatprep.mubr.msk.f32.mxu1 %vm971_vm9, %v11511_v14  ;;  %13252 = vst [vmem:[#allocation118_spill] sm:$0xff] %v11523_v41  ;;  %v11530_v39 = vld [vmem:[#allocation3 + $0x1c0] sm:$0xff] }
 0x43c   : > { %v4342_v48 = vpop.permute.xlu1 %4341  ;;  %13253 = vst [vmem:[#allocation119_spill] sm:$0xff] %v11530_v39 }
 0x43d   : > { %4447 = vst.msk [vmem:[#allocation3 + $0x2b0] sm:$0xff] %vm4407_vm15, %v4342_v48  ;;  %v4340_v43 = vpop.permute.xlu0 %4339 }
 0x43e   : > { %4446 = vst.msk [vmem:[#allocation3 + $0x2a0] sm:$0xff] %vm4407_vm15, %v4340_v43  ;;  %5097 = vmatmul.mubr.f32.gmra.mrb[82].mxu0 %v11436_v12  ;;  %5996 = vmatmul.mubr.f32.gmra.mrb[118].mxu1 %v11518_v4  ;;  %v11535_v43 = vld [vmem:[#allocation3 + $0x1d8] sm:$0xff]  ;;  %v11542_v12 = vld [vmem:[#allocation3 + $0x1d0] sm:$0xff] }
 0x43f   : > { %7248 = vmatprep.mubr.msk.f32.mxu0 %vm971_vm9, %v11444_v32  ;;  %7371 = vmatprep.mubr.msk.f32.mxu1 %vm971_vm9, %v11523_v41  ;;  %13254 = vst [vmem:[#allocation120_spill] sm:$0xff] %v11535_v43  ;;  %13255 = vst [vmem:[#allocation121_spill] sm:$0xff] %v11542_v12 }
 0x440   : > { %v4346_v16 = vpop.permute.xlu1 %4345 }
 0x441   : > { %4449 = vst.msk [vmem:[#allocation3 + $0x2d0] sm:$0xff] %vm4407_vm15, %v4346_v16  ;;  %v4344_v48 = vpop.permute.xlu0 %4343 }
 0x442   : > { %4448 = vst.msk [vmem:[#allocation3 + $0x2c0] sm:$0xff] %vm4407_vm15, %v4344_v48  ;;  %5102 = vmatmul.mubr.f32.gmra.mrb[84].mxu0 %v11451_v59  ;;  %6001 = vmatmul.mubr.f32.gmra.mrb[120].mxu1 %v11530_v39  ;;  %v11547_v48 = vld [vmem:[#allocation3 + $0x1e8] sm:$0xff]  ;;  %v11554_v59 = vld [vmem:[#allocation3 + $0x1e0] sm:$0xff] }
 0x443   : > { %7249 = vmatprep.mubr.msk.f32.mxu0 %vm971_vm9, %v11456_v25  ;;  %7372 = vmatprep.mubr.msk.f32.mxu1 %vm971_vm9, %v11535_v43  ;;  %13256 = vst [vmem:[#allocation122_spill] sm:$0xff] %v11547_v48  ;;  %13257 = vst [vmem:[#allocation123_spill] sm:$0xff] %v11554_v59 }
 0x444   : > { %v4350_v32 = vpop.permute.xlu1 %4349 }
 0x445   : > { %4451 = vst.msk [vmem:[#allocation3 + $0x2f0] sm:$0xff] %vm4407_vm15, %v4350_v32  ;;  %v4348_v16 = vpop.permute.xlu0 %4347 }
 0x446   : > { %4450 = vst.msk [vmem:[#allocation3 + $0x2e0] sm:$0xff] %vm4407_vm15, %v4348_v16  ;;  %5107 = vmatmul.mubr.f32.gmra.mrb[86].mxu0 %v11469_v19  ;;  %6006 = vmatmul.mubr.f32.gmra.mrb[122].mxu1 %v11542_v12  ;;  %v11559_v16 = vld [vmem:[#allocation3 + $0x1f8] sm:$0xff]  ;;  %v11566_v19 = vld [vmem:[#allocation3 + $0x1f0] sm:$0xff] }
 0x447   : > { %7250 = vmatprep.mubr.msk.f32.mxu0 %vm971_vm9, %v11474_v28  ;;  %7373 = vmatprep.mubr.msk.f32.mxu1 %vm971_vm9, %v11547_v48  ;;  %13258 = vst [vmem:[#allocation124_spill] sm:$0xff] %v11559_v16  ;;  %13259 = vst [vmem:[#allocation125_spill] sm:$0xff] %v11566_v19 }
 0x448   : > { %v4354_v25 = vpop.permute.xlu1 %4353 }
 0x449   : > { %4453 = vst.msk [vmem:[#allocation3 + $0x310] sm:$0xff] %vm4407_vm15, %v4354_v25  ;;  %v4352_v32 = vpop.permute.xlu0 %4351 }
 0x44a   : > { %4452 = vst.msk [vmem:[#allocation3 + $0x300] sm:$0xff] %vm4407_vm15, %v4352_v32  ;;  %5112 = vmatmul.mubr.f32.gmra.mrb[88].mxu0 %v11482_v42  ;;  %6011 = vmatmul.mubr.f32.gmra.mrb[124].mxu1 %v11554_v59  ;;  %v11571_v32 = vld [vmem:[#allocation3 + $0x208] sm:$0xff] }
 0x44b   : > { %7251 = vmatprep.mubr.msk.f32.mxu0 %vm971_vm9, %v11487_v8  ;;  %7374 = vmatprep.mubr.msk.f32.mxu1 %vm971_vm9, %v11559_v16  ;;  %13260 = vst [vmem:[#allocation126_spill] sm:$0xff] %v11571_v32  ;;  %v11577_v8 = vld [vmem:[#allocation3 + $0x200] sm:$0xff] }
 0x44c   : > { %13261 = vst [vmem:[#allocation127_spill] sm:$0xff] %v11577_v8 }
 0x44d   : > { %v4358_v28 = vpop.permute.xlu1 %4357 }
 0x44e   : > { %4455 = vst.msk [vmem:[#allocation3 + $0x330] sm:$0xff] %vm4407_vm15, %v4358_v28  ;;  %v4356_v25 = vpop.permute.xlu0 %4355  ;;  %5117 = vmatmul.mubr.f32.gmra.mrb[90].mxu0 %v11494_v24  ;;  %6016 = vmatmul.mubr.f32.gmra.mrb[126].mxu1 %v11566_v19  ;;  %v11581_v28 = vld [vmem:[#allocation3 + $0x218] sm:$0xff] }
 0x44f   : > { %4454 = vst.msk [vmem:[#allocation3 + $0x320] sm:$0xff] %vm4407_vm15, %v4356_v25  ;;  %7252 = vmatprep.mubr.msk.f32.mxu0 %vm971_vm9, %v11499_v31  ;;  %7375 = vmatprep.mubr.msk.f32.mxu1 %vm971_vm9, %v11571_v32  ;;  %13262 = vst [vmem:[#allocation128_spill] sm:$0xff] %v11581_v28  ;;  %v11587_v25 = vld [vmem:[#allocation3 + $0x210] sm:$0xff]  ;;  %v11591_v31 = vld [vmem:[#allocation3 + $0x228] sm:$0xff] }
 0x450   : > { %13263 = vst [vmem:[#allocation129_spill] sm:$0xff] %v11587_v25  ;;  %13264 = vst [vmem:[#allocation130_spill] sm:$0xff] %v11591_v31 }
 0x452   : > { %5122 = vmatmul.mubr.f32.gmra.mrb[92].mxu0 %v11506_v23  ;;  %6021 = vmatmul.mubr.f32.gmra.mrb[128].mxu1 %v11577_v8  ;;  %v11597_v23 = vld [vmem:[#allocation3 + $0x220] sm:$0xff] }
 0x453   : > { %7253 = vmatprep.mubr.msk.f32.mxu0 %vm971_vm9, %v11511_v14  ;;  %7376 = vmatprep.mubr.msk.f32.mxu1 %vm971_vm9, %v11581_v28  ;;  %13265 = vst [vmem:[#allocation131_spill] sm:$0xff] %v11597_v23  ;;  %v11601_v14 = vld [vmem:[#allocation3 + $0x238] sm:$0xff] }
 0x454   : > { %13266 = vst [vmem:[#allocation132_spill] sm:$0xff] %v11601_v14 }
 0x455   : > { %v5654_v42 = vld [vmem:[#allocation3 + $0x330] sm:$0xff] }
 0x456   : > { %5127 = vmatmul.mubr.f32.gmra.mrb[94].mxu0 %v11518_v4  ;;  %6026 = vmatmul.mubr.f32.gmra.mrb[130].mxu1 %v11587_v25  ;;  %v11607_v4 = vld [vmem:[#allocation3 + $0x230] sm:$0xff]  ;;  %v5652_v24 = vld [vmem:[#allocation3 + $0x320] sm:$0xff] }
 0x457   : > { %7254 = vmatprep.mubr.msk.f32.mxu0 %vm971_vm9, %v11523_v41  ;;  %7377 = vmatprep.mubr.msk.f32.mxu1 %vm971_vm9, %v11591_v31  ;;  %13267 = vst [vmem:[#allocation133_spill] sm:$0xff] %v11607_v4  ;;  %v11611_v41 = vld [vmem:[#allocation3 + $0x248] sm:$0xff] }
 0x458   : > { %13268 = vst [vmem:[#allocation134_spill] sm:$0xff] %v11611_v41 }
 0x45a   : > { %5132 = vmatmul.mubr.f32.gmra.mrb[96].mxu0 %v11530_v39  ;;  %6031 = vmatmul.mubr.f32.gmra.mrb[132].mxu1 %v11597_v23  ;;  %v11617_v39 = vld [vmem:[#allocation3 + $0x240] sm:$0xff] }
 0x45b   : > { %7255 = vmatprep.mubr.msk.f32.mxu0 %vm971_vm9, %v11535_v43  ;;  %7378 = vmatprep.mubr.msk.f32.mxu1 %vm971_vm9, %v11601_v14  ;;  %13269 = vst [vmem:[#allocation135_spill] sm:$0xff] %v11617_v39  ;;  %v11621_v43 = vld [vmem:[#allocation3 + $0x258] sm:$0xff] }
 0x45c   : > { %13270 = vst [vmem:[#allocation136_spill] sm:$0xff] %v11621_v43 }
 0x45e   : > { %5137 = vmatmul.mubr.f32.gmra.mrb[98].mxu0 %v11542_v12  ;;  %6036 = vmatmul.mubr.f32.gmra.mrb[134].mxu1 %v11607_v4  ;;  %v11627_v12 = vld [vmem:[#allocation3 + $0x250] sm:$0xff] }
 0x45f   : > { %7256 = vmatprep.mubr.msk.f32.mxu0 %vm971_vm9, %v11547_v48  ;;  %7379 = vmatprep.mubr.msk.f32.mxu1 %vm971_vm9, %v11611_v41  ;;  %13271 = vst [vmem:[#allocation137_spill] sm:$0xff] %v11627_v12  ;;  %v11631_v48 = vld [vmem:[#allocation3 + $0x268] sm:$0xff] }
 0x460   : > { %13272 = vst [vmem:[#allocation138_spill] sm:$0xff] %v11631_v48 }
 0x462   : > { %5142 = vmatmul.mubr.f32.gmra.mrb[100].mxu0 %v11554_v59  ;;  %6041 = vmatmul.mubr.f32.gmra.mrb[136].mxu1 %v11617_v39  ;;  %v11637_v59 = vld [vmem:[#allocation3 + $0x260] sm:$0xff] }
 0x463   : > { %7257 = vmatprep.mubr.msk.f32.mxu0 %vm971_vm9, %v11559_v16  ;;  %7380 = vmatprep.mubr.msk.f32.mxu1 %vm971_vm9, %v11621_v43  ;;  %13273 = vst [vmem:[#allocation139_spill] sm:$0xff] %v11637_v59  ;;  %v11641_v16 = vld [vmem:[#allocation3 + $0x278] sm:$0xff] }
 0x464   : > { %13274 = vst [vmem:[#allocation140_spill] sm:$0xff] %v11641_v16 }
 0x466   : > { %5147 = vmatmul.mubr.f32.gmra.mrb[102].mxu0 %v11566_v19  ;;  %6046 = vmatmul.mubr.f32.gmra.mrb[138].mxu1 %v11627_v12  ;;  %v11647_v19 = vld [vmem:[#allocation3 + $0x270] sm:$0xff] }
 0x467   : > { %7258 = vmatprep.mubr.msk.f32.mxu0 %vm971_vm9, %v11571_v32  ;;  %7381 = vmatprep.mubr.msk.f32.mxu1 %vm971_vm9, %v11631_v48  ;;  %13275 = vst [vmem:[#allocation141_spill] sm:$0xff] %v11647_v19  ;;  %v11651_v32 = vld [vmem:[#allocation3 + $0x288] sm:$0xff] }
 0x468   : > { %13276 = vst [vmem:[#allocation142_spill] sm:$0xff] %v11651_v32 }
 0x46a   : > { %5152 = vmatmul.mubr.f32.gmra.mrb[104].mxu0 %v11577_v8  ;;  %6051 = vmatmul.mubr.f32.gmra.mrb[140].mxu1 %v11637_v59  ;;  %v11657_v8 = vld [vmem:[#allocation3 + $0x280] sm:$0xff] }
 0x46b   : > { %7259 = vmatprep.mubr.msk.f32.mxu0 %vm971_vm9, %v11581_v28  ;;  %7382 = vmatprep.mubr.msk.f32.mxu1 %vm971_vm9, %v11641_v16  ;;  %13277 = vst [vmem:[#allocation143_spill] sm:$0xff] %v11657_v8  ;;  %v11661_v28 = vld [vmem:[#allocation3 + $0x298] sm:$0xff] }
 0x46c   : > { %13278 = vst [vmem:[#allocation144_spill] sm:$0xff] %v11661_v28 }
 0x46e   : > { %5157 = vmatmul.mubr.f32.gmra.mrb[106].mxu0 %v11587_v25  ;;  %6056 = vmatmul.mubr.f32.gmra.mrb[142].mxu1 %v11647_v19  ;;  %v11667_v25 = vld [vmem:[#allocation3 + $0x290] sm:$0xff] }
 0x46f   : > { %7260 = vmatprep.mubr.msk.f32.mxu0 %vm971_vm9, %v11591_v31  ;;  %7383 = vmatprep.mubr.msk.f32.mxu1 %vm971_vm9, %v11651_v32  ;;  %13279 = vst [vmem:[#allocation145_spill] sm:$0xff] %v11667_v25  ;;  %v11671_v31 = vld [vmem:[#allocation3 + $0x2a8] sm:$0xff] }
 0x470   : > { %13280 = vst [vmem:[#allocation146_spill] sm:$0xff] %v11671_v31 }
 0x472   : > { %5162 = vmatmul.mubr.f32.gmra.mrb[108].mxu0 %v11597_v23  ;;  %6061 = vmatmul.mubr.f32.gmra.mrb[144].mxu1 %v11657_v8  ;;  %v11677_v23 = vld [vmem:[#allocation3 + $0x2a0] sm:$0xff] }
 0x473   : > { %7261 = vmatprep.mubr.msk.f32.mxu0 %vm971_vm9, %v11601_v14  ;;  %7384 = vmatprep.mubr.msk.f32.mxu1 %vm971_vm9, %v11661_v28  ;;  %13281 = vst [vmem:[#allocation147_spill] sm:$0xff] %v11677_v23  ;;  %v11681_v14 = vld [vmem:[#allocation3 + $0x2b8] sm:$0xff] }
 0x474   : > { %13282 = vst [vmem:[#allocation148_spill] sm:$0xff] %v11681_v14 }
 0x476   : > { %5167 = vmatmul.mubr.f32.gmra.mrb[110].mxu0 %v11607_v4  ;;  %6066 = vmatmul.mubr.f32.gmra.mrb[146].mxu1 %v11667_v25  ;;  %v11687_v4 = vld [vmem:[#allocation3 + $0x2b0] sm:$0xff] }
 0x477   : > { %7262 = vmatprep.mubr.msk.f32.mxu0 %vm971_vm9, %v11611_v41  ;;  %7385 = vmatprep.mubr.msk.f32.mxu1 %vm971_vm9, %v11671_v31  ;;  %v11691_v41 = vld [vmem:[#allocation3 + $0x2c8] sm:$0xff] }
 0x478   : > { %13283 = vst [vmem:[#allocation149_spill] sm:$0xff] %v11691_v41 }
 0x47a   : > { %5172 = vmatmul.mubr.f32.gmra.mrb[112].mxu0 %v11617_v39  ;;  %6071 = vmatmul.mubr.f32.gmra.mrb[148].mxu1 %v11677_v23  ;;  %v11697_v39 = vld [vmem:[#allocation3 + $0x2c0] sm:$0xff] }
 0x47b   : > { %7263 = vmatprep.mubr.msk.f32.mxu0 %vm971_vm9, %v11621_v43  ;;  %7386 = vmatprep.mubr.msk.f32.mxu1 %vm971_vm9, %v11681_v14  ;;  %v11701_v43 = vld [vmem:[#allocation3 + $0x2d8] sm:$0xff] }
 0x47e   : > { %5177 = vmatmul.mubr.f32.gmra.mrb[114].mxu0 %v11627_v12  ;;  %6076 = vmatmul.mubr.f32.gmra.mrb[150].mxu1 %v11687_v4  ;;  %v11707_v12 = vld [vmem:[#allocation3 + $0x2d0] sm:$0xff] }
 0x47f   : > { %7264 = vmatprep.mubr.msk.f32.mxu0 %vm971_vm9, %v11631_v48  ;;  %7387 = vmatprep.mubr.msk.f32.mxu1 %vm971_vm9, %v11691_v41  ;;  %v11711_v48 = vld [vmem:[#allocation3 + $0x2e8] sm:$0xff] }
 0x482   : > { %5182 = vmatmul.mubr.f32.gmra.mrb[116].mxu0 %v11637_v59  ;;  %6081 = vmatmul.mubr.f32.gmra.mrb[152].mxu1 %v11697_v39  ;;  %v11717_v59 = vld [vmem:[#allocation3 + $0x2e0] sm:$0xff] }
 0x483   : > { %7265 = vmatprep.mubr.msk.f32.mxu0 %vm971_vm9, %v11641_v16  ;;  %7388 = vmatprep.mubr.msk.f32.mxu1 %vm971_vm9, %v11701_v43  ;;  %v11721_v16 = vld [vmem:[#allocation3 + $0x2f8] sm:$0xff] }
 0x484   : > { %13284 = vst [vmem:[#allocation150_spill] sm:$0xff] %v11721_v16 }
 0x486   : > { %5187 = vmatmul.mubr.f32.gmra.mrb[118].mxu0 %v11647_v19  ;;  %6086 = vmatmul.mubr.f32.gmra.mrb[154].mxu1 %v11707_v12  ;;  %v11727_v19 = vld [vmem:[#allocation3 + $0x2f0] sm:$0xff] }
 0x487   : > { %7266 = vmatprep.mubr.msk.f32.mxu0 %vm971_vm9, %v11651_v32  ;;  %7389 = vmatprep.mubr.msk.f32.mxu1 %vm971_vm9, %v11711_v48  ;;  %v11731_v32 = vld [vmem:[#allocation3 + $0x308] sm:$0xff] }
 0x48a   : > { %5192 = vmatmul.mubr.f32.gmra.mrb[120].mxu0 %v11657_v8  ;;  %6091 = vmatmul.mubr.f32.gmra.mrb[156].mxu1 %v11717_v59  ;;  %v11737_v8 = vld [vmem:[#allocation3 + $0x300] sm:$0xff] }
 0x48b   : > { %7267 = vmatprep.mubr.msk.f32.mxu0 %vm971_vm9, %v11661_v28  ;;  %7390 = vmatprep.mubr.msk.f32.mxu1 %vm971_vm9, %v11721_v16  ;;  %v5651_v28 = vld [vmem:[#allocation3 + $0x318] sm:$0xff] }
 0x48e   : > { %5197 = vmatmul.mubr.f32.gmra.mrb[122].mxu0 %v11667_v25  ;;  %6096 = vmatmul.mubr.f32.gmra.mrb[158].mxu1 %v11727_v19  ;;  %v5650_v25 = vld [vmem:[#allocation3 + $0x310] sm:$0xff] }
 0x48f   : > { %7268 = vmatprep.mubr.msk.f32.mxu0 %vm971_vm9, %v11671_v31  ;;  %7391 = vmatprep.mubr.msk.f32.mxu1 %vm971_vm9, %v11731_v32  ;;  %v5653_v31 = vld [vmem:[#allocation3 + $0x328] sm:$0xff] }
 0x492   : > { %5202 = vmatmul.mubr.f32.gmra.mrb[124].mxu0 %v11677_v23  ;;  %6101 = vmatmul.mubr.f32.gmra.mrb[160].mxu1 %v11737_v8  ;;  %v5655_v23 = vld [vmem:[#allocation3 + $0x338] sm:$0xff] }
 0x493   : > { %7269 = vmatprep.mubr.msk.f32.mxu0 %vm971_vm9, %v11681_v14  ;;  %7392 = vmatprep.mubr.msk.f32.mxu1 %vm971_vm9, %v5651_v28  ;;  %v5657_v14 = vld [vmem:[#allocation3 + $0x348] sm:$0xff] }
 0x496   : > { %5207 = vmatmul.mubr.f32.gmra.mrb[126].mxu0 %v11687_v4  ;;  %6106 = vmatmul.mubr.f32.gmra.mrb[162].mxu1 %v5650_v25 }
 0x497   : > { %7270 = vmatprep.mubr.msk.f32.mxu0 %vm971_vm9, %v11691_v41  ;;  %7393 = vmatprep.mubr.msk.f32.mxu1 %vm971_vm9, %v5653_v31  ;;  %v5656_v41 = vld [vmem:[#allocation3 + $0x340] sm:$0xff] }
 0x49a   : > { %5212 = vmatmul.mubr.f32.gmra.mrb[128].mxu0 %v11697_v39  ;;  %6111 = vmatmul.mubr.f32.gmra.mrb[164].mxu1 %v5652_v24 }
 0x49b   : > { %7271 = vmatprep.mubr.msk.f32.mxu0 %vm971_vm9, %v11701_v43  ;;  %7394 = vmatprep.mubr.msk.f32.mxu1 %vm971_vm9, %v5655_v23 }
 0x49e   : > { %5217 = vmatmul.mubr.f32.gmra.mrb[130].mxu0 %v11707_v12  ;;  %6116 = vmatmul.mubr.f32.gmra.mrb[166].mxu1 %v5654_v42 }
 0x49f   : > { %7272 = vmatprep.mubr.msk.f32.mxu0 %vm971_vm9, %v11711_v48  ;;  %7395 = vmatprep.mubr.msk.f32.mxu1 %vm971_vm9, %v5657_v14  ;;  %v4653_v14 = vld [vmem:[#allocation3 + $0x18] sm:$0xff] }
 0x4a2   : > { %5222 = vmatmul.mubr.f32.gmra.mrb[132].mxu0 %v11717_v59  ;;  %6121 = vmatmul.mubr.f32.gmra.mrb[168].mxu1 %v5656_v41  ;;  %v4655_v41 = vld [vmem:[#allocation3 + $0x28] sm:$0xff] }
 0x4a3   : > { %7273 = vmatprep.mubr.msk.f32.mxu0 %vm971_vm9, %v11721_v16  ;;  %v11767_v16 = vld [vmem:[#allocation3] sm:$0xff] }
 0x4a6   : > { %5227 = vmatmul.mubr.f32.gmra.mrb[134].mxu0 %v11727_v19 }
 0x4a7   : > { %7274 = vmatprep.mubr.msk.f32.mxu0 %vm971_vm9, %v11731_v32 }
 0x4aa   : > { %5232 = vmatmul.mubr.f32.gmra.mrb[136].mxu0 %v11737_v8 }
 0x4ab   : > { %7275 = vmatprep.mubr.msk.f32.mxu0 %vm971_vm9, %v5651_v28 }
 0x4ae   : > { %5237 = vmatmul.mubr.f32.gmra.mrb[138].mxu0 %v5650_v25 }
 0x4af   : > { %7276 = vmatprep.mubr.msk.f32.mxu0 %vm971_vm9, %v5653_v31 }
 0x4b2   : > { %5242 = vmatmul.mubr.f32.gmra.mrb[140].mxu0 %v5652_v24  ;;  %v4657_v24 = vld [vmem:[#allocation3 + $0x38] sm:$0xff] }
 0x4b3   : > { %7277 = vmatprep.mubr.msk.f32.mxu0 %vm971_vm9, %v5655_v23  ;;  %v8484_v23 = vld [vmem:[#allocation3 + $0x48] sm:$0xff] }
 0x4b6   : > { %5247 = vmatmul.mubr.f32.gmra.mrb[142].mxu0 %v5654_v42 }
 0x4b7   : > { %7278 = vmatprep.mubr.msk.f32.mxu0 %vm971_vm9, %v4653_v14 }
 0x4ba   : > { %5326 = vmatmul.mubr.f32.vlgmr.msra.gmra.mrb[144].mxu0 %v11767_v16 }
 0x4bb   : > { %8254 = vmatpush1.bf16.msra.mxu0 %v10625_v1  ;;  %7279 = vmatprep.mubr.msk.f32.mxu0 %vm971_vm9, %v4655_v41 }
 0x4bc   : > { %8255 = vmatprep.subr.bf16.mxu0 %v13237_v5 }
 0x4be   : > { %5331 = vmatmul.mubr.f32.gmra.mrb[146].mxu0 %v11767_v16 }
 0x4bf   : > { %7280 = vmatprep.mubr.msk.f32.mxu0 %vm971_vm9, %v4657_v24  ;;  %8257 = vmatpush1.bf16.msra.mxu0 %v10635_v61 }
 0x4c0   : > { %8258 = vmatprep.subr.bf16.mxu0 %v13237_v5 }
 0x4c2   : > { %5336 = vmatmul.mubr.f32.gmra.mrb[148].mxu0 %v11767_v16 }
 0x4c3   : > { %7281 = vmatprep.mubr.msk.f32.mxu0 %vm971_vm9, %v8484_v23  ;;  %8260 = vmatpush1.bf16.msra.mxu0 %v10652_v3 }
 0x4c4   : > { %8261 = vmatprep.subr.bf16.mxu0 %v13237_v5 }
 0x4c6   : > { %5341 = vmatmul.mubr.f32.gmra.mrb[150].mxu0 %v11236_v29 }
 0x4c7   : > { %7282 = vmatprep.mubr.msk.f32.mxu0 %vm971_vm9, %v11240_v13  ;;  %8263 = vmatpush1.bf16.msra.mxu0 %v10662_v11 }
 0x4c8   : > { %8264 = vmatprep.subr.bf16.mxu0 %v13237_v5 }
 0x4ca   : > { %5346 = vmatmul.mubr.f32.gmra.mrb[152].mxu0 %v11252_v53 }
 0x4cb   : > { %7283 = vmatprep.mubr.msk.f32.mxu0 %vm971_vm9, %v11256_v6  ;;  %8266 = vmatpush1.bf16.msra.mxu0 %v10674_v37 }
 0x4cc   : > { %8267 = vmatprep.subr.bf16.mxu0 %v13237_v5 }
 0x4cd   : > { %v11791_v1 = vpop.f32.mrb[48].mxu0 }
 0x4ce   : > { %v5015_v61 = vpop.f32.mrb[49].mxu0  ;;  %5351 = vmatmul.mubr.f32.gmra.mrb[154].mxu0 %v11268_v34 }
 0x4cf   : > { %7284 = vmatprep.mubr.msk.f32.mxu0 %vm971_vm9, %v11272_v22  ;;  %8269 = vmatpush1.bf16.msra.mxu0 %v10696_v33 }
 0x4d0   : > { %8270 = vmatprep.subr.bf16.mxu0 %v13237_v5 }
 0x4d1   : > { %v11798_v3 = vpop.f32.mrb[50].mxu0 }
 0x4d2   : > { %v5020_v11 = vpop.f32.mrb[51].mxu0  ;;  %5356 = vmatmul.mubr.f32.gmra.mrb[156].mxu0 %v11284_v44 }
 0x4d3   : > { %7285 = vmatprep.mubr.msk.f32.mxu0 %vm971_vm9, %v11288_v9  ;;  %8272 = vmatpush1.bf16.msra.mxu0 %v10712_v17 }
 0x4d4   : > { %8273 = vmatprep.subr.bf16.mxu0 %v13237_v5 }
 0x4d5   : > { %v11805_v37 = vpop.f32.mrb[52].mxu0 }
 0x4d6   : > { %v5025_v29 = vpop.f32.mrb[53].mxu0  ;;  %5361 = vmatmul.mubr.f32.gmra.mrb[158].mxu0 %v11300_v62 }
 0x4d7   : > { %7286 = vmatprep.mubr.msk.f32.mxu0 %vm971_vm9, %v11304_v38  ;;  %8275 = vmatpush1.bf16.msra.mxu0 %v10729_v0  ;;  %v13286_v29 = vld [vmem:[#allocation105_spill] sm:$0xff] }
 0x4d8   : > { %8276 = vmatprep.subr.bf16.mxu0 %v13237_v5 }
 0x4d9   : > { %v11812_v33 = vpop.f32.mrb[54].mxu0 }
 0x4da   : > { %v5030_v13 = vpop.f32.mrb[55].mxu0  ;;  %5366 = vmatmul.mubr.f32.gmra.mrb[160].mxu0 %v11310_v58 }
 0x4db   : > { %7287 = vmatprep.mubr.msk.f32.mxu0 %vm971_vm9, %v11320_v49  ;;  %8278 = vmatpush1.bf16.msra.mxu0 %v10758_v55 }
 0x4dc   : > { %8279 = vmatprep.subr.bf16.mxu0 %v13237_v5 }
 0x4dd   : > { %v11819_v17 = vpop.f32.mrb[56].mxu0 }
 0x4de   : > { %v5035_v53 = vpop.f32.mrb[57].mxu0  ;;  %5371 = vmatmul.mubr.f32.gmra.mrb[162].mxu0 %v11329_v57 }
 0x4df   : > { %7288 = vmatprep.mubr.msk.f32.mxu0 %vm971_vm9, %v11339_v52  ;;  %8281 = vmatpush1.bf16.msra.mxu0 %v10795_v50 }
 0x4e0   : > { %8282 = vmatprep.subr.bf16.mxu0 %v13237_v5 }
 0x4e1   : > { %v11826_v0 = vpop.f32.mrb[58].mxu0 }
 0x4e2   : > { %v5040_v6 = vpop.f32.mrb[59].mxu0  ;;  %5376 = vmatmul.mubr.f32.gmra.mrb[164].mxu0 %v11351_v2 }
 0x4e3   : > { %7289 = vmatprep.mubr.msk.f32.mxu0 %vm971_vm9, %v11362_v30  ;;  %8284 = vmatpush1.bf16.msra.mxu0 %v10829_v45 }
 0x4e4   : > { %8285 = vmatprep.subr.bf16.mxu0 %v13237_v5 }
 0x4e5   : > { %v11833_v55 = vpop.f32.mrb[60].mxu0  ;;  %v11835_v34 = vpop.f32.mrb[96].mxu1 }
 0x4e6   : > { %v5045_v22 = vpop.f32.mrb[61].mxu0  ;;  %5381 = vmatmul.mubr.f32.gmra.mrb[166].mxu0 %v11370_v51  ;;  %v5944_v50 = vpop.f32.mrb[97].mxu1  ;;  %v5659_v51 = vld [vmem:[#allocation3 + $0x358] sm:$0xff] }
 0x4e7   : > { %7290 = vmatprep.mubr.msk.f32.mxu0 %vm971_vm9, %v11385_v60  ;;  %8287 = vmatpush1.bf16.msra.mxu0 %v10862_v15  ;;  %v13288_v22 = vld [vmem:[#allocation107_spill] sm:$0xff] }
 0x4e8   : > { %8288 = vmatprep.subr.bf16.mxu0 %v13237_v5  ;;  %7396 = vmatprep.mubr.msk.f32.mxu1 %vm971_vm9, %v5659_v51  ;;  %v13291_v51 = vld [vmem:[#allocation110_spill] sm:$0xff] }
 0x4e9   : > { %v11842_v2 = vpop.f32.mrb[62].mxu0  ;;  %v11844_v45 = vpop.f32.mrb[98].mxu1  ;;  %6126 = vmatmul.mubr.f32.gmra.mrb[170].mxu1 %v11767_v16 }
 0x4ea   : > { %v5050_v44 = vpop.f32.mrb[63].mxu0  ;;  %5386 = vmatmul.mubr.f32.gmra.mrb[168].mxu0 %v11393_v40  ;;  %v5949_v9 = vpop.f32.mrb[99].mxu1 }
 0x4eb   : > { %7291 = vmatprep.mubr.msk.f32.mxu0 %vm971_vm9, %v11408_v63  ;;  %v5661_v63 = vld [vmem:[#allocation3 + $0x368] sm:$0xff]  ;;  %v13289_v44 = vld [vmem:[#allocation108_spill] sm:$0xff] }
 0x4ec   : > { %7397 = vmatprep.mubr.msk.f32.mxu1 %vm971_vm9, %v5661_v63 }
 0x4ed   : > { %v11849_v62 = vpop.f32.mrb[64].mxu0  ;;  %v11851_v38 = vpop.f32.mrb[100].mxu1  ;;  %6131 = vmatmul.mubr.f32.gmra.mrb[172].mxu1 %v11767_v16 }
 0x4ee   : > { %v5055_v58 = vpop.f32.mrb[65].mxu0  ;;  %5391 = vmatmul.mubr.f32.gmra.mrb[170].mxu0 %v11417_v7  ;;  %v5954_v15 = vpop.f32.mrb[101].mxu1 }
 0x4ef   : > { %7292 = vmatprep.mubr.msk.f32.mxu0 %vm971_vm9, %v11425_v46 }
 0x4f1   : > { %v11856_v49 = vpop.f32.mrb[66].mxu0  ;;  %v11858_v57 = vpop.f32.mrb[102].mxu1 }
 0x4f2   : > { %v5060_v52 = vpop.f32.mrb[67].mxu0  ;;  %5396 = vmatmul.mubr.f32.gmra.mrb[172].mxu0 %v11434_v47  ;;  %v5959_v30 = vpop.f32.mrb[103].mxu1 }
 0x4f3   : > { %7293 = vmatprep.mubr.msk.f32.mxu0 %vm971_vm9, %v11442_v18  ;;  %v13290_v52 = vld [vmem:[#allocation109_spill] sm:$0xff] }
 0x4f5   : > { %v11864_v60 = vpop.f32.mrb[68].mxu0  ;;  %v11866_v7 = vpop.f32.mrb[104].mxu1 }
 0x4f6   : > { %v5065_v46 = vpop.f32.mrb[69].mxu0  ;;  %5401 = vmatmul.mubr.f32.gmra.mrb[174].mxu0 %v11331_v54  ;;  %v5964_v40 = vpop.f32.mrb[105].mxu1 }
 0x4f7   : > { %7294 = vmatprep.mubr.msk.f32.mxu0 %vm971_vm9, %v11341_v21 }
 0x4f9   : > { %v11873_v47 = vpop.f32.mrb[70].mxu0  ;;  %v11875_v18 = vpop.f32.mrb[106].mxu1 }
 0x4fa   : > { %v5070_v42 = vpop.f32.mrb[71].mxu0  ;;  %5406 = vmatmul.mubr.f32.gmra.mrb[176].mxu0 %v11353_v10  ;;  %v5969_v31 = vpop.f32.mrb[107].mxu1 }
 0x4fb   : > { %7295 = vmatprep.mubr.msk.f32.mxu0 %vm971_vm9, %v11364_v56  ;;  %v13292_v42 = vld [vmem:[#allocation111_spill] sm:$0xff] }
 0x4fd   : > { %v11881_v54 = vpop.f32.mrb[72].mxu0  ;;  %v11883_v28 = vpop.f32.mrb[108].mxu1 }
 0x4fe   : > { %v5075_v21 = vpop.f32.mrb[73].mxu0  ;;  %5411 = vmatmul.mubr.f32.gmra.mrb[178].mxu0 %v11373_v20  ;;  %v5974_v25 = vpop.f32.mrb[109].mxu1 }
 0x4ff   : > { %7296 = vmatprep.mubr.msk.f32.mxu0 %vm971_vm9, %v11387_v36  ;;  %v13285_v36 = vld [vmem:[#allocation104_spill] sm:$0xff] }
 0x500   : > { %v13293_v21 = vld [vmem:[#allocation112_spill] sm:$0xff] }
 0x501   : > { %v11888_v14 = vpop.f32.mrb[74].mxu0  ;;  %v11890_v16 = vpop.f32.mrb[110].mxu1 }
 0x502   : > { %v5080_v10 = vpop.f32.mrb[75].mxu0  ;;  %5416 = vmatmul.mubr.f32.gmra.mrb[180].mxu0 %v11396_v27  ;;  %v5979_v41 = vpop.f32.mrb[111].mxu1 }
 0x503   : > { %7297 = vmatprep.mubr.msk.f32.mxu0 %vm971_vm9, %v11410_v26  ;;  %v13287_v26 = vld [vmem:[#allocation106_spill] sm:$0xff] }
 0x505   : > { %v11895_v56 = vpop.f32.mrb[76].mxu0  ;;  %v11897_v24 = vpop.f32.mrb[112].mxu1 }
 0x506   : > { %v5085_v20 = vpop.f32.mrb[77].mxu0  ;;  %5421 = vmatmul.mubr.f32.gmra.mrb[182].mxu0 %v11419_v35  ;;  %v5984_v23 = vpop.f32.mrb[113].mxu1 }
 0x507   : > { %7298 = vmatprep.mubr.msk.f32.mxu0 %vm971_vm9, %v13285_v36  ;;  %v13294_v20 = vld [vmem:[#allocation113_spill] sm:$0xff]  ;;  %v13295_v36 = vld [vmem:[#allocation114_spill] sm:$0xff] }
 0x509   : > { %v11902_v61 = vpop.f32.mrb[78].mxu0  ;;  %v11904_v11 = vpop.f32.mrb[114].mxu1 }
 0x50a   : > { %v5090_v27 = vpop.f32.mrb[79].mxu0  ;;  %5426 = vmatmul.mubr.f32.gmra.mrb[184].mxu0 %v13286_v29  ;;  %v5989_v13 = vpop.f32.mrb[115].mxu1 }
 0x50b   : > { %7299 = vmatprep.mubr.msk.f32.mxu0 %vm971_vm9, %v13287_v26  ;;  %v13296_v26 = vld [vmem:[#allocation115_spill] sm:$0xff] }
 0x50d   : > { %v11909_v53 = vpop.f32.mrb[80].mxu0  ;;  %v11911_v6 = vpop.f32.mrb[116].mxu1 }
 0x50e   : > { %v5095_v35 = vpop.f32.mrb[81].mxu0  ;;  %5431 = vmatmul.mubr.f32.gmra.mrb[186].mxu0 %v13288_v22  ;;  %v5994_v50 = vpop.f32.mrb[117].mxu1  ;;  %v13297_v22 = vld [vmem:[#allocation116_spill] sm:$0xff] }
 0x50f   : > { %7300 = vmatprep.mubr.msk.f32.mxu0 %vm971_vm9, %v13289_v44 }
 0x511   : > { %v11916_v9 = vpop.f32.mrb[82].mxu0  ;;  %v11918_v58 = vpop.f32.mrb[118].mxu1 }
 0x512   : > { %v5100_v15 = vpop.f32.mrb[83].mxu0  ;;  %5436 = vmatmul.mubr.f32.gmra.mrb[188].mxu0 %v13290_v52  ;;  %v5999_v30 = vpop.f32.mrb[119].mxu1  ;;  %v13298_v52 = vld [vmem:[#allocation117_spill] sm:$0xff] }
 0x513   : > { %7301 = vmatprep.mubr.msk.f32.mxu0 %vm971_vm9, %v13291_v51  ;;  %v13299_v51 = vld [vmem:[#allocation118_spill] sm:$0xff] }
 0x515   : > { %v11923_v46 = vpop.f32.mrb[84].mxu0  ;;  %v11925_v40 = vpop.f32.mrb[120].mxu1 }
 0x516   : > { %v5105_v63 = vpop.f32.mrb[85].mxu0  ;;  %5441 = vmatmul.mubr.f32.gmra.mrb[190].mxu0 %v13292_v42  ;;  %v6004_v31 = vpop.f32.mrb[121].mxu1 }
 0x517   : > { %7302 = vmatprep.mubr.msk.f32.mxu0 %vm971_vm9, %v13293_v21  ;;  %v13300_v21 = vld [vmem:[#allocation119_spill] sm:$0xff] }
 0x519   : > { %v11930_v25 = vpop.f32.mrb[86].mxu0  ;;  %v11932_v10 = vpop.f32.mrb[122].mxu1 }
 0x51a   : > { %v5110_v41 = vpop.f32.mrb[87].mxu0  ;;  %5446 = vmatmul.mubr.f32.gmra.mrb[192].mxu0 %v13294_v20  ;;  %v6009_v23 = vpop.f32.mrb[123].mxu1  ;;  %v13301_v20 = vld [vmem:[#allocation120_spill] sm:$0xff] }
 0x51b   : > { %7303 = vmatprep.mubr.msk.f32.mxu0 %vm971_vm9, %v13295_v36 }
 0x51d   : > { %v11937_v27 = vpop.f32.mrb[88].mxu0  ;;  %v11939_v29 = vpop.f32.mrb[124].mxu1 }
 0x51e   : > { %v5115_v13 = vpop.f32.mrb[89].mxu0  ;;  %5451 = vmatmul.mubr.f32.gmra.mrb[194].mxu0 %v13296_v26  ;;  %v6014_v35 = vpop.f32.mrb[125].mxu1  ;;  %v13303_v26 = vld [vmem:[#allocation121_spill] sm:$0xff] }
 0x51f   : > { %7304 = vmatprep.mubr.msk.f32.mxu0 %vm971_vm9, %v13297_v22  ;;  %v13304_v22 = vld [vmem:[#allocation122_spill] sm:$0xff] }
 0x521   : > { %v11944_v50 = vpop.f32.mrb[90].mxu0  ;;  %v11946_v44 = vpop.f32.mrb[126].mxu1 }
 0x522   : > { %v5120_v15 = vpop.f32.mrb[91].mxu0  ;;  %5456 = vmatmul.mubr.f32.gmra.mrb[196].mxu0 %v13298_v52  ;;  %v6019_v30 = vpop.f32.mrb[127].mxu1 }
 0x523   : > { %7305 = vmatprep.mubr.msk.f32.mxu0 %vm971_vm9, %v13299_v51  ;;  %v13306_v51 = vld [vmem:[#allocation123_spill] sm:$0xff] }
 0x525   : > { %v11951_v63 = vpop.f32.mrb[92].mxu0  ;;  %v11953_v42 = vpop.f32.mrb[128].mxu1 }
 0x526   : > { %v5125_v31 = vpop.f32.mrb[93].mxu0  ;;  %5461 = vmatmul.mubr.f32.gmra.mrb[198].mxu0 %v13300_v21  ;;  %v6024_v41 = vpop.f32.mrb[129].mxu1  ;;  %v13307_v21 = vld [vmem:[#allocation124_spill] sm:$0xff] }
 0x527   : > { %7306 = vmatprep.mubr.msk.f32.mxu0 %vm971_vm9, %v13301_v20 }
 0x529   : > { %v11958_v23 = vpop.f32.mrb[94].mxu0  ;;  %v11960_v36 = vpop.f32.mrb[130].mxu1 }
 0x52a   : > { %13302 = vst [vmem:[#allocation104_spill] sm:$0xff] %v11960_v36  ;;  %v5130_v13 = vpop.f32.mrb[95].mxu0  ;;  %5466 = vmatmul.mubr.f32.gmra.mrb[200].mxu0 %v13303_v26  ;;  %v6029_v35 = vpop.f32.mrb[131].mxu1  ;;  %v13309_v26 = vld [vmem:[#allocation125_spill] sm:$0xff] }
 0x52b   : > { %7307 = vmatprep.mubr.msk.f32.mxu0 %vm971_vm9, %v13304_v22  ;;  %v13310_v22 = vld [vmem:[#allocation126_spill] sm:$0xff] }
 0x52d   : > { %v11965_v15 = vpop.f32.mrb[96].mxu0  ;;  %v11967_v52 = vpop.f32.mrb[132].mxu1 }
 0x52e   : > { %13305 = vst [vmem:[#allocation105_spill] sm:$0xff] %v11967_v52  ;;  %v5135_v30 = vpop.f32.mrb[97].mxu0  ;;  %5471 = vmatmul.mubr.f32.gmra.mrb[202].mxu0 %v13306_v51  ;;  %v6034_v31 = vpop.f32.mrb[133].mxu1 }
 0x52f   : > { %7308 = vmatprep.mubr.msk.f32.mxu0 %vm971_vm9, %v13307_v21  ;;  %v13313_v31 = vld [vmem:[#allocation127_spill] sm:$0xff]  ;;  %v13314_v21 = vld [vmem:[#allocation128_spill] sm:$0xff] }
 0x531   : > { %v11972_v41 = vpop.f32.mrb[98].mxu0  ;;  %v11974_v20 = vpop.f32.mrb[134].mxu1 }
 0x532   : > { %13308 = vst [vmem:[#allocation106_spill] sm:$0xff] %v11974_v20  ;;  %v5140_v13 = vpop.f32.mrb[99].mxu0  ;;  %5476 = vmatmul.mubr.f32.gmra.mrb[204].mxu0 %v13309_v26  ;;  %v6039_v35 = vpop.f32.mrb[135].mxu1 }
 0x533   : > { %7309 = vmatprep.mubr.msk.f32.mxu0 %vm971_vm9, %v13310_v22  ;;  %v13317_v35 = vld [vmem:[#allocation129_spill] sm:$0xff]  ;;  %v13318_v22 = vld [vmem:[#allocation130_spill] sm:$0xff] }
 0x535   : > { %v11979_v5 = vpop.f32.mrb[100].mxu0  ;;  %v11981_v30 = vpop.f32.mrb[136].mxu1 }
 0x536   : > { %13311 = vst [vmem:[#allocation107_spill] sm:$0xff] %v11979_v5  ;;  %13312 = vst [vmem:[#allocation108_spill] sm:$0xff] %v11981_v30  ;;  %v5145_v51 = vpop.f32.mrb[101].mxu0  ;;  %5481 = vmatmul.mubr.f32.gmra.mrb[206].mxu0 %v13313_v31  ;;  %v6044_v52 = vpop.f32.mrb[137].mxu1 }
 0x537   : > { %7310 = vmatprep.mubr.msk.f32.mxu0 %vm971_vm9, %v13314_v21  ;;  %v13321_v52 = vld [vmem:[#allocation131_spill] sm:$0xff]  ;;  %v13322_v21 = vld [vmem:[#allocation132_spill] sm:$0xff] }
 0x539   : > { %v11986_v36 = vpop.f32.mrb[102].mxu0  ;;  %v11988_v13 = vpop.f32.mrb[138].mxu1 }
 0x53a   : > { %13315 = vst [vmem:[#allocation109_spill] sm:$0xff] %v11986_v36  ;;  %13316 = vst [vmem:[#allocation110_spill] sm:$0xff] %v11988_v13  ;;  %v5150_v26 = vpop.f32.mrb[103].mxu0  ;;  %5486 = vmatmul.mubr.f32.gmra.mrb[208].mxu0 %v13317_v35  ;;  %v6049_v20 = vpop.f32.mrb[139].mxu1 }
 0x53b   : > { %7311 = vmatprep.mubr.msk.f32.mxu0 %vm971_vm9, %v13318_v22  ;;  %v13325_v20 = vld [vmem:[#allocation133_spill] sm:$0xff]  ;;  %v13326_v22 = vld [vmem:[#allocation134_spill] sm:$0xff] }
 0x53d   : > { %v11993_v5 = vpop.f32.mrb[104].mxu0  ;;  %v11995_v51 = vpop.f32.mrb[140].mxu1 }
 0x53e   : > { %13319 = vst [vmem:[#allocation111_spill] sm:$0xff] %v11993_v5  ;;  %13320 = vst [vmem:[#allocation112_spill] sm:$0xff] %v11995_v51  ;;  %v5155_v31 = vpop.f32.mrb[105].mxu0  ;;  %5491 = vmatmul.mubr.f32.gmra.mrb[210].mxu0 %v13321_v52  ;;  %v6054_v30 = vpop.f32.mrb[141].mxu1 }
 0x53f   : > { %7312 = vmatprep.mubr.msk.f32.mxu0 %vm971_vm9, %v13322_v21  ;;  %v13329_v30 = vld [vmem:[#allocation135_spill] sm:$0xff]  ;;  %v13330_v21 = vld [vmem:[#allocation136_spill] sm:$0xff] }
 0x541   : > { %v12000_v36 = vpop.f32.mrb[106].mxu0  ;;  %v12002_v26 = vpop.f32.mrb[142].mxu1 }
 0x542   : > { %13323 = vst [vmem:[#allocation113_spill] sm:$0xff] %v12000_v36  ;;  %13324 = vst [vmem:[#allocation114_spill] sm:$0xff] %v12002_v26  ;;  %v5160_v35 = vpop.f32.mrb[107].mxu0  ;;  %5496 = vmatmul.mubr.f32.gmra.mrb[212].mxu0 %v13325_v20  ;;  %v6059_v13 = vpop.f32.mrb[143].mxu1 }
 0x543   : > { %7313 = vmatprep.mubr.msk.f32.mxu0 %vm971_vm9, %v13326_v22  ;;  %v13333_v13 = vld [vmem:[#allocation137_spill] sm:$0xff]  ;;  %v13334_v22 = vld [vmem:[#allocation138_spill] sm:$0xff] }
 0x545   : > { %v12007_v5 = vpop.f32.mrb[108].mxu0  ;;  %v12009_v31 = vpop.f32.mrb[144].mxu1 }
 0x546   : > { %13327 = vst [vmem:[#allocation115_spill] sm:$0xff] %v12007_v5  ;;  %13328 = vst [vmem:[#allocation116_spill] sm:$0xff] %v12009_v31  ;;  %v5165_v52 = vpop.f32.mrb[109].mxu0  ;;  %5501 = vmatmul.mubr.f32.gmra.mrb[214].mxu0 %v13329_v30  ;;  %v6064_v51 = vpop.f32.mrb[145].mxu1 }
 0x547   : > { %7314 = vmatprep.mubr.msk.f32.mxu0 %vm971_vm9, %v13330_v21  ;;  %v13337_v51 = vld [vmem:[#allocation139_spill] sm:$0xff]  ;;  %v13338_v21 = vld [vmem:[#allocation140_spill] sm:$0xff] }
 0x549   : > { %v12014_v36 = vpop.f32.mrb[110].mxu0  ;;  %v12016_v35 = vpop.f32.mrb[146].mxu1 }
 0x54a   : > { %13331 = vst [vmem:[#allocation117_spill] sm:$0xff] %v12014_v36  ;;  %13332 = vst [vmem:[#allocation118_spill] sm:$0xff] %v12016_v35  ;;  %v5170_v20 = vpop.f32.mrb[111].mxu0  ;;  %5506 = vmatmul.mubr.f32.gmra.mrb[216].mxu0 %v13333_v13  ;;  %v6069_v26 = vpop.f32.mrb[147].mxu1 }
 0x54b   : > { %7315 = vmatprep.mubr.msk.f32.mxu0 %vm971_vm9, %v13334_v22  ;;  %v13341_v26 = vld [vmem:[#allocation141_spill] sm:$0xff]  ;;  %v13342_v22 = vld [vmem:[#allocation142_spill] sm:$0xff] }
 0x54d   : > { %v12021_v5 = vpop.f32.mrb[112].mxu0  ;;  %v12023_v52 = vpop.f32.mrb[148].mxu1 }
 0x54e   : > { %13335 = vst [vmem:[#allocation119_spill] sm:$0xff] %v12021_v5  ;;  %13336 = vst [vmem:[#allocation120_spill] sm:$0xff] %v12023_v52  ;;  %v5175_v30 = vpop.f32.mrb[113].mxu0  ;;  %5511 = vmatmul.mubr.f32.gmra.mrb[218].mxu0 %v13337_v51  ;;  %v6074_v31 = vpop.f32.mrb[149].mxu1 }
 0x54f   : > { %7316 = vmatprep.mubr.msk.f32.mxu0 %vm971_vm9, %v13338_v21  ;;  %v13345_v31 = vld [vmem:[#allocation143_spill] sm:$0xff]  ;;  %v13346_v21 = vld [vmem:[#allocation144_spill] sm:$0xff] }
 0x551   : > { %v12028_v36 = vpop.f32.mrb[114].mxu0  ;;  %v12030_v20 = vpop.f32.mrb[150].mxu1 }
 0x552   : > { %13339 = vst [vmem:[#allocation121_spill] sm:$0xff] %v12028_v36  ;;  %13340 = vst [vmem:[#allocation122_spill] sm:$0xff] %v12030_v20  ;;  %v5180_v13 = vpop.f32.mrb[115].mxu0  ;;  %5516 = vmatmul.mubr.f32.gmra.mrb[220].mxu0 %v13341_v26  ;;  %v6079_v35 = vpop.f32.mrb[151].mxu1 }
 0x553   : > { %7317 = vmatprep.mubr.msk.f32.mxu0 %vm971_vm9, %v13342_v22  ;;  %v13349_v35 = vld [vmem:[#allocation145_spill] sm:$0xff]  ;;  %v13350_v22 = vld [vmem:[#allocation146_spill] sm:$0xff] }
 0x555   : > { %v12035_v5 = vpop.f32.mrb[116].mxu0  ;;  %v12037_v30 = vpop.f32.mrb[152].mxu1 }
 0x556   : > { %13343 = vst [vmem:[#allocation123_spill] sm:$0xff] %v12035_v5  ;;  %13344 = vst [vmem:[#allocation124_spill] sm:$0xff] %v12037_v30  ;;  %v5185_v51 = vpop.f32.mrb[117].mxu0  ;;  %5521 = vmatmul.mubr.f32.gmra.mrb[222].mxu0 %v13345_v31  ;;  %v6084_v52 = vpop.f32.mrb[153].mxu1 }
 0x557   : > { %7318 = vmatprep.mubr.msk.f32.mxu0 %vm971_vm9, %v13346_v21  ;;  %v13351_v52 = vld [vmem:[#allocation147_spill] sm:$0xff]  ;;  %v13352_v21 = vld [vmem:[#allocation148_spill] sm:$0xff] }
 0x559   : > { %v12042_v36 = vpop.f32.mrb[118].mxu0  ;;  %v12044_v13 = vpop.f32.mrb[154].mxu1 }
 0x55a   : > { %13347 = vst [vmem:[#allocation125_spill] sm:$0xff] %v12042_v36  ;;  %13348 = vst [vmem:[#allocation126_spill] sm:$0xff] %v12044_v13  ;;  %v5190_v26 = vpop.f32.mrb[119].mxu0  ;;  %5526 = vmatmul.mubr.f32.gmra.mrb[224].mxu0 %v13349_v35  ;;  %v6089_v20 = vpop.f32.mrb[155].mxu1 }
 0x55b   : > { %7319 = vmatprep.mubr.msk.f32.mxu0 %vm971_vm9, %v13350_v22  ;;  %v13353_v22 = vld [vmem:[#allocation149_spill] sm:$0xff] }
 0x55d   : > { %v12049_v5 = vpop.f32.mrb[120].mxu0  ;;  %v12051_v51 = vpop.f32.mrb[156].mxu1 }
 0x55e   : > { %v5195_v31 = vpop.f32.mrb[121].mxu0  ;;  %5531 = vmatmul.mubr.f32.gmra.mrb[226].mxu0 %v13351_v52  ;;  %v6094_v30 = vpop.f32.mrb[157].mxu1 }
 0x55f   : > { %7320 = vmatprep.mubr.msk.f32.mxu0 %vm971_vm9, %v13352_v21 }
 0x561   : > { %v12056_v36 = vpop.f32.mrb[122].mxu0  ;;  %v12058_v26 = vpop.f32.mrb[158].mxu1 }
 0x562   : > { %v5200_v35 = vpop.f32.mrb[123].mxu0  ;;  %5536 = vmatmul.mubr.f32.gmra.mrb[228].mxu0 %v11687_v4  ;;  %v6099_v20 = vpop.f32.mrb[159].mxu1 }
 0x563   : > { %7321 = vmatprep.mubr.msk.f32.mxu0 %vm971_vm9, %v13353_v22 }
 0x565   : > { %v12063_v13 = vpop.f32.mrb[124].mxu0  ;;  %v12065_v31 = vpop.f32.mrb[160].mxu1 }
 0x566   : > { %13354 = vst [vmem:[#allocation127_spill] sm:$0xff] %v12065_v31  ;;  %v5205_v52 = vpop.f32.mrb[125].mxu0  ;;  %5541 = vmatmul.mubr.f32.gmra.mrb[230].mxu0 %v11697_v39  ;;  %v6104_v30 = vpop.f32.mrb[161].mxu1 }
 0x567   : > { %7322 = vmatprep.mubr.msk.f32.mxu0 %vm971_vm9, %v11701_v43  ;;  %v13357_v43 = vld [vmem:[#allocation150_spill] sm:$0xff] }
 0x569   : > { %v12070_v21 = vpop.f32.mrb[126].mxu0  ;;  %v12072_v35 = vpop.f32.mrb[162].mxu1 }
 0x56a   : > { %13355 = vst [vmem:[#allocation128_spill] sm:$0xff] %v12072_v35  ;;  %v5210_v4 = vpop.f32.mrb[127].mxu0  ;;  %5546 = vmatmul.mubr.f32.gmra.mrb[232].mxu0 %v11707_v12  ;;  %v6109_v20 = vpop.f32.mrb[163].mxu1 }
 0x56b   : > { %7323 = vmatprep.mubr.msk.f32.mxu0 %vm971_vm9, %v11711_v48 }
 0x56d   : > { %v12077_v22 = vpop.f32.mrb[128].mxu0  ;;  %v12079_v52 = vpop.f32.mrb[164].mxu1 }
 0x56e   : > { %13356 = vst [vmem:[#allocation129_spill] sm:$0xff] %v12079_v52  ;;  %v5215_v39 = vpop.f32.mrb[129].mxu0  ;;  %5551 = vmatmul.mubr.f32.gmra.mrb[234].mxu0 %v11717_v59  ;;  %v6114_v30 = vpop.f32.mrb[165].mxu1 }
 0x56f   : > { %7324 = vmatprep.mubr.msk.f32.mxu0 %vm971_vm9, %v13357_v43  ;;  %v5567_v43 = vld [vmem:[#allocation3 + $0x78] sm:$0xff] }
 0x571   : > { %v12084_v31 = vpop.f32.mrb[130].mxu0  ;;  %v12086_v4 = vpop.f32.mrb[166].mxu1 }
 0x572   : > { %13358 = vst [vmem:[#allocation130_spill] sm:$0xff] %v12086_v4  ;;  %v5220_v12 = vpop.f32.mrb[131].mxu0  ;;  %5556 = vmatmul.mubr.f32.gmra.mrb[236].mxu0 %v11727_v19  ;;  %v6119_v20 = vpop.f32.mrb[167].mxu1  ;;  %v5569_v19 = vld [vmem:[#allocation3 + $0x88] sm:$0xff] }
 0x573   : > { %7325 = vmatprep.mubr.msk.f32.mxu0 %vm971_vm9, %v11731_v32  ;;  %v5566_v12 = vld [vmem:[#allocation3 + $0x70] sm:$0xff]  ;;  %v5568_v20 = vld [vmem:[#allocation3 + $0x80] sm:$0xff] }
 0x575   : > { %v12091_v48 = vpop.f32.mrb[132].mxu0  ;;  %v12093_v39 = vpop.f32.mrb[168].mxu1 }
 0x576   : > { %13359 = vst [vmem:[#allocation131_spill] sm:$0xff] %v12093_v39  ;;  %v5225_v59 = vpop.f32.mrb[133].mxu0  ;;  %5561 = vmatmul.mubr.f32.gmra.mrb[238].mxu0 %v11737_v8  ;;  %v6124_v30 = vpop.f32.mrb[169].mxu1  ;;  %v5573_v39 = vld [vmem:[#allocation3 + $0xa8] sm:$0xff] }
 0x577   : > { %7350 = vmatprep.mubr.msk.f32.mxu0 %vm971_vm9, %v5567_v43  ;;  %v5571_v59 = vld [vmem:[#allocation3 + $0x98] sm:$0xff]  ;;  %v5570_v30 = vld [vmem:[#allocation3 + $0x90] sm:$0xff] }
 0x579   : > { %v12097_v52 = vpop.f32.mrb[134].mxu0 }
 0x57a   : > { %13360 = vst [vmem:[#allocation132_spill] sm:$0xff] %v12097_v52  ;;  %v5230_v4 = vpop.f32.mrb[135].mxu0  ;;  %5896 = vmatmul.mubr.f32.vlgmr.msra.gmra.mrb[240].mxu0 %v5566_v12  ;;  %v5572_v12 = vld [vmem:[#allocation3 + $0xa0] sm:$0xff] }
 0x57b   : > { %7351 = vmatprep.mubr.msk.f32.mxu0 %vm971_vm9, %v5569_v19  ;;  %v5580_v52 = vld [vmem:[#allocation3 + $0xe0] sm:$0xff] }
 0x57d   : > { %v12100_v32 = vpop.f32.mrb[136].mxu0 }
 0x57e   : > { %13361 = vst [vmem:[#allocation133_spill] sm:$0xff] %v12100_v32  ;;  %v5235_v35 = vpop.f32.mrb[137].mxu0  ;;  %5901 = vmatmul.mubr.f32.gmra.mrb[242].mxu0 %v5568_v20  ;;  %v5575_v32 = vld [vmem:[#allocation3 + $0xb8] sm:$0xff]  ;;  %v5574_v20 = vld [vmem:[#allocation3 + $0xb0] sm:$0xff] }
 0x57f   : > { %7352 = vmatprep.mubr.msk.f32.mxu0 %vm971_vm9, %v5571_v59 }
 0x581   : > { %v12103_v8 = vpop.f32.mrb[138].mxu0 }
 0x582   : > { %13362 = vst [vmem:[#allocation134_spill] sm:$0xff] %v12103_v8  ;;  %v5240_v43 = vpop.f32.mrb[139].mxu0  ;;  %5906 = vmatmul.mubr.f32.gmra.mrb[244].mxu0 %v5570_v30  ;;  %v5577_v8 = vld [vmem:[#allocation3 + $0xc8] sm:$0xff] }
 0x583   : > { %7353 = vmatprep.mubr.msk.f32.mxu0 %vm971_vm9, %v5573_v39  ;;  %v5576_v43 = vld [vmem:[#allocation3 + $0xc0] sm:$0xff] }
 0x585   : > { %v12106_v4 = vpop.f32.mrb[140].mxu0 }
 0x586   : > { %13363 = vst [vmem:[#allocation135_spill] sm:$0xff] %v12106_v4  ;;  %v5245_v19 = vpop.f32.mrb[141].mxu0  ;;  %5911 = vmatmul.mubr.f32.gmra.mrb[246].mxu0 %v5572_v12 }
 0x587   : > { %7354 = vmatprep.mubr.msk.f32.mxu0 %vm971_vm9, %v5575_v32  ;;  %v5579_v19 = vld [vmem:[#allocation3 + $0xd8] sm:$0xff]  ;;  %v5578_v32 = vld [vmem:[#allocation3 + $0xd0] sm:$0xff] }
 0x589   : > { %v12109_v35 = vpop.f32.mrb[142].mxu0 }
 0x58a   : > { %13364 = vst [vmem:[#allocation136_spill] sm:$0xff] %v12109_v35  ;;  %v5250_v59 = vpop.f32.mrb[143].mxu0  ;;  %5916 = vmatmul.mubr.f32.gmra.mrb[248].mxu0 %v5574_v20  ;;  %v5581_v20 = vld [vmem:[#allocation3 + $0xe8] sm:$0xff] }
 0x58b   : > { %7355 = vmatprep.mubr.msk.f32.mxu0 %vm971_vm9, %v5577_v8 }
 0x58d   : > { %v5327_v30 = vpop.f32.mrb[144].mxu0 }
 0x58e   : > { %v12113_v39 = vadd.f32 %v5327_v30, %v11791_v1  ;;  %v5329_v4 = vpop.f32.mrb[145].mxu0  ;;  %5921 = vmatmul.mubr.f32.gmra.mrb[250].mxu0 %v5576_v43  ;;  %v5583_v30 = vld [vmem:[#allocation3 + $0xf8] sm:$0xff] }
 0x58f   : > { %7356 = vmatprep.mubr.msk.f32.mxu0 %vm971_vm9, %v5579_v19  ;;  %v5582_v19 = vld [vmem:[#allocation3 + $0xf0] sm:$0xff] }
 0x591   : > { %v5332_v12 = vpop.f32.mrb[146].mxu0 }
 0x592   : > { %v12117_v35 = vadd.f32 %v5332_v12, %v11798_v3  ;;  %v5334_v59 = vpop.f32.mrb[147].mxu0  ;;  %5926 = vmatmul.mubr.f32.gmra.mrb[252].mxu0 %v5578_v32 }
 0x593   : > { %7357 = vmatprep.mubr.msk.f32.mxu0 %vm971_vm9, %v5581_v20 }
 0x594   : > { %13365 = vst [vmem:[#allocation137_spill] sm:$0xff] %v12117_v35 }
 0x595   : > { %v5337_v8 = vpop.f32.mrb[148].mxu0 }
 0x596   : > { %v12121_v1 = vadd.f32 %v5337_v8, %v11805_v37  ;;  %v5339_v4 = vpop.f32.mrb[149].mxu0  ;;  %5931 = vmatmul.mubr.f32.gmra.mrb[254].mxu0 %v5580_v52 }
 0x597   : > { %7358 = vmatprep.mubr.msk.f32.mxu0 %vm971_vm9, %v5583_v30 }
 0x598   : > { %13366 = vst [vmem:[#allocation138_spill] sm:$0xff] %v12121_v1 }
 0x599   : > { %v5342_v43 = vpop.f32.mrb[150].mxu0 }
 0x59a   : > { %v12125_v3 = vadd.f32 %v5342_v43, %v11812_v33  ;;  %v5344_v12 = vpop.f32.mrb[151].mxu0  ;;  %5936 = vmatmul.mubr.f32.gmra.mrb[0].mxu0 %v5582_v19 }
 0x59d   : > { %v5347_v32 = vpop.f32.mrb[152].mxu0 }
 0x59e   : > { %v12128_v59 = vadd.f32 %v5347_v32, %v11819_v17  ;;  %v5349_v20 = vpop.f32.mrb[153].mxu0 }
 0x5a1   : > { %v5352_v35 = vpop.f32.mrb[154].mxu0 }
 0x5a2   : > { %v12131_v37 = vadd.f32 %v5352_v35, %v11826_v0  ;;  %v5354_v52 = vpop.f32.mrb[155].mxu0 }
 0x5a5   : > { %v5357_v8 = vpop.f32.mrb[156].mxu0 }
 0x5a6   : > { %v12134_v4 = vadd.f32 %v5357_v8, %v11833_v55  ;;  %v5359_v30 = vpop.f32.mrb[157].mxu0  ;;  %v12146_v55 = vld [vmem:[%s12898_s8] ss:$0 sm:$0xff] }
 0x5a9   : > { %v5362_v1 = vpop.f32.mrb[158].mxu0 }
 0x5aa   : > { %v12137_v33 = vadd.f32 %v5362_v1, %v11842_v2  ;;  %v5364_v43 = vpop.f32.mrb[159].mxu0  ;;  %v12152_v2 = vld [vmem:[%s12896_s6] ss:$0 sm:$0xff] }
 0x5ac   : > { %13367 = vst [vmem:[#allocation139_spill] sm:$0xff] %v12137_v33 }
 0x5ad   : > { %v5367_v19 = vpop.f32.mrb[160].mxu0 }
 0x5ae   : > { %v12140_v17 = vadd.f32 %v5367_v19, %v11849_v62  ;;  %v5369_v12 = vpop.f32.mrb[161].mxu0  ;;  %v13369_v62 = vld [vmem:[#allocation64_spill] sm:$0xff] }
 0x5af   : > { %v2296_v52 = vadd.f32 %v13369_v62, %v12152_v2 }
 0x5b0   : > { %13368 = vst [vmem:[#allocation140_spill] sm:$0xff] %v12140_v17 }
 0x5b1   : > { %v5372_v32 = vpop.f32.mrb[162].mxu0 }
 0x5b2   : > { %v5373_v0 = vadd.f32 %v5372_v32, %v11856_v49  ;;  %v5374_v35 = vpop.f32.mrb[163].mxu0 }
 0x5b4   : > { %v6145_v20 = vadd.f32 %v11835_v34, %v5373_v0  ;;  %v13370_v34 = vld [vmem:[#allocation67_spill] sm:$0xff] }
 0x5b5   : > { %v5377_v1 = vpop.f32.mrb[164].mxu0  ;;  %v2301_v32 = vadd.f32 %v12152_v2, %v13370_v34 }
 0x5b6   : > { %v6200_v8 = vadd.f32 %v12146_v55, %v6145_v20  ;;  %v5378_v49 = vadd.f32 %v5377_v1, %v11864_v60  ;;  %v5379_v30 = vpop.f32.mrb[165].mxu0  ;;  %v13371_v60 = vld [vmem:[#allocation66_spill] sm:$0xff] }
 0x5b7   : > { %v2306_v1 = vadd.f32 %v13371_v60, %v12152_v2 }
 0x5b8   : > { %v12158_v43 = vadd.f32 %v6200_v8, %v2296_v52  ;;  %v6146_v19 = vadd.f32 %v11844_v45, %v5378_v49 }
 0x5b9   : > { %v5382_v12 = vpop.f32.mrb[166].mxu0 }
 0x5ba   : > { %v6201_v0 = vadd.f32 %v12146_v55, %v6146_v19  ;;  %v5383_v35 = vadd.f32 %v5382_v12, %v11873_v47  ;;  %v5384_v17 = vpop.f32.mrb[167].mxu0  ;;  %v13372_v47 = vld [vmem:[#allocation69_spill] sm:$0xff] }
 0x5bb   : > { %v2311_v17 = vadd.f32 %v12152_v2, %v13372_v47 }
 0x5bc   : > { %v12165_v33 = vadd.f32 %v6201_v0, %v2301_v32  ;;  %v6147_v20 = vadd.f32 %v11851_v38, %v5383_v35 }
 0x5bd   : > { %v5387_v62 = vpop.f32.mrb[168].mxu0 }
 0x5be   : > { %v6202_v52 = vadd.f32 %v12146_v55, %v6147_v20  ;;  %v5388_v45 = vadd.f32 %v5387_v62, %v11881_v54  ;;  %v5389_v8 = vpop.f32.mrb[169].mxu0  ;;  %v13373_v54 = vld [vmem:[#allocation68_spill] sm:$0xff] }
 0x5bf   : > { %v2316_v20 = vadd.f32 %v13373_v54, %v12152_v2  ;;  %v13374_v8 = vld [vmem:[#allocation71_spill] sm:$0xff] }
 0x5c0   : > { %v12172_v49 = vadd.f32 %v6202_v52, %v2306_v1  ;;  %v6148_v30 = vadd.f32 %v11858_v57, %v5388_v45 }
 0x5c1   : > { %v5392_v19 = vpop.f32.mrb[170].mxu0 }
 0x5c2   : > { %v6203_v12 = vadd.f32 %v12146_v55, %v6148_v30  ;;  %v5393_v38 = vadd.f32 %v5392_v19, %v11888_v14  ;;  %v5394_v34 = vpop.f32.mrb[171].mxu0  ;;  %v12189_v14 = vpop.f32.mrb[170].mxu1  ;;  %v2321_v30 = vadd.f32 %v12152_v2, %v13374_v8 }
 0x5c4   : > { %v12179_v32 = vadd.f32 %v6203_v12, %v2311_v17  ;;  %v6149_v0 = vadd.f32 %v11866_v7, %v5393_v38  ;;  %v6129_v17 = vpop.f32.mrb[171].mxu1 }
 0x5c5   : > { %v5397_v35 = vpop.f32.mrb[172].mxu0  ;;  %v12198_v34 = vpop.f32.mrb[172].mxu1 }
 0x5c6   : > { %v6204_v62 = vadd.f32 %v12146_v55, %v6149_v0  ;;  %v5398_v57 = vadd.f32 %v5397_v35, %v11895_v56  ;;  %v5399_v60 = vpop.f32.mrb[173].mxu0 }
 0x5c8   : > { %v12186_v1 = vadd.f32 %v6204_v62, %v2316_v20  ;;  %v6150_v52 = vadd.f32 %v11875_v18, %v5398_v57  ;;  %v13375_v18 = vld [vmem:[#allocation70_spill] sm:$0xff]  ;;  %v6134_v62 = vpop.f32.mrb[173].mxu1 }
 0x5c9   : > { %v5402_v45 = vpop.f32.mrb[174].mxu0  ;;  %v2326_v0 = vadd.f32 %v13375_v18, %v12152_v2 }
 0x5ca   : > { %v6205_v7 = vadd.f32 %v12146_v55, %v6150_v52  ;;  %v5403_v19 = vadd.f32 %v5402_v45, %v11902_v61  ;;  %v5404_v47 = vpop.f32.mrb[175].mxu0  ;;  %v13376_v52 = vld [vmem:[#allocation73_spill] sm:$0xff] }
 0x5cb   : > { %v13377_v47 = vld [vmem:[#allocation72_spill] sm:$0xff] }
 0x5cc   : > { %v12195_v12 = vadd.f32 %v6205_v7, %v2321_v30  ;;  %v6151_v56 = vadd.f32 %v11883_v28, %v5403_v19  ;;  %v2331_v28 = vadd.f32 %v12152_v2, %v13376_v52  ;;  %v2336_v17 = vadd.f32 %v13377_v47, %v12152_v2 }
 0x5cd   : > { %v5407_v38 = vpop.f32.mrb[176].mxu0 }
 0x5ce   : > { %v6206_v35 = vadd.f32 %v12146_v55, %v6151_v56  ;;  %v5408_v54 = vadd.f32 %v5407_v38, %v11909_v53  ;;  %v5409_v20 = vpop.f32.mrb[177].mxu0 }
 0x5d0   : > { %v12204_v57 = vadd.f32 %v6206_v35, %v2326_v0  ;;  %v6152_v61 = vadd.f32 %v11890_v16, %v5408_v54 }
 0x5d1   : > { %v5412_v60 = vpop.f32.mrb[178].mxu0 }
 0x5d2   : > { %v6207_v45 = vadd.f32 %v12146_v55, %v6152_v61  ;;  %v5413_v8 = vadd.f32 %v5412_v60, %v11916_v9  ;;  %v5414_v30 = vpop.f32.mrb[179].mxu0  ;;  %v13378_v9 = vld [vmem:[#allocation75_spill] sm:$0xff] }
 0x5d3   : > { %v2341_v54 = vadd.f32 %v12152_v2, %v13378_v9 }
 0x5d4   : > { %v12211_v7 = vadd.f32 %v6207_v45, %v2331_v28  ;;  %v6153_v19 = vadd.f32 %v11897_v24, %v5413_v8 }
 0x5d5   : > { %v5417_v53 = vpop.f32.mrb[180].mxu0 }
 0x5d6   : > { %v6208_v56 = vadd.f32 %v12146_v55, %v6153_v19  ;;  %v5418_v16 = vadd.f32 %v5417_v53, %v11923_v46  ;;  %v5419_v38 = vpop.f32.mrb[181].mxu0  ;;  %v13379_v46 = vld [vmem:[#allocation74_spill] sm:$0xff] }
 0x5d7   : > { %v2346_v28 = vadd.f32 %v13379_v46, %v12152_v2 }
 0x5d8   : > { %v12218_v18 = vadd.f32 %v6208_v56, %v2336_v17  ;;  %v6154_v0 = vadd.f32 %v11904_v11, %v5418_v16 }
 0x5d9   : > { %v5422_v35 = vpop.f32.mrb[182].mxu0 }
 0x5da   : > { %v6209_v20 = vadd.f32 %v12146_v55, %v6154_v0  ;;  %v5423_v24 = vadd.f32 %v5422_v35, %v11930_v25  ;;  %v5424_v62 = vpop.f32.mrb[183].mxu0  ;;  %v13380_v25 = vld [vmem:[#allocation77_spill] sm:$0xff] }
 0x5db   : > { %v2351_v47 = vadd.f32 %v12152_v2, %v13380_v25 }
 0x5dc   : > { %v12225_v61 = vadd.f32 %v6209_v20, %v2341_v54  ;;  %v6155_v60 = vadd.f32 %v11911_v6, %v5423_v24 }
 0x5dd   : > { %v5427_v52 = vpop.f32.mrb[184].mxu0 }
 0x5de   : > { %v6210_v45 = vadd.f32 %v12146_v55, %v6155_v60  ;;  %v5428_v11 = vadd.f32 %v5427_v52, %v11937_v27  ;;  %v5429_v8 = vpop.f32.mrb[185].mxu0  ;;  %v13381_v27 = vld [vmem:[#allocation76_spill] sm:$0xff] }
 0x5df   : > { %v2356_v35 = vadd.f32 %v13381_v27, %v12152_v2 }
 0x5e0   : > { %v12232_v30 = vadd.f32 %v6210_v45, %v2346_v28  ;;  %v6156_v19 = vadd.f32 %v11918_v58, %v5428_v11 }
 0x5e1   : > { %v5432_v53 = vpop.f32.mrb[186].mxu0 }
 0x5e2   : > { %v6211_v17 = vadd.f32 %v12146_v55, %v6156_v19  ;;  %v5433_v6 = vadd.f32 %v5432_v53, %v11944_v50  ;;  %v5434_v56 = vpop.f32.mrb[187].mxu0  ;;  %v13382_v50 = vld [vmem:[#allocation79_spill] sm:$0xff] }
 0x5e3   : > { %v2361_v60 = vadd.f32 %v12152_v2, %v13382_v50 }
 0x5e4   : > { %v12239_v16 = vadd.f32 %v6211_v17, %v2351_v47  ;;  %v6157_v38 = vadd.f32 %v11925_v40, %v5433_v6 }
 0x5e5   : > { %v5437_v0 = vpop.f32.mrb[188].mxu0 }
 0x5e6   : > { %v6212_v9 = vadd.f32 %v12146_v55, %v6157_v38  ;;  %v5438_v58 = vadd.f32 %v5437_v0, %v11951_v63  ;;  %v5439_v54 = vpop.f32.mrb[189].mxu0  ;;  %v13383_v63 = vld [vmem:[#allocation78_spill] sm:$0xff] }
 0x5e7   : > { %v2366_v8 = vadd.f32 %v13383_v63, %v12152_v2 }
 0x5e8   : > { %v12246_v20 = vadd.f32 %v6212_v9, %v2356_v35  ;;  %v6158_v24 = vadd.f32 %v11932_v10, %v5438_v58 }
 0x5e9   : > { %v5442_v62 = vpop.f32.mrb[190].mxu0 }
 0x5ea   : > { %v6213_v52 = vadd.f32 %v12146_v55, %v6158_v24  ;;  %v5443_v40 = vadd.f32 %v5442_v62, %v11958_v23  ;;  %v5444_v46 = vpop.f32.mrb[191].mxu0  ;;  %v13384_v23 = vld [vmem:[#allocation81_spill] sm:$0xff] }
 0x5eb   : > { %v2371_v6 = vadd.f32 %v12152_v2, %v13384_v23  ;;  %v13392_v23 = vld [vmem:[#allocation33_spill] sm:$0xff] }
 0x5ec   : > { %v12253_v28 = vadd.f32 %v6213_v52, %v2361_v60  ;;  %v6159_v45 = vadd.f32 %v11939_v29, %v5443_v40  ;;  %v13387_v60 = vld [vmem:[#allocation104_spill] sm:$0xff] }
 0x5ed   : > { %v5447_v11 = vpop.f32.mrb[192].mxu0  ;;  %v13388_v40 = vld [vmem:[#allocation32_spill] sm:$0xff] }
 0x5ee   : > { %v6214_v19 = vadd.f32 %v12146_v55, %v6159_v45  ;;  %v5448_v10 = vadd.f32 %v5447_v11, %v11965_v15  ;;  %v5449_v53 = vpop.f32.mrb[193].mxu0  ;;  %v13385_v15 = vld [vmem:[#allocation80_spill] sm:$0xff]  ;;  %v13389_v45 = vld [vmem:[#allocation83_spill] sm:$0xff] }
 0x5ef   : > { %v2376_v9 = vadd.f32 %v13385_v15, %v12152_v2 }
 0x5f0   : > { %v12260_v25 = vadd.f32 %v6214_v19, %v2366_v8  ;;  %v6160_v47 = vadd.f32 %v11946_v44, %v5448_v10  ;;  %v13386_v44 = vld [vmem:[#allocation107_spill] sm:$0xff]  ;;  %v13390_v8 = vld [vmem:[#allocation109_spill] sm:$0xff] }
 0x5f1   : > { %v5452_v17 = vpop.f32.mrb[194].mxu0 }
 0x5f2   : > { %v6215_v56 = vadd.f32 %v12146_v55, %v6160_v47  ;;  %v5453_v29 = vadd.f32 %v5452_v17, %v11972_v41  ;;  %v5454_v38 = vpop.f32.mrb[195].mxu0  ;;  %v13391_v47 = vld [vmem:[#allocation105_spill] sm:$0xff] }
 0x5f4   : > { %v6263_v0 = vadd.f32 %v6215_v56, %v2371_v6  ;;  %v6161_v27 = vadd.f32 %v11953_v42, %v5453_v29  ;;  %v2381_v42 = vadd.f32 %v12152_v2, %v13389_v45  ;;  %v13393_v29 = vld [vmem:[#allocation82_spill] sm:$0xff]  ;;  %v13398_v45 = vld [vmem:[#allocation113_spill] sm:$0xff] }
 0x5f5   : > { %v5457_v35 = vpop.f32.mrb[196].mxu0  ;;  %v2386_v38 = vadd.f32 %v13393_v29, %v12152_v2 }
 0x5f6   : > { %v6311_v58 = vmax.f32 %v6263_v0, 0.0  ;;  %v6216_v54 = vadd.f32 %v12146_v55, %v6161_v27  ;;  %v5458_v24 = vadd.f32 %v5457_v35, %v13386_v44  ;;  %v5459_v62 = vpop.f32.mrb[197].mxu0  ;;  %v13394_v35 = vld [vmem:[#allocation111_spill] sm:$0xff] }
 0x5f8   : > { %v6264_v50 = vadd.f32 %v6216_v54, %v2376_v9  ;;  %v6162_v52 = vadd.f32 %v13387_v60, %v5458_v24  ;;  %v12274_v46 = vmul.f32 %v13388_v40, %v6311_v58  ;;  %v13395_v54 = vld [vmem:[#allocation106_spill] sm:$0xff]  ;;  %v13397_v60 = vld [vmem:[#allocation85_spill] sm:$0xff] }
 0x5f9   : > { %v5462_v41 = vpop.f32.mrb[198].mxu0  ;;  %v13396_v24 = vld [vmem:[#allocation34_spill] sm:$0xff] }
 0x5fa   : > { %v6312_v11 = vmax.f32 %v6264_v50, 0.0  ;;  %v6217_v63 = vadd.f32 %v12146_v55, %v6162_v52  ;;  %v5463_v19 = vadd.f32 %v5462_v41, %v13390_v8  ;;  %v5464_v10 = vpop.f32.mrb[199].mxu0  ;;  %6407 = vrot.lane.b32.xlu0 %v12274_v46, %s8554_s20  ;;  %v2391_v52 = vadd.f32 %v12152_v2, %v13397_v60  ;;  %v13399_v8 = vld [vmem:[#allocation108_spill] sm:$0xff] }
 0x5fb   : > { %v13400_v10 = vld [vmem:[#allocation35_spill] sm:$0xff] }
 0x5fc   : > { %v6265_v53 = vadd.f32 %v6217_v63, %v2381_v42  ;;  %v6163_v17 = vadd.f32 %v13391_v47, %v5463_v19  ;;  %v12284_v6 = vmul.f32 %v13392_v23, %v6312_v11 }
 0x5fd   : > { %v5467_v56 = vpop.f32.mrb[200].mxu0 }
 0x5fe   : > { %v6313_v0 = vmax.f32 %v6265_v53, 0.0  ;;  %v6218_v27 = vadd.f32 %v12146_v55, %v6163_v17  ;;  %v5468_v15 = vadd.f32 %v5467_v56, %v13394_v35  ;;  %v5469_v9 = vpop.f32.mrb[201].mxu0  ;;  %6409 = vrot.lane.b32.xlu1 %v12284_v6, %s8554_s20  ;;  %v13401_v17 = vld [vmem:[#allocation84_spill] sm:$0xff] }
 0x5ff   : > { %v2396_v23 = vadd.f32 %v13401_v17, %v12152_v2 }
 0x600   : > { %v6266_v58 = vadd.f32 %v6218_v27, %v2386_v38  ;;  %v6164_v44 = vadd.f32 %v13395_v54, %v5468_v15  ;;  %v12294_v62 = vmul.f32 %v13396_v24, %v6313_v0  ;;  %v13402_v38 = vld [vmem:[#allocation115_spill] sm:$0xff]  ;;  %v13403_v15 = vld [vmem:[#allocation110_spill] sm:$0xff] }
 0x601   : > { %v5472_v50 = vpop.f32.mrb[202].mxu0  ;;  %v13405_v24 = vld [vmem:[#allocation87_spill] sm:$0xff] }
 0x602   : > { %v6314_v40 = vmax.f32 %v6266_v58, 0.0  ;;  %v6219_v41 = vadd.f32 %v12146_v55, %v6164_v44  ;;  %v5473_v42 = vadd.f32 %v5472_v50, %v13398_v45  ;;  %v5474_v11 = vpop.f32.mrb[203].mxu0  ;;  %6411 = vrot.lane.b32.xlu0 %v12294_v62, %s8554_s20  ;;  %v13404_v58 = vld [vmem:[#allocation36_spill] sm:$0xff]  ;;  %v2401_v50 = vadd.f32 %v12152_v2, %v13405_v24  ;;  %v13413_v24 = vld [vmem:[#allocation89_spill] sm:$0xff] }
 0x603   : > { %v13407_v11 = vld [vmem:[#allocation112_spill] sm:$0xff] }
 0x604   : > { %v6267_v63 = vadd.f32 %v6219_v41, %v2391_v52  ;;  %v6165_v19 = vadd.f32 %v13399_v8, %v5473_v42  ;;  %v12304_v53 = vmul.f32 %v13400_v10, %v6314_v40  ;;  %v13406_v40 = vld [vmem:[#allocation117_spill] sm:$0xff] }
 0x605   : > { %v5477_v47 = vpop.f32.mrb[204].mxu0  ;;  %v13408_v8 = vld [vmem:[#allocation37_spill] sm:$0xff] }
 0x606   : > { %v6315_v56 = vmax.f32 %v6267_v63, 0.0  ;;  %v6220_v29 = vadd.f32 %v12146_v55, %v6165_v19  ;;  %v5478_v0 = vadd.f32 %v5477_v47, %v13402_v38  ;;  %v5479_v27 = vpop.f32.mrb[205].mxu0  ;;  %6413 = vrot.lane.b32.xlu1 %v12304_v53, %s8554_s20  ;;  %v13409_v47 = vld [vmem:[#allocation86_spill] sm:$0xff] }
 0x607   : > { %v2406_v17 = vadd.f32 %v13409_v47, %v12152_v2 }
 0x608   : > { %v6268_v35 = vadd.f32 %v6220_v29, %v2396_v23  ;;  %v6166_v9 = vadd.f32 %v13403_v15, %v5478_v0  ;;  %v12314_v54 = vmul.f32 %v13404_v58, %v6315_v56  ;;  %v13410_v29 = vld [vmem:[#allocation119_spill] sm:$0xff] }
 0x609   : > { %v5482_v44 = vpop.f32.mrb[206].mxu0 }
 0x60a   : > { %v6316_v60 = vmax.f32 %v6268_v35, 0.0  ;;  %v6221_v52 = vadd.f32 %v12146_v55, %v6166_v9  ;;  %v5483_v41 = vadd.f32 %v5482_v44, %v13406_v40  ;;  %v5484_v45 = vpop.f32.mrb[207].mxu0  ;;  %6415 = vrot.lane.b32.xlu0 %v12314_v54, %s8554_s20  ;;  %v13411_v35 = vld [vmem:[#allocation114_spill] sm:$0xff]  ;;  %v13412_v9 = vld [vmem:[#allocation39_spill] sm:$0xff]  ;;  %v13414_v40 = vld [vmem:[#allocation121_spill] sm:$0xff] }
 0x60c   : > { %v6269_v42 = vadd.f32 %v6221_v52, %v2401_v50  ;;  %v6167_v63 = vadd.f32 %v13407_v11, %v5483_v41  ;;  %v12324_v19 = vmul.f32 %v13408_v8, %v6316_v60  ;;  %v2411_v50 = vadd.f32 %v12152_v2, %v13413_v24  ;;  %v13415_v11 = vld [vmem:[#allocation116_spill] sm:$0xff]  ;;  %v13416_v8 = vld [vmem:[#allocation38_spill] sm:$0xff] }
 0x60d   : > { %v5487_v10 = vpop.f32.mrb[208].mxu0 }
 0x60e   : > { %v6317_v23 = vmax.f32 %v6269_v42, 0.0  ;;  %v6222_v56 = vadd.f32 %v12146_v55, %v6167_v63  ;;  %v5488_v38 = vadd.f32 %v5487_v10, %v13410_v29  ;;  %v5489_v0 = vpop.f32.mrb[209].mxu0  ;;  %6417 = vrot.lane.b32.xlu1 %v12324_v19, %s8554_s20 }
 0x610   : > { %v6270_v27 = vadd.f32 %v6222_v56, %v2406_v17  ;;  %v6168_v15 = vadd.f32 %v13411_v35, %v5488_v38  ;;  %v12334_v58 = vmul.f32 %v13412_v9, %v6317_v23  ;;  %v13417_v17 = vld [vmem:[#allocation88_spill] sm:$0xff]  ;;  %v13418_v38 = vld [vmem:[#allocation123_spill] sm:$0xff] }
 0x611   : > { %v5492_v44 = vpop.f32.mrb[210].mxu0  ;;  %v2416_v23 = vadd.f32 %v13417_v17, %v12152_v2  ;;  %v13424_v17 = vld [vmem:[#allocation40_spill] sm:$0xff] }
 0x612   : > { %v6318_v60 = vmax.f32 %v6270_v27, 0.0  ;;  %v6223_v52 = vadd.f32 %v12146_v55, %v6168_v15  ;;  %v5493_v41 = vadd.f32 %v5492_v44, %v13414_v40  ;;  %v5494_v45 = vpop.f32.mrb[211].mxu0  ;;  %6419 = vrot.lane.b32.xlu0 %v12334_v58, %s8554_s20  ;;  %v13419_v15 = vld [vmem:[#allocation118_spill] sm:$0xff]  ;;  %v13420_v44 = vld [vmem:[#allocation41_spill] sm:$0xff] }
 0x613   : > { %v13422_v45 = vld [vmem:[#allocation125_spill] sm:$0xff] }
 0x614   : > { %v6271_v42 = vadd.f32 %v6223_v52, %v2411_v50  ;;  %v6169_v63 = vadd.f32 %v13415_v11, %v5493_v41  ;;  %v12344_v10 = vmul.f32 %v13416_v8, %v6318_v60  ;;  %v13421_v60 = vld [vmem:[#allocation91_spill] sm:$0xff]  ;;  %v13423_v8 = vld [vmem:[#allocation120_spill] sm:$0xff] }
 0x615   : > { %v5497_v47 = vpop.f32.mrb[212].mxu0  ;;  %v2421_v52 = vadd.f32 %v12152_v2, %v13421_v60  ;;  %v13427_v60 = vld [vmem:[#allocation43_spill] sm:$0xff] }
 0x616   : > { %v6319_v56 = vmax.f32 %v6271_v42, 0.0  ;;  %v6224_v29 = vadd.f32 %v12146_v55, %v6169_v63  ;;  %v5498_v0 = vadd.f32 %v5497_v47, %v13418_v38  ;;  %v5499_v27 = vpop.f32.mrb[213].mxu0  ;;  %6421 = vrot.lane.b32.xlu1 %v12344_v10, %s8554_s20 }
 0x618   : > { %v6272_v35 = vadd.f32 %v6224_v29, %v2416_v23  ;;  %v6170_v9 = vadd.f32 %v13419_v15, %v5498_v0  ;;  %v12354_v24 = vmul.f32 %v13420_v44, %v6319_v56  ;;  %v13425_v29 = vld [vmem:[#allocation90_spill] sm:$0xff] }
 0x619   : > { %v5502_v50 = vpop.f32.mrb[214].mxu0  ;;  %v2426_v38 = vadd.f32 %v13425_v29, %v12152_v2  ;;  %v13426_v44 = vld [vmem:[#allocation122_spill] sm:$0xff] }
 0x61a   : > { %v6320_v40 = vmax.f32 %v6272_v35, 0.0  ;;  %v6225_v41 = vadd.f32 %v12146_v55, %v6170_v9  ;;  %v5503_v42 = vadd.f32 %v5502_v50, %v13422_v45  ;;  %v5504_v11 = vpop.f32.mrb[215].mxu0  ;;  %6423 = vrot.lane.b32.xlu0 %v12354_v24, %s8554_s20 }
 0x61c   : > { %v6273_v63 = vadd.f32 %v6225_v41, %v2421_v52  ;;  %v6171_v47 = vadd.f32 %v13423_v8, %v5503_v42  ;;  %v12364_v23 = vmul.f32 %v13424_v17, %v6320_v40  ;;  %v13428_v41 = vld [vmem:[#allocation93_spill] sm:$0xff] }
 0x61d   : > { %v5507_v56 = vpop.f32.mrb[216].mxu0  ;;  %v2431_v45 = vadd.f32 %v12152_v2, %v13428_v41 }
 0x61e   : > { %v6321_v0 = vmax.f32 %v6273_v63, 0.0  ;;  %v6226_v27 = vadd.f32 %v12146_v55, %v6171_v47  ;;  %v5508_v35 = vadd.f32 %v5507_v56, %v12049_v5  ;;  %v5509_v15 = vpop.f32.mrb[217].mxu0  ;;  %6425 = vrot.lane.b32.xlu1 %v12364_v23, %s8554_s20  ;;  %v13429_v47 = vld [vmem:[#allocation124_spill] sm:$0xff]  ;;  %v13430_v56 = vld [vmem:[#allocation42_spill] sm:$0xff] }
 0x620   : > { %v6274_v9 = vadd.f32 %v6226_v27, %v2426_v38  ;;  %v6172_v50 = vadd.f32 %v13426_v44, %v5508_v35  ;;  %v12374_v52 = vmul.f32 %v13427_v60, %v6321_v0  ;;  %v13431_v0 = vld [vmem:[#allocation92_spill] sm:$0xff] }
 0x621   : > { %v5512_v40 = vpop.f32.mrb[218].mxu0  ;;  %v2436_v27 = vadd.f32 %v13431_v0, %v12152_v2 }
 0x622   : > { %v6322_v42 = vmax.f32 %v6274_v9, 0.0  ;;  %v6227_v11 = vadd.f32 %v12146_v55, %v6172_v50  ;;  %v5513_v63 = vadd.f32 %v5512_v40, %v12056_v36  ;;  %v5514_v5 = vpop.f32.mrb[219].mxu0  ;;  %6427 = vrot.lane.b32.xlu0 %v12374_v52, %s8554_s20  ;;  %v13432_v50 = vld [vmem:[#allocation126_spill] sm:$0xff]  ;;  %v13433_v40 = vld [vmem:[#allocation45_spill] sm:$0xff] }
 0x624   : > { %v6275_v8 = vadd.f32 %v6227_v11, %v2431_v45  ;;  %v6173_v17 = vadd.f32 %v13429_v47, %v5513_v63  ;;  %v12384_v29 = vmul.f32 %v13430_v56, %v6322_v42  ;;  %v13434_v42 = vld [vmem:[#allocation95_spill] sm:$0xff]  ;;  %v13435_v56 = vld [vmem:[#allocation44_spill] sm:$0xff] }
 0x625   : > { %v5517_v38 = vpop.f32.mrb[220].mxu0  ;;  %v2441_v11 = vadd.f32 %v12152_v2, %v13434_v42 }
 0x626   : > { %v6323_v35 = vmax.f32 %v6275_v8, 0.0  ;;  %v6228_v15 = vadd.f32 %v12146_v55, %v6173_v17  ;;  %v5518_v9 = vadd.f32 %v5517_v38, %v12063_v13  ;;  %v5519_v36 = vpop.f32.mrb[221].mxu0  ;;  %6429 = vrot.lane.b32.xlu1 %v12384_v29, %s8554_s20 }
 0x628   : > { %v6276_v44 = vadd.f32 %v6228_v15, %v2436_v27  ;;  %v6174_v60 = vadd.f32 %v13432_v50, %v5518_v9  ;;  %v12394_v41 = vmul.f32 %v13433_v40, %v6323_v35  ;;  %v13436_v27 = vld [vmem:[#allocation94_spill] sm:$0xff] }
 0x629   : > { %v5522_v45 = vpop.f32.mrb[222].mxu0  ;;  %v2446_v35 = vadd.f32 %v13436_v27, %v12152_v2 }
 0x62a   : > { %v6324_v63 = vmax.f32 %v6276_v44, 0.0  ;;  %v6229_v5 = vadd.f32 %v12146_v55, %v6174_v60  ;;  %v5523_v8 = vadd.f32 %v5522_v45, %v12070_v21  ;;  %v5524_v13 = vpop.f32.mrb[223].mxu0  ;;  %6431 = vrot.lane.b32.xlu0 %v12394_v41, %s8554_s20  ;;  %v13438_v45 = vld [vmem:[#allocation97_spill] sm:$0xff] }
 0x62b   : > { %v2451_v42 = vadd.f32 %v12152_v2, %v13438_v45 }
 0x62c   : > { %v6277_v47 = vadd.f32 %v6229_v5, %v2441_v11  ;;  %v6175_v17 = vadd.f32 %v12051_v51, %v5523_v8  ;;  %v12404_v38 = vmul.f32 %v13435_v56, %v6324_v63  ;;  %v13437_v51 = vld [vmem:[#allocation47_spill] sm:$0xff] }
 0x62d   : > { %v5527_v0 = vpop.f32.mrb[224].mxu0  ;;  %v6630_v8 = vld [vmem:[%s12899_s9 + $0x8] sm:$0xff] }
 0x62e   : > { %v6325_v15 = vmax.f32 %v6277_v47, 0.0  ;;  %v6230_v9 = vadd.f32 %v12146_v55, %v6175_v17  ;;  %v5528_v36 = vadd.f32 %v5527_v0, %v12077_v22  ;;  %v5529_v21 = vpop.f32.mrb[225].mxu0  ;;  %6433 = vrot.lane.b32.xlu1 %v12404_v38, %s8554_s20  ;;  %v13439_v17 = vld [vmem:[#allocation127_spill] sm:$0xff]  ;;  %v13440_v0 = vld [vmem:[#allocation46_spill] sm:$0xff] }
 0x630   : > { %v6278_v44 = vadd.f32 %v6230_v9, %v2446_v35  ;;  %v6176_v50 = vadd.f32 %v12058_v26, %v5528_v36  ;;  %v12414_v60 = vmul.f32 %v13437_v51, %v6325_v15  ;;  %v6629_v26 = vld [vmem:[%s12899_s9] sm:$0xff]  ;;  %v13441_v35 = vld [vmem:[#allocation96_spill] sm:$0xff] }
 0x631   : > { %v5532_v40 = vpop.f32.mrb[226].mxu0  ;;  %v8289_v13 = vpack.c.bf16 %v6630_v8, %v6629_v26  ;;  %v2456_v15 = vadd.f32 %v13441_v35, %v12152_v2  ;;  %v13447_v35 = vld [vmem:[#allocation129_spill] sm:$0xff] }
 0x632   : > { %v6326_v11 = vmax.f32 %v6278_v44, 0.0  ;;  %v6231_v63 = vadd.f32 %v12146_v55, %v6176_v50  ;;  %v5533_v5 = vadd.f32 %v5532_v40, %v12084_v31  ;;  %v5534_v22 = vpop.f32.mrb[227].mxu0  ;;  %6435 = vrot.lane.b32.xlu0 %v12414_v60, %s8554_s20  ;;  %v13442_v50 = vmov 0.0|0.0   ;;  %v13443_v40 = vld [vmem:[#allocation128_spill] sm:$0xff] }
 0x633   : > { %8290 = vmatpush3.bf16.msra.mxu0 %v8289_v13 }
 0x634   : > { %v6279_v47 = vadd.f32 %v6231_v63, %v2451_v42  ;;  %v6177_v56 = vadd.f32 %v13439_v17, %v5533_v5  ;;  %v12430_v27 = vmul.f32 %v13440_v0, %v6326_v11  ;;  %8291 = vmatprep.subr.bf16.mxu0 %v13442_v50  ;;  %v13444_v42 = vld [vmem:[#allocation49_spill] sm:$0xff]  ;;  %v13445_v5 = vld [vmem:[#allocation99_spill] sm:$0xff] }
 0x635   : > { %v5537_v31 = vpop.f32.mrb[228].mxu0  ;;  %v2461_v22 = vadd.f32 %v12152_v2, %v13445_v5  ;;  %v6631_v17 = vld [vmem:[%s12899_s9 + $0x10] sm:$0xff] }
 0x636   : > { %v6327_v9 = vmax.f32 %v6279_v47, 0.0  ;;  %v6232_v36 = vadd.f32 %v12146_v55, %v6177_v56  ;;  %v5538_v21 = vadd.f32 %v5537_v31, %v12091_v48  ;;  %v5539_v44 = vpop.f32.mrb[229].mxu0  ;;  %6437 = vrot.lane.b32.xlu1 %v12430_v27, %s8554_s20  ;;  %v13446_v48 = vld [vmem:[#allocation132_spill] sm:$0xff]  ;;  %v6632_v56 = vld [vmem:[%s12899_s9 + $0x18] sm:$0xff] }
 0x637   : > { %v8292_v0 = vpack.c.bf16 %v6632_v56, %v6631_v17  ;;  %v13449_v44 = vld [vmem:[#allocation98_spill] sm:$0xff]  ;;  %v13453_v17 = vld [vmem:[#allocation101_spill] sm:$0xff] }
 0x638   : > { %v6280_v51 = vadd.f32 %v6232_v36, %v2456_v15  ;;  %v6178_v45 = vadd.f32 %v13443_v40, %v5538_v21  ;;  %v12441_v11 = vmul.f32 %v13444_v42, %v6327_v9  ;;  %v13448_v9 = vld [vmem:[#allocation48_spill] sm:$0xff]  ;;  %v13450_v42 = vld [vmem:[#allocation133_spill] sm:$0xff]  ;;  %v2471_v56 = vadd.f32 %v12152_v2, %v13453_v17  ;;  %v6633_v17 = vld [vmem:[%s12899_s9 + $0x20] sm:$0xff] }
 0x639   : > { %v5542_v63 = vpop.f32.mrb[230].mxu0  ;;  %8293 = vmatpush3.bf16.msra.mxu0 %v8292_v0 }
 0x63a   : > { %v6328_v26 = vmax.f32 %v6280_v51, 0.0  ;;  %v6233_v8 = vadd.f32 %v12146_v55, %v6178_v45  ;;  %v5543_v13 = vadd.f32 %v5542_v63, %v13446_v48  ;;  %v5544_v47 = vpop.f32.mrb[231].mxu0  ;;  %6439 = vrot.lane.b32.xlu0 %v12441_v11, %s8554_s20  ;;  %v2466_v51 = vadd.f32 %v13449_v44, %v12152_v2  ;;  %8294 = vmatprep.subr.bf16.mxu0 %v13442_v50  ;;  %v13452_v48 = vld [vmem:[#allocation51_spill] sm:$0xff] }
 0x63b   : > { %v13455_v44 = vld [vmem:[#allocation131_spill] sm:$0xff] }
 0x63c   : > { %v6281_v31 = vadd.f32 %v6233_v8, %v2461_v22  ;;  %v6179_v15 = vadd.f32 %v13447_v35, %v5543_v13  ;;  %v12457_v36 = vmul.f32 %v13448_v9, %v6328_v26  ;;  %v13451_v8 = vld [vmem:[#allocation130_spill] sm:$0xff] }
 0x63d   : > { %v5547_v21 = vpop.f32.mrb[232].mxu0  ;;  %v13454_v35 = vld [vmem:[#allocation134_spill] sm:$0xff] }
 0x63e   : > { %v6329_v40 = vmax.f32 %v6281_v31, 0.0  ;;  %v6234_v45 = vadd.f32 %v12146_v55, %v6179_v15  ;;  %v5548_v63 = vadd.f32 %v5547_v21, %v13450_v42  ;;  %v5549_v5 = vpop.f32.mrb[233].mxu0  ;;  %6441 = vrot.lane.b32.xlu1 %v12457_v36, %s8554_s20 }
 0x640   : > { %v6282_v22 = vadd.f32 %v6234_v45, %v2466_v51  ;;  %v6180_v26 = vadd.f32 %v13451_v8, %v5548_v63  ;;  %v12468_v13 = vmul.f32 %v13452_v48, %v6329_v40  ;;  %v13456_v45 = vld [vmem:[#allocation50_spill] sm:$0xff]  ;;  %v13457_v63 = vld [vmem:[#allocation100_spill] sm:$0xff] }
 0x641   : > { %v5552_v47 = vpop.f32.mrb[234].mxu0  ;;  %v2476_v5 = vadd.f32 %v13457_v63, %v12152_v2  ;;  %v13461_v63 = vld [vmem:[#allocation136_spill] sm:$0xff] }
 0x642   : > { %v6330_v0 = vmax.f32 %v6282_v22, 0.0  ;;  %v6235_v31 = vadd.f32 %v12146_v55, %v6180_v26  ;;  %v5553_v15 = vadd.f32 %v5552_v47, %v13454_v35  ;;  %v5554_v9 = vpop.f32.mrb[235].mxu0  ;;  %6443 = vrot.lane.b32.xlu0 %v12468_v13, %s8554_s20  ;;  %v13458_v26 = vld [vmem:[#allocation135_spill] sm:$0xff] }
 0x644   : > { %v6283_v21 = vadd.f32 %v6235_v31, %v2471_v56  ;;  %v6181_v51 = vadd.f32 %v13455_v44, %v5553_v15  ;;  %v12478_v42 = vmul.f32 %v13456_v45, %v6330_v0  ;;  %v6634_v56 = vld [vmem:[%s12899_s9 + $0x28] sm:$0xff]  ;;  %v13459_v15 = vld [vmem:[#allocation53_spill] sm:$0xff] }
 0x645   : > { %v5557_v40 = vpop.f32.mrb[236].mxu0  ;;  %v8295_v0 = vpack.c.bf16 %v6634_v56, %v6633_v17  ;;  %v13460_v44 = vld [vmem:[#allocation103_spill] sm:$0xff]  ;;  %v13462_v17 = vld [vmem:[#allocation52_spill] sm:$0xff] }
 0x646   : > { %v6331_v8 = vmax.f32 %v6283_v21, 0.0  ;;  %v6236_v22 = vadd.f32 %v12146_v55, %v6181_v51  ;;  %v5558_v48 = vadd.f32 %v5557_v40, %v13458_v26  ;;  %v5559_v47 = vpop.f32.mrb[237].mxu0  ;;  %6445 = vrot.lane.b32.xlu1 %v12478_v42, %s8554_s20  ;;  %v2481_v51 = vadd.f32 %v12152_v2, %v13460_v44 }
 0x647   : > { %8296 = vmatpush3.bf16.msra.mxu0 %v8295_v0  ;;  %v12513_v0 = vld [vmem:[#allocation3] sm:$0xff] }
 0x648   : > { %v6284_v31 = vadd.f32 %v6236_v22, %v2476_v5  ;;  %v6182_v35 = vadd.f32 %v12189_v14, %v5558_v48  ;;  %v12494_v9 = vmul.f32 %v13459_v15, %v6331_v8  ;;  %8297 = vmatprep.subr.bf16.mxu0 %v13442_v50  ;;  %v6635_v14 = vld [vmem:[%s12899_s9 + $0x30] sm:$0xff]  ;;  %v6636_v5 = vld [vmem:[%s12899_s9 + $0x38] sm:$0xff]  ;;  %13464 = vst [vmem:[#allocation142_spill] sm:$0xff] %v12513_v0 }
 0x649   : > { %v5562_v21 = vpop.f32.mrb[238].mxu0  ;;  %v8298_v8 = vpack.c.bf16 %v6636_v5, %v6635_v14  ;;  %8110 = vmatprep.mubr.msk.f32.mxu0 %vm8555_vm0, %v12513_v0 }
 0x64a   : > { %v6332_v45 = vmax.f32 %v6284_v31, 0.0  ;;  %v6237_v40 = vadd.f32 %v12146_v55, %v6182_v35  ;;  %v5563_v26 = vadd.f32 %v5562_v21, %v13461_v63  ;;  %v5564_v47 = vpop.f32.mrb[239].mxu0  ;;  %6447 = vrot.lane.b32.xlu0 %v12494_v9, %s8554_s20  ;;  %v13465_v35 = vld [vmem:[#allocation102_spill] sm:$0xff]  ;;  %v13467_v63 = vld [vmem:[#allocation55_spill] sm:$0xff] }
 0x64b   : > { %8299 = vmatpush3.bf16.msra.mxu0 %v8298_v8  ;;  %v2486_v15 = vadd.f32 %v13465_v35, %v12152_v2 }
 0x64c   : > { %v6285_v22 = vadd.f32 %v6237_v40, %v2481_v51  ;;  %v6183_v48 = vadd.f32 %v12198_v34, %v5563_v26  ;;  %v12511_v56 = vmul.f32 %v13462_v17, %v6332_v45  ;;  %8300 = vmatprep.subr.bf16.mxu0 %v13442_v50  ;;  %v13466_v45 = vld [vmem:[#allocation57_spill] sm:$0xff] }
 0x64d   : > { %v5897_v31 = vpop.f32.mrb[240].mxu0  ;;  %v2251_v40 = vadd.f32 %v12152_v2, %v13466_v45 }
 0x64e   : > { %13463 = vst [vmem:[#allocation141_spill] sm:$0xff] %v12511_v56  ;;  %v6333_v21 = vmax.f32 %v6285_v22, 0.0  ;;  %v6238_v44 = vadd.f32 %v12146_v55, %v6183_v48  ;;  %v6136_v51 = vadd.f32 %v5897_v31, %v12113_v39  ;;  %v5899_v34 = vpop.f32.mrb[241].mxu0  ;;  %6449 = vrot.lane.b32.xlu1 %v12511_v56, %s8554_s20  ;;  %v13469_v48 = vld [vmem:[#allocation137_spill] sm:$0xff]  ;;  %v13470_v31 = vld [vmem:[#allocation56_spill] sm:$0xff] }
 0x64f   : > { %v2256_v35 = vadd.f32 %v13470_v31, %v12152_v2  ;;  %v13471_v34 = vld [vmem:[#allocation54_spill] sm:$0xff]  ;;  %v13475_v31 = vld [vmem:[#allocation9_spill] sm:$0xff] }
 0x650   : > { %v12527_v26 = vmul.f32 %v13467_v63, %v6333_v21  ;;  %v6286_v47 = vadd.f32 %v6238_v44, %v2486_v15  ;;  %v6191_v14 = vadd.f32 %v12146_v55, %v6136_v51  ;;  %v13473_v63 = vld [vmem:[#allocation138_spill] sm:$0xff] }
 0x651   : > { %v5902_v5 = vpop.f32.mrb[242].mxu0 }
 0x652   : > { %13468 = vst [vmem:[#allocation143_spill] sm:$0xff] %v12527_v26  ;;  %v6334_v8 = vmax.f32 %v6286_v47, 0.0  ;;  %v6239_v22 = vadd.f32 %v6191_v14, %v2251_v40  ;;  %v6137_v39 = vadd.f32 %v5902_v5, %v13469_v48  ;;  %v5904_v17 = vpop.f32.mrb[243].mxu0  ;;  %6451 = vrot.lane.b32.xlu0 %v12527_v26, %s8554_s20  ;;  %v13474_v14 = vld [vmem:[#allocation59_spill] sm:$0xff] }
 0x653   : > { %v2261_v5 = vadd.f32 %v12152_v2, %v13474_v14 }
 0x654   : > { %v12536_v45 = vmul.f32 %v13471_v34, %v6334_v8  ;;  %v6287_v21 = vmax.f32 %v6239_v22, 0.0  ;;  %v6192_v15 = vadd.f32 %v12146_v55, %v6137_v39 }
 0x655   : > { %v5907_v44 = vpop.f32.mrb[244].mxu0 }
 0x656   : > { %13472 = vst [vmem:[#allocation144_spill] sm:$0xff] %v12536_v45  ;;  %v6240_v51 = vadd.f32 %v6192_v15, %v2256_v35  ;;  %v6138_v47 = vadd.f32 %v5907_v44, %v13473_v63  ;;  %v5909_v40 = vpop.f32.mrb[245].mxu0  ;;  %6453 = vrot.lane.b32.xlu1 %v12536_v45, %s8554_s20  ;;  %v6335_v8 = vmul.f32 %v13475_v31, %v6287_v21  ;;  %v13476_v35 = vld [vmem:[#allocation8_spill] sm:$0xff]  ;;  %v13477_v44 = vld [vmem:[#allocation58_spill] sm:$0xff]  ;;  %v13479_v31 = vld [vmem:[#allocation61_spill] sm:$0xff]  ;;  %s8433_s20 = smul.u32 192, %s8699_s25 }
 0x657   : > { %v2266_v63 = vadd.f32 %v13477_v44, %v12152_v2  ;;  %s467_s25 = scalar_lea.vmem [#allocation4], %s466_s0 }
 0x658   : > { %v6288_v48 = vmax.f32 %v6240_v51, 0.0  ;;  %v6193_v17 = vadd.f32 %v12146_v55, %v6138_v47  ;;  %v6527_v51 = vsel %vm971_vm9, %v6335_v8, 0.0  ;;  %s12585_s2 = scalar_lea.vmem %s12903_s13, %s8433_s20 }
 0x659   : > { %v5912_v34 = vpop.f32.mrb[246].mxu0 }
 0x65a   : > { %v6241_v22 = vadd.f32 %v6193_v17, %v2261_v5  ;;  %v6139_v39 = vadd.f32 %v5912_v34, %v12125_v3  ;;  %v5914_v50 = vpop.f32.mrb[247].mxu0  ;;  %v12548_v15 = vmul.f32 %v13476_v35, %v6288_v48  ;;  %v13478_v17 = vld [vmem:[#allocation11_spill] sm:$0xff]  ;;  %v2271_v34 = vadd.f32 %v12152_v2, %v13479_v31 }
 0x65c   : > { %v6289_v40 = vmax.f32 %v6241_v22, 0.0  ;;  %v6194_v0 = vadd.f32 %v12146_v55, %v6139_v39  ;;  %v6528_v47 = vsel %vm971_vm9, %v12548_v15, 0.0 }
 0x65d   : > { %v5917_v21 = vpop.f32.mrb[248].mxu0  ;;  %v6529_v14 = vadd.f32 %v6528_v47, %v6527_v51  ;;  %v13481_v47 = vld [vmem:[#allocation60_spill] sm:$0xff] }
 0x65e   : > { %v6242_v5 = vadd.f32 %v6194_v0, %v2266_v63  ;;  %v6140_v3 = vadd.f32 %v5917_v21, %v12128_v59  ;;  %v5919_v50 = vpop.f32.mrb[249].mxu0  ;;  %v6337_v48 = vmul.f32 %v13478_v17, %v6289_v40  ;;  %v13480_v63 = vld [vmem:[#allocation10_spill] sm:$0xff]  ;;  %v2276_v40 = vadd.f32 %v13481_v47, %v12152_v2 }
 0x660   : > { %v6290_v35 = vmax.f32 %v6242_v5, 0.0  ;;  %v6195_v22 = vadd.f32 %v12146_v55, %v6140_v3  ;;  %v6530_v39 = vsel %vm971_vm9, %v6337_v48, 0.0 }
 0x661   : > { %v5922_v44 = vpop.f32.mrb[250].mxu0  ;;  %v6531_v45 = vadd.f32 %v6530_v39, %v6529_v14 }
 0x662   : > { %v6243_v26 = vadd.f32 %v6195_v22, %v2271_v34  ;;  %v6141_v51 = vadd.f32 %v5922_v44, %v12131_v37  ;;  %v5924_v0 = vpop.f32.mrb[251].mxu0  ;;  %v6338_v59 = vmul.f32 %v13480_v63, %v6290_v35  ;;  %v13482_v34 = vld [vmem:[#allocation12_spill] sm:$0xff]  ;;  %v13483_v37 = vld [vmem:[#allocation63_spill] sm:$0xff] }
 0x663   : > { %v2281_v35 = vadd.f32 %v12152_v2, %v13483_v37  ;;  %v13484_v63 = vld [vmem:[#allocation139_spill] sm:$0xff] }
 0x664   : > { %v6291_v21 = vmax.f32 %v6243_v26, 0.0  ;;  %v6196_v50 = vadd.f32 %v12146_v55, %v6141_v51  ;;  %v6532_v5 = vsel %vm971_vm9, %v6338_v59, 0.0 }
 0x665   : > { %v5927_v3 = vpop.f32.mrb[252].mxu0  ;;  %v6533_v17 = vadd.f32 %v6532_v5, %v6531_v45 }
 0x666   : > { %v6244_v31 = vadd.f32 %v6196_v50, %v2276_v40  ;;  %v6142_v56 = vadd.f32 %v5927_v3, %v12134_v4  ;;  %v5929_v14 = vpop.f32.mrb[253].mxu0  ;;  %v12570_v22 = vmul.f32 %v13482_v34, %v6291_v21  ;;  %v13485_v40 = vld [vmem:[#allocation13_spill] sm:$0xff]  ;;  %v13486_v21 = vld [vmem:[#allocation62_spill] sm:$0xff] }
 0x668   : > { %v6292_v39 = vmax.f32 %v6244_v31, 0.0  ;;  %v6197_v26 = vadd.f32 %v12146_v55, %v6142_v56  ;;  %v6534_v44 = vsel %vm971_vm9, %v12570_v22, 0.0  ;;  %v2286_v56 = vadd.f32 %v13486_v21, %v12152_v2 }
 0x669   : > { %v5932_v51 = vpop.f32.mrb[254].mxu0  ;;  %v6535_v0 = vadd.f32 %v6534_v44, %v6533_v17 }
 0x66a   : > { %v6245_v45 = vadd.f32 %v6197_v26, %v2281_v35  ;;  %v6143_v47 = vadd.f32 %v5932_v51, %v13484_v63  ;;  %v5934_v4 = vpop.f32.mrb[255].mxu0  ;;  %v12580_v50 = vmul.f32 %v13485_v40, %v6292_v39  ;;  %v13487_v39 = vld [vmem:[#allocation140_spill] sm:$0xff]  ;;  %v13488_v51 = vld [vmem:[#allocation14_spill] sm:$0xff] }
 0x66b   : > { %v13489_v4 = vld [vmem:[#allocation65_spill] sm:$0xff] }
 0x66c   : > { %v6293_v5 = vmax.f32 %v6245_v45, 0.0  ;;  %v6198_v3 = vadd.f32 %v12146_v55, %v6143_v47  ;;  %v6408_v17 = vpop.permute.xlu0 %6407  ;;  %v6536_v31 = vsel %vm971_vm9, %v12580_v50, 0.0  ;;  %v2291_v45 = vadd.f32 %v12152_v2, %v13489_v4 }
 0x66d   : > { %v6479_v14 = vsel %vm971_vm9, %v6335_v8, %v6408_v17  ;;  %v5937_v34 = vpop.f32.mrb[0].mxu0  ;;  %v6537_v37 = vadd.f32 %v6536_v31, %v6535_v0  ;;  %v13490_v31 = vld [vmem:[#allocation15_spill] sm:$0xff] }
 0x66e   : > { %v6246_v35 = vadd.f32 %v6198_v3, %v2286_v56  ;;  %6503 = vst [vmem:[%s12585_s2] sm:$0xff] %v6479_v14  ;;  %v6144_v26 = vadd.f32 %v5937_v34, %v13487_v39  ;;  %v5939_v44 = vpop.f32.mrb[1].mxu0  ;;  %v6341_v63 = vmul.f32 %v13488_v51, %v6293_v5  ;;  %v6296_v3 = vmax.f32 %v12158_v43, 0.0  ;;  %v13492_v43 = vld [vmem:[#allocation17_spill] sm:$0xff] }
 0x66f   : > { %v6297_v14 = vmax.f32 %v12165_v33, 0.0  ;;  %v6299_v51 = vmax.f32 %v12179_v32, 0.0 }
 0x670   : > { %v6294_v47 = vmax.f32 %v6246_v35, 0.0  ;;  %v6199_v40 = vadd.f32 %v12146_v55, %v6144_v26  ;;  %v6410_v21 = vpop.permute.xlu1 %6409  ;;  %v6538_v8 = vsel %vm971_vm9, %v6341_v63, 0.0  ;;  %v6298_v26 = vmax.f32 %v12172_v49, 0.0 }
 0x671   : > { %v6480_v0 = vsel %vm971_vm9, %v12548_v15, %v6410_v21  ;;  %v6539_v56 = vadd.f32 %v6538_v8, %v6537_v37  ;;  %v13491_v15 = vld [vmem:[#allocation16_spill] sm:$0xff]  ;;  %v12612_v44 = vmul.f32 %v13492_v43, %v6296_v3  ;;  %v6300_v49 = vmax.f32 %v12186_v1, 0.0  ;;  %v13494_v8 = vld [vmem:[#allocation19_spill] sm:$0xff]  ;;  %v13497_v43 = vld [vmem:[#allocation22_spill] sm:$0xff] }
 0x672   : > { %v6247_v17 = vadd.f32 %v6199_v40, %v2291_v45  ;;  %6504 = vst [vmem:[%s12585_s2 + $0x8] sm:$0xff] %v6480_v0  ;;  %v6342_v5 = vmul.f32 %v13490_v31, %v6294_v47  ;;  %v13493_v45 = vld [vmem:[#allocation18_spill] sm:$0xff]  ;;  %v12625_v0 = vmul.f32 %v13494_v8, %v6298_v26  ;;  %v13495_v31 = vld [vmem:[#allocation21_spill] sm:$0xff]  ;;  %v13499_v8 = vld [vmem:[#allocation24_spill] sm:$0xff] }
 0x673   : > { %v12617_v47 = vmul.f32 %v13493_v45, %v6297_v14  ;;  %v6544_v21 = vsel %vm971_vm9, %v12612_v44, 0.0  ;;  %v13498_v45 = vld [vmem:[#allocation23_spill] sm:$0xff] }
 0x674   : > { %v6295_v2 = vmax.f32 %v6247_v17, 0.0  ;;  %v6412_v34 = vpop.permute.xlu0 %6411  ;;  %v6540_v55 = vsel %vm971_vm9, %v6342_v5, 0.0 }
 0x675   : > { %v6481_v35 = vsel %vm971_vm9, %v6337_v48, %v6412_v34  ;;  %v6541_v39 = vadd.f32 %v6540_v55, %v6539_v56  ;;  %v6301_v56 = vmax.f32 %v12195_v12, 0.0  ;;  %v6546_v17 = vsel %vm971_vm9, %v12617_v47, 0.0  ;;  %v13496_v55 = vld [vmem:[#allocation20_spill] sm:$0xff] }
 0x676   : > { %6505 = vst [vmem:[%s12585_s2 + $0x10] sm:$0xff] %v6481_v35  ;;  %v6343_v37 = vmul.f32 %v13491_v15, %v6295_v2  ;;  %v6302_v2 = vmax.f32 %v12204_v57, 0.0  ;;  %v6548_v34 = vsel %vm971_vm9, %v12625_v0, 0.0  ;;  %v12640_v12 = vmul.f32 %v13496_v55, %v6300_v49 }
 0x678   : > { %v6414_v4 = vpop.permute.xlu1 %6413  ;;  %v6542_v33 = vsel %vm971_vm9, %v6343_v37, 0.0 }
 0x679   : > { %v6482_v48 = vsel %vm971_vm9, %v6338_v59, %v6414_v4  ;;  %v6543_v40 = vadd.f32 %v6542_v33, %v6541_v39  ;;  %v12631_v59 = vmul.f32 %v13495_v31, %v6299_v51  ;;  %v6303_v39 = vmax.f32 %v12211_v7, 0.0 }
 0x67a   : > { %6506 = vst [vmem:[%s12585_s2 + $0x18] sm:$0xff] %v6482_v48  ;;  %v6304_v4 = vmax.f32 %v12218_v18, 0.0  ;;  %v6552_v33 = vsel %vm971_vm9, %v12640_v12, 0.0  ;;  %v12655_v7 = vmul.f32 %v13498_v45, %v6302_v2  ;;  %v6310_v45 = vmax.f32 %v12260_v25, 0.0 }
 0x67b   : > { %v6545_v32 = vadd.f32 %v6544_v21, %v6543_v40  ;;  %v6550_v15 = vsel %vm971_vm9, %v12631_v59, 0.0  ;;  %v6305_v40 = vmax.f32 %v12225_v61, 0.0 }
 0x67c   : > { %v6416_v3 = vpop.permute.xlu0 %6415 }
 0x67d   : > { %v6483_v1 = vsel %vm971_vm9, %v12570_v22, %v6416_v3  ;;  %v6547_v14 = vadd.f32 %v6546_v17, %v6545_v32  ;;  %v12646_v22 = vmul.f32 %v13497_v43, %v6301_v56  ;;  %v6306_v56 = vmax.f32 %v12232_v30, 0.0  ;;  %v13500_v17 = vld [vmem:[#allocation25_spill] sm:$0xff] }
 0x67e   : > { %6507 = vst [vmem:[%s12585_s2 + $0x20] sm:$0xff] %v6483_v1  ;;  %v6556_v3 = vsel %vm971_vm9, %v12655_v7, 0.0  ;;  %v12669_v31 = vmul.f32 %v13500_v17, %v6304_v4  ;;  %v6307_v1 = vmax.f32 %v12239_v16, 0.0  ;;  %v6309_v43 = vmax.f32 %v12253_v28, 0.0  ;;  %v13503_v4 = vld [vmem:[#allocation28_spill] sm:$0xff] }
 0x67f   : > { %v6549_v35 = vadd.f32 %v6548_v34, %v6547_v14  ;;  %v6554_v21 = vsel %vm971_vm9, %v12646_v22, 0.0  ;;  %v13501_v34 = vld [vmem:[#allocation26_spill] sm:$0xff] }
 0x680   : > { %v6418_v26 = vpop.permute.xlu1 %6417 }
 0x681   : > { %v6484_v57 = vsel %vm971_vm9, %v12580_v50, %v6418_v26  ;;  %v6551_v51 = vadd.f32 %v6550_v15, %v6549_v35  ;;  %v12661_v50 = vmul.f32 %v13499_v8, %v6303_v39  ;;  %v6308_v35 = vmax.f32 %v12246_v20, 0.0  ;;  %v13502_v26 = vld [vmem:[#allocation27_spill] sm:$0xff] }
 0x682   : > { %6508 = vst [vmem:[%s12585_s2 + $0x28] sm:$0xff] %v6484_v57  ;;  %v6560_v39 = vsel %vm971_vm9, %v12669_v31, 0.0  ;;  %v12683_v15 = vmul.f32 %v13502_v26, %v6306_v56 }
 0x683   : > { %v6553_v48 = vadd.f32 %v6552_v33, %v6551_v51  ;;  %v6558_v2 = vsel %vm971_vm9, %v12661_v50, 0.0 }
 0x684   : > { %v6420_v49 = vpop.permute.xlu0 %6419 }
 0x685   : > { %v6485_v18 = vsel %vm971_vm9, %v6341_v63, %v6420_v49  ;;  %v6555_v32 = vadd.f32 %v6554_v21, %v6553_v48  ;;  %v12675_v63 = vmul.f32 %v13501_v34, %v6305_v40  ;;  %v6564_v48 = vsel %vm971_vm9, %v12683_v15, 0.0  ;;  %v13504_v40 = vld [vmem:[#allocation29_spill] sm:$0xff] }
 0x686   : > { %6509 = vst [vmem:[%s12585_s2 + $0x30] sm:$0xff] %v6485_v18  ;;  %v12697_v28 = vmul.f32 %v13504_v40, %v6308_v35  ;;  %v13505_v18 = vld [vmem:[#allocation31_spill] sm:$0xff] }
 0x687   : > { %v6557_v61 = vadd.f32 %v6556_v3, %v6555_v32  ;;  %v6562_v51 = vsel %vm971_vm9, %v12675_v63, 0.0  ;;  %v12702_v32 = vmul.f32 %v13505_v18, %v6309_v43  ;;  %v13506_v3 = vld [vmem:[#allocation30_spill] sm:$0xff]  ;;  %v6578_v43 = vsel %vm971_vm9, %v12294_v62, 0.0 }
 0x688   : > { %v6422_v14 = vpop.permute.xlu1 %6421  ;;  %v6568_v56 = vsel %vm971_vm9, %v12697_v28, 0.0  ;;  %v12710_v17 = vmul.f32 %v13506_v3, %v6310_v45  ;;  %v6584_v62 = vsel %vm971_vm9, %v12324_v19, 0.0  ;;  %v6598_v3 = vsel %vm971_vm9, %v12394_v41, 0.0 }
 0x689   : > { %v6486_v30 = vsel %vm971_vm9, %v6342_v5, %v6422_v14  ;;  %v6559_v55 = vadd.f32 %v6558_v2, %v6557_v61  ;;  %v12689_v5 = vmul.f32 %v13503_v4, %v6307_v1  ;;  %v6570_v14 = vsel %vm971_vm9, %v12702_v32, 0.0 }
 0x68a   : > { %6510 = vst [vmem:[%s12585_s2 + $0x38] sm:$0xff] %v6486_v30  ;;  %v6604_v41 = vsel %vm971_vm9, %v12430_v27, 0.0 }
 0x68b   : > { %v6561_v16 = vadd.f32 %v6560_v39, %v6559_v55  ;;  %v6566_v8 = vsel %vm971_vm9, %v12689_v5, 0.0  ;;  %v6574_v55 = vsel %vm971_vm9, %v12274_v46, 0.0  ;;  %v6580_v46 = vsel %vm971_vm9, %v12304_v53, 0.0 }
 0x68c   : > { %v6424_v57 = vpop.permute.xlu0 %6423 }
 0x68d   : > { %v6487_v20 = vsel %vm971_vm9, %v6343_v37, %v6424_v57  ;;  %v6563_v33 = vadd.f32 %v6562_v51, %v6561_v16  ;;  %v6576_v16 = vsel %vm971_vm9, %v12284_v6, 0.0 }
 0x68e   : > { %6511 = vst [vmem:[%s12585_s2 + $0x40] sm:$0xff] %v6487_v20  ;;  %v6582_v20 = vsel %vm971_vm9, %v12314_v54, 0.0  ;;  %v6588_v54 = vsel %vm971_vm9, %v12344_v10, 0.0 }
 0x68f   : > { %v6565_v49 = vadd.f32 %v6564_v48, %v6563_v33  ;;  %v6586_v48 = vsel %vm971_vm9, %v12334_v58, 0.0  ;;  %v6592_v58 = vsel %vm971_vm9, %v12364_v23, 0.0 }
 0x690   : > { %v6426_v21 = vpop.permute.xlu1 %6425 }
 0x691   : > { %v6488_v37 = vsel %vm971_vm9, %v12612_v44, %v6426_v21  ;;  %v6567_v25 = vadd.f32 %v6566_v8, %v6565_v49  ;;  %v6572_v44 = vsel %vm971_vm9, %v12710_v17, 0.0  ;;  %v6590_v21 = vsel %vm971_vm9, %v12354_v24, 0.0 }
 0x692   : > { %6512 = vst [vmem:[%s12585_s2 + $0x48] sm:$0xff] %v6488_v37  ;;  %v6594_v37 = vsel %vm971_vm9, %v12374_v52, 0.0  ;;  %v6596_v24 = vsel %vm971_vm9, %v12384_v29, 0.0  ;;  %v6600_v52 = vsel %vm971_vm9, %v12404_v38, 0.0 }
 0x693   : > { %v6569_v61 = vadd.f32 %v6568_v56, %v6567_v25 }
 0x694   : > { %v6428_v1 = vpop.permute.xlu0 %6427 }
 0x695   : > { %v6489_v2 = vsel %vm971_vm9, %v12617_v47, %v6428_v1  ;;  %v6571_v34 = vadd.f32 %v6570_v14, %v6569_v61  ;;  %v6602_v14 = vsel %vm971_vm9, %v12414_v60, 0.0  ;;  %v6608_v60 = vsel %vm971_vm9, %v12457_v36, 0.0 }
 0x696   : > { %6513 = vst [vmem:[%s12585_s2 + $0x50] sm:$0xff] %v6489_v2 }
 0x697   : > { %v6573_v30 = vadd.f32 %v6572_v44, %v6571_v34  ;;  %v6606_v44 = vsel %vm971_vm9, %v12441_v11, 0.0  ;;  %v6612_v11 = vsel %vm971_vm9, %v12478_v42, 0.0 }
 0x698   : > { %v6430_v35 = vpop.permute.xlu1 %6429 }
 0x699   : > { %v6490_v39 = vsel %vm971_vm9, %v12625_v0, %v6430_v35  ;;  %v6575_v26 = vadd.f32 %v6574_v55, %v6573_v30  ;;  %v6610_v35 = vsel %vm971_vm9, %v12468_v13, 0.0 }
 0x69a   : > { %6514 = vst [vmem:[%s12585_s2 + $0x58] sm:$0xff] %v6490_v39 }
 0x69b   : > { %v6577_v47 = vadd.f32 %v6576_v16, %v6575_v26  ;;  %v6614_v16 = vsel %vm971_vm9, %v12494_v9, 0.0  ;;  %v13509_v9 = vld [vmem:[#allocation144_spill] sm:$0xff] }
 0x69c   : > { %v6432_v57 = vpop.permute.xlu0 %6431 }
 0x69d   : > { %v6491_v51 = vsel %vm971_vm9, %v12631_v59, %v6432_v57  ;;  %v6579_v4 = vadd.f32 %v6578_v43, %v6577_v47  ;;  %v13507_v43 = vld [vmem:[#allocation141_spill] sm:$0xff] }
 0x69e   : > { %6515 = vst [vmem:[%s12585_s2 + $0x60] sm:$0xff] %v6491_v51  ;;  %v6616_v57 = vsel %vm971_vm9, %v13507_v43, 0.0  ;;  %v13508_v51 = vld [vmem:[#allocation143_spill] sm:$0xff] }
 0x69f   : > { %v6581_v0 = vadd.f32 %v6580_v46, %v6579_v4  ;;  %v6618_v4 = vsel %vm971_vm9, %v13508_v51, 0.0 }
 0x6a0   : > { %v6434_v6 = vpop.permute.xlu1 %6433 }
 0x6a1   : > { %v6492_v33 = vsel %vm971_vm9, %v12640_v12, %v6434_v6  ;;  %v6583_v45 = vadd.f32 %v6582_v20, %v6581_v0  ;;  %v6620_v20 = vsel %vm971_vm9, %v13509_v9, 0.0 }
 0x6a2   : > { %6516 = vst [vmem:[%s12585_s2 + $0x68] sm:$0xff] %v6492_v33 }
 0x6a3   : > { %v6585_v59 = vadd.f32 %v6584_v62, %v6583_v45 }
 0x6a4   : > { %v6436_v53 = vpop.permute.xlu0 %6435 }
 0x6a5   : > { %v6493_v40 = vsel %vm971_vm9, %v12646_v22, %v6436_v53  ;;  %v6587_v49 = vadd.f32 %v6586_v48, %v6585_v59 }
 0x6a6   : > { %6517 = vst [vmem:[%s12585_s2 + $0x70] sm:$0xff] %v6493_v40  ;;  %v6713_v40 = vld [vmem:[%s12901_s11 + $0x8] sm:$0xff] }
 0x6a7   : > { %v6589_v12 = vadd.f32 %v6588_v54, %v6587_v49 }
 0x6a8   : > { %v6438_v19 = vpop.permute.xlu1 %6437 }
 0x6a9   : > { %v6494_v8 = vsel %vm971_vm9, %v12655_v7, %v6438_v19  ;;  %v6591_v18 = vadd.f32 %v6590_v21, %v6589_v12  ;;  %v6715_v21 = vld [vmem:[%s12901_s11 + $0x18] sm:$0xff] }
 0x6aa   : > { %6518 = vst [vmem:[%s12585_s2 + $0x78] sm:$0xff] %v6494_v8  ;;  %v13510_v8 = vld [vmem:[#allocation142_spill] sm:$0xff] }
 0x6ab   : > { %v6593_v22 = vadd.f32 %v6592_v58, %v6591_v18  ;;  %v13511_v18 = vmov 0.0|0.0   ;;  %v6716_v58 = vld [vmem:[%s12901_s11 + $0x20] sm:$0xff] }
 0x6ac   : > { %v6440_v10 = vpop.permute.xlu0 %6439 }
 0x6ad   : > { %v6495_v25 = vsel %vm971_vm9, %v12661_v50, %v6440_v10  ;;  %v6595_v56 = vadd.f32 %v6594_v37, %v6593_v22  ;;  %v6717_v22 = vld [vmem:[%s12901_s11 + $0x28] sm:$0xff]  ;;  %v6718_v10 = vld [vmem:[%s12901_s11 + $0x30] sm:$0xff] }
 0x6ae   : > { %6519 = vst [vmem:[%s12585_s2 + $0x80] sm:$0xff] %v6495_v25  ;;  %v8307_v37 = vpack.c.bf16 %v6717_v22, %v6716_v58  ;;  %v6719_v25 = vld [vmem:[%s12901_s11 + $0x38] sm:$0xff] }
 0x6af   : > { %v6597_v7 = vadd.f32 %v6596_v24, %v6595_v56  ;;  %v8310_v56 = vpack.c.bf16 %v6719_v25, %v6718_v10  ;;  %v6637_v24 = vld [vmem:[%s12900_s10] sm:$0x1] }
 0x6b0   : > { %v6442_v23 = vpop.permute.xlu1 %6441 }
 0x6b1   : > { %v6496_v61 = vsel %vm971_vm9, %v12669_v31, %v6442_v23  ;;  %v6599_v1 = vadd.f32 %v6598_v3, %v6597_v7 }
 0x6b2   : > { %6520 = vst [vmem:[%s12585_s2 + $0x88] sm:$0xff] %v6496_v61 }
 0x6b3   : > { %v6601_v50 = vadd.f32 %v6600_v52, %v6599_v1  ;;  %v6720_v1 = vld [vmem:[%s12902_s12] sm:$0x1] }
 0x6b4   : > { %v6444_v29 = vpop.permute.xlu0 %6443 }
 0x6b5   : > { %v6497_v2 = vsel %vm971_vm9, %v12675_v63, %v6444_v29  ;;  %v6603_v34 = vadd.f32 %v6602_v14, %v6601_v50 }
 0x6b6   : > { %6521 = vst [vmem:[%s12585_s2 + $0x90] sm:$0xff] %v6497_v2 }
 0x6b7   : > { %v6605_v31 = vadd.f32 %v6604_v41, %v6603_v34 }
 0x6b8   : > { %v6446_v38 = vpop.permute.xlu1 %6445 }
 0x6b9   : > { %v6498_v30 = vsel %vm971_vm9, %v12683_v15, %v6446_v38  ;;  %v6607_v55 = vadd.f32 %v6606_v44, %v6605_v31 }
 0x6ba   : > { %6522 = vst [vmem:[%s12585_s2 + $0x98] sm:$0xff] %v6498_v30 }
 0x6bb   : > { %v6609_v63 = vadd.f32 %v6608_v60, %v6607_v55 }
 0x6bc   : > { %v6448_v27 = vpop.permute.xlu0 %6447 }
 0x6bd   : > { %v6499_v39 = vsel %vm971_vm9, %v12689_v5, %v6448_v27  ;;  %v6611_v26 = vadd.f32 %v6610_v35, %v6609_v63 }
 0x6be   : > { %6523 = vst [vmem:[%s12585_s2 + $0xa0] sm:$0xff] %v6499_v39 }
 0x6bf   : > { %v6613_v15 = vadd.f32 %v6612_v11, %v6611_v26 }
 0x6c0   : > { %v6450_v36 = vpop.permute.xlu1 %6449 }
 0x6c1   : > { %v6500_v47 = vsel %vm971_vm9, %v12697_v28, %v6450_v36  ;;  %v6615_v13 = vadd.f32 %v6614_v16, %v6613_v15 }
 0x6c2   : > { %6524 = vst [vmem:[%s12585_s2 + $0xa8] sm:$0xff] %v6500_v47 }
 0x6c3   : > { %v6617_v5 = vadd.f32 %v6616_v57, %v6615_v13 }
 0x6c4   : > { %v6452_v42 = vpop.permute.xlu0 %6451 }
 0x6c5   : > { %v6501_v46 = vsel %vm971_vm9, %v12702_v32, %v6452_v42  ;;  %v6619_v0 = vadd.f32 %v6618_v4, %v6617_v5  ;;  %v6712_v32 = vld [vmem:[%s12901_s11] sm:$0xff] }
 0x6c6   : > { %6525 = vst [vmem:[%s12585_s2 + $0xb0] sm:$0xff] %v6501_v46  ;;  %v8301_v54 = vpack.c.bf16 %v6713_v40, %v6712_v32 }
 0x6c7   : > { %v6621_v6 = vadd.f32 %v6620_v20, %v6619_v0 }
 0x6c8   : > { %v6454_v28 = vpop.permute.xlu1 %6453 }
 0x6c9   : > { %v6502_v33 = vsel %vm971_vm9, %v12710_v17, %v6454_v28  ;;  %v6622_v45 = vrot.slane %v6621_v6, 4  ;;  %v6714_v17 = vld [vmem:[%s12901_s11 + $0x10] sm:$0xff] }
 0x6ca   : > { %6526 = vst [vmem:[%s12585_s2 + $0xb8] sm:$0xff] %v6502_v33  ;;  %v8304_v19 = vpack.c.bf16 %v6715_v21, %v6714_v17  ;;  %s6817_s2 = sshll.u32 %s467_s25, 4  ;;  %s12850_s2 = int_to_ptr.vmem [resolvable:$true] %s6817_s2 }
 0x6cb   : > { %v6623_v62 = vadd.f32 %v6622_v45, %v6621_v6  ;;  %s8486_s21 = scalar_lea.vmem %s12850_s2, 16  ;;  %p8493_p0 = scmp.lt.s32.totalorder %s12850_s2, %s8491_s26 }
 0x6cc   : > { %p8487_p11 = scmp.ne.s32.totalorder %s12850_s2, %s8486_s21  ;;  %p8494_p1 = scmp.lt.s32.totalorder %s8492_s18, %s8486_s21 }
 0x6cd   : > { %v6624_v59 = vrot.slane %v6623_v62, 2 }
 0x6ce   : > { %p8488_p12 = pnand %p8487_p11, %p8670_p5  ;;  %p8495_p2 = por %p8494_p1, %p8493_p0 }
 0x6cf   : > { %v6625_v48 = vadd.f32 %v6624_v59, %v6623_v62 }
 0x6d0   : > { %p8489_p13 = pneg %p8488_p12 }
 0x6d1   : > { %v6626_v53 = vrot.slane %v6625_v48, 1 }
 0x6d2   : > { %p8496_p3 = pnand %p8495_p2, %p8489_p13 }
 0x6d3   : > { %v6627_v49 = vadd.f32 %v6626_v53, %v6625_v48 }
 0x6d5   : > { %v6628_v12 = vmul.f32 0.00390625, %v6627_v49 }
 0x6d7   : > { %8111 = vmatmul.mubr.msk.f32.vlgmr.msra.gmra.mrb[2].mxu0 %vm971_vm9, %v6628_v12 }
 0x6d8   : > { %8302 = vmatpush3.bf16.msra.mxu0 %v8301_v54  ;;  %8129 = vmatprep.mubr.msk.f32.mxu0 %vm8555_vm0, %v13510_v8 }
 0x6d9   : > { %8303 = vmatprep.subr.bf16.mxu0 %v13511_v18 }
 0x6dc   : > { %8305 = vmatpush3.bf16.msra.mxu0 %v8304_v19 }
 0x6dd   : > { %8306 = vmatprep.subr.bf16.mxu0 %v13511_v18 }
 0x6e0   : > { %8308 = vmatpush3.bf16.msra.mxu0 %v8307_v37 }
 0x6e1   : > { %8309 = vmatprep.subr.bf16.mxu0 %v13511_v18 }
 0x6e4   : > { %8311 = vmatpush3.bf16.msra.mxu0 %v8310_v56 }
 0x7aa   : > { %v6707_v7 = vpop.f32.mrb[2].mxu0 }
 0x7ab   : > { %v6708_v3 = vadd.f32 %v6707_v7, %v6637_v24  ;;  %v8112_v23 = vpop.f32.mrb[3].mxu0 }
 0x7ad   : > { %v6711_v61 = vmax.f32 %v6708_v3, 0.0 }
 0x7af   : > { %8130 = vmatmul.mubr.msk.f32.vlgmr.msra.gmra.mrb[4].mxu0 %vm971_vm9, %v6711_v61 }
 0x882   : > { %v6790_v52 = vpop.f32.mrb[4].mxu0 }
 0x883   : > { %v6791_v50 = vadd.f32 %v6790_v52, %v6720_v1  ;;  %v8131_v14 = vpop.f32.mrb[5].mxu0 }
 0x885   : > { %6795 = vst.msk [vmem:[%s467_s25] sm:$0x1] %vm6794_vm3, %v6791_v50 }
 0x886   : > { %8499 = shalt.err (!%p8496_p3)
}
 0x887   : > { %s8500_s0 = scalar_lea.hbm %s12848_s27, 16  ;;  %s8504_s25 = scalar_lea.hbm %s12904_s14, 32 }
 0x888   : > { %p8501_p4 = scmp.ne.s32.totalorder %s12848_s27, %s8500_s0  ;;  %p8505_p9 = scmp.lt.u32.totalorder %s12848_s27, %s12904_s14 }
 0x889   : > { %p8506_p10 = scmp.lt.u32.totalorder %s8504_s25, %s8500_s0  ;;  %p8508_p12 = scmp.lt.u32.totalorder %s8500_s0, %s12848_s27 }
 0x88a   : > { %p8502_p7 = pnand %p8501_p4, %p8670_p5 }
 0x88b   : > { %p8507_p11 = por %p8506_p10, %p8505_p9 }
 0x88c   : > { %p8503_p8 = pneg %p8502_p7 }
 0x88d   : > { %p8509_p13 = por %p8508_p12, %p8507_p11 }
 0x88f   : > { %p8510_p0 = pnand %p8509_p13, %p8503_p8 }
 0x891   : > { %8513 = shalt.err (!%p8510_p0)
}
 0x892   : > { %8434 = dma.vmem_to_hbm [thread:$0]  (%p8670_p5), %s12850_s2, 16, %s12848_s27, %s6802_s28  }
 0x893 PF: > { %p8440_p1 = scmp.ge.s32.totalorder %s8548_s16, 2  ;;  %s6837_s21 = sand.u32 1, %s8536_s29  }
 0x894   : > { %s6838_s17 = scalar_lea.sflag [#allocation5], %s6837_s21 }
 0x895   : > { %p8437_p2 = pnand %p8440_p1, %p8674_p6 }
 0x897   : > { %8531 = dma.done.wait (!%p8437_p2), %s6838_s17, 16  }
 0x898   : > { %8533 = vsyncadd (!%p8437_p2), %s6838_s17, 4294967280  ;;  %s13512_s26 = sld [smem:[#allocation7_spill]]  ;;  %p25_p3 = scmp.ge.s32.totalorder %s8657_s19, 4  }
 0x899   : > { %s13513_s29 = smov %s8540_s30  ;;  %s13514_s30 = smov %s8544_s15 }
 0x89a   : > { %s13516_s16 = smov %s8657_s19  ;;  %27 = sbr.rel (!%p25_p3) target bundleno = 8 (0x8), region = 123 }
 0x89e   : > { %s13515_s15 = smov %s13512_s26 }
 0x8a1   :  { %6842 = vsyncpa [#allocation5], 1 }
 0x8a2   :  { %6844 = vsyncpa [#allocation5 + $0x1], 1 }

</bundles_post_ra>
